<compile_context>
chip_gen: v7x
topology: tpu7x:2x2x1
jax: 0.10.0
libtpu: 0.0.40
codegen_flags: <defaults>
</compile_context>

<pallas_src>
import numpy as np

import jax
import jax.numpy as jnp
from jax import lax
from jax.experimental import pallas as pl
from jax.experimental.pallas import tpu as pltpu

# Board / network constants implied by the PyTorch module.
BOARD_PAWN_DIM = 9
BOARD_WALL_DIM = 8
HW = BOARD_PAWN_DIM * BOARD_PAWN_DIM            # 81 spatial positions
PAD = 16                                        # lane offset of the activation
PADDED_W = 112                                  # >= PAD + HW + 10 (max shift)

CONV1_DIM = 32
CONV2_DIM = 64
L1_IN = CONV2_DIM * HW                          # 5184
L1_DIM = 250
L2_ACTOR_DIM = 200
L3_CRITIC_DIM = 150
ACTOR_OUT = BOARD_WALL_DIM * BOARD_WALL_DIM * 2 + 12    # 140


# ------------------------------ fused kernel ---------------------------------
def _fused_forward_kernel(x_ref, mask_ref, w1_ref, b1_ref, w2_ref, b2_ref,
                          wl1_hbm, bl1_ref, wl2_ref, bl2_ref, wa_ref, ba_ref,
                          wl3_ref, bl3_ref, wc_ref, bc_ref,
                          actor_ref, critic_ref,
                          pad1_ref, pad2_ref, flat_ref, wl1_vmem, dma_sem):
    # Kick off the dominant l1-weight DMA first so it overlaps the conv work.
    l1_copy = pltpu.make_async_copy(wl1_hbm, wl1_vmem, dma_sem)
    l1_copy.start()

    m_left = mask_ref[0:1, :]      # (1, 81): neighbor x-1 valid (x >= 1)
    m_right = mask_ref[1:2, :]     # (1, 81): neighbor x+1 valid (x <= 7)

    def leaky_relu(z):
        return jnp.where(z > 0, z, 0.01 * z)

    def conv3x3(pad_ref, src, w_ref, bias, cout):
        """3x3 / stride-1 / pad-1 conv; activations laid out (Cin, H*W)."""
        pad_ref[...] = jnp.zeros_like(pad_ref)
        pad_ref[:, PAD:PAD + HW] = src                      # zero-padded copy
        acc = jnp.zeros((cout, HW), jnp.float32)
        k = 0
        for dy in (-1, 0, 1):
            for dx in (-1, 0, 1):
                off = dy * BOARD_PAWN_DIM + dx
                sh = pad_ref[:, PAD + off:PAD + off + HW]   # (Cin, 81)
                if dx == -1:
                    sh = sh * m_left       # kill column-wrapped reads
                elif dx == 1:
                    sh = sh * m_right
                wk = w_ref[k * cout:(k + 1) * cout, :]      # (Cout, Cin)
                acc = acc + jnp.dot(wk, sh,
                                    preferred_element_type=jnp.float32)
                k += 1
        return acc + bias                                   # bias: (Cout, 1)

    h1 = leaky_relu(conv3x3(pad1_ref, x_ref[...], w1_ref, b1_ref[...],
                            CONV1_DIM))                     # (32, 81)
    h2 = leaky_relu(conv3x3(pad2_ref, h1, w2_ref, b2_ref[...],
                            CONV2_DIM))                     # (64, 81)

    # torch.flatten(NCHW) order is c*81 + p == row-major (C, HW): lay h2 out as
    # one lane-dense (1, 5184) row in VMEM for the l1 matmul.
    for c in range(CONV2_DIM):
        flat_ref[0:1, c * HW:(c + 1) * HW] = h2[c:c + 1, :]
    flat = flat_ref[...]                                    # (1, 5184) f32

    l1_copy.wait()     # bf16 l1 weight now resident in VMEM
    y = jnp.dot(flat.astype(jnp.bfloat16), wl1_vmem[...],
                preferred_element_type=jnp.float32) + bl1_ref[...]
    y = jnp.maximum(y, 0.0)                                 # (1, 250)
    y = jnp.dot(y, wl2_ref[...],
                preferred_element_type=jnp.float32) + bl2_ref[...]
    y = jnp.maximum(y, 0.0)                                 # (1, 200)

    # Actor head: log_softmax over the 140 action logits.
    logits = jnp.dot(y, wa_ref[...],
                     preferred_element_type=jnp.float32) + ba_ref[...]
    m = jnp.max(logits, axis=-1, keepdims=True)
    e = jnp.exp(logits - m)
    actor_ref[...] = (logits - m) - jnp.log(jnp.sum(e, axis=-1, keepdims=True))

    # Critic head (detach() is a no-op in forward).
    c3 = jnp.dot(y, wl3_ref[...],
                 preferred_element_type=jnp.float32) + bl3_ref[...]
    c3 = jnp.maximum(c3, 0.0)                               # (1, 150)
    critic_ref[...] = jnp.tanh(
        jnp.dot(c3, wc_ref[...], preferred_element_type=jnp.float32)
        + bc_ref[...])


_VMEM_SPEC = pl.BlockSpec(memory_space=pltpu.MemorySpace.VMEM)
_HBM_SPEC = pl.BlockSpec(memory_space=pl.ANY)   # l1 weight: manual DMA


@jax.jit
def actor_critic_conv(x_nchw, kp):
    """Forward pass matching ActorCriticConv.forward (batch 1, NCHW input)."""
    x_chw_flat = x_nchw.reshape(3, HW).astype(jnp.float32)   # (C, H*W)

    actor, critic = pl.pallas_call(
        _fused_forward_kernel,
        out_shape=(jax.ShapeDtypeStruct((1, ACTOR_OUT), jnp.float32),
                   jax.ShapeDtypeStruct((1, 1), jnp.float32)),
        in_specs=[_VMEM_SPEC] * 6 + [_HBM_SPEC] + [_VMEM_SPEC] * 9,
        out_specs=(_VMEM_SPEC, _VMEM_SPEC),
        scratch_shapes=[
            pltpu.VMEM((3, PADDED_W), jnp.float32),           # conv1 pad buf
            pltpu.VMEM((CONV1_DIM, PADDED_W), jnp.float32),   # conv2 pad buf
            pltpu.VMEM((1, L1_IN), jnp.float32),              # flat activation
            pltpu.VMEM((L1_IN, L1_DIM), jnp.bfloat16),        # l1 weight buf
            pltpu.SemaphoreType.DMA,                          # l1 weight sem
        ],
        compiler_params=pltpu.CompilerParams(
            vmem_limit_bytes=16 * 1024 * 1024),
        cost_estimate=pl.CostEstimate(flops=6_000_000, transcendentals=256,
                                      bytes_accessed=3_400_000),
    )(x_chw_flat, kp["masks"], kp["w1"], kp["b1"], kp["w2"], kp["b2"],
      kp["wl1"], kp["bl1"], kp["wl2"], kp["bl2"], kp["wa"], kp["ba"],
      kp["wl3"], kp["bl3"], kp["wc"], kp["bc"])
    return actor.reshape(-1), critic.reshape(-1)


# ----------------------------- parameter prep --------------------------------
def init_params(key):
    """Deterministic synthetic parameters in native PyTorch layouts."""
    def uni(k, shape, fan_in):
        bound = 1.0 / jnp.sqrt(jnp.float32(fan_in))
        return jax.random.uniform(k, shape, jnp.float32, -bound, bound)

    ks = jax.random.split(key, 14)
    return {
        "conv1_w": uni(ks[0], (CONV1_DIM, 3, 3, 3), 3 * 9),
        "conv1_b": uni(ks[1], (CONV1_DIM,), 3 * 9),
        "conv2_w": uni(ks[2], (CONV2_DIM, CONV1_DIM, 3, 3), CONV1_DIM * 9),
        "conv2_b": uni(ks[3], (CONV2_DIM,), CONV1_DIM * 9),
        "l1_w": uni(ks[4], (L1_DIM, L1_IN), L1_IN),
        "l1_b": uni(ks[5], (L1_DIM,), L1_IN),
        "l2_w": uni(ks[6], (L2_ACTOR_DIM, L1_DIM), L1_DIM),
        "l2_b": uni(ks[7], (L2_ACTOR_DIM,), L1_DIM),
        "actor_w": uni(ks[8], (ACTOR_OUT, L2_ACTOR_DIM), L2_ACTOR_DIM),
        "actor_b": uni(ks[9], (ACTOR_OUT,), L2_ACTOR_DIM),
        "l3_w": uni(ks[10], (L3_CRITIC_DIM, L2_ACTOR_DIM), L2_ACTOR_DIM),
        "l3_b": uni(ks[11], (L3_CRITIC_DIM,), L2_ACTOR_DIM),
        "critic_w": uni(ks[12], (1, L3_CRITIC_DIM), L3_CRITIC_DIM),
        "critic_b": uni(ks[13], (1,), L3_CRITIC_DIM),
    }


def prepare_params(p):
    """One-time re-layout of PyTorch params into the kernel's matmul layouts."""
    def conv_prep(w):  # (Cout, Cin, 3, 3) -> (9*Cout, Cin), rows k*Cout + co
        cout, cin = w.shape[0], w.shape[1]
        return jnp.transpose(w, (2, 3, 0, 1)).reshape(9 * cout, cin)

    col = np.arange(HW) % BOARD_PAWN_DIM
    masks = np.stack([(col >= 1), (col <= BOARD_PAWN_DIM - 2)]).astype(np.float32)

    return {
        "masks": jnp.asarray(masks),                               # (2, 81)
        "w1": conv_prep(p["conv1_w"]), "b1": p["conv1_b"].reshape(-1, 1),
        "w2": conv_prep(p["conv2_w"]), "b2": p["conv2_b"].reshape(-1, 1),
        # l1 weight rows indexed c*81+p == torch.flatten order -> plain .T,
        # stored bf16 (accumulation stays f32 in-kernel).
        "wl1": p["l1_w"].T.astype(jnp.bfloat16),
        "bl1": p["l1_b"].reshape(1, -1),
        "wl2": p["l2_w"].T, "bl2": p["l2_b"].reshape(1, -1),
        "wa": p["actor_w"].T, "ba": p["actor_b"].reshape(1, -1),
        "wl3": p["l3_w"].T, "bl3": p["l3_b"].reshape(1, -1),
        "wc": p["critic_w"].T, "bc": p["critic_b"].reshape(1, -1),
    }


# ------------------------------ pure-JAX reference ---------------------------
def _reference_forward(x_nchw, p):
    def conv(h, w, b):
        out = lax.conv_general_dilated(
            h, w, window_strides=(1, 1), padding=((1, 1), (1, 1)),
            dimension_numbers=("NCHW", "OIHW", "NCHW"))
        return out + b[None, :, None, None]

    def leaky(z):
        return jnp.where(z > 0, z, 0.01 * z)

    h = leaky(conv(x_nchw, p["conv1_w"], p["conv1_b"]))
    h = leaky(conv(h, p["conv2_w"], p["conv2_b"]))
    flat = h.reshape(-1)                                    # (C, H, W) order
    y = jax.nn.relu(p["l1_w"] @ flat + p["l1_b"])
    y = jax.nn.relu(p["l2_w"] @ y + p["l2_b"])
    actor = jax.nn.log_softmax(p["actor_w"] @ y + p["actor_b"])
    c = jax.nn.relu(p["l3_w"] @ y + p["l3_b"])
    critic = jnp.tanh(p["critic_w"] @ c + p["critic_b"])
    return actor, critic


# ------------------------------------ main ------------------------------------
if __name__ == "__main__":
    key = jax.random.PRNGKey(0)
    pkey, xkey = jax.random.split(key)
    params = init_params(pkey)
    kparams = prepare_params(params)

    # Single 3-channel 9x9 board plane stack, NCHW like the PyTorch module.
    x = jax.random.normal(xkey, (1, 3, BOARD_PAWN_DIM, BOARD_PAWN_DIM),
                          jnp.float32)

    actor, critic = actor_critic_conv(x, kparams)
    jax.block_until_ready((actor, critic))

    assert actor.shape == (ACTOR_OUT,) and critic.shape == (1,)
    assert bool(jnp.isfinite(actor).all()) and bool(jnp.isfinite(critic).all())

    # Numerical check against a pure-JAX reference (loose tolerance: the l1
    # weight is intentionally stored in bf16).
    a_ref, c_ref = _reference_forward(x, params)
    assert bool(jnp.allclose(actor, a_ref, rtol=5e-2, atol=5e-2)), "actor mismatch"
    assert bool(jnp.allclose(critic, c_ref, rtol=5e-2, atol=5e-2)), "critic mismatch"

    print("KERNEL_OK")
</pallas_src>

<mosaic_0001>
module attributes {stable_mosaic.version = 11 : i64} {
  func.func @_fused_forward_kernel(%arg0: memref<3x81xf32, #tpu.memory_space<vmem>>, %arg1: memref<2x81xf32, #tpu.memory_space<vmem>>, %arg2: memref<288x3xf32, #tpu.memory_space<vmem>>, %arg3: memref<32x1xf32, #tpu.memory_space<vmem>>, %arg4: memref<576x32xf32, #tpu.memory_space<vmem>>, %arg5: memref<64x1xf32, #tpu.memory_space<vmem>>, %arg6: memref<5184x250xbf16, #tpu.memory_space<any>>, %arg7: memref<1x250xf32, #tpu.memory_space<vmem>>, %arg8: memref<250x200xf32, #tpu.memory_space<vmem>>, %arg9: memref<1x200xf32, #tpu.memory_space<vmem>>, %arg10: memref<200x140xf32, #tpu.memory_space<vmem>>, %arg11: memref<1x140xf32, #tpu.memory_space<vmem>>, %arg12: memref<200x150xf32, #tpu.memory_space<vmem>>, %arg13: memref<1x150xf32, #tpu.memory_space<vmem>>, %arg14: memref<150x1xf32, #tpu.memory_space<vmem>>, %arg15: memref<1x1xf32, #tpu.memory_space<vmem>>, %arg16: memref<1x140xf32, #tpu.memory_space<vmem>>, %arg17: memref<1x1xf32, #tpu.memory_space<vmem>>, %arg18: memref<3x112xf32, #tpu.memory_space<vmem>>, %arg19: memref<32x112xf32, #tpu.memory_space<vmem>>, %arg20: memref<1x5184xf32, #tpu.memory_space<vmem>>, %arg21: memref<5184x250xbf16, #tpu.memory_space<vmem>>, %arg22: memref<!tpu.dma_semaphore, #tpu.memory_space<semaphore_mem>>) attributes {dimension_semantics = [], scalar_prefetch = 0 : i64, scratch_operands = 5 : i64, tpu.core_type = #tpu.core_type<tc>} {
    tpu.enqueue_dma source(%arg6 : memref<5184x250xbf16, #tpu.memory_space<any>>) target(%arg21 : memref<5184x250xbf16, #tpu.memory_space<vmem>>) target_semaphore(%arg22 : memref<!tpu.dma_semaphore, #tpu.memory_space<semaphore_mem>>)
    %c0 = arith.constant 0 : index
    %c0_0 = arith.constant 0 : index
    %0 = vector.load %arg1[%c0, %c0_0] : memref<2x81xf32, #tpu.memory_space<vmem>>, vector<1x81xf32>
    %c1 = arith.constant 1 : index
    %c0_1 = arith.constant 0 : index
    %1 = vector.load %arg1[%c1, %c0_1] : memref<2x81xf32, #tpu.memory_space<vmem>>, vector<1x81xf32>
    %c0_2 = arith.constant 0 : index
    %c0_3 = arith.constant 0 : index
    %2 = vector.load %arg0[%c0_2, %c0_3] : memref<3x81xf32, #tpu.memory_space<vmem>>, vector<3x81xf32>
    %c0_4 = arith.constant 0 : index
    %c0_5 = arith.constant 0 : index
    %3 = vector.load %arg3[%c0_4, %c0_5] : memref<32x1xf32, #tpu.memory_space<vmem>>, vector<32x1xf32>
    %cst = arith.constant 0.000000e+00 : f32
    %4 = vector.broadcast %cst : f32 to vector<3x112xf32>
    %c0_6 = arith.constant 0 : index
    %c0_7 = arith.constant 0 : index
    %5 = vector.load %arg18[%c0_6, %c0_7] : memref<3x112xf32, #tpu.memory_space<vmem>>, vector<3x112xf32>
    tpu.vector_store %arg18[%c0_6, %c0_7], %4 {strides = array<i32>} : memref<3x112xf32, #tpu.memory_space<vmem>>, vector<3x112xf32>,
    %c0_8 = arith.constant 0 : index
    %c16 = arith.constant 16 : index
    %6 = vector.load %arg18[%c0_8, %c16] : memref<3x112xf32, #tpu.memory_space<vmem>>, vector<3x81xf32>
    tpu.vector_store %arg18[%c0_8, %c16], %2 {strides = array<i32>} : memref<3x112xf32, #tpu.memory_space<vmem>>, vector<3x81xf32>,
    %cst_9 = arith.constant 0.000000e+00 : f32
    %7 = vector.broadcast %cst_9 : f32 to vector<32x81xf32>
    %c0_10 = arith.constant 0 : index
    %c6 = arith.constant 6 : index
    %8 = vector.load %arg18[%c0_10, %c6] : memref<3x112xf32, #tpu.memory_space<vmem>>, vector<3x81xf32>
    %9 = vector.broadcast %0 : vector<1x81xf32> to vector<3x81xf32>
    %10 = arith.mulf %8, %9 : vector<3x81xf32>
    %c0_11 = arith.constant 0 : index
    %c0_12 = arith.constant 0 : index
    %11 = vector.load %arg2[%c0_11, %c0_12] : memref<288x3xf32, #tpu.memory_space<vmem>>, vector<32x3xf32>
    %cst_13 = arith.constant dense<0.000000e+00> : vector<32x81xf32>
    %12 = tpu.matmul %11, %10, %cst_13 {dimension_numbers = #tpu.dot_dimension_numbers<[1], [0], [0], [1], [0, 0, 1, 1], [], []>} : vector<32x3xf32>, vector<3x81xf32>, vector<32x81xf32> -> vector<32x81xf32>
    %13 = arith.addf %7, %12 : vector<32x81xf32>
    %c0_14 = arith.constant 0 : index
    %c7 = arith.constant 7 : index
    %14 = vector.load %arg18[%c0_14, %c7] : memref<3x112xf32, #tpu.memory_space<vmem>>, vector<3x81xf32>
    %c32 = arith.constant 32 : index
    %c0_15 = arith.constant 0 : index
    %15 = vector.load %arg2[%c32, %c0_15] : memref<288x3xf32, #tpu.memory_space<vmem>>, vector<32x3xf32>
    %cst_16 = arith.constant dense<0.000000e+00> : vector<32x81xf32>
    %16 = tpu.matmul %15, %14, %cst_16 {dimension_numbers = #tpu.dot_dimension_numbers<[1], [0], [0], [1], [0, 0, 1, 1], [], []>} : vector<32x3xf32>, vector<3x81xf32>, vector<32x81xf32> -> vector<32x81xf32>
    %17 = arith.addf %13, %16 : vector<32x81xf32>
    %c0_17 = arith.constant 0 : index
    %c8 = arith.constant 8 : index
    %18 = vector.load %arg18[%c0_17, %c8] : memref<3x112xf32, #tpu.memory_space<vmem>>, vector<3x81xf32>
    %19 = vector.broadcast %1 : vector<1x81xf32> to vector<3x81xf32>
    %20 = arith.mulf %18, %19 : vector<3x81xf32>
    %c64 = arith.constant 64 : index
    %c0_18 = arith.constant 0 : index
    %21 = vector.load %arg2[%c64, %c0_18] : memref<288x3xf32, #tpu.memory_space<vmem>>, vector<32x3xf32>
    %cst_19 = arith.constant dense<0.000000e+00> : vector<32x81xf32>
    %22 = tpu.matmul %21, %20, %cst_19 {dimension_numbers = #tpu.dot_dimension_numbers<[1], [0], [0], [1], [0, 0, 1, 1], [], []>} : vector<32x3xf32>, vector<3x81xf32>, vector<32x81xf32> -> vector<32x81xf32>
    %23 = arith.addf %17, %22 : vector<32x81xf32>
    %c0_20 = arith.constant 0 : index
    %c15 = arith.constant 15 : index
    %24 = vector.load %arg18[%c0_20, %c15] : memref<3x112xf32, #tpu.memory_space<vmem>>, vector<3x81xf32>
    %25 = vector.broadcast %0 : vector<1x81xf32> to vector<3x81xf32>
    %26 = arith.mulf %24, %25 : vector<3x81xf32>
    %c96 = arith.constant 96 : index
    %c0_21 = arith.constant 0 : index
    %27 = vector.load %arg2[%c96, %c0_21] : memref<288x3xf32, #tpu.memory_space<vmem>>, vector<32x3xf32>
    %cst_22 = arith.constant dense<0.000000e+00> : vector<32x81xf32>
    %28 = tpu.matmul %27, %26, %cst_22 {dimension_numbers = #tpu.dot_dimension_numbers<[1], [0], [0], [1], [0, 0, 1, 1], [], []>} : vector<32x3xf32>, vector<3x81xf32>, vector<32x81xf32> -> vector<32x81xf32>
    %29 = arith.addf %23, %28 : vector<32x81xf32>
    %c0_23 = arith.constant 0 : index
    %c16_24 = arith.constant 16 : index
    %30 = vector.load %arg18[%c0_23, %c16_24] : memref<3x112xf32, #tpu.memory_space<vmem>>, vector<3x81xf32>
    %c128 = arith.constant 128 : index
    %c0_25 = arith.constant 0 : index
    %31 = vector.load %arg2[%c128, %c0_25] : memref<288x3xf32, #tpu.memory_space<vmem>>, vector<32x3xf32>
    %cst_26 = arith.constant dense<0.000000e+00> : vector<32x81xf32>
    %32 = tpu.matmul %31, %30, %cst_26 {dimension_numbers = #tpu.dot_dimension_numbers<[1], [0], [0], [1], [0, 0, 1, 1], [], []>} : vector<32x3xf32>, vector<3x81xf32>, vector<32x81xf32> -> vector<32x81xf32>
    %33 = arith.addf %29, %32 : vector<32x81xf32>
    %c0_27 = arith.constant 0 : index
    %c17 = arith.constant 17 : index
    %34 = vector.load %arg18[%c0_27, %c17] : memref<3x112xf32, #tpu.memory_space<vmem>>, vector<3x81xf32>
    %35 = vector.broadcast %1 : vector<1x81xf32> to vector<3x81xf32>
    %36 = arith.mulf %34, %35 : vector<3x81xf32>
    %c160 = arith.constant 160 : index
    %c0_28 = arith.constant 0 : index
    %37 = vector.load %arg2[%c160, %c0_28] : memref<288x3xf32, #tpu.memory_space<vmem>>, vector<32x3xf32>
    %cst_29 = arith.constant dense<0.000000e+00> : vector<32x81xf32>
    %38 = tpu.matmul %37, %36, %cst_29 {dimension_numbers = #tpu.dot_dimension_numbers<[1], [0], [0], [1], [0, 0, 1, 1], [], []>} : vector<32x3xf32>, vector<3x81xf32>, vector<32x81xf32> -> vector<32x81xf32>
    %39 = arith.addf %33, %38 : vector<32x81xf32>
    %c0_30 = arith.constant 0 : index
    %c24 = arith.constant 24 : index
    %40 = vector.load %arg18[%c0_30, %c24] : memref<3x112xf32, #tpu.memory_space<vmem>>, vector<3x81xf32>
    %41 = vector.broadcast %0 : vector<1x81xf32> to vector<3x81xf32>
    %42 = arith.mulf %40, %41 : vector<3x81xf32>
    %c192 = arith.constant 192 : index
    %c0_31 = arith.constant 0 : index
    %43 = vector.load %arg2[%c192, %c0_31] : memref<288x3xf32, #tpu.memory_space<vmem>>, vector<32x3xf32>
    %cst_32 = arith.constant dense<0.000000e+00> : vector<32x81xf32>
    %44 = tpu.matmul %43, %42, %cst_32 {dimension_numbers = #tpu.dot_dimension_numbers<[1], [0], [0], [1], [0, 0, 1, 1], [], []>} : vector<32x3xf32>, vector<3x81xf32>, vector<32x81xf32> -> vector<32x81xf32>
    %45 = arith.addf %39, %44 : vector<32x81xf32>
    %c0_33 = arith.constant 0 : index
    %c25 = arith.constant 25 : index
    %46 = vector.load %arg18[%c0_33, %c25] : memref<3x112xf32, #tpu.memory_space<vmem>>, vector<3x81xf32>
    %c224 = arith.constant 224 : index
    %c0_34 = arith.constant 0 : index
    %47 = vector.load %arg2[%c224, %c0_34] : memref<288x3xf32, #tpu.memory_space<vmem>>, vector<32x3xf32>
    %cst_35 = arith.constant dense<0.000000e+00> : vector<32x81xf32>
    %48 = tpu.matmul %47, %46, %cst_35 {dimension_numbers = #tpu.dot_dimension_numbers<[1], [0], [0], [1], [0, 0, 1, 1], [], []>} : vector<32x3xf32>, vector<3x81xf32>, vector<32x81xf32> -> vector<32x81xf32>
    %49 = arith.addf %45, %48 : vector<32x81xf32>
    %c0_36 = arith.constant 0 : index
    %c26 = arith.constant 26 : index
    %50 = vector.load %arg18[%c0_36, %c26] : memref<3x112xf32, #tpu.memory_space<vmem>>, vector<3x81xf32>
    %51 = vector.broadcast %1 : vector<1x81xf32> to vector<3x81xf32>
    %52 = arith.mulf %50, %51 : vector<3x81xf32>
    %c256 = arith.constant 256 : index
    %c0_37 = arith.constant 0 : index
    %53 = vector.load %arg2[%c256, %c0_37] : memref<288x3xf32, #tpu.memory_space<vmem>>, vector<32x3xf32>
    %cst_38 = arith.constant dense<0.000000e+00> : vector<32x81xf32>
    %54 = tpu.matmul %53, %52, %cst_38 {dimension_numbers = #tpu.dot_dimension_numbers<[1], [0], [0], [1], [0, 0, 1, 1], [], []>} : vector<32x3xf32>, vector<3x81xf32>, vector<32x81xf32> -> vector<32x81xf32>
    %55 = arith.addf %49, %54 : vector<32x81xf32>
    %56 = vector.broadcast %3 : vector<32x1xf32> to vector<32x81xf32>
    %57 = arith.addf %55, %56 : vector<32x81xf32>
    %cst_39 = arith.constant 0.000000e+00 : f32
    %58 = vector.broadcast %cst_39 : f32 to vector<32x81xf32>
    %59 = arith.cmpf ogt, %57, %58 : vector<32x81xf32>
    %cst_40 = arith.constant 0.00999999977 : f32
    %60 = vector.broadcast %cst_40 : f32 to vector<32x81xf32>
    %61 = arith.mulf %60, %57 : vector<32x81xf32>
    %62 = arith.select %59, %57, %61 : vector<32x81xi1>, vector<32x81xf32>
    %c0_41 = arith.constant 0 : index
    %c0_42 = arith.constant 0 : index
    %63 = vector.load %arg5[%c0_41, %c0_42] : memref<64x1xf32, #tpu.memory_space<vmem>>, vector<64x1xf32>
    %cst_43 = arith.constant 0.000000e+00 : f32
    %64 = vector.broadcast %cst_43 : f32 to vector<32x112xf32>
    %c0_44 = arith.constant 0 : index
    %c0_45 = arith.constant 0 : index
    %65 = vector.load %arg19[%c0_44, %c0_45] : memref<32x112xf32, #tpu.memory_space<vmem>>, vector<32x112xf32>
    tpu.vector_store %arg19[%c0_44, %c0_45], %64 {strides = array<i32>} : memref<32x112xf32, #tpu.memory_space<vmem>>, vector<32x112xf32>,
    %c0_46 = arith.constant 0 : index
    %c16_47 = arith.constant 16 : index
    %66 = vector.load %arg19[%c0_46, %c16_47] : memref<32x112xf32, #tpu.memory_space<vmem>>, vector<32x81xf32>
    tpu.vector_store %arg19[%c0_46, %c16_47], %62 {strides = array<i32>} : memref<32x112xf32, #tpu.memory_space<vmem>>, vector<32x81xf32>,
    %cst_48 = arith.constant 0.000000e+00 : f32
    %67 = vector.broadcast %cst_48 : f32 to vector<64x81xf32>
    %c0_49 = arith.constant 0 : index
    %c6_50 = arith.constant 6 : index
    %68 = vector.load %arg19[%c0_49, %c6_50] : memref<32x112xf32, #tpu.memory_space<vmem>>, vector<32x81xf32>
    %69 = vector.broadcast %0 : vector<1x81xf32> to vector<32x81xf32>
    %70 = arith.mulf %68, %69 : vector<32x81xf32>
    %c0_51 = arith.constant 0 : index
    %c0_52 = arith.constant 0 : index
    %71 = vector.load %arg4[%c0_51, %c0_52] : memref<576x32xf32, #tpu.memory_space<vmem>>, vector<64x32xf32>
    %cst_53 = arith.constant dense<0.000000e+00> : vector<64x81xf32>
    %72 = tpu.matmul %71, %70, %cst_53 {dimension_numbers = #tpu.dot_dimension_numbers<[1], [0], [0], [1], [0, 0, 1, 1], [], []>} : vector<64x32xf32>, vector<32x81xf32>, vector<64x81xf32> -> vector<64x81xf32>
    %73 = arith.addf %67, %72 : vector<64x81xf32>
    %c0_54 = arith.constant 0 : index
    %c7_55 = arith.constant 7 : index
    %74 = vector.load %arg19[%c0_54, %c7_55] : memref<32x112xf32, #tpu.memory_space<vmem>>, vector<32x81xf32>
    %c64_56 = arith.constant 64 : index
    %c0_57 = arith.constant 0 : index
    %75 = vector.load %arg4[%c64_56, %c0_57] : memref<576x32xf32, #tpu.memory_space<vmem>>, vector<64x32xf32>
    %cst_58 = arith.constant dense<0.000000e+00> : vector<64x81xf32>
    %76 = tpu.matmul %75, %74, %cst_58 {dimension_numbers = #tpu.dot_dimension_numbers<[1], [0], [0], [1], [0, 0, 1, 1], [], []>} : vector<64x32xf32>, vector<32x81xf32>, vector<64x81xf32> -> vector<64x81xf32>
    %77 = arith.addf %73, %76 : vector<64x81xf32>
    %c0_59 = arith.constant 0 : index
    %c8_60 = arith.constant 8 : index
    %78 = vector.load %arg19[%c0_59, %c8_60] : memref<32x112xf32, #tpu.memory_space<vmem>>, vector<32x81xf32>
    %79 = vector.broadcast %1 : vector<1x81xf32> to vector<32x81xf32>
    %80 = arith.mulf %78, %79 : vector<32x81xf32>
    %c128_61 = arith.constant 128 : index
    %c0_62 = arith.constant 0 : index
    %81 = vector.load %arg4[%c128_61, %c0_62] : memref<576x32xf32, #tpu.memory_space<vmem>>, vector<64x32xf32>
    %cst_63 = arith.constant dense<0.000000e+00> : vector<64x81xf32>
    %82 = tpu.matmul %81, %80, %cst_63 {dimension_numbers = #tpu.dot_dimension_numbers<[1], [0], [0], [1], [0, 0, 1, 1], [], []>} : vector<64x32xf32>, vector<32x81xf32>, vector<64x81xf32> -> vector<64x81xf32>
    %83 = arith.addf %77, %82 : vector<64x81xf32>
    %c0_64 = arith.constant 0 : index
    %c15_65 = arith.constant 15 : index
    %84 = vector.load %arg19[%c0_64, %c15_65] : memref<32x112xf32, #tpu.memory_space<vmem>>, vector<32x81xf32>
    %85 = vector.broadcast %0 : vector<1x81xf32> to vector<32x81xf32>
    %86 = arith.mulf %84, %85 : vector<32x81xf32>
    %c192_66 = arith.constant 192 : index
    %c0_67 = arith.constant 0 : index
    %87 = vector.load %arg4[%c192_66, %c0_67] : memref<576x32xf32, #tpu.memory_space<vmem>>, vector<64x32xf32>
    %cst_68 = arith.constant dense<0.000000e+00> : vector<64x81xf32>
    %88 = tpu.matmul %87, %86, %cst_68 {dimension_numbers = #tpu.dot_dimension_numbers<[1], [0], [0], [1], [0, 0, 1, 1], [], []>} : vector<64x32xf32>, vector<32x81xf32>, vector<64x81xf32> -> vector<64x81xf32>
    %89 = arith.addf %83, %88 : vector<64x81xf32>
    %c0_69 = arith.constant 0 : index
    %c16_70 = arith.constant 16 : index
    %90 = vector.load %arg19[%c0_69, %c16_70] : memref<32x112xf32, #tpu.memory_space<vmem>>, vector<32x81xf32>
    %c256_71 = arith.constant 256 : index
    %c0_72 = arith.constant 0 : index
    %91 = vector.load %arg4[%c256_71, %c0_72] : memref<576x32xf32, #tpu.memory_space<vmem>>, vector<64x32xf32>
    %cst_73 = arith.constant dense<0.000000e+00> : vector<64x81xf32>
    %92 = tpu.matmul %91, %90, %cst_73 {dimension_numbers = #tpu.dot_dimension_numbers<[1], [0], [0], [1], [0, 0, 1, 1], [], []>} : vector<64x32xf32>, vector<32x81xf32>, vector<64x81xf32> -> vector<64x81xf32>
    %93 = arith.addf %89, %92 : vector<64x81xf32>
    %c0_74 = arith.constant 0 : index
    %c17_75 = arith.constant 17 : index
    %94 = vector.load %arg19[%c0_74, %c17_75] : memref<32x112xf32, #tpu.memory_space<vmem>>, vector<32x81xf32>
    %95 = vector.broadcast %1 : vector<1x81xf32> to vector<32x81xf32>
    %96 = arith.mulf %94, %95 : vector<32x81xf32>
    %c320 = arith.constant 320 : index
    %c0_76 = arith.constant 0 : index
    %97 = vector.load %arg4[%c320, %c0_76] : memref<576x32xf32, #tpu.memory_space<vmem>>, vector<64x32xf32>
    %cst_77 = arith.constant dense<0.000000e+00> : vector<64x81xf32>
    %98 = tpu.matmul %97, %96, %cst_77 {dimension_numbers = #tpu.dot_dimension_numbers<[1], [0], [0], [1], [0, 0, 1, 1], [], []>} : vector<64x32xf32>, vector<32x81xf32>, vector<64x81xf32> -> vector<64x81xf32>
    %99 = arith.addf %93, %98 : vector<64x81xf32>
    %c0_78 = arith.constant 0 : index
    %c24_79 = arith.constant 24 : index
    %100 = vector.load %arg19[%c0_78, %c24_79] : memref<32x112xf32, #tpu.memory_space<vmem>>, vector<32x81xf32>
    %101 = vector.broadcast %0 : vector<1x81xf32> to vector<32x81xf32>
    %102 = arith.mulf %100, %101 : vector<32x81xf32>
    %c384 = arith.constant 384 : index
    %c0_80 = arith.constant 0 : index
    %103 = vector.load %arg4[%c384, %c0_80] : memref<576x32xf32, #tpu.memory_space<vmem>>, vector<64x32xf32>
    %cst_81 = arith.constant dense<0.000000e+00> : vector<64x81xf32>
    %104 = tpu.matmul %103, %102, %cst_81 {dimension_numbers = #tpu.dot_dimension_numbers<[1], [0], [0], [1], [0, 0, 1, 1], [], []>} : vector<64x32xf32>, vector<32x81xf32>, vector<64x81xf32> -> vector<64x81xf32>
    %105 = arith.addf %99, %104 : vector<64x81xf32>
    %c0_82 = arith.constant 0 : index
    %c25_83 = arith.constant 25 : index
    %106 = vector.load %arg19[%c0_82, %c25_83] : memref<32x112xf32, #tpu.memory_space<vmem>>, vector<32x81xf32>
    %c448 = arith.constant 448 : index
    %c0_84 = arith.constant 0 : index
    %107 = vector.load %arg4[%c448, %c0_84] : memref<576x32xf32, #tpu.memory_space<vmem>>, vector<64x32xf32>
    %cst_85 = arith.constant dense<0.000000e+00> : vector<64x81xf32>
    %108 = tpu.matmul %107, %106, %cst_85 {dimension_numbers = #tpu.dot_dimension_numbers<[1], [0], [0], [1], [0, 0, 1, 1], [], []>} : vector<64x32xf32>, vector<32x81xf32>, vector<64x81xf32> -> vector<64x81xf32>
    %109 = arith.addf %105, %108 : vector<64x81xf32>
    %c0_86 = arith.constant 0 : index
    %c26_87 = arith.constant 26 : index
    %110 = vector.load %arg19[%c0_86, %c26_87] : memref<32x112xf32, #tpu.memory_space<vmem>>, vector<32x81xf32>
    %111 = vector.broadcast %1 : vector<1x81xf32> to vector<32x81xf32>
    %112 = arith.mulf %110, %111 : vector<32x81xf32>
    %c512 = arith.constant 512 : index
    %c0_88 = arith.constant 0 : index
    %113 = vector.load %arg4[%c512, %c0_88] : memref<576x32xf32, #tpu.memory_space<vmem>>, vector<64x32xf32>
    %cst_89 = arith.constant dense<0.000000e+00> : vector<64x81xf32>
    %114 = tpu.matmul %113, %112, %cst_89 {dimension_numbers = #tpu.dot_dimension_numbers<[1], [0], [0], [1], [0, 0, 1, 1], [], []>} : vector<64x32xf32>, vector<32x81xf32>, vector<64x81xf32> -> vector<64x81xf32>
    %115 = arith.addf %109, %114 : vector<64x81xf32>
    %116 = vector.broadcast %63 : vector<64x1xf32> to vector<64x81xf32>
    %117 = arith.addf %115, %116 : vector<64x81xf32>
    %cst_90 = arith.constant 0.000000e+00 : f32
    %118 = vector.broadcast %cst_90 : f32 to vector<64x81xf32>
    %119 = arith.cmpf ogt, %117, %118 : vector<64x81xf32>
    %cst_91 = arith.constant 0.00999999977 : f32
    %120 = vector.broadcast %cst_91 : f32 to vector<64x81xf32>
    %121 = arith.mulf %120, %117 : vector<64x81xf32>
    %122 = arith.select %119, %117, %121 : vector<64x81xi1>, vector<64x81xf32>
    %123 = vector.extract_strided_slice %122 {offsets = [0, 0], sizes = [1, 81], strides = [1, 1]} : vector<64x81xf32> to vector<1x81xf32>
    %c0_92 = arith.constant 0 : index
    %c0_93 = arith.constant 0 : index
    %124 = vector.load %arg20[%c0_92, %c0_93] : memref<1x5184xf32, #tpu.memory_space<vmem>>, vector<1x81xf32>
    tpu.vector_store %arg20[%c0_92, %c0_93], %123 {strides = array<i32>} : memref<1x5184xf32, #tpu.memory_space<vmem>>, vector<1x81xf32>,
    %125 = vector.extract_strided_slice %122 {offsets = [1, 0], sizes = [1, 81], strides = [1, 1]} : vector<64x81xf32> to vector<1x81xf32>
    %c0_94 = arith.constant 0 : index
    %c81 = arith.constant 81 : index
    %126 = vector.load %arg20[%c0_94, %c81] : memref<1x5184xf32, #tpu.memory_space<vmem>>, vector<1x81xf32>
    tpu.vector_store %arg20[%c0_94, %c81], %125 {strides = array<i32>} : memref<1x5184xf32, #tpu.memory_space<vmem>>, vector<1x81xf32>,
    %127 = vector.extract_strided_slice %122 {offsets = [2, 0], sizes = [1, 81], strides = [1, 1]} : vector<64x81xf32> to vector<1x81xf32>
    %c0_95 = arith.constant 0 : index
    %c162 = arith.constant 162 : index
    %128 = vector.load %arg20[%c0_95, %c162] : memref<1x5184xf32, #tpu.memory_space<vmem>>, vector<1x81xf32>
    tpu.vector_store %arg20[%c0_95, %c162], %127 {strides = array<i32>} : memref<1x5184xf32, #tpu.memory_space<vmem>>, vector<1x81xf32>,
    %129 = vector.extract_strided_slice %122 {offsets = [3, 0], sizes = [1, 81], strides = [1, 1]} : vector<64x81xf32> to vector<1x81xf32>
    %c0_96 = arith.constant 0 : index
    %c243 = arith.constant 243 : index
    %130 = vector.load %arg20[%c0_96, %c243] : memref<1x5184xf32, #tpu.memory_space<vmem>>, vector<1x81xf32>
    tpu.vector_store %arg20[%c0_96, %c243], %129 {strides = array<i32>} : memref<1x5184xf32, #tpu.memory_space<vmem>>, vector<1x81xf32>,
    %131 = vector.extract_strided_slice %122 {offsets = [4, 0], sizes = [1, 81], strides = [1, 1]} : vector<64x81xf32> to vector<1x81xf32>
    %c0_97 = arith.constant 0 : index
    %c324 = arith.constant 324 : index
    %132 = vector.load %arg20[%c0_97, %c324] : memref<1x5184xf32, #tpu.memory_space<vmem>>, vector<1x81xf32>
    tpu.vector_store %arg20[%c0_97, %c324], %131 {strides = array<i32>} : memref<1x5184xf32, #tpu.memory_space<vmem>>, vector<1x81xf32>,
    %133 = vector.extract_strided_slice %122 {offsets = [5, 0], sizes = [1, 81], strides = [1, 1]} : vector<64x81xf32> to vector<1x81xf32>
    %c0_98 = arith.constant 0 : index
    %c405 = arith.constant 405 : index
    %134 = vector.load %arg20[%c0_98, %c405] : memref<1x5184xf32, #tpu.memory_space<vmem>>, vector<1x81xf32>
    tpu.vector_store %arg20[%c0_98, %c405], %133 {strides = array<i32>} : memref<1x5184xf32, #tpu.memory_space<vmem>>, vector<1x81xf32>,
    %135 = vector.extract_strided_slice %122 {offsets = [6, 0], sizes = [1, 81], strides = [1, 1]} : vector<64x81xf32> to vector<1x81xf32>
    %c0_99 = arith.constant 0 : index
    %c486 = arith.constant 486 : index
    %136 = vector.load %arg20[%c0_99, %c486] : memref<1x5184xf32, #tpu.memory_space<vmem>>, vector<1x81xf32>
    tpu.vector_store %arg20[%c0_99, %c486], %135 {strides = array<i32>} : memref<1x5184xf32, #tpu.memory_space<vmem>>, vector<1x81xf32>,
    %137 = vector.extract_strided_slice %122 {offsets = [7, 0], sizes = [1, 81], strides = [1, 1]} : vector<64x81xf32> to vector<1x81xf32>
    %c0_100 = arith.constant 0 : index
    %c567 = arith.constant 567 : index
    %138 = vector.load %arg20[%c0_100, %c567] : memref<1x5184xf32, #tpu.memory_space<vmem>>, vector<1x81xf32>
    tpu.vector_store %arg20[%c0_100, %c567], %137 {strides = array<i32>} : memref<1x5184xf32, #tpu.memory_space<vmem>>, vector<1x81xf32>,
    %139 = vector.extract_strided_slice %122 {offsets = [8, 0], sizes = [1, 81], strides = [1, 1]} : vector<64x81xf32> to vector<1x81xf32>
    %c0_101 = arith.constant 0 : index
    %c648 = arith.constant 648 : index
    %140 = vector.load %arg20[%c0_101, %c648] : memref<1x5184xf32, #tpu.memory_space<vmem>>, vector<1x81xf32>
    tpu.vector_store %arg20[%c0_101, %c648], %139 {strides = array<i32>} : memref<1x5184xf32, #tpu.memory_space<vmem>>, vector<1x81xf32>,
    %141 = vector.extract_strided_slice %122 {offsets = [9, 0], sizes = [1, 81], strides = [1, 1]} : vector<64x81xf32> to vector<1x81xf32>
    %c0_102 = arith.constant 0 : index
    %c729 = arith.constant 729 : index
    %142 = vector.load %arg20[%c0_102, %c729] : memref<1x5184xf32, #tpu.memory_space<vmem>>, vector<1x81xf32>
    tpu.vector_store %arg20[%c0_102, %c729], %141 {strides = array<i32>} : memref<1x5184xf32, #tpu.memory_space<vmem>>, vector<1x81xf32>,
    %143 = vector.extract_strided_slice %122 {offsets = [10, 0], sizes = [1, 81], strides = [1, 1]} : vector<64x81xf32> to vector<1x81xf32>
    %c0_103 = arith.constant 0 : index
    %c810 = arith.constant 810 : index
    %144 = vector.load %arg20[%c0_103, %c810] : memref<1x5184xf32, #tpu.memory_space<vmem>>, vector<1x81xf32>
    tpu.vector_store %arg20[%c0_103, %c810], %143 {strides = array<i32>} : memref<1x5184xf32, #tpu.memory_space<vmem>>, vector<1x81xf32>,
    %145 = vector.extract_strided_slice %122 {offsets = [11, 0], sizes = [1, 81], strides = [1, 1]} : vector<64x81xf32> to vector<1x81xf32>
    %c0_104 = arith.constant 0 : index
    %c891 = arith.constant 891 : index
    %146 = vector.load %arg20[%c0_104, %c891] : memref<1x5184xf32, #tpu.memory_space<vmem>>, vector<1x81xf32>
    tpu.vector_store %arg20[%c0_104, %c891], %145 {strides = array<i32>} : memref<1x5184xf32, #tpu.memory_space<vmem>>, vector<1x81xf32>,
    %147 = vector.extract_strided_slice %122 {offsets = [12, 0], sizes = [1, 81], strides = [1, 1]} : vector<64x81xf32> to vector<1x81xf32>
    %c0_105 = arith.constant 0 : index
    %c972 = arith.constant 972 : index
    %148 = vector.load %arg20[%c0_105, %c972] : memref<1x5184xf32, #tpu.memory_space<vmem>>, vector<1x81xf32>
    tpu.vector_store %arg20[%c0_105, %c972], %147 {strides = array<i32>} : memref<1x5184xf32, #tpu.memory_space<vmem>>, vector<1x81xf32>,
    %149 = vector.extract_strided_slice %122 {offsets = [13, 0], sizes = [1, 81], strides = [1, 1]} : vector<64x81xf32> to vector<1x81xf32>
    %c0_106 = arith.constant 0 : index
    %c1053 = arith.constant 1053 : index
    %150 = vector.load %arg20[%c0_106, %c1053] : memref<1x5184xf32, #tpu.memory_space<vmem>>, vector<1x81xf32>
    tpu.vector_store %arg20[%c0_106, %c1053], %149 {strides = array<i32>} : memref<1x5184xf32, #tpu.memory_space<vmem>>, vector<1x81xf32>,
    %151 = vector.extract_strided_slice %122 {offsets = [14, 0], sizes = [1, 81], strides = [1, 1]} : vector<64x81xf32> to vector<1x81xf32>
    %c0_107 = arith.constant 0 : index
    %c1134 = arith.constant 1134 : index
    %152 = vector.load %arg20[%c0_107, %c1134] : memref<1x5184xf32, #tpu.memory_space<vmem>>, vector<1x81xf32>
    tpu.vector_store %arg20[%c0_107, %c1134], %151 {strides = array<i32>} : memref<1x5184xf32, #tpu.memory_space<vmem>>, vector<1x81xf32>,
    %153 = vector.extract_strided_slice %122 {offsets = [15, 0], sizes = [1, 81], strides = [1, 1]} : vector<64x81xf32> to vector<1x81xf32>
    %c0_108 = arith.constant 0 : index
    %c1215 = arith.constant 1215 : index
    %154 = vector.load %arg20[%c0_108, %c1215] : memref<1x5184xf32, #tpu.memory_space<vmem>>, vector<1x81xf32>
    tpu.vector_store %arg20[%c0_108, %c1215], %153 {strides = array<i32>} : memref<1x5184xf32, #tpu.memory_space<vmem>>, vector<1x81xf32>,
    %155 = vector.extract_strided_slice %122 {offsets = [16, 0], sizes = [1, 81], strides = [1, 1]} : vector<64x81xf32> to vector<1x81xf32>
    %c0_109 = arith.constant 0 : index
    %c1296 = arith.constant 1296 : index
    %156 = vector.load %arg20[%c0_109, %c1296] : memref<1x5184xf32, #tpu.memory_space<vmem>>, vector<1x81xf32>
    tpu.vector_store %arg20[%c0_109, %c1296], %155 {strides = array<i32>} : memref<1x5184xf32, #tpu.memory_space<vmem>>, vector<1x81xf32>,
    %157 = vector.extract_strided_slice %122 {offsets = [17, 0], sizes = [1, 81], strides = [1, 1]} : vector<64x81xf32> to vector<1x81xf32>
    %c0_110 = arith.constant 0 : index
    %c1377 = arith.constant 1377 : index
    %158 = vector.load %arg20[%c0_110, %c1377] : memref<1x5184xf32, #tpu.memory_space<vmem>>, vector<1x81xf32>
    tpu.vector_store %arg20[%c0_110, %c1377], %157 {strides = array<i32>} : memref<1x5184xf32, #tpu.memory_space<vmem>>, vector<1x81xf32>,
    %159 = vector.extract_strided_slice %122 {offsets = [18, 0], sizes = [1, 81], strides = [1, 1]} : vector<64x81xf32> to vector<1x81xf32>
    %c0_111 = arith.constant 0 : index
    %c1458 = arith.constant 1458 : index
    %160 = vector.load %arg20[%c0_111, %c1458] : memref<1x5184xf32, #tpu.memory_space<vmem>>, vector<1x81xf32>
    tpu.vector_store %arg20[%c0_111, %c1458], %159 {strides = array<i32>} : memref<1x5184xf32, #tpu.memory_space<vmem>>, vector<1x81xf32>,
    %161 = vector.extract_strided_slice %122 {offsets = [19, 0], sizes = [1, 81], strides = [1, 1]} : vector<64x81xf32> to vector<1x81xf32>
    %c0_112 = arith.constant 0 : index
    %c1539 = arith.constant 1539 : index
    %162 = vector.load %arg20[%c0_112, %c1539] : memref<1x5184xf32, #tpu.memory_space<vmem>>, vector<1x81xf32>
    tpu.vector_store %arg20[%c0_112, %c1539], %161 {strides = array<i32>} : memref<1x5184xf32, #tpu.memory_space<vmem>>, vector<1x81xf32>,
    %163 = vector.extract_strided_slice %122 {offsets = [20, 0], sizes = [1, 81], strides = [1, 1]} : vector<64x81xf32> to vector<1x81xf32>
    %c0_113 = arith.constant 0 : index
    %c1620 = arith.constant 1620 : index
    %164 = vector.load %arg20[%c0_113, %c1620] : memref<1x5184xf32, #tpu.memory_space<vmem>>, vector<1x81xf32>
    tpu.vector_store %arg20[%c0_113, %c1620], %163 {strides = array<i32>} : memref<1x5184xf32, #tpu.memory_space<vmem>>, vector<1x81xf32>,
    %165 = vector.extract_strided_slice %122 {offsets = [21, 0], sizes = [1, 81], strides = [1, 1]} : vector<64x81xf32> to vector<1x81xf32>
    %c0_114 = arith.constant 0 : index
    %c1701 = arith.constant 1701 : index
    %166 = vector.load %arg20[%c0_114, %c1701] : memref<1x5184xf32, #tpu.memory_space<vmem>>, vector<1x81xf32>
    tpu.vector_store %arg20[%c0_114, %c1701], %165 {strides = array<i32>} : memref<1x5184xf32, #tpu.memory_space<vmem>>, vector<1x81xf32>,
    %167 = vector.extract_strided_slice %122 {offsets = [22, 0], sizes = [1, 81], strides = [1, 1]} : vector<64x81xf32> to vector<1x81xf32>
    %c0_115 = arith.constant 0 : index
    %c1782 = arith.constant 1782 : index
    %168 = vector.load %arg20[%c0_115, %c1782] : memref<1x5184xf32, #tpu.memory_space<vmem>>, vector<1x81xf32>
    tpu.vector_store %arg20[%c0_115, %c1782], %167 {strides = array<i32>} : memref<1x5184xf32, #tpu.memory_space<vmem>>, vector<1x81xf32>,
    %169 = vector.extract_strided_slice %122 {offsets = [23, 0], sizes = [1, 81], strides = [1, 1]} : vector<64x81xf32> to vector<1x81xf32>
    %c0_116 = arith.constant 0 : index
    %c1863 = arith.constant 1863 : index
    %170 = vector.load %arg20[%c0_116, %c1863] : memref<1x5184xf32, #tpu.memory_space<vmem>>, vector<1x81xf32>
    tpu.vector_store %arg20[%c0_116, %c1863], %169 {strides = array<i32>} : memref<1x5184xf32, #tpu.memory_space<vmem>>, vector<1x81xf32>,
    %171 = vector.extract_strided_slice %122 {offsets = [24, 0], sizes = [1, 81], strides = [1, 1]} : vector<64x81xf32> to vector<1x81xf32>
    %c0_117 = arith.constant 0 : index
    %c1944 = arith.constant 1944 : index
    %172 = vector.load %arg20[%c0_117, %c1944] : memref<1x5184xf32, #tpu.memory_space<vmem>>, vector<1x81xf32>
    tpu.vector_store %arg20[%c0_117, %c1944], %171 {strides = array<i32>} : memref<1x5184xf32, #tpu.memory_space<vmem>>, vector<1x81xf32>,
    %173 = vector.extract_strided_slice %122 {offsets = [25, 0], sizes = [1, 81], strides = [1, 1]} : vector<64x81xf32> to vector<1x81xf32>
    %c0_118 = arith.constant 0 : index
    %c2025 = arith.constant 2025 : index
    %174 = vector.load %arg20[%c0_118, %c2025] : memref<1x5184xf32, #tpu.memory_space<vmem>>, vector<1x81xf32>
    tpu.vector_store %arg20[%c0_118, %c2025], %173 {strides = array<i32>} : memref<1x5184xf32, #tpu.memory_space<vmem>>, vector<1x81xf32>,
    %175 = vector.extract_strided_slice %122 {offsets = [26, 0], sizes = [1, 81], strides = [1, 1]} : vector<64x81xf32> to vector<1x81xf32>
    %c0_119 = arith.constant 0 : index
    %c2106 = arith.constant 2106 : index
    %176 = vector.load %arg20[%c0_119, %c2106] : memref<1x5184xf32, #tpu.memory_space<vmem>>, vector<1x81xf32>
    tpu.vector_store %arg20[%c0_119, %c2106], %175 {strides = array<i32>} : memref<1x5184xf32, #tpu.memory_space<vmem>>, vector<1x81xf32>,
    %177 = vector.extract_strided_slice %122 {offsets = [27, 0], sizes = [1, 81], strides = [1, 1]} : vector<64x81xf32> to vector<1x81xf32>
    %c0_120 = arith.constant 0 : index
    %c2187 = arith.constant 2187 : index
    %178 = vector.load %arg20[%c0_120, %c2187] : memref<1x5184xf32, #tpu.memory_space<vmem>>, vector<1x81xf32>
    tpu.vector_store %arg20[%c0_120, %c2187], %177 {strides = array<i32>} : memref<1x5184xf32, #tpu.memory_space<vmem>>, vector<1x81xf32>,
    %179 = vector.extract_strided_slice %122 {offsets = [28, 0], sizes = [1, 81], strides = [1, 1]} : vector<64x81xf32> to vector<1x81xf32>
    %c0_121 = arith.constant 0 : index
    %c2268 = arith.constant 2268 : index
    %180 = vector.load %arg20[%c0_121, %c2268] : memref<1x5184xf32, #tpu.memory_space<vmem>>, vector<1x81xf32>
    tpu.vector_store %arg20[%c0_121, %c2268], %179 {strides = array<i32>} : memref<1x5184xf32, #tpu.memory_space<vmem>>, vector<1x81xf32>,
    %181 = vector.extract_strided_slice %122 {offsets = [29, 0], sizes = [1, 81], strides = [1, 1]} : vector<64x81xf32> to vector<1x81xf32>
    %c0_122 = arith.constant 0 : index
    %c2349 = arith.constant 2349 : index
    %182 = vector.load %arg20[%c0_122, %c2349] : memref<1x5184xf32, #tpu.memory_space<vmem>>, vector<1x81xf32>
    tpu.vector_store %arg20[%c0_122, %c2349], %181 {strides = array<i32>} : memref<1x5184xf32, #tpu.memory_space<vmem>>, vector<1x81xf32>,
    %183 = vector.extract_strided_slice %122 {offsets = [30, 0], sizes = [1, 81], strides = [1, 1]} : vector<64x81xf32> to vector<1x81xf32>
    %c0_123 = arith.constant 0 : index
    %c2430 = arith.constant 2430 : index
    %184 = vector.load %arg20[%c0_123, %c2430] : memref<1x5184xf32, #tpu.memory_space<vmem>>, vector<1x81xf32>
    tpu.vector_store %arg20[%c0_123, %c2430], %183 {strides = array<i32>} : memref<1x5184xf32, #tpu.memory_space<vmem>>, vector<1x81xf32>,
    %185 = vector.extract_strided_slice %122 {offsets = [31, 0], sizes = [1, 81], strides = [1, 1]} : vector<64x81xf32> to vector<1x81xf32>
    %c0_124 = arith.constant 0 : index
    %c2511 = arith.constant 2511 : index
    %186 = vector.load %arg20[%c0_124, %c2511] : memref<1x5184xf32, #tpu.memory_space<vmem>>, vector<1x81xf32>
    tpu.vector_store %arg20[%c0_124, %c2511], %185 {strides = array<i32>} : memref<1x5184xf32, #tpu.memory_space<vmem>>, vector<1x81xf32>,
    %187 = vector.extract_strided_slice %122 {offsets = [32, 0], sizes = [1, 81], strides = [1, 1]} : vector<64x81xf32> to vector<1x81xf32>
    %c0_125 = arith.constant 0 : index
    %c2592 = arith.constant 2592 : index
    %188 = vector.load %arg20[%c0_125, %c2592] : memref<1x5184xf32, #tpu.memory_space<vmem>>, vector<1x81xf32>
    tpu.vector_store %arg20[%c0_125, %c2592], %187 {strides = array<i32>} : memref<1x5184xf32, #tpu.memory_space<vmem>>, vector<1x81xf32>,
    %189 = vector.extract_strided_slice %122 {offsets = [33, 0], sizes = [1, 81], strides = [1, 1]} : vector<64x81xf32> to vector<1x81xf32>
    %c0_126 = arith.constant 0 : index
    %c2673 = arith.constant 2673 : index
    %190 = vector.load %arg20[%c0_126, %c2673] : memref<1x5184xf32, #tpu.memory_space<vmem>>, vector<1x81xf32>
    tpu.vector_store %arg20[%c0_126, %c2673], %189 {strides = array<i32>} : memref<1x5184xf32, #tpu.memory_space<vmem>>, vector<1x81xf32>,
    %191 = vector.extract_strided_slice %122 {offsets = [34, 0], sizes = [1, 81], strides = [1, 1]} : vector<64x81xf32> to vector<1x81xf32>
    %c0_127 = arith.constant 0 : index
    %c2754 = arith.constant 2754 : index
    %192 = vector.load %arg20[%c0_127, %c2754] : memref<1x5184xf32, #tpu.memory_space<vmem>>, vector<1x81xf32>
    tpu.vector_store %arg20[%c0_127, %c2754], %191 {strides = array<i32>} : memref<1x5184xf32, #tpu.memory_space<vmem>>, vector<1x81xf32>,
    %193 = vector.extract_strided_slice %122 {offsets = [35, 0], sizes = [1, 81], strides = [1, 1]} : vector<64x81xf32> to vector<1x81xf32>
    %c0_128 = arith.constant 0 : index
    %c2835 = arith.constant 2835 : index
    %194 = vector.load %arg20[%c0_128, %c2835] : memref<1x5184xf32, #tpu.memory_space<vmem>>, vector<1x81xf32>
    tpu.vector_store %arg20[%c0_128, %c2835], %193 {strides = array<i32>} : memref<1x5184xf32, #tpu.memory_space<vmem>>, vector<1x81xf32>,
    %195 = vector.extract_strided_slice %122 {offsets = [36, 0], sizes = [1, 81], strides = [1, 1]} : vector<64x81xf32> to vector<1x81xf32>
    %c0_129 = arith.constant 0 : index
    %c2916 = arith.constant 2916 : index
    %196 = vector.load %arg20[%c0_129, %c2916] : memref<1x5184xf32, #tpu.memory_space<vmem>>, vector<1x81xf32>
    tpu.vector_store %arg20[%c0_129, %c2916], %195 {strides = array<i32>} : memref<1x5184xf32, #tpu.memory_space<vmem>>, vector<1x81xf32>,
    %197 = vector.extract_strided_slice %122 {offsets = [37, 0], sizes = [1, 81], strides = [1, 1]} : vector<64x81xf32> to vector<1x81xf32>
    %c0_130 = arith.constant 0 : index
    %c2997 = arith.constant 2997 : index
    %198 = vector.load %arg20[%c0_130, %c2997] : memref<1x5184xf32, #tpu.memory_space<vmem>>, vector<1x81xf32>
    tpu.vector_store %arg20[%c0_130, %c2997], %197 {strides = array<i32>} : memref<1x5184xf32, #tpu.memory_space<vmem>>, vector<1x81xf32>,
    %199 = vector.extract_strided_slice %122 {offsets = [38, 0], sizes = [1, 81], strides = [1, 1]} : vector<64x81xf32> to vector<1x81xf32>
    %c0_131 = arith.constant 0 : index
    %c3078 = arith.constant 3078 : index
    %200 = vector.load %arg20[%c0_131, %c3078] : memref<1x5184xf32, #tpu.memory_space<vmem>>, vector<1x81xf32>
    tpu.vector_store %arg20[%c0_131, %c3078], %199 {strides = array<i32>} : memref<1x5184xf32, #tpu.memory_space<vmem>>, vector<1x81xf32>,
    %201 = vector.extract_strided_slice %122 {offsets = [39, 0], sizes = [1, 81], strides = [1, 1]} : vector<64x81xf32> to vector<1x81xf32>
    %c0_132 = arith.constant 0 : index
    %c3159 = arith.constant 3159 : index
    %202 = vector.load %arg20[%c0_132, %c3159] : memref<1x5184xf32, #tpu.memory_space<vmem>>, vector<1x81xf32>
    tpu.vector_store %arg20[%c0_132, %c3159], %201 {strides = array<i32>} : memref<1x5184xf32, #tpu.memory_space<vmem>>, vector<1x81xf32>,
    %203 = vector.extract_strided_slice %122 {offsets = [40, 0], sizes = [1, 81], strides = [1, 1]} : vector<64x81xf32> to vector<1x81xf32>
    %c0_133 = arith.constant 0 : index
    %c3240 = arith.constant 3240 : index
    %204 = vector.load %arg20[%c0_133, %c3240] : memref<1x5184xf32, #tpu.memory_space<vmem>>, vector<1x81xf32>
    tpu.vector_store %arg20[%c0_133, %c3240], %203 {strides = array<i32>} : memref<1x5184xf32, #tpu.memory_space<vmem>>, vector<1x81xf32>,
    %205 = vector.extract_strided_slice %122 {offsets = [41, 0], sizes = [1, 81], strides = [1, 1]} : vector<64x81xf32> to vector<1x81xf32>
    %c0_134 = arith.constant 0 : index
    %c3321 = arith.constant 3321 : index
    %206 = vector.load %arg20[%c0_134, %c3321] : memref<1x5184xf32, #tpu.memory_space<vmem>>, vector<1x81xf32>
    tpu.vector_store %arg20[%c0_134, %c3321], %205 {strides = array<i32>} : memref<1x5184xf32, #tpu.memory_space<vmem>>, vector<1x81xf32>,
    %207 = vector.extract_strided_slice %122 {offsets = [42, 0], sizes = [1, 81], strides = [1, 1]} : vector<64x81xf32> to vector<1x81xf32>
    %c0_135 = arith.constant 0 : index
    %c3402 = arith.constant 3402 : index
    %208 = vector.load %arg20[%c0_135, %c3402] : memref<1x5184xf32, #tpu.memory_space<vmem>>, vector<1x81xf32>
    tpu.vector_store %arg20[%c0_135, %c3402], %207 {strides = array<i32>} : memref<1x5184xf32, #tpu.memory_space<vmem>>, vector<1x81xf32>,
    %209 = vector.extract_strided_slice %122 {offsets = [43, 0], sizes = [1, 81], strides = [1, 1]} : vector<64x81xf32> to vector<1x81xf32>
    %c0_136 = arith.constant 0 : index
    %c3483 = arith.constant 3483 : index
    %210 = vector.load %arg20[%c0_136, %c3483] : memref<1x5184xf32, #tpu.memory_space<vmem>>, vector<1x81xf32>
    tpu.vector_store %arg20[%c0_136, %c3483], %209 {strides = array<i32>} : memref<1x5184xf32, #tpu.memory_space<vmem>>, vector<1x81xf32>,
    %211 = vector.extract_strided_slice %122 {offsets = [44, 0], sizes = [1, 81], strides = [1, 1]} : vector<64x81xf32> to vector<1x81xf32>
    %c0_137 = arith.constant 0 : index
    %c3564 = arith.constant 3564 : index
    %212 = vector.load %arg20[%c0_137, %c3564] : memref<1x5184xf32, #tpu.memory_space<vmem>>, vector<1x81xf32>
    tpu.vector_store %arg20[%c0_137, %c3564], %211 {strides = array<i32>} : memref<1x5184xf32, #tpu.memory_space<vmem>>, vector<1x81xf32>,
    %213 = vector.extract_strided_slice %122 {offsets = [45, 0], sizes = [1, 81], strides = [1, 1]} : vector<64x81xf32> to vector<1x81xf32>
    %c0_138 = arith.constant 0 : index
    %c3645 = arith.constant 3645 : index
    %214 = vector.load %arg20[%c0_138, %c3645] : memref<1x5184xf32, #tpu.memory_space<vmem>>, vector<1x81xf32>
    tpu.vector_store %arg20[%c0_138, %c3645], %213 {strides = array<i32>} : memref<1x5184xf32, #tpu.memory_space<vmem>>, vector<1x81xf32>,
    %215 = vector.extract_strided_slice %122 {offsets = [46, 0], sizes = [1, 81], strides = [1, 1]} : vector<64x81xf32> to vector<1x81xf32>
    %c0_139 = arith.constant 0 : index
    %c3726 = arith.constant 3726 : index
    %216 = vector.load %arg20[%c0_139, %c3726] : memref<1x5184xf32, #tpu.memory_space<vmem>>, vector<1x81xf32>
    tpu.vector_store %arg20[%c0_139, %c3726], %215 {strides = array<i32>} : memref<1x5184xf32, #tpu.memory_space<vmem>>, vector<1x81xf32>,
    %217 = vector.extract_strided_slice %122 {offsets = [47, 0], sizes = [1, 81], strides = [1, 1]} : vector<64x81xf32> to vector<1x81xf32>
    %c0_140 = arith.constant 0 : index
    %c3807 = arith.constant 3807 : index
    %218 = vector.load %arg20[%c0_140, %c3807] : memref<1x5184xf32, #tpu.memory_space<vmem>>, vector<1x81xf32>
    tpu.vector_store %arg20[%c0_140, %c3807], %217 {strides = array<i32>} : memref<1x5184xf32, #tpu.memory_space<vmem>>, vector<1x81xf32>,
    %219 = vector.extract_strided_slice %122 {offsets = [48, 0], sizes = [1, 81], strides = [1, 1]} : vector<64x81xf32> to vector<1x81xf32>
    %c0_141 = arith.constant 0 : index
    %c3888 = arith.constant 3888 : index
    %220 = vector.load %arg20[%c0_141, %c3888] : memref<1x5184xf32, #tpu.memory_space<vmem>>, vector<1x81xf32>
    tpu.vector_store %arg20[%c0_141, %c3888], %219 {strides = array<i32>} : memref<1x5184xf32, #tpu.memory_space<vmem>>, vector<1x81xf32>,
    %221 = vector.extract_strided_slice %122 {offsets = [49, 0], sizes = [1, 81], strides = [1, 1]} : vector<64x81xf32> to vector<1x81xf32>
    %c0_142 = arith.constant 0 : index
    %c3969 = arith.constant 3969 : index
    %222 = vector.load %arg20[%c0_142, %c3969] : memref<1x5184xf32, #tpu.memory_space<vmem>>, vector<1x81xf32>
    tpu.vector_store %arg20[%c0_142, %c3969], %221 {strides = array<i32>} : memref<1x5184xf32, #tpu.memory_space<vmem>>, vector<1x81xf32>,
    %223 = vector.extract_strided_slice %122 {offsets = [50, 0], sizes = [1, 81], strides = [1, 1]} : vector<64x81xf32> to vector<1x81xf32>
    %c0_143 = arith.constant 0 : index
    %c4050 = arith.constant 4050 : index
    %224 = vector.load %arg20[%c0_143, %c4050] : memref<1x5184xf32, #tpu.memory_space<vmem>>, vector<1x81xf32>
    tpu.vector_store %arg20[%c0_143, %c4050], %223 {strides = array<i32>} : memref<1x5184xf32, #tpu.memory_space<vmem>>, vector<1x81xf32>,
    %225 = vector.extract_strided_slice %122 {offsets = [51, 0], sizes = [1, 81], strides = [1, 1]} : vector<64x81xf32> to vector<1x81xf32>
    %c0_144 = arith.constant 0 : index
    %c4131 = arith.constant 4131 : index
    %226 = vector.load %arg20[%c0_144, %c4131] : memref<1x5184xf32, #tpu.memory_space<vmem>>, vector<1x81xf32>
    tpu.vector_store %arg20[%c0_144, %c4131], %225 {strides = array<i32>} : memref<1x5184xf32, #tpu.memory_space<vmem>>, vector<1x81xf32>,
    %227 = vector.extract_strided_slice %122 {offsets = [52, 0], sizes = [1, 81], strides = [1, 1]} : vector<64x81xf32> to vector<1x81xf32>
    %c0_145 = arith.constant 0 : index
    %c4212 = arith.constant 4212 : index
    %228 = vector.load %arg20[%c0_145, %c4212] : memref<1x5184xf32, #tpu.memory_space<vmem>>, vector<1x81xf32>
    tpu.vector_store %arg20[%c0_145, %c4212], %227 {strides = array<i32>} : memref<1x5184xf32, #tpu.memory_space<vmem>>, vector<1x81xf32>,
    %229 = vector.extract_strided_slice %122 {offsets = [53, 0], sizes = [1, 81], strides = [1, 1]} : vector<64x81xf32> to vector<1x81xf32>
    %c0_146 = arith.constant 0 : index
    %c4293 = arith.constant 4293 : index
    %230 = vector.load %arg20[%c0_146, %c4293] : memref<1x5184xf32, #tpu.memory_space<vmem>>, vector<1x81xf32>
    tpu.vector_store %arg20[%c0_146, %c4293], %229 {strides = array<i32>} : memref<1x5184xf32, #tpu.memory_space<vmem>>, vector<1x81xf32>,
    %231 = vector.extract_strided_slice %122 {offsets = [54, 0], sizes = [1, 81], strides = [1, 1]} : vector<64x81xf32> to vector<1x81xf32>
    %c0_147 = arith.constant 0 : index
    %c4374 = arith.constant 4374 : index
    %232 = vector.load %arg20[%c0_147, %c4374] : memref<1x5184xf32, #tpu.memory_space<vmem>>, vector<1x81xf32>
    tpu.vector_store %arg20[%c0_147, %c4374], %231 {strides = array<i32>} : memref<1x5184xf32, #tpu.memory_space<vmem>>, vector<1x81xf32>,
    %233 = vector.extract_strided_slice %122 {offsets = [55, 0], sizes = [1, 81], strides = [1, 1]} : vector<64x81xf32> to vector<1x81xf32>
    %c0_148 = arith.constant 0 : index
    %c4455 = arith.constant 4455 : index
    %234 = vector.load %arg20[%c0_148, %c4455] : memref<1x5184xf32, #tpu.memory_space<vmem>>, vector<1x81xf32>
    tpu.vector_store %arg20[%c0_148, %c4455], %233 {strides = array<i32>} : memref<1x5184xf32, #tpu.memory_space<vmem>>, vector<1x81xf32>,
    %235 = vector.extract_strided_slice %122 {offsets = [56, 0], sizes = [1, 81], strides = [1, 1]} : vector<64x81xf32> to vector<1x81xf32>
    %c0_149 = arith.constant 0 : index
    %c4536 = arith.constant 4536 : index
    %236 = vector.load %arg20[%c0_149, %c4536] : memref<1x5184xf32, #tpu.memory_space<vmem>>, vector<1x81xf32>
    tpu.vector_store %arg20[%c0_149, %c4536], %235 {strides = array<i32>} : memref<1x5184xf32, #tpu.memory_space<vmem>>, vector<1x81xf32>,
    %237 = vector.extract_strided_slice %122 {offsets = [57, 0], sizes = [1, 81], strides = [1, 1]} : vector<64x81xf32> to vector<1x81xf32>
    %c0_150 = arith.constant 0 : index
    %c4617 = arith.constant 4617 : index
    %238 = vector.load %arg20[%c0_150, %c4617] : memref<1x5184xf32, #tpu.memory_space<vmem>>, vector<1x81xf32>
    tpu.vector_store %arg20[%c0_150, %c4617], %237 {strides = array<i32>} : memref<1x5184xf32, #tpu.memory_space<vmem>>, vector<1x81xf32>,
    %239 = vector.extract_strided_slice %122 {offsets = [58, 0], sizes = [1, 81], strides = [1, 1]} : vector<64x81xf32> to vector<1x81xf32>
    %c0_151 = arith.constant 0 : index
    %c4698 = arith.constant 4698 : index
    %240 = vector.load %arg20[%c0_151, %c4698] : memref<1x5184xf32, #tpu.memory_space<vmem>>, vector<1x81xf32>
    tpu.vector_store %arg20[%c0_151, %c4698], %239 {strides = array<i32>} : memref<1x5184xf32, #tpu.memory_space<vmem>>, vector<1x81xf32>,
    %241 = vector.extract_strided_slice %122 {offsets = [59, 0], sizes = [1, 81], strides = [1, 1]} : vector<64x81xf32> to vector<1x81xf32>
    %c0_152 = arith.constant 0 : index
    %c4779 = arith.constant 4779 : index
    %242 = vector.load %arg20[%c0_152, %c4779] : memref<1x5184xf32, #tpu.memory_space<vmem>>, vector<1x81xf32>
    tpu.vector_store %arg20[%c0_152, %c4779], %241 {strides = array<i32>} : memref<1x5184xf32, #tpu.memory_space<vmem>>, vector<1x81xf32>,
    %243 = vector.extract_strided_slice %122 {offsets = [60, 0], sizes = [1, 81], strides = [1, 1]} : vector<64x81xf32> to vector<1x81xf32>
    %c0_153 = arith.constant 0 : index
    %c4860 = arith.constant 4860 : index
    %244 = vector.load %arg20[%c0_153, %c4860] : memref<1x5184xf32, #tpu.memory_space<vmem>>, vector<1x81xf32>
    tpu.vector_store %arg20[%c0_153, %c4860], %243 {strides = array<i32>} : memref<1x5184xf32, #tpu.memory_space<vmem>>, vector<1x81xf32>,
    %245 = vector.extract_strided_slice %122 {offsets = [61, 0], sizes = [1, 81], strides = [1, 1]} : vector<64x81xf32> to vector<1x81xf32>
    %c0_154 = arith.constant 0 : index
    %c4941 = arith.constant 4941 : index
    %246 = vector.load %arg20[%c0_154, %c4941] : memref<1x5184xf32, #tpu.memory_space<vmem>>, vector<1x81xf32>
    tpu.vector_store %arg20[%c0_154, %c4941], %245 {strides = array<i32>} : memref<1x5184xf32, #tpu.memory_space<vmem>>, vector<1x81xf32>,
    %247 = vector.extract_strided_slice %122 {offsets = [62, 0], sizes = [1, 81], strides = [1, 1]} : vector<64x81xf32> to vector<1x81xf32>
    %c0_155 = arith.constant 0 : index
    %c5022 = arith.constant 5022 : index
    %248 = vector.load %arg20[%c0_155, %c5022] : memref<1x5184xf32, #tpu.memory_space<vmem>>, vector<1x81xf32>
    tpu.vector_store %arg20[%c0_155, %c5022], %247 {strides = array<i32>} : memref<1x5184xf32, #tpu.memory_space<vmem>>, vector<1x81xf32>,
    %249 = vector.extract_strided_slice %122 {offsets = [63, 0], sizes = [1, 81], strides = [1, 1]} : vector<64x81xf32> to vector<1x81xf32>
    %c0_156 = arith.constant 0 : index
    %c5103 = arith.constant 5103 : index
    %250 = vector.load %arg20[%c0_156, %c5103] : memref<1x5184xf32, #tpu.memory_space<vmem>>, vector<1x81xf32>
    tpu.vector_store %arg20[%c0_156, %c5103], %249 {strides = array<i32>} : memref<1x5184xf32, #tpu.memory_space<vmem>>, vector<1x81xf32>,
    %c0_157 = arith.constant 0 : index
    %c0_158 = arith.constant 0 : index
    %251 = vector.load %arg20[%c0_157, %c0_158] : memref<1x5184xf32, #tpu.memory_space<vmem>>, vector<1x5184xf32>
    tpu.wait_dma2 semaphore(%arg22 : memref<!tpu.dma_semaphore, #tpu.memory_space<semaphore_mem>>) src(%arg6 : memref<5184x250xbf16, #tpu.memory_space<any>>) dst(%arg21 : memref<5184x250xbf16, #tpu.memory_space<vmem>>)
    %252 = arith.truncf %251 : vector<1x5184xf32> to vector<1x5184xbf16>
    %c0_159 = arith.constant 0 : index
    %c0_160 = arith.constant 0 : index
    %253 = vector.load %arg21[%c0_159, %c0_160] : memref<5184x250xbf16, #tpu.memory_space<vmem>>, vector<5184x250xbf16>
    %cst_161 = arith.constant dense<0.000000e+00> : vector<1x250xf32>
    %254 = tpu.matmul %252, %253, %cst_161 {dimension_numbers = #tpu.dot_dimension_numbers<[1], [0], [0], [1], [0, 0, 1, 1], [], []>} : vector<1x5184xbf16>, vector<5184x250xbf16>, vector<1x250xf32> -> vector<1x250xf32>
    %c0_162 = arith.constant 0 : index
    %c0_163 = arith.constant 0 : index
    %255 = vector.load %arg7[%c0_162, %c0_163] : memref<1x250xf32, #tpu.memory_space<vmem>>, vector<1x250xf32>
    %256 = arith.addf %254, %255 : vector<1x250xf32>
    %cst_164 = arith.constant 0.000000e+00 : f32
    %257 = vector.broadcast %cst_164 : f32 to vector<1x250xf32>
    %258 = arith.maximumf %256, %257 : vector<1x250xf32>
    %c0_165 = arith.constant 0 : index
    %c0_166 = arith.constant 0 : index
    %259 = vector.load %arg8[%c0_165, %c0_166] : memref<250x200xf32, #tpu.memory_space<vmem>>, vector<250x200xf32>
    %cst_167 = arith.constant dense<0.000000e+00> : vector<1x200xf32>
    %260 = tpu.matmul %258, %259, %cst_167 {dimension_numbers = #tpu.dot_dimension_numbers<[1], [0], [0], [1], [0, 0, 1, 1], [], []>} : vector<1x250xf32>, vector<250x200xf32>, vector<1x200xf32> -> vector<1x200xf32>
    %c0_168 = arith.constant 0 : index
    %c0_169 = arith.constant 0 : index
    %261 = vector.load %arg9[%c0_168, %c0_169] : memref<1x200xf32, #tpu.memory_space<vmem>>, vector<1x200xf32>
    %262 = arith.addf %260, %261 : vector<1x200xf32>
    %cst_170 = arith.constant 0.000000e+00 : f32
    %263 = vector.broadcast %cst_170 : f32 to vector<1x200xf32>
    %264 = arith.maximumf %262, %263 : vector<1x200xf32>
    %c0_171 = arith.constant 0 : index
    %c0_172 = arith.constant 0 : index
    %265 = vector.load %arg10[%c0_171, %c0_172] : memref<200x140xf32, #tpu.memory_space<vmem>>, vector<200x140xf32>
    %cst_173 = arith.constant dense<0.000000e+00> : vector<1x140xf32>
    %266 = tpu.matmul %264, %265, %cst_173 {dimension_numbers = #tpu.dot_dimension_numbers<[1], [0], [0], [1], [0, 0, 1, 1], [], []>} : vector<1x200xf32>, vector<200x140xf32>, vector<1x140xf32> -> vector<1x140xf32>
    %c0_174 = arith.constant 0 : index
    %c0_175 = arith.constant 0 : index
    %267 = vector.load %arg11[%c0_174, %c0_175] : memref<1x140xf32, #tpu.memory_space<vmem>>, vector<1x140xf32>
    %268 = arith.addf %266, %267 : vector<1x140xf32>
    %cst_176 = arith.constant dense<0xFF800000> : vector<1xf32>
    %269 = vector.multi_reduction <maximumf>, %268, %cst_176 [1] : vector<1x140xf32> to vector<1xf32>
    %270 = vector.shape_cast %269 : vector<1xf32> to vector<1x1xf32>
    %271 = vector.broadcast %270 : vector<1x1xf32> to vector<1x140xf32>
    %272 = arith.subf %268, %271 : vector<1x140xf32>
    %273 = math.exp %272 : vector<1x140xf32>
    %274 = vector.broadcast %270 : vector<1x1xf32> to vector<1x140xf32>
    %275 = arith.subf %268, %274 : vector<1x140xf32>
    %cst_177 = arith.constant dense<0.000000e+00> : vector<1xf32>
    %276 = vector.multi_reduction <add>, %273, %cst_177 [1] : vector<1x140xf32> to vector<1xf32>
    %277 = vector.shape_cast %276 : vector<1xf32> to vector<1x1xf32>
    %278 = math.log %277 : vector<1x1xf32>
    %279 = vector.broadcast %278 : vector<1x1xf32> to vector<1x140xf32>
    %280 = arith.subf %275, %279 : vector<1x140xf32>
    %c0_178 = arith.constant 0 : index
    %c0_179 = arith.constant 0 : index
    %281 = vector.load %arg16[%c0_178, %c0_179] : memref<1x140xf32, #tpu.memory_space<vmem>>, vector<1x140xf32>
    tpu.vector_store %arg16[%c0_178, %c0_179], %280 {strides = array<i32>} : memref<1x140xf32, #tpu.memory_space<vmem>>, vector<1x140xf32>,
    %c0_180 = arith.constant 0 : index
    %c0_181 = arith.constant 0 : index
    %282 = vector.load %arg12[%c0_180, %c0_181] : memref<200x150xf32, #tpu.memory_space<vmem>>, vector<200x150xf32>
    %cst_182 = arith.constant dense<0.000000e+00> : vector<1x150xf32>
    %283 = tpu.matmul %264, %282, %cst_182 {dimension_numbers = #tpu.dot_dimension_numbers<[1], [0], [0], [1], [0, 0, 1, 1], [], []>} : vector<1x200xf32>, vector<200x150xf32>, vector<1x150xf32> -> vector<1x150xf32>
    %c0_183 = arith.constant 0 : index
    %c0_184 = arith.constant 0 : index
    %284 = vector.load %arg13[%c0_183, %c0_184] : memref<1x150xf32, #tpu.memory_space<vmem>>, vector<1x150xf32>
    %285 = arith.addf %283, %284 : vector<1x150xf32>
    %cst_185 = arith.constant 0.000000e+00 : f32
    %286 = vector.broadcast %cst_185 : f32 to vector<1x150xf32>
    %287 = arith.maximumf %285, %286 : vector<1x150xf32>
    %c0_186 = arith.constant 0 : index
    %c0_187 = arith.constant 0 : index
    %288 = vector.load %arg14[%c0_186, %c0_187] : memref<150x1xf32, #tpu.memory_space<vmem>>, vector<150x1xf32>
    %cst_188 = arith.constant dense<0.000000e+00> : vector<1x1xf32>
    %289 = tpu.matmul %287, %288, %cst_188 {dimension_numbers = #tpu.dot_dimension_numbers<[1], [0], [0], [1], [0, 0, 1, 1], [], []>} : vector<1x150xf32>, vector<150x1xf32>, vector<1x1xf32> -> vector<1x1xf32>
    %c0_189 = arith.constant 0 : index
    %c0_190 = arith.constant 0 : index
    %290 = vector.load %arg15[%c0_189, %c0_190] : memref<1x1xf32, #tpu.memory_space<vmem>>, vector<1x1xf32>
    %291 = arith.addf %289, %290 : vector<1x1xf32>
    %292 = math.tanh %291 : vector<1x1xf32>
    %c0_191 = arith.constant 0 : index
    %c0_192 = arith.constant 0 : index
    %293 = vector.load %arg17[%c0_191, %c0_192] : memref<1x1xf32, #tpu.memory_space<vmem>>, vector<1x1xf32>
    tpu.vector_store %arg17[%c0_191, %c0_192], %292 {strides = array<i32>} : memref<1x1xf32, #tpu.memory_space<vmem>>, vector<1x1xf32>,
    return
  }
}

</mosaic_0001>

<bundles_post_ra>
// kernel: actor_critic_conv.1
= control target key start
LH: loop header
LB: loop body
LE: loop exit
PB: predicated region body
PF: predicated region fallthrough
CT: control target
= control target key end

     0   :  { %s10342_s0 = inlined_call_operand.vmem [shape: f32[3,81], index: 0, kind: input, shape index: {}]   ;;  %s10343_s1 = inlined_call_operand.hbm [shape: f32[2,81], index: 1, kind: input, shape index: {}]   ;;  %s10344_s2 = inlined_call_operand.vmem [shape: f32[288,3], index: 2, kind: input, shape index: {}]   ;;  %s10345_s3 = inlined_call_operand.vmem [shape: f32[32,1], index: 3, kind: input, shape index: {}]   ;;  %s10346_s4 = inlined_call_operand.vmem [shape: f32[576,32], index: 4, kind: input, shape index: {}]   ;;  %s10347_s5 = inlined_call_operand.vmem [shape: f32[64,1], index: 5, kind: input, shape index: {}]   ;;  %s10348_s6 = inlined_call_operand.hbm [shape: bf16[5184,250], index: 6, kind: input, shape index: {}]   ;;  %s10349_s7 = inlined_call_operand.hbm [shape: f32[1,250], index: 7, kind: input, shape index: {}]   ;;  %s10350_s8 = inlined_call_operand.vmem [shape: f32[250,200], index: 8, kind: input, shape index: {}]   ;;  %s10351_s9 = inlined_call_operand.hbm [shape: f32[1,200], index: 9, kind: input, shape index: {}]   ;;  %s10352_s10 = inlined_call_operand.vmem [shape: f32[200,140], index: 10, kind: input, shape index: {}]   ;;  %s10353_s11 = inlined_call_operand.hbm [shape: f32[1,140], index: 11, kind: input, shape index: {}]   ;;  %s10354_s12 = inlined_call_operand.vmem [shape: f32[200,150], index: 12, kind: input, shape index: {}]   ;;  %s10355_s13 = inlined_call_operand.hbm [shape: f32[1,150], index: 13, kind: input, shape index: {}]   ;;  %s10356_s14 = inlined_call_operand.vmem [shape: f32[150,1], index: 14, kind: input, shape index: {}]   ;;  %s10357_s15 = inlined_call_operand.<no memory space> [shape: f32[1,1], index: 15, kind: input, shape index: {}]   ;;  %s10358_s16 = inlined_call_operand.hbm [shape: f32[1,140], index: 16, kind: output, shape index: {0}]   ;;  %s10359_s17 = inlined_call_operand.hbm [shape: f32[1,1], index: 17, kind: output, shape index: {1}]  }
   0x1   :  { %10376 = sst [smem:[#allocation28_spill]] %s10342_s0  ;;  %v23_v0 = vstv %s10357_s15 }
   0x2   :  { %10377 = sst [smem:[#allocation29_spill]] %s10343_s1  ;;  %24 = vst [vmem:[#allocation7] sm:$0x1] %v23_v0 }
   0x3   :  { %25 = vsyncpa [#allocation9], 0 }
   0x4   :  { %26 = vsyncpa [#allocation12], 0 }
   0x5   :  { %27 = vsyncpa [#allocation15], 0 }
   0x6   :  { %28 = vsyncpa [#allocation10], 0 }
   0x7   :  { %29 = vsyncpa [#allocation19], 0  ;;  %s7476_s26 = smov [#allocation11]   ;;  %s7477_s28 = smov [#allocation14]  }
   0x8   :  { %s56_s27 = sshll.u32 %s7476_s26, 4  ;;  %s80_s29 = sshll.u32 %s7477_s28, 4  ;;  %s57_s27 = int_to_ptr.vmem [resolvable:$true] %s56_s27  ;;  %s81_s29 = int_to_ptr.vmem [resolvable:$true] %s80_s29 }
   0x9   :  { %s7310_s18 = scalar_lea.hbm %s10349_s7, 32 }
   0xa   :  { %p7311_p0 = scmp.ne.s32.totalorder %s10349_s7, %s7310_s18  ;;  %p7314_p1 = scmp.lt.u32.totalorder %s7310_s18, %s10349_s7 }
   0xc   :  { %p7316_p2 = pnand %p7314_p1, %p7311_p0 }
   0xe   :  { %7319 = shalt.err (!%p7316_p2)
}
   0xf   :  { %s7320_s21 = scalar_lea.vmem %s57_s27, 32  ;;  %p7325_p4 = scmp.lt.s32.totalorder %s57_s27, %s57_s27 }
  0x10   :  { %p7321_p3 = scmp.ne.s32.totalorder %s57_s27, %s7320_s21  ;;  %p7326_p5 = scmp.lt.s32.totalorder %s7320_s21, %s7320_s21 }
  0x12   :  { %p7327_p6 = por %p7326_p5, %p7325_p4 }
  0x14   :  { %p7328_p7 = pnand %p7327_p6, %p7321_p3 }
  0x16   :  { %7331 = shalt.err (!%p7328_p7)
}
  0x17   :  { %59 = dma.hbm_to_vmem [thread:$0]  %s10349_s7, 32, %s57_s27, [#allocation12]  }
  0x18   :  { %s7332_s26 = scalar_lea.hbm %s10353_s11, 32 }
  0x19   :  { %p7333_p8 = scmp.ne.s32.totalorder %s10353_s11, %s7332_s26  ;;  %p7336_p9 = scmp.lt.u32.totalorder %s7332_s26, %s10353_s11 }
  0x1b   :  { %p7338_p10 = pnand %p7336_p9, %p7333_p8 }
  0x1d   :  { %7341 = shalt.err (!%p7338_p10)
}
  0x1e   :  { %s7342_s19 = scalar_lea.vmem %s81_s29, 32  ;;  %p7347_p12 = scmp.lt.s32.totalorder %s81_s29, %s81_s29 }
  0x1f   :  { %p7343_p11 = scmp.ne.s32.totalorder %s81_s29, %s7342_s19  ;;  %p7348_p13 = scmp.lt.s32.totalorder %s7342_s19, %s7342_s19 }
  0x21   :  { %p7349_p0 = por %p7348_p13, %p7347_p12 }
  0x23   :  { %p7350_p1 = pnand %p7349_p0, %p7343_p11 }
  0x25   :  { %7353 = shalt.err (!%p7350_p1)
}
  0x26   :  { %83 = dma.hbm_to_vmem [thread:$0]  %s10353_s11, 32, %s81_s29, [#allocation15]  }
  0x27   :  { %s7478_s1 = smov [#allocation8]   ;;  %s7479_s20 = smov [#allocation13]  }
  0x28   :  { %s38_s15 = sshll.u32 %s7478_s1, 4  ;;  %s68_s21 = sshll.u32 %s7479_s20, 4  ;;  %s39_s15 = int_to_ptr.vmem [resolvable:$true] %s38_s15  ;;  %s69_s21 = int_to_ptr.vmem [resolvable:$true] %s68_s21 }
  0x29   :  { %s10378_s24 = sld [smem:[#allocation29_spill]] }
  0x2f   :  { %s7354_s25 = scalar_lea.hbm %s10378_s24, 32 }
  0x30   :  { %p7355_p2 = scmp.ne.s32.totalorder %s10378_s24, %s7354_s25  ;;  %p7358_p3 = scmp.lt.u32.totalorder %s7354_s25, %s10378_s24 }
  0x32   :  { %p7360_p4 = pnand %p7358_p3, %p7355_p2 }
  0x34   :  { %7363 = shalt.err (!%p7360_p4)
}
  0x35   :  { %s7364_s11 = scalar_lea.vmem %s39_s15, 32  ;;  %p7369_p6 = scmp.lt.s32.totalorder %s39_s15, %s39_s15 }
  0x36   :  { %p7365_p5 = scmp.ne.s32.totalorder %s39_s15, %s7364_s11  ;;  %p7370_p7 = scmp.lt.s32.totalorder %s7364_s11, %s7364_s11 }
  0x38   :  { %p7371_p8 = por %p7370_p7, %p7369_p6 }
  0x3a   :  { %p7372_p9 = pnand %p7371_p8, %p7365_p5 }
  0x3c   :  { %7375 = shalt.err (!%p7372_p9)
}
  0x3d   :  { %41 = dma.hbm_to_vmem [thread:$0]  %s10378_s24, 32, %s39_s15, [#allocation9]  }
  0x3e   :  { %s7376_s27 = scalar_lea.hbm %s10351_s9, 32 }
  0x3f   :  { %p7377_p10 = scmp.ne.s32.totalorder %s10351_s9, %s7376_s27  ;;  %p7380_p11 = scmp.lt.u32.totalorder %s7376_s27, %s10351_s9 }
  0x41   :  { %p7382_p12 = pnand %p7380_p11, %p7377_p10 }
  0x43   :  { %7385 = shalt.err (!%p7382_p12)
}
  0x44   :  { %s7386_s25 = scalar_lea.vmem %s69_s21, 32  ;;  %p7391_p0 = scmp.lt.s32.totalorder %s69_s21, %s69_s21 }
  0x45   :  { %p7387_p13 = scmp.ne.s32.totalorder %s69_s21, %s7386_s25  ;;  %p7392_p1 = scmp.lt.s32.totalorder %s7386_s25, %s7386_s25 }
  0x47   :  { %p7393_p2 = por %p7392_p1, %p7391_p0 }
  0x49   :  { %p7394_p3 = pnand %p7393_p2, %p7387_p13 }
  0x4b   :  { %7397 = shalt.err (!%p7394_p3)
}
  0x4c   :  { %71 = dma.hbm_to_vmem [thread:$0]  %s10351_s9, 32, %s69_s21, [#allocation12]  }
  0x4d   :  { %s7480_s26 = smov [#allocation16]   ;;  %s7398_s11 = scalar_lea.hbm %s10355_s13, 32 }
  0x4e   :  { %s92_s28 = sshll.u32 %s7480_s26, 4  ;;  %p7399_p4 = scmp.ne.s32.totalorder %s10355_s13, %s7398_s11  ;;  %s93_s28 = int_to_ptr.vmem [resolvable:$true] %s92_s28 }
  0x4f   :  { %p7402_p5 = scmp.lt.u32.totalorder %s7398_s11, %s10355_s13 }
  0x51   :  { %p7404_p6 = pnand %p7402_p5, %p7399_p4 }
  0x53   :  { %7407 = shalt.err (!%p7404_p6)
}
  0x54   :  { %s7408_s27 = scalar_lea.vmem %s93_s28, 32  ;;  %p7413_p8 = scmp.lt.s32.totalorder %s93_s28, %s93_s28 }
  0x55   :  { %p7409_p7 = scmp.ne.s32.totalorder %s93_s28, %s7408_s27  ;;  %p7414_p9 = scmp.lt.s32.totalorder %s7408_s27, %s7408_s27 }
  0x57   :  { %p7415_p10 = por %p7414_p9, %p7413_p8 }
  0x59   :  { %p7416_p11 = pnand %p7415_p10, %p7409_p7 }
  0x5b   :  { %7419 = shalt.err (!%p7416_p11)
}
  0x5c   :  { %95 = dma.hbm_to_vmem [thread:$0]  %s10355_s13, 32, %s93_s28, [#allocation15]  }
  0x5d   :  { %7464 = dma.done.wait [#allocation9], 32  }
  0x5e   :  { %7465 = vsyncadd [#allocation9], 4294967264 }
  0x5f   :  { %7466 = dma.done.wait [#allocation12], 64  }
  0x60   :  { %7467 = vsyncadd [#allocation12], 4294967232 }
  0x61   :  { %7468 = dma.done.wait [#allocation15], 64  }
  0x62   :  { %7469 = vsyncadd [#allocation15], 4294967232  ;;  %s120_s1 = sld [smem:[#allocation0]]   ;;  %s7481_s20 = smov 256   ;;  %vm158_vm0 = vcmask 911360   ;;  %v7489_v1 = vmov 0.0  }
  0x63   :  { %132 = sst [smem:[#allocation21]] %s7481_s20  ;;  %s7482_s22 = smov 2   ;;  %vm164_vm1 = vcmask 788608   ;;  %vm187_vm2 = vcmask 23552   ;;  %v7506_v23 = vmov 0   ;;  %vm200_vm3 = vcmask 1042432  }
  0x64   :  { %134 = sst [smem:[#allocation21 + $0x1]] %s7481_s20  ;;  %s7483_s23 = smov 64   ;;  %7211 = vset.pattern.permute.xlu1 %v7506_v23  ;;  %7210 = vset.pattern.permute.xlu0 %v7506_v23  ;;  %vm1227_vm4 = vcmask 916480   ;;  %vm1248_vm9 = vcmask 793728   ;;  %vm1293_vm10 = vcmask 261120  }
  0x65   :  { %136 = sst [smem:[#allocation21 + $0x2]] %s7482_s22  ;;  %s7484_s25 = smov 128  }
  0x66   :  { %138 = sst [smem:[#allocation21 + $0x3]] %s7483_s23  ;;  %s7485_s15 = smov [#allocation5]  }
  0x67   :  { %140 = sst [smem:[#allocation21 + $0x4]] %s7484_s25  ;;  %s128_s24 = sshll.u32 %s7485_s15, 4  ;;  %s129_s24 = int_to_ptr.vmem [resolvable:$true] %s128_s24 }
  0x68   :  { %142 = sst [smem:[#allocation21 + $0x5]] %s7482_s22  ;;  %s6147_s13 = sshll.u32 %s120_s1, 26 }
  0x69   :  { %144 = sst [smem:[#allocation21 + $0x6]] %s7484_s25  ;;  %s6148_s26 = sadd.s32 134217728, %s6147_s13 }
  0x6a   :  { %146 = sst [smem:[#allocation21 + $0x7]] %s7483_s23  ;;  %s7486_s28 = smov 4  }
  0x6b   :  { %148 = sst [smem:[#allocation21 + $0x8]] %s7486_s28  ;;  %s7487_s0 = smov [#allocation6]  }
  0x6c   :  { %s7488_s30 = smov [#allocation20]   ;;  %s7490_s27 = smov 16  }
  0x6d   :  { %150 = dma.general %s10348_s6, 82944, %s129_s24, %s7487_s0, %s7488_s30, [#allocation21], %s6148_s26, 0  }
  0x6e   :  { %159 = vst.msk [vmem:[#allocation2] sm:$0x7] %vm158_vm0, %v7489_v1  ;;  %s10379_s7 = sld [smem:[#allocation28_spill]]  ;;  %v6160_v3 = vld [vmem:[#allocation8 + $0x1] ss:$0 sm:$0xff]  ;;  %s7491_s9 = smov 8  }
  0x6f   :  { %395 = vrot.lane.b32.xlu1 %v6160_v3, %s7491_s9  ;;  %v6149_v4 = vld [vmem:[#allocation8] ss:$0 sm:$0xff]  ;;  %s7492_s21 = smov 15   ;;  %s7493_s1 = smov 6   ;;  %v176_v5 = vld [vmem:[%s10344_s2] sm:$0xff]  ;;  %v157_v24 = vld [vmem:[%s10345_s3 + $0x18] sm:$0xff] }
  0x70   :  { %s7494_s6 = smov 24   ;;  %s7495_s20 = smov 17   ;;  %6441 = vmatprep.mubr.msk.f32.mxu0 %vm187_vm2, %v176_v5  ;;  %v180_v20 = vld [vmem:[%s10344_s2 + $0x20] sm:$0xff]  ;;  %v155_v22 = vld [vmem:[%s10345_s3 + $0x8] sm:$0xff]  ;;  %v156_v25 = vld [vmem:[%s10345_s3 + $0x10] sm:$0xff]  ;;  %1229 = vst.msk [vmem:[#allocation3 + $0x8] sm:$0xff] %vm1227_vm4, %v7489_v1 }
  0x71   :  { %s7496_s22 = smov 26   ;;  %s7497_s15 = smov 120   ;;  %6433 = vmatprep.mubr.msk.f32.mxu1 %vm187_vm2, %v180_v20  ;;  %v154_v21 = vld [vmem:[%s10345_s3] sm:$0xff]  ;;  %v177_v28 = vld [vmem:[%s10344_s2 + $0x8] sm:$0xff]  ;;  %v178_v29 = vld [vmem:[%s10344_s2 + $0x10] sm:$0xff]  ;;  %1228 = vst.msk [vmem:[#allocation3] sm:$0xff] %vm1227_vm4, %v7489_v1 }
  0x72   :  { %s7498_s24 = smov 122   ;;  %s7499_s13 = smov 112   ;;  %v179_v32 = vld [vmem:[%s10344_s2 + $0x18] sm:$0xff]  ;;  %v399_v33 = vld [vmem:[%s10344_s2 + $0x40] sm:$0xff]  ;;  %v400_v35 = vld [vmem:[%s10344_s2 + $0x48] sm:$0xff]  ;;  %1230 = vst.msk [vmem:[#allocation3 + $0x10] sm:$0xff] %vm1227_vm4, %v7489_v1 }
  0x73   :  { %509 = vrot.lane.b32.xlu1 %v6149_v4, %s7492_s21  ;;  %s7500_s26 = smov 113   ;;  %s7501_s28 = smov 104   ;;  %v401_v36 = vld [vmem:[%s10344_s2 + $0x50] sm:$0xff]  ;;  %v402_v38 = vld [vmem:[%s10344_s2 + $0x58] sm:$0xff]  ;;  %v181_v39 = vld [vmem:[%s10344_s2 + $0x28] sm:$0xff]  ;;  %1231 = vst.msk [vmem:[#allocation3 + $0x18] sm:$0xff] %vm1227_vm4, %v7489_v1 }
  0x74   :  { %v153_v2 = vld [vmem:[%s10379_s7] sm:$0x7]  ;;  %s7502_s0 = smov 111   ;;  %s7503_s30 = smov 121   ;;  %v182_v41 = vld [vmem:[%s10344_s2 + $0x30] sm:$0xff]  ;;  %v514_v42 = vld [vmem:[%s10344_s2 + $0x68] sm:$0xff] }
  0x75   :  { %161 = vrot.lane.b32.xlu0 %v153_v2, %s7490_s27  ;;  %s7504_s11 = smov 103   ;;  %s7505_s29 = smov 102   ;;  %v513_v40 = vld [vmem:[%s10344_s2 + $0x60] sm:$0xff]  ;;  %v183_v43 = vld [vmem:[%s10344_s2 + $0x38] sm:$0xff]  ;;  %v515_v44 = vld [vmem:[%s10344_s2 + $0x70] sm:$0xff] }
  0x76   :  { %v516_v46 = vld [vmem:[%s10344_s2 + $0x78] sm:$0xff]  ;;  %v623_v47 = vld [vmem:[%s10344_s2 + $0x80] sm:$0xff]  ;;  %v624_v48 = vld [vmem:[%s10344_s2 + $0x88] sm:$0xff]  ;;  %s7509_s21 = smov 76   ;;  %s7513_s3 = smov 68  }
  0x77   :  { %846 = vrot.lane.b32.xlu1 %v6149_v4, %s7494_s6  ;;  %v625_v49 = vld [vmem:[%s10344_s2 + $0x90] sm:$0xff]  ;;  %v626_v50 = vld [vmem:[%s10344_s2 + $0x98] sm:$0xff]  ;;  %v736_v51 = vld [vmem:[%s10344_s2 + $0xa0] sm:$0xff]  ;;  %s7515_s23 = smov 110   ;;  %s7523_s25 = smov 55  }
  0x78   :  { %v737_v52 = vld [vmem:[%s10344_s2 + $0xa8] sm:$0xff]  ;;  %v738_v53 = vld [vmem:[%s10344_s2 + $0xb0] sm:$0xff]  ;;  %v739_v55 = vld [vmem:[%s10344_s2 + $0xb8] sm:$0xff]  ;;  %s7525_s18 = smov 97   ;;  %s7526_s19 = smov 84  }
  0x79   :  { %172 = vrot.lane.b32.xlu0 %v6149_v4, %s7493_s1  ;;  %v850_v56 = vld [vmem:[%s10344_s2 + $0xc0] sm:$0xff]  ;;  %v851_v57 = vld [vmem:[%s10344_s2 + $0xc8] sm:$0xff]  ;;  %v852_v58 = vld [vmem:[%s10344_s2 + $0xd0] sm:$0xff]  ;;  %s7527_s7 = smov 11  }
  0x7a   :  { %v853_v60 = vld [vmem:[%s10344_s2 + $0xd8] sm:$0xff]  ;;  %v960_v61 = vld [vmem:[%s10344_s2 + $0xe0] sm:$0xff]  ;;  %v961_v62 = vld [vmem:[%s10344_s2 + $0xe8] sm:$0xff] }
  0x7b   :  { %v962_v63 = vld [vmem:[%s10344_s2 + $0xf0] sm:$0xff]  ;;  %v963_v0 = vld [vmem:[%s10344_s2 + $0xf8] sm:$0xff]  ;;  %v1073_v2 = vld [vmem:[%s10344_s2 + $0x100] sm:$0xff] }
  0x7c   :  { %v1075_v4 = vld [vmem:[%s10344_s2 + $0x110] sm:$0xff]  ;;  %v1076_v5 = vld [vmem:[%s10344_s2 + $0x118] sm:$0xff] }
  0x7d   :  { %732 = vrot.lane.b32.xlu0 %v6160_v3, %s7495_s20  ;;  %s7511_s20 = smov 81  }
  0x81   :  { %1069 = vrot.lane.b32.xlu0 %v6160_v3, %s7496_s22  ;;  %v1074_v3 = vld [vmem:[%s10344_s2 + $0x108] sm:$0xff]  ;;  %s7512_s22 = smov 34   ;;  %s7514_s2 = smov 123  }
  0xe1   :  { %v7734_v7 = vpop.permute.xlu1 %395 }
  0xe5   :  { %v7736_v8 = vpop.permute.xlu1 %509 }
  0xe7   :  { %v162_v6 = vpop.permute.xlu0 %161 }
  0xe8   :  { %165 = vst.msk [vmem:[#allocation2] sm:$0x7] %vm164_vm1, %v162_v6 }
  0xe9   :  { %v7745_v14 = vpop.permute.xlu1 %846 }
  0xeb   :  { %v7738_v9 = vpop.permute.xlu0 %172 }
  0xef   :  { %v166_v10 = vld [vmem:[#allocation2] sm:$0x7]  ;;  %v7747_v15 = vpop.permute.xlu0 %732 }
  0xf0   :  { %v398_v11 = vmul.f32 %v7734_v7, %v166_v10  ;;  %v175_v12 = vmul.f32 %v7738_v9, %v166_v10  ;;  %v512_v13 = vmul.f32 %v7736_v8, %v166_v10  ;;  %v849_v16 = vmul.f32 %v7745_v14, %v166_v10 }
  0xf1   :  { %v735_v17 = vmul.f32 %v7747_v15, %v166_v10 }
  0xf2   :  { %404 = vrot.lane.b32.xlu0 %v398_v11, %s7497_s15  ;;  %289 = vrot.lane.b32.xlu1 %v175_v12, %s7498_s24 }
  0xf3   :  { %v7755_v18 = vpop.permute.xlu0 %1069 }
  0xf4   :  { %v1072_v19 = vmul.f32 %v7755_v18, %v166_v10 }
  0xf6   :  { %627 = vrot.lane.b32.xlu0 %v166_v10, %s7499_s13  ;;  %518 = vrot.lane.b32.xlu1 %v512_v13, %s7500_s26 }
  0xfa   :  { %855 = vrot.lane.b32.xlu0 %v849_v16, %s7501_s28  ;;  %741 = vrot.lane.b32.xlu1 %v735_v17, %s7502_s0 }
  0xfe   :  { %185 = vrot.lane.b32.xlu0 %v166_v10, %s7503_s30  ;;  %964 = vrot.lane.b32.xlu1 %v166_v10, %s7504_s11 }
 0x102   :  { %1078 = vrot.lane.b32.xlu1 %v1072_v19, %s7505_s29  ;;  %1185 = vperm.xlu0 %7210, %v154_v21  }
 0x106   :  { %1190 = vperm.xlu1 %7211, %v155_v22   ;;  %1200 = vperm.xlu0 %7210, %v157_v24  }
 0x10a   :  { %1195 = vperm.xlu1 %7211, %v156_v25  }
 0x164   :  { %v290_v26 = vpop.permute.xlu1 %289  ;;  %v405_v27 = vpop.permute.xlu0 %404 }
 0x165   :  { %6439 = vmatprep.subr.msk.mxu0 %vm200_vm3, %v290_v26 }
 0x166   :  { %6440 = vmatpush3.msk.msra.mxu0 %vm200_vm3, %v290_v26 }
 0x167   :  { %6442 = vmatmul.mubr.msk.f32.vlgmr.msra.gmra.mrb[0].mxu0 %vm187_vm2, %v177_v28  ;;  %6447 = vmatprep.subr.msk.mxu0 %vm200_vm3, %v405_v27 }
 0x168   :  { %v519_v30 = vpop.permute.xlu1 %518  ;;  %6448 = vmatpush3.msk.msra.mxu0 %vm200_vm3, %v405_v27  ;;  %v628_v31 = vpop.permute.xlu0 %627  ;;  %6444 = vmatprep.mubr.msk.f32.mxu0 %vm187_vm2, %v178_v29 }
 0x169   :  { %6455 = vmatprep.subr.msk.mxu0 %vm200_vm3, %v519_v30 }
 0x16b   :  { %6445 = vmatmul.mubr.msk.f32.gmra.mrb[2].mxu0 %vm187_vm2, %v179_v32 }
 0x16c   :  { %v856_v34 = vpop.permute.xlu0 %855  ;;  %6449 = vmatprep.mubr.msk.f32.mxu0 %vm187_vm2, %v399_v33  ;;  %v742_v45 = vpop.permute.xlu1 %741 }
 0x16f   :  { %6450 = vmatmul.mubr.msk.f32.vlgmr.msra.gmra.mrb[0].mxu0 %vm187_vm2, %v400_v35 }
 0x170   :  { %6456 = vmatpush3.msk.msra.mxu0 %vm200_vm3, %v519_v30  ;;  %v186_v37 = vpop.permute.xlu0 %185  ;;  %6452 = vmatprep.mubr.msk.f32.mxu0 %vm187_vm2, %v401_v36  ;;  %v965_v54 = vpop.permute.xlu1 %964 }
 0x171   :  { %6463 = vmatprep.subr.msk.mxu0 %vm200_vm3, %v628_v31  ;;  %6431 = vmatprep.subr.msk.mxu1 %vm200_vm3, %v186_v37 }
 0x172   :  { %6432 = vmatpush3.msk.msra.mxu1 %vm200_vm3, %v186_v37 }
 0x173   :  { %6453 = vmatmul.mubr.msk.f32.gmra.mrb[2].mxu0 %vm187_vm2, %v402_v38  ;;  %6434 = vmatmul.mubr.msk.f32.vlgmr.msra.gmra.mrb[0].mxu1 %vm187_vm2, %v181_v39 }
 0x174   :  { %6457 = vmatprep.mubr.msk.f32.mxu0 %vm187_vm2, %v513_v40  ;;  %6436 = vmatprep.mubr.msk.f32.mxu1 %vm187_vm2, %v182_v41  ;;  %v1079_v59 = vpop.permute.xlu1 %1078 }
 0x177   :  { %6458 = vmatmul.mubr.msk.f32.vlgmr.msra.gmra.mrb[0].mxu0 %vm187_vm2, %v514_v42  ;;  %6437 = vmatmul.mubr.msk.f32.gmra.mrb[2].mxu1 %vm187_vm2, %v183_v43 }
 0x178   :  { %6464 = vmatpush3.msk.msra.mxu0 %vm200_vm3, %v628_v31  ;;  %6460 = vmatprep.mubr.msk.f32.mxu0 %vm187_vm2, %v515_v44 }
 0x179   :  { %6471 = vmatprep.subr.msk.mxu0 %vm200_vm3, %v742_v45 }
 0x17b   :  { %6461 = vmatmul.mubr.msk.f32.gmra.mrb[2].mxu0 %vm187_vm2, %v516_v46 }
 0x17c   :  { %6465 = vmatprep.mubr.msk.f32.mxu0 %vm187_vm2, %v623_v47 }
 0x17f   :  { %6466 = vmatmul.mubr.msk.f32.vlgmr.msra.gmra.mrb[0].mxu0 %vm187_vm2, %v624_v48 }
 0x180   :  { %6472 = vmatpush3.msk.msra.mxu0 %vm200_vm3, %v742_v45  ;;  %6468 = vmatprep.mubr.msk.f32.mxu0 %vm187_vm2, %v625_v49 }
 0x181   :  { %6479 = vmatprep.subr.msk.mxu0 %vm200_vm3, %v856_v34  ;;  %v1186_v13 = vpop.permute.xlu0 %1185 }
 0x183   :  { %6469 = vmatmul.mubr.msk.f32.gmra.mrb[2].mxu0 %vm187_vm2, %v626_v50 }
 0x184   :  { %6473 = vmatprep.mubr.msk.f32.mxu0 %vm187_vm2, %v736_v51 }
 0x185   :  { %v1191_v17 = vpop.permute.xlu1 %1190  ;;  %v1201_v29 = vpop.permute.xlu0 %1200 }
 0x187   :  { %6474 = vmatmul.mubr.msk.f32.vlgmr.msra.gmra.mrb[0].mxu0 %vm187_vm2, %v737_v52 }
 0x188   :  { %6480 = vmatpush3.msk.msra.mxu0 %vm200_vm3, %v856_v34  ;;  %6476 = vmatprep.mubr.msk.f32.mxu0 %vm187_vm2, %v738_v53 }
 0x189   :  { %6487 = vmatprep.subr.msk.mxu0 %vm200_vm3, %v965_v54  ;;  %v1196_v32 = vpop.permute.xlu1 %1195 }
 0x18b   :  { %6477 = vmatmul.mubr.msk.f32.gmra.mrb[2].mxu0 %vm187_vm2, %v739_v55 }
 0x18c   :  { %6481 = vmatprep.mubr.msk.f32.mxu0 %vm187_vm2, %v850_v56 }
 0x18f   :  { %6482 = vmatmul.mubr.msk.f32.vlgmr.msra.gmra.mrb[0].mxu0 %vm187_vm2, %v851_v57 }
 0x190   :  { %6488 = vmatpush3.msk.msra.mxu0 %vm200_vm3, %v965_v54  ;;  %6484 = vmatprep.mubr.msk.f32.mxu0 %vm187_vm2, %v852_v58  ;;  %v1269_v58 = vld [vmem:[%s10346_s4 + $0x40] sm:$0xff] }
 0x191   :  { %6495 = vmatprep.subr.msk.mxu0 %vm200_vm3, %v1079_v59  ;;  %6511 = vmatprep.mubr.msk.f32.mxu1 %vm1293_vm10, %v1269_v58  ;;  %v1274_v58 = vld [vmem:[%s10346_s4 + $0x68] sm:$0xff] }
 0x193   :  { %6485 = vmatmul.mubr.msk.f32.gmra.mrb[2].mxu0 %vm187_vm2, %v853_v60 }
 0x194   :  { %6489 = vmatprep.mubr.msk.f32.mxu0 %vm187_vm2, %v960_v61 }
 0x197   :  { %6490 = vmatmul.mubr.msk.f32.vlgmr.msra.gmra.mrb[0].mxu0 %vm187_vm2, %v961_v62 }
 0x198   :  { %6496 = vmatpush3.msk.msra.mxu0 %vm200_vm3, %v1079_v59  ;;  %6492 = vmatprep.mubr.msk.f32.mxu0 %vm187_vm2, %v962_v63 }
 0x19b   :  { %6493 = vmatmul.mubr.msk.f32.gmra.mrb[2].mxu0 %vm187_vm2, %v963_v0 }
 0x19c   :  { %6497 = vmatprep.mubr.msk.f32.mxu0 %vm187_vm2, %v1073_v2 }
 0x19f   :  { %6498 = vmatmul.mubr.msk.f32.vlgmr.msra.gmra.mrb[0].mxu0 %vm187_vm2, %v1074_v3 }
 0x1a0   :  { %6500 = vmatprep.mubr.msk.f32.mxu0 %vm187_vm2, %v1075_v4 }
 0x1a3   :  { %6501 = vmatmul.mubr.msk.f32.gmra.mrb[2].mxu0 %vm187_vm2, %v1076_v5 }
 0x246   :  { %v6435_v6 = vpop.f32.mrb[0].mxu1 }
 0x247   :  { %v269_v10 = vpop.f32.mrb[1].mxu1 }
 0x24a   :  { %v6438_v11 = vpop.f32.mrb[2].mxu1 }
 0x24b   :  { %v279_v12 = vpop.f32.mrb[3].mxu1 }
 0x272   :  { %v6499_v16 = vpop.f32.mrb[0].mxu0 }
 0x273   :  { %v6944_v19 = vadd.f32 %v6499_v16, %v6435_v6  ;;  %v1160_v20 = vpop.f32.mrb[1].mxu0 }
 0x274   :  { %v6945_v21 = vadd.f32 %v1160_v20, %v269_v10 }
 0x275   :  { %v1204_v22 = vadd.f32 %v6944_v19, %v1191_v17 }
 0x276   :  { %v1203_v24 = vadd.f32 %v6945_v21, %v1186_v13  ;;  %v6502_v25 = vpop.f32.mrb[2].mxu0 }
 0x277   :  { %v6946_v26 = vadd.f32 %v6502_v25, %v6438_v11  ;;  %v1170_v27 = vpop.f32.mrb[3].mxu0  ;;  %vm1208_vm5 = vcmp.gt.f32.partialorder %v1204_v22, 0.0  ;;  %v1212_v28 = vmul.f32 0.01, %v1204_v22 }
 0x278   :  { %v6947_v30 = vadd.f32 %v1170_v27, %v279_v12  ;;  %vm1207_vm6 = vcmp.gt.f32.partialorder %v1203_v24, 0.0  ;;  %v1211_v31 = vmul.f32 0.01, %v1203_v24 }
 0x279   :  { %v1206_v33 = vadd.f32 %v6946_v26, %v1201_v29  ;;  %v1216_v34 = vsel %vm1208_vm5, %v1204_v22, %v1212_v28  ;;  %v1221_v28 = vld [vmem:[%s10347_s5 + $0x10] sm:$0xff]  ;;  %v1223_v29 = vld [vmem:[%s10347_s5 + $0x20] sm:$0xff] }
 0x27a   :  { %v1205_v35 = vadd.f32 %v6947_v30, %v1196_v32  ;;  %1238 = vrot.lane.b32.xlu0 %v1216_v34, %s7490_s27  ;;  %v1215_v36 = vsel %vm1207_vm6, %v1203_v24, %v1211_v31  ;;  %v1222_v30 = vld [vmem:[%s10347_s5 + $0x18] sm:$0xff]  ;;  %v1225_v31 = vld [vmem:[%s10347_s5 + $0x30] sm:$0xff]  ;;  %v1224_v32 = vld [vmem:[%s10347_s5 + $0x28] sm:$0xff] }
 0x27b   :  { %1236 = vrot.lane.b32.xlu1 %v1215_v36, %s7490_s27  ;;  %vm1210_vm7 = vcmp.gt.f32.partialorder %v1206_v33, 0.0  ;;  %v1214_v37 = vmul.f32 0.01, %v1206_v33 }
 0x27c   :  { %vm1209_vm8 = vcmp.gt.f32.partialorder %v1205_v35, 0.0  ;;  %v1213_v38 = vmul.f32 0.01, %v1205_v35 }
 0x27d   :  { %v1218_v39 = vsel %vm1210_vm7, %v1206_v33, %v1214_v37  ;;  %v1226_v33 = vld [vmem:[%s10347_s5 + $0x38] sm:$0xff] }
 0x27e   :  { %1242 = vrot.lane.b32.xlu0 %v1218_v39, %s7490_s27  ;;  %v1217_v40 = vsel %vm1209_vm8, %v1205_v35, %v1213_v38  ;;  %vm2810_vm8 = vcmask 662528  }
 0x27f   :  { %1240 = vrot.lane.b32.xlu1 %v1217_v40, %s7490_s27 }
 0x2ec   :  { %v1239_v41 = vpop.permute.xlu0 %1238 }
 0x2ed   :  { %1250 = vst.msk [vmem:[#allocation3 + $0x8] sm:$0xff] %vm1248_vm9, %v1239_v41  ;;  %v1237_v42 = vpop.permute.xlu1 %1236 }
 0x2ee   :  { %1249 = vst.msk [vmem:[#allocation3] sm:$0xff] %vm1248_vm9, %v1237_v42 }
 0x2f0   :  { %v1243_v43 = vpop.permute.xlu0 %1242 }
 0x2f1   :  { %1252 = vst.msk [vmem:[#allocation3 + $0x18] sm:$0xff] %vm1248_vm9, %v1243_v43  ;;  %v1241_v44 = vpop.permute.xlu1 %1240 }
 0x2f2   :  { %1251 = vst.msk [vmem:[#allocation3 + $0x10] sm:$0xff] %vm1248_vm9, %v1241_v44 }
 0x2f4   :  { %v1254_v45 = vld [vmem:[#allocation3 + $0x8] sm:$0xff] }
 0x2f5   :  { %v1253_v46 = vld [vmem:[#allocation3] sm:$0xff]  ;;  %v1258_v49 = vmul.f32 %v1254_v45, %v7738_v9  ;;  %v1569_v53 = vmul.f32 %v1254_v45, %v7734_v7  ;;  %v1734_v60 = vmul.f32 %v1254_v45, %v7736_v8  ;;  %v2056_v10 = vmul.f32 %v1254_v45, %v7747_v15 }
 0x2f6   :  { %v7212_v47 = vpack.i.bf16 %v1254_v45, %v1253_v46  ;;  %v1257_v48 = vmul.f32 %v1253_v46, %v7738_v9  ;;  %v1568_v52 = vmul.f32 %v1253_v46, %v7734_v7  ;;  %v1733_v59 = vmul.f32 %v1253_v46, %v7736_v8 }
 0x2f7   :  { %v2055_v6 = vmul.f32 %v1253_v46, %v7747_v15  ;;  %v2221_v11 = vmul.f32 %v1254_v45, %v7745_v14  ;;  %v2542_v22 = vmul.f32 %v1253_v46, %v7755_v18  ;;  %v2543_v24 = vmul.f32 %v1254_v45, %v7755_v18 }
 0x2f8   :  { %7213 = vrot.lane.b32.xlu1 %v7212_v47, %s7503_s30  ;;  %v1256_v50 = vld [vmem:[#allocation3 + $0x18] sm:$0xff]  ;;  %v7222_v54 = vpack.i.bf16 %v1258_v49, %v1257_v48  ;;  %v7232_v61 = vpack.i.bf16 %v1569_v53, %v1568_v52  ;;  %v7242_v0 = vpack.i.bf16 %v1734_v60, %v1733_v59  ;;  %v1275_v59 = vld [vmem:[%s10346_s4 + $0x70] sm:$0xff] }
 0x2f9   :  { %v1255_v51 = vld [vmem:[#allocation3 + $0x10] sm:$0xff]  ;;  %v1260_v57 = vmul.f32 %v1256_v50, %v7738_v9  ;;  %v1736_v4 = vmul.f32 %v1256_v50, %v7736_v8  ;;  %v7262_v12 = vpack.i.bf16 %v2056_v10, %v2055_v6  ;;  %v2058_v13 = vmul.f32 %v1256_v50, %v7747_v15 }
 0x2fa   :  { %v7217_v55 = vpack.i.bf16 %v1256_v50, %v1255_v51  ;;  %v1259_v56 = vmul.f32 %v1255_v51, %v7738_v9  ;;  %v1570_v63 = vmul.f32 %v1255_v51, %v7734_v7  ;;  %v1571_v9 = vmul.f32 %v1256_v50, %v7734_v7  ;;  %v1264_v10 = vld [vmem:[%s10346_s4 + $0x18] sm:$0xff] }
 0x2fb   :  { %v1735_v3 = vmul.f32 %v1255_v51, %v7736_v8  ;;  %v2220_v7 = vmul.f32 %v1253_v46, %v7745_v14  ;;  %v2057_v8 = vmul.f32 %v1255_v51, %v7747_v15  ;;  %v2222_v19 = vmul.f32 %v1255_v51, %v7745_v14 }
 0x2fc   :  { %7223 = vrot.lane.b32.xlu1 %v7222_v54, %s7498_s24  ;;  %7218 = vrot.lane.b32.xlu0 %v7217_v55, %s7503_s30  ;;  %v7227_v62 = vpack.i.bf16 %v1260_v57, %v1259_v56  ;;  %v7237_v2 = vpack.i.bf16 %v1571_v9, %v1570_v63  ;;  %v2223_v20 = vmul.f32 %v1256_v50, %v7745_v14  ;;  %v1219_v14 = vld [vmem:[%s10347_s5] sm:$0xff] }
 0x2fd   :  { %v7247_v5 = vpack.i.bf16 %v1736_v4, %v1735_v3  ;;  %v7272_v16 = vpack.i.bf16 %v2221_v11, %v2220_v7  ;;  %v7267_v17 = vpack.i.bf16 %v2058_v13, %v2057_v8  ;;  %v7292_v15 = vpack.i.bf16 %v2543_v24, %v2542_v22  ;;  %v1273_v56 = vld [vmem:[%s10346_s4 + $0x60] sm:$0xff]  ;;  %v1263_v3 = vld [vmem:[%s10346_s4 + $0x10] sm:$0xff]  ;;  %v1573_v22 = vld [vmem:[%s10346_s4 + $0x88] sm:$0xff] }
 0x2fe   :  { %v7277_v21 = vpack.i.bf16 %v2223_v20, %v2222_v19  ;;  %v2544_v25 = vmul.f32 %v1255_v51, %v7755_v18  ;;  %v2545_v26 = vmul.f32 %v1256_v50, %v7755_v18  ;;  %v1220_v18 = vld [vmem:[%s10347_s5 + $0x8] sm:$0xff]  ;;  %v1271_v51 = vld [vmem:[%s10346_s4 + $0x50] sm:$0xff]  ;;  %v1265_v7 = vld [vmem:[%s10346_s4 + $0x20] sm:$0xff]  ;;  %s7521_s5 = smov 105  }
 0x2ff   :  { %v1270_v50 = vld [vmem:[%s10346_s4 + $0x48] sm:$0xff]  ;;  %v1267_v8 = vld [vmem:[%s10346_s4 + $0x30] sm:$0xff] }
 0x300   :  { %7233 = vrot.lane.b32.xlu1 %v7232_v61, %s7497_s15  ;;  %7228 = vrot.lane.b32.xlu0 %v7227_v62, %s7498_s24  ;;  %v7297_v27 = vpack.i.bf16 %v2545_v26, %v2544_v25  ;;  %v1276_v61 = vld [vmem:[%s10346_s4 + $0x78] sm:$0xff]  ;;  %v1261_v62 = vld [vmem:[%s10346_s4] sm:$0xff]  ;;  %s7519_s24 = smov 63  }
 0x301   :  { %v1574_v24 = vld [vmem:[%s10346_s4 + $0x90] sm:$0xff] }
 0x304   :  { %7243 = vrot.lane.b32.xlu1 %v7242_v0, %s7500_s26  ;;  %7238 = vrot.lane.b32.xlu0 %v7237_v2, %s7497_s15  ;;  %v1262_v2 = vld [vmem:[%s10346_s4 + $0x8] sm:$0xff]  ;;  %s7516_s15 = smov 29  }
 0x308   :  { %7253 = vrot.lane.b32.xlu1 %v7212_v47, %s7499_s13  ;;  %7248 = vrot.lane.b32.xlu0 %v7247_v5, %s7500_s26 }
 0x30c   :  { %7263 = vrot.lane.b32.xlu1 %v7262_v12, %s7502_s0  ;;  %7258 = vrot.lane.b32.xlu0 %v7217_v55, %s7499_s13  ;;  %v1266_v12 = vld [vmem:[%s10346_s4 + $0x28] sm:$0xff]  ;;  %s7522_s13 = smov 92  }
 0x310   :  { %7273 = vrot.lane.b32.xlu1 %v7272_v16, %s7501_s28  ;;  %7268 = vrot.lane.b32.xlu0 %v7267_v17, %s7502_s0  ;;  %v1268_v16 = vld [vmem:[%s10346_s4 + $0x38] sm:$0xff]  ;;  %v1572_v17 = vld [vmem:[%s10346_s4 + $0x80] sm:$0xff] }
 0x314   :  { %7283 = vrot.lane.b32.xlu1 %v7212_v47, %s7504_s11  ;;  %7278 = vrot.lane.b32.xlu0 %v7277_v21, %s7501_s28  ;;  %s7524_s28 = smov 50  }
 0x318   :  { %7293 = vrot.lane.b32.xlu1 %v7292_v15, %s7505_s29  ;;  %7288 = vrot.lane.b32.xlu0 %v7217_v55, %s7504_s11  ;;  %v1272_v55 = vld [vmem:[%s10346_s4 + $0x58] sm:$0xff] }
 0x31c   :  { %2709 = vperm.xlu1 %7211, %v1219_v14   ;;  %7298 = vrot.lane.b32.xlu0 %v7297_v27, %s7505_s29  ;;  %v1575_v14 = vld [vmem:[%s10346_s4 + $0x98] sm:$0xff]  ;;  %v1576_v27 = vld [vmem:[%s10346_s4 + $0xa0] sm:$0xff] }
 0x320   :  { %2719 = vperm.xlu1 %7211, %v1221_v28   ;;  %2714 = vperm.xlu0 %7210, %v1220_v18   ;;  %v1577_v18 = vld [vmem:[%s10346_s4 + $0xa8] sm:$0xff] }
 0x324   :  { %2729 = vperm.xlu1 %7211, %v1223_v29   ;;  %2724 = vperm.xlu0 %7210, %v1222_v30   ;;  %v1578_v29 = vld [vmem:[%s10346_s4 + $0xb0] sm:$0xff] }
 0x328   :  { %2739 = vperm.xlu1 %7211, %v1225_v31   ;;  %2734 = vperm.xlu0 %7210, %v1224_v32   ;;  %v1579_v31 = vld [vmem:[%s10346_s4 + $0xb8] sm:$0xff]  ;;  %v1737_v32 = vld [vmem:[%s10346_s4 + $0xc0] sm:$0xff] }
 0x32c   :  { %2744 = vperm.xlu0 %7210, %v1226_v33  }
 0x36a   :  { %v7214_v34 = vpop.permute.xlu1 %7213 }
 0x36b   :  { %v7216_v35 = vunpack.i.h.bf16 %v7214_v34  ;;  %v7215_v36 = vunpack.i.l.bf16 %v7214_v34 }
 0x36d   :  { %v6683_v37 = vpack.c.bf16 %v7216_v35, %v7215_v36  ;;  %v1738_v36 = vld [vmem:[%s10346_s4 + $0xc8] sm:$0xff] }
 0x36e   :  { %v7224_v38 = vpop.permute.xlu1 %7223  ;;  %v7219_v39 = vpop.permute.xlu0 %7218 }
 0x36f   :  { %v7226_v40 = vunpack.i.h.bf16 %v7224_v38  ;;  %v7225_v41 = vunpack.i.l.bf16 %v7224_v38  ;;  %v7221_v42 = vunpack.i.h.bf16 %v7219_v39  ;;  %v7220_v43 = vunpack.i.l.bf16 %v7219_v39  ;;  %6684 = vmatprep.subr.bf16.mxu1 %v6683_v37 }
 0x370   :  { %6686 = vmatpush3.bf16.msra.mxu1 %v6683_v37  ;;  %v1739_v37 = vld [vmem:[%s10346_s4 + $0xd0] sm:$0xff] }
 0x371   :  { %v6687_v44 = vpack.c.bf16 %v7221_v42, %v7220_v43  ;;  %v6691_v46 = vpack.c.bf16 %v7226_v40, %v7225_v41  ;;  %v1740_v41 = vld [vmem:[%s10346_s4 + $0xd8] sm:$0xff]  ;;  %v1741_v42 = vld [vmem:[%s10346_s4 + $0xe0] sm:$0xff] }
 0x372   :  { %v7229_v45 = vpop.permute.xlu0 %7228  ;;  %v7234_v49 = vpop.permute.xlu1 %7233 }
 0x373   :  { %v7231_v47 = vunpack.i.h.bf16 %v7229_v45  ;;  %v7230_v48 = vunpack.i.l.bf16 %v7229_v45  ;;  %6688 = vmatprep.subr.bf16.mxu1 %v6687_v44  ;;  %v7236_v52 = vunpack.i.h.bf16 %v7234_v49  ;;  %v7235_v53 = vunpack.i.l.bf16 %v7234_v49  ;;  %v1743_v45 = vld [vmem:[%s10346_s4 + $0xf0] sm:$0xff] }
 0x374   :  { %6690 = vmatpush3.bf16.msra.mxu1 %v6687_v44  ;;  %v1742_v44 = vld [vmem:[%s10346_s4 + $0xe8] sm:$0xff] }
 0x375   :  { %6692 = vmatprep.subr.bf16.mxu1 %v6691_v46  ;;  %v6695_v54 = vpack.c.bf16 %v7231_v47, %v7230_v48  ;;  %v6699_v57 = vpack.c.bf16 %v7236_v52, %v7235_v53  ;;  %v1744_v47 = vld [vmem:[%s10346_s4 + $0xf8] sm:$0xff]  ;;  %v1898_v48 = vld [vmem:[%s10346_s4 + $0x100] sm:$0xff]  ;;  %v1899_v52 = vld [vmem:[%s10346_s4 + $0x108] sm:$0xff] }
 0x376   :  { %v7239_v60 = vpop.permute.xlu0 %7238  ;;  %v7244_v0 = vpop.permute.xlu1 %7243  ;;  %v1900_v53 = vld [vmem:[%s10346_s4 + $0x110] sm:$0xff] }
 0x377   :  { %6512 = vmatmul.mubr.msk.f32.vlgmr.msra.gmra.mrb[4].mxu1 %vm1293_vm10, %v1270_v50  ;;  %v7241_v63 = vunpack.i.h.bf16 %v7239_v60  ;;  %v7240_v9 = vunpack.i.l.bf16 %v7239_v60  ;;  %v7246_v4 = vunpack.i.h.bf16 %v7244_v0  ;;  %v7245_v5 = vunpack.i.l.bf16 %v7244_v0  ;;  %v1903_v60 = vld [vmem:[%s10346_s4 + $0x128] sm:$0xff] }
 0x378   :  { %6694 = vmatpush3.bf16.msra.mxu1 %v6691_v46  ;;  %6514 = vmatprep.mubr.msk.f32.mxu1 %vm1293_vm10, %v1271_v51 }
 0x379   :  { %6696 = vmatprep.subr.bf16.mxu1 %v6695_v54  ;;  %v6703_v6 = vpack.c.bf16 %v7241_v63, %v7240_v9  ;;  %v6707_v11 = vpack.c.bf16 %v7246_v4, %v7245_v5  ;;  %v1905_v63 = vld [vmem:[%s10346_s4 + $0x138] sm:$0xff]  ;;  %v2059_v9 = vld [vmem:[%s10346_s4 + $0x140] sm:$0xff]  ;;  %v2060_v4 = vld [vmem:[%s10346_s4 + $0x148] sm:$0xff] }
 0x37a   :  { %v7249_v13 = vpop.permute.xlu0 %7248  ;;  %v7254_v21 = vpop.permute.xlu1 %7253  ;;  %v2061_v5 = vld [vmem:[%s10346_s4 + $0x150] sm:$0xff] }
 0x37b   :  { %6515 = vmatmul.mubr.msk.f32.gmra.mrb[6].mxu1 %vm1293_vm10, %v1272_v55  ;;  %v7251_v19 = vunpack.i.h.bf16 %v7249_v13  ;;  %v7250_v20 = vunpack.i.l.bf16 %v7249_v13  ;;  %v7256_v15 = vunpack.i.h.bf16 %v7254_v21  ;;  %v7255_v25 = vunpack.i.l.bf16 %v7254_v21  ;;  %v2064_v13 = vld [vmem:[%s10346_s4 + $0x168] sm:$0xff] }
 0x37c   :  { %6698 = vmatpush3.bf16.msra.mxu1 %v6695_v54  ;;  %6517 = vmatprep.mubr.msk.f32.mxu1 %vm1293_vm10, %v1273_v56 }
 0x37d   :  { %6700 = vmatprep.subr.bf16.mxu1 %v6699_v57  ;;  %v6711_v26 = vpack.c.bf16 %v7251_v19, %v7250_v20  ;;  %v6715_v28 = vpack.c.bf16 %v7256_v15, %v7255_v25  ;;  %v2066_v19 = vld [vmem:[%s10346_s4 + $0x178] sm:$0xff]  ;;  %v2224_v20 = vld [vmem:[%s10346_s4 + $0x180] sm:$0xff]  ;;  %v2225_v15 = vld [vmem:[%s10346_s4 + $0x188] sm:$0xff] }
 0x37e   :  { %v7259_v30 = vpop.permute.xlu0 %7258  ;;  %v7264_v35 = vpop.permute.xlu1 %7263  ;;  %v2226_v25 = vld [vmem:[%s10346_s4 + $0x190] sm:$0xff] }
 0x37f   :  { %6518 = vmatmul.mubr.msk.f32.gmra.mrb[8].mxu1 %vm1293_vm10, %v1274_v58  ;;  %v7261_v33 = vunpack.i.h.bf16 %v7259_v30  ;;  %v7260_v34 = vunpack.i.l.bf16 %v7259_v30  ;;  %v7266_v38 = vunpack.i.h.bf16 %v7264_v35  ;;  %v7265_v39 = vunpack.i.l.bf16 %v7264_v35  ;;  %v1902_v58 = vld [vmem:[%s10346_s4 + $0x120] sm:$0xff]  ;;  %v2229_v30 = vld [vmem:[%s10346_s4 + $0x1a8] sm:$0xff] }
 0x380   :  { %6520 = vmatprep.mubr.msk.f32.mxu1 %vm1293_vm10, %v1275_v59 }
 0x381   :  { %v6719_v40 = vpack.c.bf16 %v7261_v33, %v7260_v34  ;;  %v6723_v43 = vpack.c.bf16 %v7266_v38, %v7265_v39  ;;  %v2231_v33 = vld [vmem:[%s10346_s4 + $0x1b8] sm:$0xff]  ;;  %v2385_v34 = vld [vmem:[%s10346_s4 + $0x1c0] sm:$0xff]  ;;  %v2387_v38 = vld [vmem:[%s10346_s4 + $0x1d0] sm:$0xff] }
 0x382   :  { %v7269_v46 = vpop.permute.xlu0 %7268  ;;  %v7274_v51 = vpop.permute.xlu1 %7273 }
 0x383   :  { %6521 = vmatmul.mubr.msk.f32.gmra.mrb[10].mxu1 %vm1293_vm10, %v1276_v61  ;;  %v7271_v49 = vunpack.i.h.bf16 %v7269_v46  ;;  %v7270_v50 = vunpack.i.l.bf16 %v7269_v46  ;;  %v7276_v54 = vunpack.i.h.bf16 %v7274_v51  ;;  %v7275_v55 = vunpack.i.l.bf16 %v7274_v51  ;;  %v1904_v61 = vld [vmem:[%s10346_s4 + $0x130] sm:$0xff]  ;;  %v2547_v46 = vld [vmem:[%s10346_s4 + $0x208] sm:$0xff] }
 0x384   :  { %6531 = vmatprep.mubr.msk.f32.mxu1 %vm1293_vm10, %v1261_v62  ;;  %v2552_v51 = vld [vmem:[%s10346_s4 + $0x230] sm:$0xff] }
 0x385   :  { %v6727_v56 = vpack.c.bf16 %v7271_v49, %v7270_v50  ;;  %v6731_v59 = vpack.c.bf16 %v7276_v54, %v7275_v55  ;;  %v2550_v49 = vld [vmem:[%s10346_s4 + $0x220] sm:$0xff]  ;;  %v2551_v50 = vld [vmem:[%s10346_s4 + $0x228] sm:$0xff]  ;;  %v2779_v54 = vlaneseq  ;;  %v7507_v55 = vmov 1966171168  }
 0x386   :  { %v7279_v62 = vpop.permute.xlu0 %7278 }
 0x387   :  { %6532 = vmatmul.mubr.msk.f32.vlgmr.msra.gmra.mrb[4].mxu1 %vm1293_vm10, %v1262_v2  ;;  %v7281_v0 = vunpack.i.h.bf16 %v7279_v62  ;;  %v7280_v2 = vunpack.i.l.bf16 %v7279_v62  ;;  %vm2781_vm13 = vcmp.lt.s32.totalorder %v2779_v54, 81  ;;  %vm8474_vm4 = vcmp.ge.s32.totalorder %v2779_v54, 81 }
 0x388   :  { %6702 = vmatpush3.bf16.msra.mxu1 %v6699_v57  ;;  %6534 = vmatprep.mubr.msk.f32.mxu1 %vm1293_vm10, %v1263_v3  ;;  %v1901_v57 = vld [vmem:[%s10346_s4 + $0x118] sm:$0xff]  ;;  %v7284_v3 = vpop.permute.xlu1 %7283  ;;  %vm8479_vm5 = vcmp.lt.s32.totalorder %v2779_v54, 162  ;;  %vm8486_vm6 = vcmp.ge.s32.totalorder %v2779_v54, 34  ;;  %vm2822_vm7 = vcmp.lt.s32.totalorder %v2779_v54, 115 }
 0x389   :  { %6704 = vmatprep.subr.bf16.mxu1 %v6703_v6  ;;  %vm2815_vm9 = vmand %vm8474_vm4, %vm8479_vm5  ;;  %vm2883_vm5 = vcmp.ge.s32.totalorder %v2779_v54, 102 }
 0x38b   :  { %6535 = vmatmul.mubr.msk.f32.gmra.mrb[6].mxu1 %vm1293_vm10, %v1264_v10  ;;  %v7285_v10 = vunpack.i.l.bf16 %v7284_v3 }
 0x38c   :  { %6706 = vmatpush3.bf16.msra.mxu1 %v6703_v6  ;;  %6537 = vmatprep.mubr.msk.f32.mxu1 %vm1293_vm10, %v1265_v7  ;;  %v7286_v6 = vunpack.i.h.bf16 %v7284_v3  ;;  %v6735_v7 = vpack.c.bf16 %v7281_v0, %v7280_v2 }
 0x38d   :  { %6708 = vmatprep.subr.bf16.mxu1 %v6707_v11 }
 0x38f   :  { %6538 = vmatmul.mubr.msk.f32.gmra.mrb[8].mxu1 %vm1293_vm10, %v1266_v12  ;;  %v2063_v12 = vld [vmem:[%s10346_s4 + $0x160] sm:$0xff] }
 0x390   :  { %6540 = vmatprep.mubr.msk.f32.mxu1 %vm1293_vm10, %v1267_v8  ;;  %v6739_v8 = vpack.c.bf16 %v7286_v6, %v7285_v10 }
 0x393   :  { %6541 = vmatmul.mubr.msk.f32.gmra.mrb[10].mxu1 %vm1293_vm10, %v1268_v16  ;;  %v2065_v16 = vld [vmem:[%s10346_s4 + $0x170] sm:$0xff] }
 0x394   :  { %6551 = vmatprep.mubr.msk.f32.mxu1 %vm1293_vm10, %v1572_v17  ;;  %v7289_v17 = vpop.permute.xlu0 %7288 }
 0x395   :  { %v7291_v21 = vunpack.i.h.bf16 %v7289_v17 }
 0x397   :  { %6552 = vmatmul.mubr.msk.f32.vlgmr.msra.gmra.mrb[4].mxu1 %vm1293_vm10, %v1573_v22  ;;  %v7290_v22 = vunpack.i.l.bf16 %v7289_v17 }
 0x398   :  { %6710 = vmatpush3.bf16.msra.mxu1 %v6707_v11  ;;  %6554 = vmatprep.mubr.msk.f32.mxu1 %vm1293_vm10, %v1574_v24  ;;  %v2062_v11 = vld [vmem:[%s10346_s4 + $0x158] sm:$0xff]  ;;  %v7294_v24 = vpop.permute.xlu1 %7293 }
 0x399   :  { %6712 = vmatprep.subr.bf16.mxu1 %v6711_v26 }
 0x39b   :  { %6555 = vmatmul.mubr.msk.f32.gmra.mrb[6].mxu1 %vm1293_vm10, %v1575_v14  ;;  %v7295_v14 = vunpack.i.l.bf16 %v7294_v24 }
 0x39c   :  { %6714 = vmatpush3.bf16.msra.mxu1 %v6711_v26  ;;  %6557 = vmatprep.mubr.msk.f32.mxu1 %vm1293_vm10, %v1576_v27  ;;  %v7296_v26 = vunpack.i.h.bf16 %v7294_v24  ;;  %v6743_v27 = vpack.c.bf16 %v7291_v21, %v7290_v22 }
 0x39d   :  { %6716 = vmatprep.subr.bf16.mxu1 %v6715_v28 }
 0x39f   :  { %6558 = vmatmul.mubr.msk.f32.gmra.mrb[8].mxu1 %vm1293_vm10, %v1577_v18  ;;  %v2228_v18 = vld [vmem:[%s10346_s4 + $0x1a0] sm:$0xff] }
 0x3a0   :  { %6560 = vmatprep.mubr.msk.f32.mxu1 %vm1293_vm10, %v1578_v29  ;;  %v6747_v29 = vpack.c.bf16 %v7296_v26, %v7295_v14 }
 0x3a3   :  { %6561 = vmatmul.mubr.msk.f32.gmra.mrb[10].mxu1 %vm1293_vm10, %v1579_v31  ;;  %v2230_v31 = vld [vmem:[%s10346_s4 + $0x1b0] sm:$0xff] }
 0x3a4   :  { %6571 = vmatprep.mubr.msk.f32.mxu1 %vm1293_vm10, %v1737_v32  ;;  %v7299_v32 = vpop.permute.xlu0 %7298 }
 0x3a5   :  { %v7301_v35 = vunpack.i.h.bf16 %v7299_v32 }
 0x3a7   :  { %6572 = vmatmul.mubr.msk.f32.vlgmr.msra.gmra.mrb[4].mxu1 %vm1293_vm10, %v1738_v36  ;;  %v7300_v36 = vunpack.i.l.bf16 %v7299_v32 }
 0x3a8   :  { %6718 = vmatpush3.bf16.msra.mxu1 %v6715_v28  ;;  %6574 = vmatprep.mubr.msk.f32.mxu1 %vm1293_vm10, %v1739_v37  ;;  %v2227_v28 = vld [vmem:[%s10346_s4 + $0x198] sm:$0xff]  ;;  %v2386_v37 = vld [vmem:[%s10346_s4 + $0x1c8] sm:$0xff] }
 0x3a9   :  { %6720 = vmatprep.subr.bf16.mxu1 %v6719_v40  ;;  %v6751_v39 = vpack.c.bf16 %v7301_v35, %v7300_v36 }
 0x3ab   :  { %6575 = vmatmul.mubr.msk.f32.gmra.mrb[6].mxu1 %vm1293_vm10, %v1740_v41  ;;  %v2389_v41 = vld [vmem:[%s10346_s4 + $0x1e0] sm:$0xff] }
 0x3ac   :  { %6722 = vmatpush3.bf16.msra.mxu1 %v6719_v40  ;;  %6577 = vmatprep.mubr.msk.f32.mxu1 %vm1293_vm10, %v1741_v42  ;;  %v2388_v40 = vld [vmem:[%s10346_s4 + $0x1d8] sm:$0xff]  ;;  %v2390_v42 = vld [vmem:[%s10346_s4 + $0x1e8] sm:$0xff] }
 0x3ad   :  { %6724 = vmatprep.subr.bf16.mxu1 %v6723_v43 }
 0x3af   :  { %6578 = vmatmul.mubr.msk.f32.gmra.mrb[8].mxu1 %vm1293_vm10, %v1742_v44  ;;  %v2392_v44 = vld [vmem:[%s10346_s4 + $0x1f8] sm:$0xff] }
 0x3b0   :  { %6580 = vmatprep.mubr.msk.f32.mxu1 %vm1293_vm10, %v1743_v45  ;;  %v2546_v45 = vld [vmem:[%s10346_s4 + $0x200] sm:$0xff] }
 0x3b3   :  { %6581 = vmatmul.mubr.msk.f32.gmra.mrb[10].mxu1 %vm1293_vm10, %v1744_v47  ;;  %v2548_v47 = vld [vmem:[%s10346_s4 + $0x210] sm:$0xff] }
 0x3b4   :  { %6591 = vmatprep.mubr.msk.f32.mxu1 %vm1293_vm10, %v1898_v48  ;;  %v2549_v48 = vld [vmem:[%s10346_s4 + $0x218] sm:$0xff] }
 0x3b7   :  { %6592 = vmatmul.mubr.msk.f32.vlgmr.msra.gmra.mrb[4].mxu1 %vm1293_vm10, %v1899_v52  ;;  %v2553_v52 = vld [vmem:[%s10346_s4 + $0x238] sm:$0xff] }
 0x3b8   :  { %6726 = vmatpush3.bf16.msra.mxu1 %v6723_v43  ;;  %6594 = vmatprep.mubr.msk.f32.mxu1 %vm1293_vm10, %v1900_v53  ;;  %v2391_v43 = vld [vmem:[%s10346_s4 + $0x1f0] sm:$0xff]  ;;  %v2715_v53 = vpop.permute.xlu0 %2714  ;;  %s7508_s4 = smov 89  }
 0x3b9   :  { %6728 = vmatprep.subr.bf16.mxu1 %v6727_v56 }
 0x3bb   :  { %6595 = vmatmul.mubr.msk.f32.gmra.mrb[6].mxu1 %vm1293_vm10, %v1901_v57  ;;  %v2710_v57 = vpop.permute.xlu1 %2709 }
 0x3bc   :  { %6730 = vmatpush3.bf16.msra.mxu1 %v6727_v56  ;;  %6597 = vmatprep.mubr.msk.f32.mxu1 %vm1293_vm10, %v1902_v58  ;;  %v2786_v56 = vunpack.c.l.s4 %v7507_v55 }
 0x3bd   :  { %6732 = vmatprep.subr.bf16.mxu1 %v6731_v59 }
 0x3be   :  { %v2787_v58 = vunpack.c.0.s8 %v2786_v56 }
 0x3bf   :  { %6598 = vmatmul.mubr.msk.f32.gmra.mrb[8].mxu1 %vm1293_vm10, %v1903_v60  ;;  %v2725_v60 = vpop.permute.xlu0 %2724  ;;  %v2720_v62 = vpop.permute.xlu1 %2719 }
 0x3c0   :  { %6600 = vmatprep.mubr.msk.f32.mxu1 %vm1293_vm10, %v1904_v61 }
 0x3c3   :  { %6601 = vmatmul.mubr.msk.f32.gmra.mrb[10].mxu1 %vm1293_vm10, %v1905_v63 }
 0x3c4   :  { %6611 = vmatprep.mubr.msk.f32.mxu1 %vm1293_vm10, %v2059_v9 }
 0x3c7   :  { %6612 = vmatmul.mubr.msk.f32.vlgmr.msra.gmra.mrb[4].mxu1 %vm1293_vm10, %v2060_v4 }
 0x3c8   :  { %6734 = vmatpush3.bf16.msra.mxu1 %v6731_v59  ;;  %6614 = vmatprep.mubr.msk.f32.mxu1 %vm1293_vm10, %v2061_v5  ;;  %v8296_v59 = vshrl.u32 %v2779_v54, 7 }
 0x3c9   :  { %6736 = vmatprep.subr.bf16.mxu1 %v6735_v7 }
 0x3ca   :  { %v8299_v2 = vsub.s32 %v2787_v58, %v8296_v59 }
 0x3cb   :  { %6615 = vmatmul.mubr.msk.f32.gmra.mrb[6].mxu1 %vm1293_vm10, %v2062_v11 }
 0x3cc   :  { %6738 = vmatpush3.bf16.msra.mxu1 %v6735_v7  ;;  %6617 = vmatprep.mubr.msk.f32.mxu1 %vm1293_vm10, %v2063_v12  ;;  %v2735_v7 = vpop.permute.xlu0 %2734 }
 0x3cd   :  { %6740 = vmatprep.subr.bf16.mxu1 %v6739_v8 }
 0x3cf   :  { %6618 = vmatmul.mubr.msk.f32.gmra.mrb[8].mxu1 %vm1293_vm10, %v2064_v13  ;;  %v2730_v13 = vpop.permute.xlu1 %2729 }
 0x3d0   :  { %6620 = vmatprep.mubr.msk.f32.mxu1 %vm1293_vm10, %v2065_v16  ;;  %v2745_v26 = vpop.permute.xlu0 %2744 }
 0x3d3   :  { %6621 = vmatmul.mubr.msk.f32.gmra.mrb[10].mxu1 %vm1293_vm10, %v2066_v19 }
 0x3d4   :  { %6631 = vmatprep.mubr.msk.f32.mxu1 %vm1293_vm10, %v2224_v20 }
 0x3d7   :  { %6632 = vmatmul.mubr.msk.f32.vlgmr.msra.gmra.mrb[4].mxu1 %vm1293_vm10, %v2225_v15 }
 0x3d8   :  { %6742 = vmatpush3.bf16.msra.mxu1 %v6739_v8  ;;  %6634 = vmatprep.mubr.msk.f32.mxu1 %vm1293_vm10, %v2226_v25 }
 0x3d9   :  { %6744 = vmatprep.subr.bf16.mxu1 %v6743_v27 }
 0x3db   :  { %6635 = vmatmul.mubr.msk.f32.gmra.mrb[6].mxu1 %vm1293_vm10, %v2227_v28 }
 0x3dc   :  { %6746 = vmatpush3.bf16.msra.mxu1 %v6743_v27  ;;  %6637 = vmatprep.mubr.msk.f32.mxu1 %vm1293_vm10, %v2228_v18 }
 0x3dd   :  { %6748 = vmatprep.subr.bf16.mxu1 %v6747_v29 }
 0x3df   :  { %6638 = vmatmul.mubr.msk.f32.gmra.mrb[8].mxu1 %vm1293_vm10, %v2229_v30 }
 0x3e0   :  { %6640 = vmatprep.mubr.msk.f32.mxu1 %vm1293_vm10, %v2230_v31 }
 0x3e3   :  { %6641 = vmatmul.mubr.msk.f32.gmra.mrb[10].mxu1 %vm1293_vm10, %v2231_v33 }
 0x3e4   :  { %6651 = vmatprep.mubr.msk.f32.mxu1 %vm1293_vm10, %v2385_v34 }
 0x3e7   :  { %6652 = vmatmul.mubr.msk.f32.vlgmr.msra.gmra.mrb[4].mxu1 %vm1293_vm10, %v2386_v37 }
 0x3e8   :  { %6750 = vmatpush3.bf16.msra.mxu1 %v6747_v29  ;;  %6654 = vmatprep.mubr.msk.f32.mxu1 %vm1293_vm10, %v2387_v38  ;;  %v2740_v29 = vpop.permute.xlu1 %2739 }
 0x3e9   :  { %6752 = vmatprep.subr.bf16.mxu1 %v6751_v39 }
 0x3eb   :  { %6655 = vmatmul.mubr.msk.f32.gmra.mrb[6].mxu1 %vm1293_vm10, %v2388_v40 }
 0x3ec   :  { %6754 = vmatpush3.bf16.msra.mxu1 %v6751_v39  ;;  %6657 = vmatprep.mubr.msk.f32.mxu1 %vm1293_vm10, %v2389_v41 }
 0x3ef   :  { %6658 = vmatmul.mubr.msk.f32.gmra.mrb[8].mxu1 %vm1293_vm10, %v2390_v42 }
 0x3f0   :  { %6660 = vmatprep.mubr.msk.f32.mxu1 %vm1293_vm10, %v2391_v43 }
 0x3f3   :  { %6661 = vmatmul.mubr.msk.f32.gmra.mrb[10].mxu1 %vm1293_vm10, %v2392_v44 }
 0x3f4   :  { %6671 = vmatprep.mubr.msk.f32.mxu1 %vm1293_vm10, %v2546_v45 }
 0x3f7   :  { %6672 = vmatmul.mubr.msk.f32.vlgmr.msra.gmra.mrb[4].mxu1 %vm1293_vm10, %v2547_v46 }
 0x3f8   :  { %6674 = vmatprep.mubr.msk.f32.mxu1 %vm1293_vm10, %v2548_v47 }
 0x3fb   :  { %6675 = vmatmul.mubr.msk.f32.gmra.mrb[6].mxu1 %vm1293_vm10, %v2549_v48 }
 0x3fc   :  { %6677 = vmatprep.mubr.msk.f32.mxu1 %vm1293_vm10, %v2550_v49 }
 0x3ff   :  { %6678 = vmatmul.mubr.msk.f32.gmra.mrb[8].mxu1 %vm1293_vm10, %v2551_v50 }
 0x400   :  { %6680 = vmatprep.mubr.msk.f32.mxu1 %vm1293_vm10, %v2552_v51 }
 0x403   :  { %6681 = vmatmul.mubr.msk.f32.gmra.mrb[10].mxu1 %vm1293_vm10, %v2553_v52  ;;  %vm2823_vm10 = vmand %vm8486_vm6, %vm2822_vm7  ;;  %vm2884_vm6 = vcmp.lt.s32.totalorder %v2779_v54, 183  ;;  %vm2880_vm7 = vcmask 834560  }
 0x4ca   :  { %v6673_v61 = vpop.f32.mrb[4].mxu1 }
 0x4cb   :  { %v2748_v63 = vadd.f32 %v6673_v61, %v2715_v53  ;;  %v2660_v9 = vpop.f32.mrb[5].mxu1 }
 0x4cc   :  { %v2747_v0 = vadd.f32 %v2710_v57, %v2660_v9 }
 0x4cd   :  { %vm2756_vm11 = vcmp.gt.f32.partialorder %v2748_v63, 0.0  ;;  %v2764_v3 = vmul.f32 0.01, %v2748_v63 }
 0x4ce   :  { %vm2755_vm12 = vcmp.gt.f32.partialorder %v2747_v0, 0.0  ;;  %v2763_v4 = vmul.f32 0.01, %v2747_v0  ;;  %v6676_v5 = vpop.f32.mrb[6].mxu1 }
 0x4cf   :  { %v2772_v6 = vsel %vm2756_vm11, %v2748_v63, %v2764_v3  ;;  %v2670_v10 = vpop.f32.mrb[7].mxu1  ;;  %v2750_v21 = vadd.f32 %v6676_v5, %v2725_v60  ;;  %vm8509_vm11 = vcmp.ge.s32.totalorder %v2779_v54, 115 }
 0x4d0   :  { %v2957_v11 = vcombine.high %v2772_v6, %v2772_v6  ;;  %v2771_v12 = vsel %vm2755_vm12, %v2747_v0, %v2763_v4  ;;  %v2905_v8 = vrot.slane %v2772_v6, %v8299_v2  ;;  %v2749_v42 = vadd.f32 %v2720_v62, %v2670_v10 }
 0x4d1   :  { %2783 = vst.msk [vmem:[#allocation4] sm:$0x1] %vm2781_vm13, %v2771_v12  ;;  %v2791_v16 = vrot.slane %v2771_v12, %v8299_v2  ;;  %v2836_v14 = vcombine.high %v2771_v12, %v2771_v12  ;;  %v2766_v30 = vmul.f32 0.01, %v2750_v21  ;;  %vm2758_vm14 = vcmp.gt.f32.partialorder %v2750_v21, 0.0 }
 0x4d2   :  { %v6679_v17 = vpop.f32.mrb[8].mxu1  ;;  %v2912_v19 = vrot.slane %v2905_v8, %v8299_v2  ;;  %v2920_v20 = vcombine.high %v2905_v8, %v2905_v8  ;;  %v8306_v24 = vrot.slane %v2957_v11, %v8299_v2  ;;  %v2765_v60 = vmul.f32 0.01, %v2749_v42 }
 0x4d3   :  { %v2680_v22 = vpop.f32.mrb[9].mxu1  ;;  %v2752_v25 = vadd.f32 %v6679_v17, %v2735_v7  ;;  %v2792_v18 = vcombine.high %v2791_v16, %v2791_v16  ;;  %v2799_v36 = vrot.slane %v2791_v16, %v8299_v2  ;;  %v8315_v41 = vrot.slane %v2836_v14, %v8299_v2 }
 0x4d4   :  { %2913 = vrot.lane.b32.xlu1 %v2912_v19, %s7491_s9  ;;  %v2927_v15 = vrot.slane %v2920_v20, %v8299_v2  ;;  %v2971_v28 = vrot.slane %v8306_v24, %v8299_v2  ;;  %v2751_v33 = vadd.f32 %v2730_v13, %v2680_v22  ;;  %v2938_v35 = vcombine.high %v2912_v19, %v2912_v19  ;;  %s7510_s9 = smov 42  }
 0x4d5   :  { %v2768_v37 = vmul.f32 0.01, %v2752_v25  ;;  %v2806_v40 = vrot.slane %v2792_v18, %v8299_v2  ;;  %vm2760_vm1 = vcmp.gt.f32.partialorder %v2752_v25, 0.0  ;;  %v2817_v47 = vcombine.high %v2799_v36, %v2799_v36 }
 0x4d6   :  { %2928 = vrot.lane.b32.xlu0 %v2927_v15, %s7508_s4  ;;  %v6682_v27 = vpop.f32.mrb[10].mxu1  ;;  %v2767_v44 = vmul.f32 0.01, %v2751_v33  ;;  %v8318_v48 = vsel %vm2758_vm14, %v2750_v21, %v2766_v30  ;;  %vm2759_vm2 = vcmp.gt.f32.partialorder %v2751_v33, 0.0  ;;  %v2850_v53 = vrot.slane %v8315_v41, %v8299_v2  ;;  %s7528_s4 = smov 126  }
 0x4d7   :  { %v2754_v31 = vadd.f32 %v6682_v27, %v2745_v26  ;;  %v2690_v32 = vpop.f32.mrb[11].mxu1  ;;  %v2776_v51 = vsel %vm2760_vm1, %v2752_v25, %v2768_v37  ;;  %v2946_v57 = vcombine.high %v2927_v15, %v2927_v15  ;;  %v8329_v58 = vrot.slane %v8318_v48, %v8299_v2 }
 0x4d8   :  { %v2753_v34 = vadd.f32 %v2740_v29, %v2690_v32  ;;  %2972 = vrot.lane.b32.xlu1 %v2971_v28, %s7509_s21  ;;  %v2775_v56 = vsel %vm2759_vm2, %v2751_v33, %v2767_v44  ;;  %v3441_v61 = vcombine.high %v2776_v51, %v2776_v51  ;;  %v8332_v62 = vrot.slane %v2776_v51, %v8299_v2  ;;  %s7529_s21 = smov 40  }
 0x4d9   :  { %vm2762_vm15 = vcmp.gt.f32.partialorder %v2754_v31, 0.0  ;;  %v2770_v38 = vmul.f32 0.01, %v2754_v31  ;;  %vm2757_vm3 = vcmp.gt.f32.partialorder %v2749_v42, 0.0  ;;  %v2997_v63 = vcombine.high %v2971_v28, %v2971_v28 }
 0x4da   :  { %vm2761_vm0 = vcmp.gt.f32.partialorder %v2753_v34, 0.0  ;;  %v2769_v39 = vmul.f32 0.01, %v2753_v34  ;;  %2939 = vrot.lane.b32.xlu0 %v2938_v35, %s7510_s9  ;;  %v2982_v9 = vcombine.high %v8306_v24, %v8306_v24  ;;  %v3320_v0 = vcombine.high %v2775_v56, %v2775_v56  ;;  %s7530_s9 = smov 45  }
 0x4db   :  { %v2778_v43 = vsel %vm2762_vm15, %v2754_v31, %v2770_v38  ;;  %v8337_v3 = vrot.slane %v2775_v56, %v8299_v2  ;;  %v3154_v4 = vrot.slane %v8329_v58, %v8299_v2  ;;  %v3404_v5 = vcombine.high %v8332_v62, %v8332_v62 }
 0x4dc   :  { %v3683_v45 = vcombine.high %v2778_v43, %v2778_v43  ;;  %v2777_v46 = vsel %vm2761_vm0, %v2753_v34, %v2769_v39  ;;  %2807 = vrot.lane.b32.xlu1 %v2806_v40, %s7511_s20  ;;  %v8343_v6 = vsel %vm2757_vm3, %v2749_v42, %v2765_v60  ;;  %v3448_v10 = vrot.slane %v3441_v61, %v8299_v2  ;;  %s7531_s20 = smov 3  }
 0x4dd   :  { %v3510_v49 = vrot.slane %v2777_v46, %v8299_v2  ;;  %v3562_v50 = vcombine.high %v2777_v46, %v2777_v46  ;;  %v2989_v11 = vrot.slane %v2982_v9, %v8299_v2  ;;  %v2825_v12 = vcombine.high %v2806_v40, %v2806_v40 }
 0x4de   :  { %v8322_v52 = vrot.slane %v3683_v45, %v8299_v2  ;;  %2818 = vrot.lane.b32.xlu0 %v2817_v47, %s7512_s22  ;;  %v8349_v8 = vrot.slane %v3404_v5, %v8299_v2  ;;  %v8352_v13 = vrot.slane %v3448_v10, %v8299_v2  ;;  %v3283_v16 = vcombine.high %v8337_v3, %v8337_v3  ;;  %s7532_s22 = smov 118  }
 0x4df   :  { %v3569_v55 = vrot.slane %v3562_v50, %v8299_v2  ;;  %v3528_v7 = vcombine.high %v3510_v49, %v3510_v49  ;;  %v3327_v17 = vrot.slane %v3320_v0, %v8299_v2  ;;  %v3466_v19 = vcombine.high %v3448_v10, %v3448_v10 }
 0x4e0   :  { %2851 = vrot.lane.b32.xlu1 %v2850_v53, %s7513_s3  ;;  %v2876_v20 = vcombine.high %v2850_v53, %v2850_v53  ;;  %v3026_v21 = vrot.slane %v8343_v6, %v8299_v2  ;;  %v3631_v22 = vrot.slane %v2778_v43, %v8299_v2  ;;  %v8361_v24 = vrot.slane %v3510_v49, %v8299_v2  ;;  %s7533_s3 = smov 32  }
 0x4e1   :  { %v2861_v15 = vcombine.high %v8315_v41, %v8315_v41  ;;  %v8366_v25 = vrot.slane %v3283_v16, %v8299_v2  ;;  %v8369_v26 = vrot.slane %v3327_v17, %v8299_v2  ;;  %v8372_v14 = vrot.slane %v3466_v19, %v8299_v2 }
 0x4e2   :  { %2947 = vrot.lane.b32.xlu0 %v2946_v57, %s7514_s2  ;;  %v8375_v27 = vrot.slane %v3631_v22, %v8299_v2  ;;  %v3345_v28 = vcombine.high %v3327_v17, %v3327_v17  ;;  %v3649_v18 = vcombine.high %v3631_v22, %v3631_v22  ;;  %v8378_v29 = vrot.slane %v3528_v7, %v8299_v2  ;;  %s7534_s2 = smov 37  }
 0x4e3   :  { %v3033_v30 = vrot.slane %v3026_v21, %v8299_v2  ;;  %v3587_v33 = vcombine.high %v3569_v55, %v3569_v55  ;;  %v8389_v34 = vrot.slane %v3569_v55, %v8299_v2  ;;  %v8393_v35 = vrot.slane %v8322_v52, %v8299_v2 }
 0x4e4   :  { %2998 = vrot.lane.b32.xlu1 %v2997_v63, %s7515_s23  ;;  %v8383_v31 = vrot.slane %v3345_v28, %v8299_v2  ;;  %v8386_v32 = vrot.slane %v3649_v18, %v8299_v2  ;;  %v3708_v36 = vcombine.high %v8322_v52, %v8322_v52  ;;  %v3199_v37 = vcombine.high %v8318_v48, %v8318_v48  ;;  %s7535_s23 = smov 79  }
 0x4e5   :  { %v2868_v38 = vrot.slane %v2861_v15, %v8299_v2  ;;  %v8402_v39 = vrot.slane %v3587_v33, %v8299_v2  ;;  %v3008_v41 = vcombine.high %v2989_v11, %v2989_v11  ;;  %v3162_v42 = vcombine.high %v8329_v58, %v8329_v58 }
 0x4e6   :  { %3155 = vrot.lane.b32.xlu0 %v3154_v4, %s7494_s6  ;;  %s7517_s6 = smov 115   ;;  %v8405_v40 = vrot.slane %v3708_v36, %v8299_v2  ;;  %v3180_v43 = vcombine.high %v3154_v4, %v3154_v4  ;;  %v3206_v44 = vrot.slane %v3199_v37, %v8299_v2  ;;  %v3078_v46 = vcombine.high %v8343_v6, %v8343_v6 }
 0x4e7   :  { %v3169_v45 = vrot.slane %v3162_v42, %v8299_v2  ;;  %v2887_v48 = vcombine.high %v2868_v38, %v2868_v38  ;;  %v3041_v49 = vcombine.high %v3026_v21, %v3026_v21  ;;  %v3059_v50 = vcombine.high %v3033_v30, %v3033_v30 }
 0x4e8   :  { %2990 = vrot.lane.b32.xlu1 %v2989_v11, %s7516_s15  ;;  %v3213_v47 = vrot.slane %v3206_v44, %v8299_v2  ;;  %v3085_v51 = vrot.slane %v3078_v46, %v8299_v2  ;;  %v3224_v57 = vcombine.high %v3206_v44, %v3206_v44  ;;  %v3396_v58 = vrot.slane %v8332_v62, %v8299_v2  ;;  %s7536_s15 = smov 74  }
 0x4e9   :  { %v3048_v52 = vrot.slane %v3041_v49, %v8299_v2  ;;  %v3191_v55 = vcombine.high %v3169_v45, %v3169_v45  ;;  %v3275_v0 = vrot.slane %v8337_v3, %v8299_v2  ;;  %v3433_v10 = vcombine.high %v8349_v8, %v8349_v8 }
 0x4ea   :  { %2826 = vrot.lane.b32.xlu0 %v2825_v12, %s7517_s6  ;;  %v3092_v53 = vrot.slane %v3085_v51, %v8299_v2  ;;  %v3239_v56 = vcombine.high %v3213_v47, %v3213_v47  ;;  %v3231_v60 = vrot.slane %v3224_v57, %v8299_v2  ;;  %v3103_v9 = vcombine.high %v3085_v51, %v3085_v51  ;;  %s7537_s6 = smov 108  }
 0x4eb   :  { %v3070_v61 = vcombine.high %v3048_v52, %v3048_v52  ;;  %v3422_v5 = vcombine.high %v3396_v58, %v3396_v58  ;;  %v3301_v3 = vcombine.high %v3275_v0, %v3275_v0  ;;  %v3484_v7 = vcombine.high %v8352_v13, %v8352_v13 }
 0x4ec   :  { %2877 = vrot.lane.b32.xlu1 %v2876_v20, %s7505_s29  ;;  %s7518_s29 = smov 21   ;;  %v3118_v63 = vcombine.high %v3092_v53, %v3092_v53  ;;  %v3110_v62 = vrot.slane %v3103_v9, %v8299_v2  ;;  %v3250_v4 = vcombine.high %v3231_v60, %v3231_v60  ;;  %v3312_v11 = vcombine.high %v8366_v25, %v8366_v25 }
 0x4ed   :  { %v3492_v12 = vcombine.high %v8372_v14, %v8372_v14  ;;  %v3664_v16 = vcombine.high %v8375_v27, %v8375_v27  ;;  %v3543_v17 = vcombine.high %v8361_v24, %v8361_v24  ;;  %v3605_v19 = vcombine.high %v8389_v34, %v8389_v34 }
 0x4ee   :  { %3034 = vrot.lane.b32.xlu0 %v3033_v30, %s7490_s27  ;;  %s7520_s27 = smov 58   ;;  %v3129_v6 = vcombine.high %v3110_v62, %v3110_v62  ;;  %v3554_v20 = vcombine.high %v8378_v29, %v8378_v29  ;;  %v3613_v21 = vcombine.high %v8402_v39, %v8402_v39  ;;  %v3675_v15 = vcombine.high %v8386_v32, %v8386_v32 }
 0x4ef   :  { %v3734_v28 = vcombine.high %v8405_v40, %v8405_v40  ;;  %v3726_v30 = vcombine.high %v8393_v35, %v8393_v35  ;;  %vm8514_vm12 = vcmp.lt.s32.totalorder %v2779_v54, 196  ;;  %vm8519_vm13 = vcmp.ge.s32.totalorder %v2779_v54, 68 }
 0x4f0   :  { %2869 = vrot.lane.b32.xlu1 %v2868_v38, %s7518_s29  ;;  %s7538_s29 = smov 71   ;;  %vm8524_vm14 = vcmp.lt.s32.totalorder %v2779_v54, 149  ;;  %vm2829_vm15 = vcmask 941056   ;;  %vm2854_vm0 = vcmask 556032   ;;  %vm2834_vm1 = vmand %vm8509_vm11, %vm8514_vm12  ;;  %vm8533_vm2 = vcmp.ge.s32.totalorder %v2779_v54, 21 }
 0x4f1   :  { %vm8538_vm3 = vcmp.lt.s32.totalorder %v2779_v54, 102  ;;  %vm2859_vm4 = vmand %vm8519_vm13, %vm8524_vm14  ;;  %vm8568_vm11 = vcmp.lt.s32.totalorder %v2779_v54, 136  ;;  %vm8573_vm12 = vcmp.ge.s32.totalorder %v2779_v54, 8  ;;  %vm8578_vm13 = vcmp.lt.s32.totalorder %v2779_v54, 89 }
 0x4f2   :  { %3009 = vrot.lane.b32.xlu0 %v3008_v41, %s7519_s24  ;;  %s7539_s24 = smov 66   ;;  %vm2891_vm14 = vcmask 449536   ;;  %v10452_v41 = vmov 0  ;;  %v10454_v42 = vmov 0  ;;  %v10527_v46 = vmov 0 }
 0x4f4   :  { %3181 = vrot.lane.b32.xlu1 %v3180_v43, %s7520_s27  ;;  %s7540_s27 = smov 100  }
 0x4f6   :  { %3170 = vrot.lane.b32.xlu0 %v3169_v45, %s7521_s5  ;;  %s7541_s5 = smov 61  }
 0x4f8   :  { %3214 = vrot.lane.b32.xlu1 %v3213_v47, %s7522_s13  ;;  %s7543_s13 = smov 14  }
 0x4fa   :  { %2888 = vrot.lane.b32.xlu0 %v2887_v48, %s7523_s25  ;;  %s7544_s25 = smov 56  }
 0x4fc   :  { %3060 = vrot.lane.b32.xlu1 %v3059_v50, %s7524_s28  ;;  %s7546_s28 = smov 19  }
 0x4fe   :  { %3049 = vrot.lane.b32.xlu0 %v3048_v52, %s7525_s18  ;;  %s7547_s18 = smov 95  }
 0x500   :  { %3093 = vrot.lane.b32.xlu1 %v3092_v53, %s7526_s19  ;;  %s7548_s19 = smov 9  }
 0x502   :  { %3192 = vrot.lane.b32.xlu0 %v3191_v55, %s7527_s7  ;;  %s7549_s7 = smov 48  }
 0x504   :  { %3240 = vrot.lane.b32.xlu1 %v3239_v56, %s7528_s4  ;;  %s7550_s4 = smov 87  }
 0x506   :  { %3397 = vrot.lane.b32.xlu0 %v3396_v58, %s7529_s21  ;;  %s7551_s21 = smov 90  }
 0x508   :  { %3232 = vrot.lane.b32.xlu1 %v3231_v60, %s7530_s9  ;;  %s7552_s9 = smov 1  }
 0x50a   :  { %3071 = vrot.lane.b32.xlu0 %v3070_v61, %s7531_s20  ;;  %s7554_s20 = smov 69  }
 0x50c   :  { %3119 = vrot.lane.b32.xlu1 %v3118_v63, %s7532_s22  ;;  %s7555_s22 = smov 116  }
 0x50e   :  { %3276 = vrot.lane.b32.xlu0 %v3275_v0, %s7533_s3  ;;  %s7556_s3 = smov 22  }
 0x510   :  { %3111 = vrot.lane.b32.xlu1 %v3110_v62, %s7534_s2  ;;  %s7557_s2 = smov 35  }
 0x512   :  { %3251 = vrot.lane.b32.xlu0 %v3250_v4, %s7535_s23  ;;  %s7558_s23 = smov 124  }
 0x514   :  { %3423 = vrot.lane.b32.xlu1 %v3422_v5, %s7536_s15  ;;  %s7559_s15 = smov 77  }
 0x516   :  { %3412 = vrot.lane.b32.xlu0 %v8349_v8, %s7503_s30  ;;  %s7542_s30 = smov 27   ;;  %v3363_v8 = vcombine.high %v8369_v26, %v8369_v26 }
 0x518   :  { %3456 = vrot.lane.b32.xlu1 %v8352_v13, %s7537_s6  ;;  %v3371_v13 = vcombine.high %v8383_v31, %v8383_v31  ;;  %s7560_s6 = smov 43  }
 0x51a   :  { %3130 = vrot.lane.b32.xlu0 %v3129_v6, %s7538_s29 }
 0x51c   :  { %3302 = vrot.lane.b32.xlu1 %v3301_v3, %s7539_s24 }
 0x51e   :  { %3291 = vrot.lane.b32.xlu0 %v8366_v25, %s7500_s26  ;;  %s7545_s26 = smov 53  }
 0x520   :  { %3335 = vrot.lane.b32.xlu1 %v8369_v26, %s7540_s27 }
 0x522   :  { %3474 = vrot.lane.b32.xlu0 %v8372_v14, %s7541_s5 }
 0x524   :  { %3434 = vrot.lane.b32.xlu1 %v3433_v10, %s7542_s30 }
 0x526   :  { %3485 = vrot.lane.b32.xlu0 %v3484_v7, %s7543_s13 }
 0x528   :  { %3639 = vrot.lane.b32.xlu1 %v8375_v27, %s7544_s25 }
 0x52a   :  { %3353 = vrot.lane.b32.xlu0 %v8383_v31, %s7545_s26 }
 0x52c   :  { %3313 = vrot.lane.b32.xlu1 %v3312_v11, %s7546_s28  ;;  %v10614_v11 = vmov 0 }
 0x52e   :  { %3493 = vrot.lane.b32.xlu0 %v3492_v12, %s7547_s18 }
 0x530   :  { %3364 = vrot.lane.b32.xlu1 %v3363_v8, %s7493_s1  ;;  %s7553_s1 = smov 82  }
 0x532   :  { %3657 = vrot.lane.b32.xlu0 %v8386_v32, %s7548_s19 }
 0x534   :  { %3518 = vrot.lane.b32.xlu1 %v8361_v24, %s7549_s7 }
 0x536   :  { %3372 = vrot.lane.b32.xlu0 %v3371_v13, %s7550_s4 }
 0x538   :  { %3665 = vrot.lane.b32.xlu1 %v3664_v16, %s7551_s21 }
 0x53a   :  { %3536 = vrot.lane.b32.xlu0 %v8378_v29, %s7552_s9 }
 0x53c   :  { %3544 = vrot.lane.b32.xlu1 %v3543_v17, %s7553_s1  ;;  %v10418_v17 = vmov 0 }
 0x53e   :  { %3595 = vrot.lane.b32.xlu0 %v8402_v39, %s7554_s20 }
 0x540   :  { %3577 = vrot.lane.b32.xlu1 %v8389_v34, %s7555_s22 }
 0x542   :  { %3606 = vrot.lane.b32.xlu0 %v3605_v19, %s7556_s3 }
 0x544   :  { %3555 = vrot.lane.b32.xlu1 %v3554_v20, %s7557_s2 }
 0x546   :  { %v8460_v22 = vpop.permute.xlu1 %2913  ;;  %3614 = vrot.lane.b32.xlu0 %v3613_v21, %s7504_s11  ;;  %s7561_s11 = smov 30  }
 0x548   :  { %v8463_v24 = vpop.permute.xlu0 %2928  ;;  %3698 = vrot.lane.b32.xlu1 %v8393_v35, %s7558_s23 }
 0x549   :  { %v2930_v6 = vrot.slane %v8463_v24, 7 }
 0x54a   :  { %v8468_v25 = vpop.permute.xlu1 %2972  ;;  %3716 = vrot.lane.b32.xlu0 %v8405_v40, %s7559_s15 }
 0x54b   :  { %v2974_v20 = vrot.slane %v8468_v25, 7 }
 0x54c   :  { %v8471_v26 = vpop.permute.xlu0 %2939  ;;  %3676 = vrot.lane.b32.xlu1 %v3675_v15, %s7560_s6 }
 0x54e   :  { %v2808_v29 = vpop.permute.xlu1 %2807  ;;  %3735 = vrot.lane.b32.xlu0 %v3734_v28, %s7502_s0  ;;  %v10428_v28 = vmov 0 }
 0x54f   :  { %v2809_v31 = vrot.slane %v2808_v29, 7 }
 0x550   :  { %v2819_v32 = vpop.permute.xlu0 %2818  ;;  %3727 = vrot.lane.b32.xlu1 %v3726_v30, %s7561_s11 }
 0x551   :  { %v2811_v33 = vsel %vm2810_vm8, %v2809_v31, %v2808_v29  ;;  %vm2874_vm8 = vmand %vm8533_vm2, %vm8538_vm3  ;;  %vm8598_vm2 = vcmp.ge.s32.totalorder %v2779_v54, 42  ;;  %vm8603_vm3 = vcmp.lt.s32.totalorder %v2779_v54, 123 }
 0x552   :  { %2816 = vst.msk [vmem:[#allocation4] sm:$0x3] %vm2815_vm9, %v2811_v33  ;;  %v2852_v34 = vpop.permute.xlu1 %2851  ;;  %vm2885_vm9 = vmand %vm2883_vm5, %vm2884_vm6  ;;  %vm8612_vm6 = vcmp.ge.s32.totalorder %v2779_v54, 123  ;;  %vm8635_vm5 = vcmp.lt.s32.totalorder %v2779_v54, 157  ;;  %v10440_v33 = vmov 0 }
 0x553   :  { %2824 = vst.msk [vmem:[#allocation4 + $0x1] sm:$0x1] %vm2823_vm10, %v2819_v32  ;;  %v2853_v43 = vrot.slane %v2852_v34, 7  ;;  %vm8563_vm10 = vcmp.ge.s32.totalorder %v2779_v54, 55 }
 0x554   :  { %v8500_v36 = vpop.permute.xlu0 %2947 }
 0x555   :  { %v2855_v51 = vsel %vm2854_vm0, %v2853_v43, %v2852_v34  ;;  %vm8588_vm0 = vcmp.lt.s32.totalorder %v2779_v54, 170  ;;  %v2949_v13 = vrot.slane %v8500_v36, 7  ;;  %v10442_v34 = vmov 0 }
 0x556   :  { %v8502_v37 = vpop.permute.xlu1 %2998 }
 0x557   :  { %v3000_v18 = vrot.slane %v8502_v37, 7 }
 0x558   :  { %v8504_v35 = vpop.permute.xlu0 %3155 }
 0x55a   :  { %v8506_v38 = vpop.permute.xlu1 %2990 }
 0x55c   :  { %v2827_v44 = vpop.permute.xlu0 %2826 }
 0x55d   :  { %v2828_v45 = vrot.slane %v2827_v44, 7 }
 0x55e   :  { %v2878_v48 = vpop.permute.xlu1 %2877 }
 0x55f   :  { %v2830_v49 = vsel %vm2829_vm15, %v2828_v45, %v2827_v44  ;;  %v2879_v50 = vrot.slane %v2878_v48, 7  ;;  %vm8583_vm15 = vcmp.ge.s32.totalorder %v2779_v54, 89 }
 0x560   :  { %2835 = vst.msk [vmem:[#allocation4 + $0x1] sm:$0x3] %vm2834_vm1, %v2830_v49  ;;  %v8548_v52 = vpop.permute.xlu0 %3034  ;;  %vm2896_vm1 = vmand %vm8563_vm10, %vm8568_vm11 }
 0x561   :  { %2860 = vst.msk [vmem:[#allocation4 + $0x2] sm:$0x3] %vm2859_vm4, %v2855_v51  ;;  %v2881_v55 = vsel %vm2880_vm7, %v2879_v50, %v2878_v48  ;;  %vm8617_vm7 = vcmp.lt.s32.totalorder %v2779_v54, 204  ;;  %vm10426_vm4 = vcmask 728064   ;;  %vm10427_vm11 = vmand %vm8573_vm12, %vm8578_vm13  ;;  %vm10444_vm13 = vcmask 621568  }
 0x562   :  { %v2870_v53 = vpop.permute.xlu1 %2869  ;;  %v2932_v27 = vsel %vm10426_vm4, %v2930_v6, %v8463_v24  ;;  %vm8677_vm4 = vcmp.lt.s32.totalorder %v2779_v54, 191  ;;  %vm10432_vm10 = vmand %vm8583_vm15, %vm8588_vm0  ;;  %vm10456_vm0 = vcmask 900096  }
 0x563   :  { %2875 = vst.msk [vmem:[#allocation4 + $0x3] sm:$0x1] %vm2874_vm8, %v2870_v53  ;;  %vm8697_vm8 = vcmp.lt.s32.totalorder %v2779_v54, 144  ;;  %vm10439_vm15 = vmand %vm8598_vm2, %vm8603_vm3  ;;  %v3002_v43 = vsel %vm10456_vm0, %v3000_v18, %v8502_v37  ;;  %vm3052_vm2 = vcmask 793600   ;;  %vm3063_vm0 = vcmask 408576  }
 0x564   :  { %2886 = vst.msk [vmem:[#allocation4 + $0x3] sm:$0x3] %vm2885_vm9, %v2881_v55  ;;  %v8554_v56 = vpop.permute.xlu0 %3009  ;;  %vm8630_vm9 = vcmp.ge.s32.totalorder %v2779_v54, 76  ;;  %vm10445_vm3 = vmand %vm8612_vm6, %vm8617_vm7 }
 0x565   :  { %v10419_v17 = vsel %vm8630_vm9, 4294967295, %v10418_v17  ;;  %vm8655_vm9 = vcmp.lt.s32.totalorder %v2779_v54, 110  ;;  %v3011_v32 = vrot.slane %v8554_v56, 7 }
 0x566   :  { %v8556_v57 = vpop.permute.xlu1 %3181  ;;  %vm10433_vm12 = vnez %v10419_v17 }
 0x567   :  { %vm10451_vm6 = vmand %vm10433_vm12, %vm8635_vm5 }
 0x568   :  { %v8558_v58 = vpop.permute.xlu0 %3170 }
 0x569   :  { %v3172_v19 = vrot.slane %v8558_v58, 7 }
 0x56a   :  { %v8560_v60 = vpop.permute.xlu1 %3214 }
 0x56c   :  { %v2889_v5 = vpop.permute.xlu0 %2888 }
 0x56d   :  { %v2890_v7 = vrot.slane %v2889_v5, 7 }
 0x56e   :  { %v8621_v8 = vpop.permute.xlu1 %3060 }
 0x56f   :  { %v2892_v16 = vsel %vm2891_vm14, %v2890_v7, %v2889_v5  ;;  %vm8650_vm14 = vcmp.ge.s32.totalorder %v2779_v54, 29  ;;  %v3062_v44 = vrot.slane %v8621_v8, 7  ;;  %v10612_v7 = vmov 0 }
 0x570   :  { %2897 = vst.msk [vmem:[#allocation4 + $0x4] sm:$0x3] %vm2896_vm1, %v2892_v16  ;;  %v3050_v14 = vpop.permute.xlu0 %3049  ;;  %vm8672_vm1 = vcmp.ge.s32.totalorder %v2779_v54, 110  ;;  %vm10457_vm5 = vmand %vm8650_vm14, %vm8655_vm9  ;;  %vm8793_vm14 = vcmp.ge.s32.totalorder %v2779_v54, 3 }
 0x571   :  { %2919 = vst.msk [vmem:[#allocation4 + $0x5] sm:$0x1] %vm10427_vm11, %v8460_v22  ;;  %v10429_v28 = vsel %vm8672_vm1, 4294967295, %v10428_v28  ;;  %vm8692_vm11 = vcmp.ge.s32.totalorder %v2779_v54, 63  ;;  %vm10438_vm1 = vcmask 1006592   ;;  %v3051_v40 = vrot.slane %v3050_v14, 7 }
 0x572   :  { %2937 = vst.msk [vmem:[#allocation4 + $0x5] sm:$0x3] %vm10432_vm10, %v2932_v27  ;;  %v3094_v30 = vpop.permute.xlu1 %3093  ;;  %v2951_v31 = vsel %vm10438_vm1, %v2949_v13, %v8500_v36  ;;  %vm8715_vm10 = vcmp.ge.s32.totalorder %v2779_v54, 16  ;;  %vm8720_vm1 = vcmp.lt.s32.totalorder %v2779_v54, 97  ;;  %v2976_v36 = vsel %vm10444_vm13, %v2974_v20, %v8468_v25 }
 0x573   :  { %2945 = vst.msk [vmem:[#allocation4 + $0x6] sm:$0x1] %vm10439_vm15, %v8471_v26  ;;  %v10441_v33 = vsel %vm8715_vm10, 4294967295, %v10440_v33  ;;  %v10443_v34 = vsel %vm8720_vm1, 4294967295, %v10442_v34  ;;  %vm10446_vm15 = vnez %v10429_v28  ;;  %vm8736_vm10 = vcmp.ge.s32.totalorder %v2779_v54, 97 }
 0x574   :  { %2956 = vst.msk [vmem:[#allocation4 + $0x6] sm:$0x3] %vm10445_vm3, %v2951_v31  ;;  %vm8741_vm1 = vcmp.lt.s32.totalorder %v2779_v54, 178  ;;  %v8745_v39 = vpop.permute.xlu0 %3192  ;;  %vm8757_vm13 = vcmp.ge.s32.totalorder %v2779_v54, 50  ;;  %vm8762_vm3 = vcmp.lt.s32.totalorder %v2779_v54, 131  ;;  %vm10458_vm12 = vnez %v10443_v34 }
 0x575   :  { %2981 = vst.msk [vmem:[#allocation4 + $0x7] sm:$0x3] %vm10451_vm6, %v2976_v36  ;;  %v10453_v41 = vsel %vm8757_vm13, 4294967295, %v10452_v41  ;;  %v10455_v42 = vsel %vm8762_vm3, 4294967295, %v10454_v42  ;;  %vm10459_vm6 = vnez %v10441_v33  ;;  %vm10460_vm13 = vcmask 515072   ;;  %vm10461_vm3 = vmand %vm10446_vm15, %vm8677_vm4 }
 0x576   :  { %2996 = vst.msk [vmem:[#allocation4 + $0x8] sm:$0x1] %vm10457_vm5, %v8506_v38  ;;  %vm3039_vm7 = vmand %vm10459_vm6, %vm10458_vm12  ;;  %v8779_v45 = vpop.permute.xlu1 %3240  ;;  %v3013_v37 = vsel %vm10460_vm13, %v3011_v32, %v8554_v56  ;;  %vm8798_vm5 = vcmp.lt.s32.totalorder %v2779_v54, 84  ;;  %vm8814_vm13 = vcmp.ge.s32.totalorder %v2779_v54, 84  ;;  %v3053_v50 = vsel %vm3052_vm2, %v3051_v40, %v3050_v14 }
 0x577   :  { %3007 = vst.msk [vmem:[#allocation4 + $0x8] sm:$0x3] %vm10461_vm3, %v3002_v43  ;;  %vm3057_vm9 = vmand %vm8736_vm10, %vm8741_vm1  ;;  %vm10467_vm10 = vnez %v10455_v42  ;;  %vm10468_vm1 = vnez %v10453_v41  ;;  %vm8819_vm3 = vcmp.lt.s32.totalorder %v2779_v54, 165  ;;  %v3095_v51 = vrot.slane %v3094_v30, 7 }
 0x578   :  { %vm10466_vm4 = vmand %vm8692_vm11, %vm8697_vm8  ;;  %v8807_v47 = vpop.permute.xlu0 %3397  ;;  %v3064_v53 = vsel %vm3063_vm0, %v3062_v44, %v8621_v8  ;;  %vm3096_vm8 = vcmask 687104   ;;  %vm3114_vm2 = vcmp.ge.s32.totalorder %v2779_v54, 37  ;;  %vm3125_vm6 = vcmp.ge.s32.totalorder %v2779_v54, 118 }
 0x579   :  { %3018 = vst.msk [vmem:[#allocation4 + $0x9] sm:$0x3] %vm10466_vm4, %v3013_v37  ;;  %vm3068_vm15 = vmand %vm10468_vm1, %vm10467_vm10  ;;  %v3097_v61 = vsel %vm3096_vm8, %v3095_v51, %v3094_v30  ;;  %vm3126_vm0 = vcmp.lt.s32.totalorder %v2779_v54, 199  ;;  %vm8852_vm4 = vcmp.ge.s32.totalorder %v2779_v54, 71  ;;  %vm8857_vm10 = vcmp.lt.s32.totalorder %v2779_v54, 152 }
 0x57a   :  { %3040 = vst.msk [vmem:[#allocation4 + $0xa] sm:$0x1] %vm3039_vm7, %v8548_v52  ;;  %v8825_v55 = vpop.permute.xlu1 %3232  ;;  %vm3076_vm11 = vmand %vm8793_vm14, %vm8798_vm5  ;;  %vm3115_vm7 = vcmp.lt.s32.totalorder %v2779_v54, 118  ;;  %vm8862_vm1 = vcmp.ge.s32.totalorder %v2779_v54, 24  ;;  %vm8877_vm8 = vcmp.lt.s32.totalorder %v2779_v54, 186  ;;  %v3183_v14 = vrot.slane %v8556_v57, 7 }
 0x57b   :  { %3058 = vst.msk [vmem:[#allocation4 + $0xa] sm:$0x3] %vm3057_vm9, %v3053_v50  ;;  %vm3101_vm12 = vmand %vm8814_vm13, %vm8819_vm3  ;;  %vm3122_vm9 = vcmask 965632   ;;  %vm3133_vm13 = vcmask 580608   ;;  %vm8872_vm3 = vcmp.ge.s32.totalorder %v2779_v54, 105  ;;  %v10493_v22 = vmov 0 }
 0x57c   :  { %3069 = vst.msk [vmem:[#allocation4 + $0xb] sm:$0x3] %vm3068_vm15, %v3064_v53  ;;  %v8835_v52 = vld [vmem:[#allocation4] sm:$0xff]  ;;  %v3072_v56 = vpop.permute.xlu0 %3071  ;;  %vm3116_vm14 = vmand %vm3114_vm2, %vm3115_vm7  ;;  %vm8867_vm15 = vcmp.lt.s32.totalorder %v2779_v54, 105  ;;  %vm8892_vm2 = vcmp.lt.s32.totalorder %v2779_v54, 139  ;;  %vm8922_vm7 = vcmp.lt.s32.totalorder %v2779_v54, 173 }
 0x57d   :  { %3077 = vst.msk [vmem:[#allocation4 + $0xc] sm:$0x1] %vm3076_vm11, %v3072_v56  ;;  %vm3127_vm5 = vmand %vm3125_vm6, %vm3126_vm0  ;;  %vm8902_vm0 = vcmp.ge.s32.totalorder %v2779_v54, 11  ;;  %vm8917_vm6 = vcmp.ge.s32.totalorder %v2779_v54, 92  ;;  %v3216_v30 = vrot.slane %v8560_v60, 7  ;;  %v10503_v36 = vmov 0 }
 0x57e   :  { %v3120_v63 = vpop.permute.xlu1 %3119  ;;  %3102 = vst.msk [vmem:[#allocation4 + $0xc] sm:$0x3] %vm3101_vm12, %v3097_v61  ;;  %vm3138_vm11 = vmand %vm8852_vm4, %vm8857_vm10  ;;  %vm8887_vm12 = vcmp.ge.s32.totalorder %v2779_v54, 58  ;;  %v10494_v22 = vsel %vm8917_vm6, 4294967295, %v10493_v22  ;;  %vm10501_vm6 = vcmask 859136   ;;  %v3242_v25 = vrot.slane %v8779_v45, 7 }
 0x57f   :  { %v3121_v9 = vrot.slane %v3120_v63, 7  ;;  %v3174_v34 = vsel %vm10501_vm6, %v3172_v19, %v8558_v58  ;;  %vm10502_vm10 = vmand %vm8862_vm1, %vm8867_vm15  ;;  %vm8964_vm6 = vcmp.lt.s32.totalorder %v2779_v54, 207  ;;  %vm10509_vm15 = vnez %v10494_v22 }
 0x580   :  { %v8841_v0 = vpop.permute.xlu0 %3276  ;;  %vm10508_vm1 = vmand %vm8872_vm3, %vm8877_vm8  ;;  %vm8981_vm4 = vcmp.ge.s32.totalorder %v2779_v54, 79  ;;  %v10515_v42 = vmov 0  ;;  %vm9049_vm8 = vcmp.lt.s32.totalorder %v2779_v54, 147  ;;  %v10638_v22 = vmov 0 }
 0x581   :  { %v3123_v4 = vsel %vm3122_vm9, %v3121_v9, %v3120_v63  ;;  %vm8907_vm9 = vcmp.lt.s32.totalorder %v2779_v54, 92  ;;  %vm10514_vm3 = vmand %vm8887_vm12, %vm8892_vm2  ;;  %vm10531_vm12 = vcmask 1031168   ;;  %v10600_v63 = vmov 0 }
 0x582   :  { %v3112_v62 = vpop.permute.xlu1 %3111  ;;  %vm10520_vm2 = vmand %vm8902_vm0, %vm8907_vm9  ;;  %v3244_v49 = vsel %vm10531_vm12, %v3242_v25, %v8779_v45  ;;  %vm3305_vm12 = vcmask 539648   ;;  %v10663_v43 = vmov 0 }
 0x583   :  { %3117 = vst.msk [vmem:[#allocation4 + $0xd] sm:$0x1] %vm3116_vm14, %v3112_v62  ;;  %vm10507_vm14 = vcmask 474112   ;;  %vm10526_vm0 = vmand %vm10509_vm15, %vm8922_vm7 }
 0x584   :  { %3128 = vst.msk [vmem:[#allocation4 + $0xd] sm:$0x3] %vm3127_vm5, %v3123_v4  ;;  %v8843_v5 = vpop.permute.xlu0 %3251  ;;  %vm8942_vm5 = vcmp.lt.s32.totalorder %v2779_v54, 126  ;;  %v3185_v26 = vsel %vm10507_vm14, %v3183_v14, %v8556_v57  ;;  %vm8986_vm14 = vcmp.lt.s32.totalorder %v2779_v54, 160  ;;  %v10569_v57 = vmov 0 }
 0x585   :  { %v3253_v41 = vrot.slane %v8843_v5, 7  ;;  %vm3259_vm9 = vmand %vm8981_vm4, %vm8986_vm14  ;;  %vm3294_vm14 = vcmask 924672   ;;  %v10632_v14 = vmov 0 }
 0x586   :  { %v8845_v6 = vpop.permute.xlu1 %3423 }
 0x588   :  { %v8847_v3 = vpop.permute.xlu0 %3412 }
 0x589   :  { %v3414_v31 = vrot.slane %v8847_v3, 7 }
 0x58a   :  { %v8849_v10 = vpop.permute.xlu1 %3456 }
 0x58c   :  { %v3131_v17 = vpop.permute.xlu0 %3130 }
 0x58d   :  { %v3132_v15 = vrot.slane %v3131_v17, 7 }
 0x58e   :  { %v3303_v24 = vpop.permute.xlu1 %3302 }
 0x58f   :  { %v3134_v18 = vsel %vm3133_vm13, %v3132_v15, %v3131_v17  ;;  %vm8937_vm13 = vcmp.ge.s32.totalorder %v2779_v54, 45  ;;  %v3304_v50 = vrot.slane %v3303_v24, 7 }
 0x590   :  { %3139 = vst.msk [vmem:[#allocation4 + $0xe] sm:$0x3] %vm3138_vm11, %v3134_v18  ;;  %v3292_v33 = vpop.permute.xlu0 %3291  ;;  %vm8959_vm11 = vcmp.ge.s32.totalorder %v2779_v54, 126  ;;  %vm10532_vm7 = vmand %vm8937_vm13, %vm8942_vm5 }
 0x591   :  { %3161 = vst.msk [vmem:[#allocation4 + $0xf] sm:$0x1] %vm10502_vm10, %v8504_v35  ;;  %v10504_v36 = vsel %vm8959_vm11, 4294967295, %v10503_v36  ;;  %vm9006_vm11 = vcmp.lt.s32.totalorder %v2779_v54, 113  ;;  %vm10519_vm10 = vcmask 752640   ;;  %v3306_v9 = vsel %vm3305_vm12, %v3304_v50, %v3303_v24 }
 0x592   :  { %3179 = vst.msk [vmem:[#allocation4 + $0xf] sm:$0x3] %vm10508_vm1, %v3174_v34  ;;  %v3336_v40 = vpop.permute.xlu1 %3335  ;;  %vm9001_vm1 = vcmp.ge.s32.totalorder %v2779_v54, 32  ;;  %v3218_v44 = vsel %vm10519_vm10, %v3216_v30, %v8560_v60  ;;  %vm9028_vm10 = vcmp.lt.s32.totalorder %v2779_v54, 194  ;;  %v10592_v50 = vmov 0 }
 0x593   :  { %3190 = vst.msk [vmem:[#allocation4 + $0x10] sm:$0x3] %vm10514_vm3, %v3185_v26  ;;  %v10516_v42 = vsel %vm9001_vm1, 4294967295, %v10515_v42  ;;  %vm10521_vm3 = vnez %v10504_v36  ;;  %vm9023_vm1 = vcmp.ge.s32.totalorder %v2779_v54, 113  ;;  %v3425_v36 = vrot.slane %v8845_v6, 7 }
 0x594   :  { %3198 = vst.msk [vmem:[#allocation4 + $0x11] sm:$0x1] %vm10520_vm2, %v8745_v39  ;;  %v9032_v38 = vpop.permute.xlu0 %3474  ;;  %v3293_v39 = vrot.slane %v3292_v33, 7  ;;  %vm9044_vm2 = vcmp.ge.s32.totalorder %v2779_v54, 66  ;;  %vm10533_vm4 = vnez %v10516_v42  ;;  %vm3299_vm5 = vmand %vm9023_vm1, %vm9028_vm10  ;;  %vm9093_vm1 = vcmp.lt.s32.totalorder %v2779_v54, 100 }
 0x595   :  { %3223 = vst.msk [vmem:[#allocation4 + $0x11] sm:$0x3] %vm10526_vm0, %v3218_v44  ;;  %v10528_v46 = vsel %vm9044_vm2, 4294967295, %v10527_v46  ;;  %vm3281_vm15 = vmand %vm10533_vm4, %vm9006_vm11  ;;  %vm10534_vm0 = vcmask 646144   ;;  %vm9110_vm10 = vcmp.ge.s32.totalorder %v2779_v54, 53  ;;  %v3476_v60 = vrot.slane %v9032_v38, 7 }
 0x596   :  { %3238 = vst.msk [vmem:[#allocation4 + $0x12] sm:$0x1] %vm10532_vm7, %v8825_v55  ;;  %v9065_v51 = vpop.permute.xlu1 %3434  ;;  %v3255_v53 = vsel %vm10534_vm0, %v3253_v41, %v8843_v5  ;;  %vm10535_vm2 = vmand %vm10521_vm3, %vm8964_vm6  ;;  %vm10536_vm13 = vnez %v10528_v46  ;;  %v3295_v56 = vsel %vm3294_vm14, %v3293_v39, %v3292_v33  ;;  %vm9088_vm6 = vcmp.ge.s32.totalorder %v2779_v54, 19 }
 0x597   :  { %3249 = vst.msk [vmem:[#allocation4 + $0x12] sm:$0x3] %vm10535_vm2, %v3244_v49  ;;  %vm3310_vm11 = vmand %vm10536_vm13, %vm9049_vm8  ;;  %vm9100_vm8 = vcmp.ge.s32.totalorder %v2779_v54, 100  ;;  %vm9105_vm3 = vcmp.lt.s32.totalorder %v2779_v54, 181  ;;  %v3337_v5 = vrot.slane %v3336_v40, 7  ;;  %vm3338_vm2 = vcmask 818176  }
 0x598   :  { %3260 = vst.msk [vmem:[#allocation4 + $0x13] sm:$0x3] %vm3259_vm9, %v3255_v53  ;;  %v9078_v45 = vpop.permute.xlu0 %3485  ;;  %vm9115_vm9 = vcmp.lt.s32.totalorder %v2779_v54, 134  ;;  %vm3356_vm7 = vcmask 433152   ;;  %vm3318_vm4 = vmand %vm9088_vm6, %vm9093_vm1  ;;  %vm3367_vm14 = vcmp.ge.s32.totalorder %v2779_v54, 6  ;;  %vm3368_vm0 = vcmp.lt.s32.totalorder %v2779_v54, 87 }
 0x599   :  { %v9084_v55 = vld [vmem:[#allocation4 + $0x8] sm:$0xff]  ;;  %3282 = vst.msk [vmem:[#allocation4 + $0x14] sm:$0x1] %vm3281_vm15, %v8841_v0  ;;  %vm3343_vm15 = vmand %vm9100_vm8, %vm9105_vm3  ;;  %v3339_v16 = vsel %vm3338_vm2, %v3337_v5, %v3336_v40  ;;  %vm9140_vm13 = vcmp.ge.s32.totalorder %v2779_v54, 87  ;;  %vm9150_vm6 = vcmp.ge.s32.totalorder %v2779_v54, 40  ;;  %vm9155_vm1 = vcmp.lt.s32.totalorder %v2779_v54, 121 }
 0x59a   :  { %3300 = vst.msk [vmem:[#allocation4 + $0x14] sm:$0x3] %vm3299_vm5, %v3295_v56  ;;  %v9097_v62 = vpop.permute.xlu1 %3639  ;;  %vm3361_vm12 = vmand %vm9110_vm10, %vm9115_vm9  ;;  %vm3375_vm8 = vcmask 711680   ;;  %vm9162_vm3 = vcmp.ge.s32.totalorder %v2779_v54, 121  ;;  %vm9167_vm10 = vcmp.lt.s32.totalorder %v2779_v54, 202  ;;  %vm9177_vm2 = vcmp.ge.s32.totalorder %v2779_v54, 74 }
 0x59b   :  { %3311 = vst.msk [vmem:[#allocation4 + $0x15] sm:$0x3] %vm3310_vm11, %v3306_v9  ;;  %vm3369_vm5 = vmand %vm3367_vm14, %vm3368_vm0  ;;  %vm9145_vm11 = vcmp.lt.s32.totalorder %v2779_v54, 168  ;;  %vm9192_vm14 = vcmp.ge.s32.totalorder %v2779_v54, 27  ;;  %vm9197_vm0 = vcmp.lt.s32.totalorder %v2779_v54, 108  ;;  %v3458_v41 = vrot.slane %v8849_v10, 7 }
 0x59c   :  { %v3354_v12 = vpop.permute.xlu0 %3353  ;;  %vm9234_vm9 = vcmp.lt.s32.totalorder %v2779_v54, 142  ;;  %v10580_v39 = vmov 0  ;;  %v3641_v32 = vrot.slane %v9097_v62, 7 }
 0x59d   :  { %v3355_v8 = vrot.slane %v3354_v12, 7 }
 0x59e   :  { %v3314_v13 = vpop.permute.xlu1 %3313 }
 0x59f   :  { %v3357_v17 = vsel %vm3356_vm7, %v3355_v8, %v3354_v12  ;;  %3319 = vst.msk [vmem:[#allocation4 + $0x16] sm:$0x1] %vm3318_vm4, %v3314_v13  ;;  %vm9182_vm7 = vcmp.lt.s32.totalorder %v2779_v54, 155  ;;  %vm9214_vm4 = vcmp.lt.s32.totalorder %v2779_v54, 189 }
 0x5a0   :  { %3344 = vst.msk [vmem:[#allocation4 + $0x16] sm:$0x3] %vm3343_vm15, %v3339_v16  ;;  %v9133_v19 = vpop.permute.xlu0 %3493  ;;  %vm9209_vm15 = vcmp.ge.s32.totalorder %v2779_v54, 108 }
 0x5a1   :  { %3362 = vst.msk [vmem:[#allocation4 + $0x17] sm:$0x3] %vm3361_vm12, %v3357_v17  ;;  %v10570_v57 = vsel %vm9209_vm15, 4294967295, %v10569_v57  ;;  %vm9229_vm12 = vcmp.ge.s32.totalorder %v2779_v54, 61  ;;  %vm10578_vm15 = vcmask 990208   ;;  %v3495_v49 = vrot.slane %v9133_v19, 7 }
 0x5a2   :  { %v3365_v20 = vpop.permute.xlu1 %3364  ;;  %v3416_v37 = vsel %vm10578_vm15, %v3414_v31, %v8847_v3  ;;  %vm9257_vm15 = vcmp.lt.s32.totalorder %v2779_v54, 95  ;;  %v10582_v3 = vmov 0 }
 0x5a3   :  { %3370 = vst.msk [vmem:[#allocation4 + $0x18] sm:$0x1] %vm3369_vm5, %v3365_v20  ;;  %v10583_v3 = vsel %vm9257_vm15, 4294967295, %v10582_v3  ;;  %vm10584_vm5 = vcmask 605184   ;;  %vm9278_vm15 = vcmp.lt.s32.totalorder %v2779_v54, 176 }
 0x5a4   :  { %v9135_v21 = vpop.permute.xlu0 %3657  ;;  %v3427_v46 = vsel %vm10584_vm5, %v3425_v36, %v8845_v6  ;;  %vm9298_vm5 = vcmp.lt.s32.totalorder %v2779_v54, 129  ;;  %v10651_v36 = vmov 0  ;;  %v10676_v6 = vmov 0 }
 0x5a6   :  { %v9137_v15 = vpop.permute.xlu1 %3518 }
 0x5a7   :  { %v3520_v61 = vrot.slane %v9137_v15, 7 }
 0x5a8   :  { %v9159_v18 = vld [vmem:[#allocation4 + $0x10] sm:$0xff]  ;;  %v3373_v30 = vpop.permute.xlu0 %3372 }
 0x5a9   :  { %v3374_v34 = vrot.slane %v3373_v30, 7 }
 0x5aa   :  { %v9201_v25 = vpop.permute.xlu1 %3665 }
 0x5ab   :  { %v3376_v35 = vsel %vm3375_vm8, %v3374_v34, %v3373_v30  ;;  %vm10573_vm8 = vmand %vm9140_vm13, %vm9145_vm11  ;;  %vm9316_vm13 = vcmp.ge.s32.totalorder %v2779_v54, 1 }
 0x5ac   :  { %3381 = vst.msk [vmem:[#allocation4 + $0x18] sm:$0x3] %vm10573_vm8, %v3376_v35  ;;  %v3537_v44 = vpop.permute.xlu0 %3536  ;;  %vm10579_vm11 = vmand %vm9150_vm6, %vm9155_vm1  ;;  %vm9252_vm8 = vcmp.ge.s32.totalorder %v2779_v54, 14  ;;  %vm10586_vm1 = vnez %v10570_v57  ;;  %v10601_v63 = vsel %vm9316_vm13, 4294967295, %v10600_v63  ;;  %vm9342_vm13 = vcmp.lt.s32.totalorder %v2779_v54, 163 }
 0x5ad   :  { %3403 = vst.msk [vmem:[#allocation4 + $0x19] sm:$0x1] %vm10579_vm11, %v8807_v47  ;;  %v10581_v39 = vsel %vm9252_vm8, 4294967295, %v10580_v39  ;;  %vm10585_vm6 = vmand %vm9162_vm3, %vm9167_vm10  ;;  %vm9273_vm8 = vcmp.ge.s32.totalorder %v2779_v54, 95  ;;  %vm10596_vm11 = vcmask 883712   ;;  %vm9337_vm10 = vcmp.ge.s32.totalorder %v2779_v54, 82 }
 0x5ae   :  { %3421 = vst.msk [vmem:[#allocation4 + $0x19] sm:$0x3] %vm10585_vm6, %v3416_v37  ;;  %v3545_v48 = vpop.permute.xlu1 %3544  ;;  %vm10591_vm3 = vmand %vm9177_vm2, %vm9182_vm7  ;;  %vm9293_vm6 = vcmp.ge.s32.totalorder %v2779_v54, 48  ;;  %v3460_v56 = vsel %vm10596_vm11, %v3458_v41, %v8849_v10  ;;  %vm10598_vm7 = vnez %v10583_v3  ;;  %vm9321_vm11 = vcmp.lt.s32.totalorder %v2779_v54, 82 }
 0x5af   :  { %3432 = vst.msk [vmem:[#allocation4 + $0x1a] sm:$0x3] %vm10591_vm3, %v3427_v46  ;;  %v10593_v50 = vsel %vm9293_vm6, 4294967295, %v10592_v50  ;;  %vm10597_vm2 = vmand %vm9192_vm14, %vm9197_vm0  ;;  %vm10599_vm3 = vnez %v10581_v39  ;;  %vm10604_vm6 = vcmask 498688   ;;  %v3546_v0 = vrot.slane %v3545_v48, 7 }
 0x5b0   :  { %3440 = vst.msk [vmem:[#allocation4 + $0x1b] sm:$0x1] %vm10597_vm2, %v9065_v51  ;;  %v3596_v9 = vpop.permute.xlu0 %3595  ;;  %v3478_v4 = vsel %vm10604_vm6, %v3476_v60, %v9032_v38  ;;  %vm10605_vm0 = vmand %vm10586_vm1, %vm9214_vm4  ;;  %vm10611_vm1 = vnez %v10593_v50  ;;  %vm9361_vm2 = vcmp.lt.s32.totalorder %v2779_v54, 116  ;;  %vm9418_vm6 = vcmp.ge.s32.totalorder %v2779_v54, 22 }
 0x5b1   :  { %3465 = vst.msk [vmem:[#allocation4 + $0x1b] sm:$0x3] %vm10605_vm0, %v3460_v56  ;;  %vm10610_vm4 = vmand %vm9229_vm12, %vm9234_vm9  ;;  %vm9356_vm0 = vcmp.ge.s32.totalorder %v2779_v54, 35  ;;  %v10615_v11 = vsel %vm9361_vm2, 4294967295, %v10614_v11  ;;  %vm10616_vm9 = vcmask 777216   ;;  %vm10623_vm2 = vcmask 392192  }
 0x5b2   :  { %3483 = vst.msk [vmem:[#allocation4 + $0x1c] sm:$0x3] %vm10610_vm4, %v3478_v4  ;;  %v3578_v5 = vpop.permute.xlu1 %3577  ;;  %v10613_v7 = vsel %vm9356_vm0, 4294967295, %v10612_v7  ;;  %v3497_v12 = vsel %vm10616_vm9, %v3495_v49, %v9133_v19  ;;  %vm10617_vm12 = vmand %vm10599_vm3, %vm10598_vm7  ;;  %vm10618_vm4 = vnez %v10601_v63  ;;  %vm9378_vm0 = vcmp.ge.s32.totalorder %v2779_v54, 116 }
 0x5b3   :  { %3491 = vst.msk [vmem:[#allocation4 + $0x1d] sm:$0x1] %vm10617_vm12, %v9078_v45  ;;  %vm9383_vm9 = vcmp.lt.s32.totalorder %v2779_v54, 197  ;;  %v3522_v16 = vsel %vm10623_vm2, %v3520_v61, %v9137_v15  ;;  %vm10624_vm7 = vmand %vm9273_vm8, %vm9278_vm15  ;;  %v3579_v45 = vrot.slane %v3578_v5, 7  ;;  %vm9399_vm12 = vcmp.ge.s32.totalorder %v2779_v54, 69 }
 0x5b4   :  { %3502 = vst.msk [vmem:[#allocation4 + $0x1d] sm:$0x3] %vm10624_vm7, %v3497_v12  ;;  %v3607_v17 = vpop.permute.xlu0 %3606  ;;  %v10625_v19 = vmov 0  ;;  %vm9404_vm2 = vcmp.lt.s32.totalorder %v2779_v54, 150  ;;  %vm10629_vm8 = vmand %vm10611_vm1, %vm9298_vm5  ;;  %v3597_v15 = vrot.slane %v3596_v9, 7  ;;  %vm10630_vm7 = vnez %v10615_v11 }
 0x5b5   :  { %v10626_v19 = vsel %vm9399_vm12, 4294967295, %v10625_v19  ;;  %3527 = vst.msk [vmem:[#allocation4 + $0x1e] sm:$0x3] %vm10629_vm8, %v3522_v16  ;;  %vm10631_vm3 = vnez %v10613_v7  ;;  %v10633_v14 = vsel %vm9418_vm6, 4294967295, %v10632_v14  ;;  %vm9423_vm12 = vcmp.lt.s32.totalorder %v2779_v54, 103  ;;  %vm10636_vm5 = vmand %vm10618_vm4, %vm9321_vm11 }
 0x5b6   :  { %3542 = vst.msk [vmem:[#allocation4 + $0x1f] sm:$0x1] %vm10636_vm5, %v3537_v44  ;;  %vm10637_vm1 = vcmask 670720   ;;  %v3556_v24 = vpop.permute.xlu1 %3555  ;;  %vm9438_vm15 = vcmp.ge.s32.totalorder %v2779_v54, 103  ;;  %vm9443_vm6 = vcmp.lt.s32.totalorder %v2779_v54, 184  ;;  %vm10642_vm4 = vmand %vm9337_vm10, %vm9342_vm13  ;;  %vm10643_vm5 = vnez %v10626_v19 }
 0x5b7   :  { %v3548_v28 = vsel %vm10637_vm1, %v3546_v0, %v3545_v48  ;;  %v10639_v22 = vsel %vm9438_vm15, 4294967295, %v10638_v22  ;;  %vm9457_vm8 = vcmp.ge.s32.totalorder %v2779_v54, 56  ;;  %vm9462_vm15 = vcmp.lt.s32.totalorder %v2779_v54, 137  ;;  %vm10649_vm10 = vmand %vm10631_vm3, %vm10630_vm7 }
 0x5b8   :  { %3553 = vst.msk [vmem:[#allocation4 + $0x1f] sm:$0x3] %vm10642_vm4, %v3548_v28  ;;  %vm10648_vm13 = vcmask 949248   ;;  %vm10650_vm4 = vnez %v10633_v14  ;;  %v3615_v34 = vpop.permute.xlu0 %3614  ;;  %vm9478_vm14 = vcmp.ge.s32.totalorder %v2779_v54, 9  ;;  %vm9483_vm1 = vcmp.lt.s32.totalorder %v2779_v54, 90  ;;  %vm10656_vm3 = vmand %vm9378_vm0, %vm9383_vm9 }
 0x5b9   :  { %v3581_v33 = vsel %vm10648_vm13, %v3579_v45, %v3578_v5  ;;  %3561 = vst.msk [vmem:[#allocation4 + $0x20] sm:$0x1] %vm10649_vm10, %v3556_v24  ;;  %v10652_v36 = vsel %vm9478_vm14, 4294967295, %v10651_v36  ;;  %vm10655_vm13 = vcmask 564224   ;;  %vm10657_vm7 = vnez %v10639_v22  ;;  %vm10662_vm0 = vmand %vm10643_vm5, %vm9404_vm2 }
 0x5ba   :  { %v3599_v26 = vsel %vm10655_vm13, %v3597_v15, %v3596_v9  ;;  %3586 = vst.msk [vmem:[#allocation4 + $0x20] sm:$0x3] %vm10656_vm3, %v3581_v33  ;;  %v3616_v35 = vrot.slane %v3615_v34, 7  ;;  %vm9498_vm11 = vcmp.ge.s32.totalorder %v2779_v54, 90  ;;  %vm9503_vm14 = vcmp.lt.s32.totalorder %v2779_v54, 171  ;;  %v3699_v42 = vpop.permute.xlu1 %3698  ;;  %vm10667_vm2 = vmand %vm10650_vm4, %vm9423_vm12 }
 0x5bb   :  { %v3667_v41 = vrot.slane %v9201_v25, 7  ;;  %3604 = vst.msk [vmem:[#allocation4 + $0x21] sm:$0x3] %vm10662_vm0, %v3599_v26  ;;  %vm9518_vm13 = vcmp.ge.s32.totalorder %v2779_v54, 43  ;;  %vm9523_vm3 = vcmp.lt.s32.totalorder %v2779_v54, 124  ;;  %vm10668_vm5 = vcmask 842752   ;;  %vm10675_vm4 = vmand %vm10657_vm7, %vm9443_vm6 }
 0x5bc   :  { %v10664_v43 = vsel %vm9518_vm13, 4294967295, %v10663_v43  ;;  %3612 = vst.msk [vmem:[#allocation4 + $0x22] sm:$0x1] %vm10667_vm2, %v3607_v17  ;;  %v3618_v37 = vsel %vm10668_vm5, %v3616_v35, %v3615_v34  ;;  %vm10669_vm0 = vnez %v10652_v36  ;;  %vm9538_vm13 = vcmp.ge.s32.totalorder %v2779_v54, 124  ;;  %v3717_v47 = vpop.permute.xlu0 %3716  ;;  %vm10680_vm6 = vmand %vm9457_vm8, %vm9462_vm15 }
 0x5bd   :  { %vm9543_vm10 = vcmp.lt.s32.totalorder %v2779_v54, 205  ;;  %vm10674_vm12 = vcmask 457728   ;;  %3623 = vst.msk [vmem:[#allocation4 + $0x22] sm:$0x3] %vm10675_vm4, %v3618_v37  ;;  %v3700_v46 = vrot.slane %v3699_v42, 7  ;;  %vm9559_vm5 = vcmp.ge.s32.totalorder %v2779_v54, 77 }
 0x5be   :  { %v3643_v3 = vsel %vm10674_vm12, %v3641_v32, %v9097_v62  ;;  %v10677_v6 = vsel %vm9559_vm5, 4294967295, %v10676_v6  ;;  %vm9564_vm12 = vcmp.lt.s32.totalorder %v2779_v54, 158  ;;  %vm3701_vm7 = vcmask 1014784   ;;  %v3677_v61 = vpop.permute.xlu1 %3676 }
 0x5bf   :  { %3648 = vst.msk [vmem:[#allocation4 + $0x23] sm:$0x3] %vm10680_vm6, %v3643_v3  ;;  %v3718_v48 = vrot.slane %v3717_v47, 7  ;;  %vm10681_vm4 = vnez %v10664_v43  ;;  %vm9578_vm9 = vcmp.ge.s32.totalorder %v2779_v54, 30  ;;  %vm9583_vm5 = vcmp.lt.s32.totalorder %v2779_v54, 111  ;;  %v9589_v56 = vld [vmem:[#allocation4 + $0x18] sm:$0xff]  ;;  %vm3706_vm6 = vmand %vm9538_vm13, %vm9543_vm10 }
 0x5c0   :  { %vm3681_vm2 = vmand %vm10681_vm4, %vm9523_vm3  ;;  %vm10686_vm15 = vcmask 736256   ;;  %vm3719_vm8 = vcmask 629760   ;;  %vm9602_vm4 = vcmp.ge.s32.totalorder %v2779_v54, 111  ;;  %vm10693_vm10 = vnez %v10677_v6  ;;  %v3736_v10 = vpop.permute.xlu0 %3735 }
 0x5c1   :  { %v3669_v53 = vsel %vm10686_vm15, %v3667_v41, %v9201_v25  ;;  %vm10687_vm3 = vmand %vm10669_vm0, %vm9483_vm1  ;;  %vm9607_vm15 = vcmp.lt.s32.totalorder %v2779_v54, 192  ;;  %vm3738_vm0 = vcmask 908288   ;;  %v3720_v9 = vsel %vm3719_vm8, %v3718_v48, %v3717_v47 }
 0x5c2   :  { %3663 = vst.msk [vmem:[#allocation4 + $0x24] sm:$0x1] %vm10687_vm3, %v9135_v21  ;;  %vm10692_vm1 = vmand %vm9498_vm11, %vm9503_vm14  ;;  %v3702_v21 = vsel %vm3701_vm7, %v3700_v46, %v3699_v42  ;;  %v3737_v4 = vrot.slane %v3736_v10, 7  ;;  %v3728_v51 = vpop.permute.xlu1 %3727 }
 0x5c3   :  { %3674 = vst.msk [vmem:[#allocation4 + $0x24] sm:$0x3] %vm10692_vm1, %v3669_v53  ;;  %vm3724_vm13 = vmand %vm10693_vm10, %vm9564_vm12 }
 0x5c4   :  { %3682 = vst.msk [vmem:[#allocation4 + $0x25] sm:$0x1] %vm3681_vm2, %v3677_v61  ;;  %vm3732_vm3 = vmand %vm9578_vm9, %vm9583_vm5  ;;  %v3739_v38 = vsel %vm3738_vm0, %v3737_v4, %v3736_v10 }
 0x5c5   :  { %3707 = vst.msk [vmem:[#allocation4 + $0x25] sm:$0x3] %vm3706_vm6, %v3702_v21  ;;  %vm3743_vm14 = vmand %vm9602_vm4, %vm9607_vm15 }
 0x5c6   :  { %3725 = vst.msk [vmem:[#allocation4 + $0x26] sm:$0x3] %vm3724_vm13, %v3720_v9 }
 0x5c7   :  { %3733 = vst.msk [vmem:[#allocation4 + $0x27] sm:$0x1] %vm3732_vm3, %v3728_v51 }
 0x5c8   :  { %3744 = vst.msk [vmem:[#allocation4 + $0x27] sm:$0x3] %vm3743_vm14, %v3739_v38 }
 0x5cf   :  { %v9629_v0 = vld [vmem:[#allocation4 + $0x20] sm:$0xff]  ;;  %v9631_v5 = vld [vmem:[#allocation4 + $0x28] ss:$0 sm:$0xff] }
 0x5d0   :  { %7470 = dma.done.wait [#allocation6], 82944 }
 0x5d1   :  { %7471 = vsyncadd [#allocation6], 4294884352  ;;  %v9634_v7 = vsub.s32 1, %v8296_v59  ;;  %v4008_v16 = vld [vmem:[#allocation5 + $0x8] sm:$0xff]  ;;  %v4007_v17 = vld [vmem:[#allocation5] sm:$0xff]  ;;  %vm4667_vm11 = vcmask 523264  }
 0x5d2   :  { %v4264_v45 = vld [vmem:[#allocation5 + $0x808] sm:$0xff]  ;;  %4671 = vmatprep.subr.bf16.mxu1 %v4008_v16  ;;  %v4263_v19 = vld [vmem:[#allocation5 + $0x800] sm:$0xff]  ;;  %v4010_v20 = vld [vmem:[#allocation5 + $0x18] sm:$0xff]  ;;  %vm5614_vm9 = vcmask 1041408   ;;  %vm7562_vm2 = vmmov 1   ;;  %vm5610_vm12 = vcmask 998400  }
 0x5d3   :  { %v3768_v11 = vrot.slane %v8835_v52, %v9634_v7  ;;  %v3832_v12 = vrot.slane %v9159_v18, %v9634_v7  ;;  %4999 = vmatprep.subr.bf16.mxu0 %v4264_v45  ;;  %v4266_v15 = vld [vmem:[#allocation5 + $0x818] sm:$0xff]  ;;  %4672 = vmatpush1.bf16.msra.mxu1 %v4007_v17  ;;  %v4009_v14 = vld [vmem:[#allocation5 + $0x10] sm:$0xff]  ;;  %v4012_v28 = vld [vmem:[#allocation5 + $0x28] sm:$0xff]  ;;  %vm5756_vm7 = vcmask 588800   ;;  %vm6033_vm8 = vcmask 1045504  }
 0x5d4   :  { %5000 = vmatpush1.bf16.msra.mxu0 %v4263_v19  ;;  %4673 = vmatprep.subr.bf16.mxu1 %v4010_v20  ;;  %v4265_v27 = vld [vmem:[#allocation5 + $0x810] sm:$0xff]  ;;  %v4268_v24 = vld [vmem:[#allocation5 + $0x828] sm:$0xff]  ;;  %v4011_v22 = vld [vmem:[#allocation5 + $0x20] sm:$0xff]  ;;  %vm5831_vm6 = vcmask 1040384   ;;  %vm5833_vm4 = vcmask 90112   ;;  %vm6029_vm15 = vcmask 179200  }
 0x5d5   :  { %v3967_v8 = vpack.c.bf16 %v3768_v11, %v3768_v11  ;;  %v3983_v13 = vpack.c.bf16 %v3832_v12, %v3832_v12  ;;  %5001 = vmatprep.subr.bf16.mxu0 %v4266_v15  ;;  %v4267_v29 = vld [vmem:[#allocation5 + $0x820] sm:$0xff]  ;;  %v4014_v30 = vld [vmem:[#allocation5 + $0x38] sm:$0xff]  ;;  %v4013_v32 = vld [vmem:[#allocation5 + $0x30] sm:$0xff]  ;;  %vm6108_vm1 = vcmask 0  }
 0x5d6   :  { %v4270_v31 = vld [vmem:[#allocation5 + $0x838] sm:$0xff]  ;;  %v4269_v33 = vld [vmem:[#allocation5 + $0x830] sm:$0xff]  ;;  %v4016_v34 = vld [vmem:[#allocation5 + $0x48] sm:$0xff] }
 0x5d7   :  { %4703 = vmatprep.mubr.bf16.mxu1 %v3967_v8  ;;  %5031 = vmatprep.mubr.bf16.mxu0 %v3983_v13  ;;  %v4272_v36 = vld [vmem:[#allocation5 + $0x848] sm:$0xff]  ;;  %v4015_v58 = vld [vmem:[#allocation5 + $0x40] sm:$0xff]  ;;  %v4018_v35 = vld [vmem:[#allocation5 + $0x58] sm:$0xff] }
 0x5d8   :  { %4674 = vmatpush1.bf16.msra.mxu1 %v4009_v14  ;;  %5002 = vmatpush1.bf16.msra.mxu0 %v4265_v27  ;;  %v4271_v26 = vld [vmem:[#allocation5 + $0x840] sm:$0xff]  ;;  %v4274_v57 = vld [vmem:[#allocation5 + $0x858] sm:$0xff]  ;;  %v4017_v40 = vld [vmem:[#allocation5 + $0x50] sm:$0xff]  ;;  %v9641_v14 = vsub.s32 0, %v8296_v59 }
 0x5d9   :  { %4675 = vmatprep.subr.bf16.mxu1 %v4012_v28  ;;  %5003 = vmatprep.subr.bf16.mxu0 %v4268_v24  ;;  %v4273_v41 = vld [vmem:[#allocation5 + $0x850] sm:$0xff]  ;;  %v4020_v42 = vld [vmem:[#allocation5 + $0x68] sm:$0xff]  ;;  %v4019_v44 = vld [vmem:[#allocation5 + $0x60] sm:$0xff] }
 0x5da   :  { %v4276_v43 = vld [vmem:[#allocation5 + $0x868] sm:$0xff]  ;;  %v4275_v37 = vld [vmem:[#allocation5 + $0x860] sm:$0xff]  ;;  %v4022_v60 = vld [vmem:[#allocation5 + $0x78] sm:$0xff] }
 0x5db   :  { %v4278_v39 = vld [vmem:[#allocation5 + $0x878] sm:$0xff]  ;;  %v4021_v3 = vld [vmem:[#allocation5 + $0x70] sm:$0xff]  ;;  %v4024_v47 = vld [vmem:[#allocation5 + $0x88] sm:$0xff] }
 0x5dc   :  { %4676 = vmatpush1.bf16.msra.mxu1 %v4011_v22  ;;  %5004 = vmatpush1.bf16.msra.mxu0 %v4267_v29  ;;  %v4277_v46 = vld [vmem:[#allocation5 + $0x870] sm:$0xff]  ;;  %v4280_v6 = vld [vmem:[#allocation5 + $0x888] sm:$0xff]  ;;  %v4023_v62 = vld [vmem:[#allocation5 + $0x80] sm:$0xff]  ;;  %v9644_v29 = vsub.s32 3, %v8296_v59 }
 0x5dd   :  { %4677 = vmatprep.subr.bf16.mxu1 %v4014_v30  ;;  %5005 = vmatprep.subr.bf16.mxu0 %v4270_v31  ;;  %v4279_v48 = vld [vmem:[#allocation5 + $0x880] sm:$0xff]  ;;  %v4026_v49 = vld [vmem:[#allocation5 + $0x98] sm:$0xff]  ;;  %v4025_v53 = vld [vmem:[#allocation5 + $0x90] sm:$0xff]  ;;  %v3764_v30 = vrot.slane %v8835_v52, %v9641_v14  ;;  %v3828_v31 = vrot.slane %v9159_v18, %v9641_v14 }
 0x5de   :  { %v4282_v50 = vld [vmem:[#allocation5 + $0x898] sm:$0xff]  ;;  %v4281_v61 = vld [vmem:[#allocation5 + $0x890] sm:$0xff]  ;;  %v4028_v63 = vld [vmem:[#allocation5 + $0xa8] sm:$0xff] }
 0x5df   :  { %v4284_v25 = vld [vmem:[#allocation5 + $0x8a8] sm:$0xff]  ;;  %v4027_v21 = vld [vmem:[#allocation5 + $0xa0] sm:$0xff]  ;;  %v4030_v9 = vld [vmem:[#allocation5 + $0xb8] sm:$0xff] }
 0x5e0   :  { %4678 = vmatpush1.bf16.msra.mxu1 %v4013_v32  ;;  %5006 = vmatpush1.bf16.msra.mxu0 %v4269_v33  ;;  %v4283_v10 = vld [vmem:[#allocation5 + $0x8a0] sm:$0xff]  ;;  %v4286_v4 = vld [vmem:[#allocation5 + $0x8b8] sm:$0xff]  ;;  %v4029_v51 = vld [vmem:[#allocation5 + $0xb0] sm:$0xff] }
 0x5e1   :  { %4679 = vmatprep.subr.bf16.mxu1 %v4016_v34  ;;  %5007 = vmatprep.subr.bf16.mxu0 %v4272_v36  ;;  %v4285_v38 = vld [vmem:[#allocation5 + $0x8b0] sm:$0xff]  ;;  %v4032_v11 = vld [vmem:[#allocation5 + $0xc8] sm:$0xff]  ;;  %v4031_v8 = vld [vmem:[#allocation5 + $0xc0] sm:$0xff] }
 0x5e2   :  { %v4288_v12 = vld [vmem:[#allocation5 + $0x8c8] sm:$0xff]  ;;  %v4287_v13 = vld [vmem:[#allocation5 + $0x8c0] sm:$0xff]  ;;  %v4034_v16 = vld [vmem:[#allocation5 + $0xd8] sm:$0xff] }
 0x5e3   :  { %v4290_v45 = vld [vmem:[#allocation5 + $0x8d8] sm:$0xff]  ;;  %v4033_v17 = vld [vmem:[#allocation5 + $0xd0] sm:$0xff]  ;;  %v4036_v20 = vld [vmem:[#allocation5 + $0xe8] sm:$0xff] }
 0x5e4   :  { %4680 = vmatpush1.bf16.msra.mxu1 %v4015_v58  ;;  %5008 = vmatpush1.bf16.msra.mxu0 %v4271_v26  ;;  %v4289_v19 = vld [vmem:[#allocation5 + $0x8d0] sm:$0xff]  ;;  %v4292_v15 = vld [vmem:[#allocation5 + $0x8e8] sm:$0xff]  ;;  %v4035_v27 = vld [vmem:[#allocation5 + $0xe0] sm:$0xff]  ;;  %v3776_v58 = vrot.slane %v8835_v52, %v9644_v29  ;;  %v3840_v26 = vrot.slane %v9159_v18, %v9644_v29 }
 0x5e5   :  { %4681 = vmatprep.subr.bf16.mxu1 %v4018_v35  ;;  %5009 = vmatprep.subr.bf16.mxu0 %v4274_v57  ;;  %v4291_v28 = vld [vmem:[#allocation5 + $0x8e0] sm:$0xff]  ;;  %v4038_v24 = vld [vmem:[#allocation5 + $0xf8] sm:$0xff]  ;;  %v4037_v32 = vld [vmem:[#allocation5 + $0xf0] sm:$0xff]  ;;  %v3966_v35 = vpack.c.bf16 %v3764_v30, %v3764_v30  ;;  %v3982_v57 = vpack.c.bf16 %v3828_v31, %v3828_v31 }
 0x5e6   :  { %v4294_v22 = vld [vmem:[#allocation5 + $0x8f8] sm:$0xff]  ;;  %v4293_v33 = vld [vmem:[#allocation5 + $0x8f0] sm:$0xff]  ;;  %v4040_v34 = vld [vmem:[#allocation5 + $0x108] sm:$0xff] }
 0x5e7   :  { %v4296_v36 = vld [vmem:[#allocation5 + $0x908] sm:$0xff]  ;;  %vm6816_vm5 = vmpackc.low %vm5614_vm9, %vm7562_vm2 }
 0x5e8   :  { %4682 = vmatpush1.bf16.msra.mxu1 %v4017_v40  ;;  %5010 = vmatpush1.bf16.msra.mxu0 %v4273_v41  ;;  %v4039_v40 = vld [vmem:[#allocation5 + $0x100] sm:$0xff]  ;;  %v4060_v30 = vld [vmem:[#allocation5 + $0x1a8] sm:$0xff] }
 0x5e9   :  { %4683 = vmatprep.subr.bf16.mxu1 %v4020_v42  ;;  %5011 = vmatprep.subr.bf16.mxu0 %v4276_v43  ;;  %v4295_v41 = vld [vmem:[#allocation5 + $0x900] sm:$0xff]  ;;  %v4042_v42 = vld [vmem:[#allocation5 + $0x118] sm:$0xff]  ;;  %v4316_v31 = vld [vmem:[#allocation5 + $0x9a8] sm:$0xff] }
 0x5ea   :  { %v4298_v43 = vld [vmem:[#allocation5 + $0x918] sm:$0xff] }
 0x5ec   :  { %4684 = vmatpush1.bf16.msra.mxu1 %v4019_v44  ;;  %5012 = vmatpush1.bf16.msra.mxu0 %v4275_v37  ;;  %v3969_v44 = vpack.c.bf16 %v3776_v58, %v3776_v58  ;;  %v3985_v37 = vpack.c.bf16 %v3840_v26, %v3840_v26  ;;  %v4061_v58 = vld [vmem:[#allocation5 + $0x1b0] sm:$0xff] }
 0x5ed   :  { %4685 = vmatprep.subr.bf16.mxu1 %v4022_v60  ;;  %5013 = vmatprep.subr.bf16.mxu0 %v4278_v39  ;;  %v4041_v60 = vld [vmem:[#allocation5 + $0x110] sm:$0xff] }
 0x5ee   :  { %v4297_v39 = vld [vmem:[#allocation5 + $0x910] sm:$0xff] }
 0x5ef   :  { %v4317_v26 = vld [vmem:[#allocation5 + $0x9b0] sm:$0xff] }
 0x5f0   :  { %4686 = vmatpush1.bf16.msra.mxu1 %v4021_v3  ;;  %5014 = vmatpush1.bf16.msra.mxu0 %v4277_v46  ;;  %v4044_v3 = vld [vmem:[#allocation5 + $0x128] sm:$0xff] }
 0x5f1   :  { %4687 = vmatprep.subr.bf16.mxu1 %v4024_v47  ;;  %5015 = vmatprep.subr.bf16.mxu0 %v4280_v6  ;;  %v4300_v46 = vld [vmem:[#allocation5 + $0x928] sm:$0xff]  ;;  %v4043_v47 = vld [vmem:[#allocation5 + $0x120] sm:$0xff] }
 0x5f2   :  { %v4299_v6 = vld [vmem:[#allocation5 + $0x920] sm:$0xff] }
 0x5f4   :  { %4688 = vmatpush1.bf16.msra.mxu1 %v4023_v62  ;;  %5016 = vmatpush1.bf16.msra.mxu0 %v4279_v48  ;;  %v4046_v62 = vld [vmem:[#allocation5 + $0x138] sm:$0xff] }
 0x5f5   :  { %4689 = vmatprep.subr.bf16.mxu1 %v4026_v49  ;;  %5017 = vmatprep.subr.bf16.mxu0 %v4282_v50  ;;  %v4302_v48 = vld [vmem:[#allocation5 + $0x938] sm:$0xff]  ;;  %v4045_v49 = vld [vmem:[#allocation5 + $0x130] sm:$0xff] }
 0x5f6   :  { %v4301_v50 = vld [vmem:[#allocation5 + $0x930] sm:$0xff] }
 0x5f8   :  { %4690 = vmatpush1.bf16.msra.mxu1 %v4025_v53  ;;  %5018 = vmatpush1.bf16.msra.mxu0 %v4281_v61  ;;  %v4048_v53 = vld [vmem:[#allocation5 + $0x148] sm:$0xff] }
 0x5f9   :  { %4691 = vmatprep.subr.bf16.mxu1 %v4028_v63  ;;  %5019 = vmatprep.subr.bf16.mxu0 %v4284_v25  ;;  %v4304_v61 = vld [vmem:[#allocation5 + $0x948] sm:$0xff]  ;;  %v4047_v63 = vld [vmem:[#allocation5 + $0x140] sm:$0xff] }
 0x5fa   :  { %v4303_v25 = vld [vmem:[#allocation5 + $0x940] sm:$0xff] }
 0x5fc   :  { %4692 = vmatpush1.bf16.msra.mxu1 %v4027_v21  ;;  %5020 = vmatpush1.bf16.msra.mxu0 %v4283_v10  ;;  %v4050_v21 = vld [vmem:[#allocation5 + $0x158] sm:$0xff] }
 0x5fd   :  { %4693 = vmatprep.subr.bf16.mxu1 %v4030_v9  ;;  %5021 = vmatprep.subr.bf16.mxu0 %v4286_v4  ;;  %v4306_v10 = vld [vmem:[#allocation5 + $0x958] sm:$0xff]  ;;  %v4049_v9 = vld [vmem:[#allocation5 + $0x150] sm:$0xff] }
 0x5fe   :  { %v4305_v4 = vld [vmem:[#allocation5 + $0x950] sm:$0xff] }
 0x600   :  { %4694 = vmatpush1.bf16.msra.mxu1 %v4029_v51  ;;  %5022 = vmatpush1.bf16.msra.mxu0 %v4285_v38  ;;  %v4052_v51 = vld [vmem:[#allocation5 + $0x168] sm:$0xff] }
 0x601   :  { %4695 = vmatprep.subr.bf16.mxu1 %v4032_v11  ;;  %5023 = vmatprep.subr.bf16.mxu0 %v4288_v12  ;;  %v4308_v38 = vld [vmem:[#allocation5 + $0x968] sm:$0xff]  ;;  %v4051_v11 = vld [vmem:[#allocation5 + $0x160] sm:$0xff] }
 0x602   :  { %v4307_v12 = vld [vmem:[#allocation5 + $0x960] sm:$0xff] }
 0x604   :  { %4696 = vmatpush1.bf16.msra.mxu1 %v4031_v8  ;;  %5024 = vmatpush1.bf16.msra.mxu0 %v4287_v13  ;;  %v4054_v8 = vld [vmem:[#allocation5 + $0x178] sm:$0xff] }
 0x605   :  { %4697 = vmatprep.subr.bf16.mxu1 %v4034_v16  ;;  %5025 = vmatprep.subr.bf16.mxu0 %v4290_v45  ;;  %v4310_v13 = vld [vmem:[#allocation5 + $0x978] sm:$0xff]  ;;  %v4053_v16 = vld [vmem:[#allocation5 + $0x170] sm:$0xff] }
 0x606   :  { %v4309_v45 = vld [vmem:[#allocation5 + $0x970] sm:$0xff] }
 0x608   :  { %4698 = vmatpush1.bf16.msra.mxu1 %v4033_v17  ;;  %5026 = vmatpush1.bf16.msra.mxu0 %v4289_v19  ;;  %v4056_v17 = vld [vmem:[#allocation5 + $0x188] sm:$0xff] }
 0x609   :  { %4699 = vmatprep.subr.bf16.mxu1 %v4036_v20  ;;  %5027 = vmatprep.subr.bf16.mxu0 %v4292_v15  ;;  %v4312_v19 = vld [vmem:[#allocation5 + $0x988] sm:$0xff]  ;;  %v4055_v20 = vld [vmem:[#allocation5 + $0x180] sm:$0xff] }
 0x60a   :  { %v4311_v15 = vld [vmem:[#allocation5 + $0x980] sm:$0xff] }
 0x60c   :  { %4700 = vmatpush1.bf16.msra.mxu1 %v4035_v27  ;;  %5028 = vmatpush1.bf16.msra.mxu0 %v4291_v28  ;;  %v4058_v27 = vld [vmem:[#allocation5 + $0x198] sm:$0xff] }
 0x60d   :  { %4701 = vmatprep.subr.bf16.mxu1 %v4038_v24  ;;  %5029 = vmatprep.subr.bf16.mxu0 %v4294_v22  ;;  %v4314_v28 = vld [vmem:[#allocation5 + $0x998] sm:$0xff]  ;;  %v4057_v24 = vld [vmem:[#allocation5 + $0x190] sm:$0xff] }
 0x60e   :  { %v4313_v22 = vld [vmem:[#allocation5 + $0x990] sm:$0xff] }
 0x610   :  { %4702 = vmatpush1.bf16.msra.mxu1 %v4037_v32  ;;  %5030 = vmatpush1.bf16.msra.mxu0 %v4293_v33  ;;  %v4059_v32 = vld [vmem:[#allocation5 + $0x1a0] sm:$0xff] }
 0x611   :  { %4712 = vmatprep.subr.bf16.mxu1 %v4040_v34  ;;  %5040 = vmatprep.subr.bf16.mxu0 %v4296_v36  ;;  %v4315_v33 = vld [vmem:[#allocation5 + $0x9a0] sm:$0xff]  ;;  %v4062_v34 = vld [vmem:[#allocation5 + $0x1b8] sm:$0xff] }
 0x612   :  { %v4318_v36 = vld [vmem:[#allocation5 + $0x9b8] sm:$0xff] }
 0x613   :  { %4704 = vmatmul.mubr.bf16.vlgmr.msra.gmra.mrb[12].mxu1 %v3966_v35  ;;  %5032 = vmatmul.mubr.bf16.vlgmr.msra.gmra.mrb[4].mxu0 %v3982_v57  ;;  %v4064_v35 = vld [vmem:[#allocation5 + $0x1c8] sm:$0xff] }
 0x614   :  { %4713 = vmatpush1.bf16.msra.mxu1 %v4039_v40  ;;  %5041 = vmatpush1.bf16.msra.mxu0 %v4295_v41  ;;  %v4320_v57 = vld [vmem:[#allocation5 + $0x9c8] sm:$0xff]  ;;  %v4063_v40 = vld [vmem:[#allocation5 + $0x1c0] sm:$0xff] }
 0x615   :  { %4714 = vmatprep.subr.bf16.mxu1 %v4042_v42  ;;  %5042 = vmatprep.subr.bf16.mxu0 %v4298_v43  ;;  %v4319_v41 = vld [vmem:[#allocation5 + $0x9c0] sm:$0xff]  ;;  %v4066_v42 = vld [vmem:[#allocation5 + $0x1d8] sm:$0xff] }
 0x616   :  { %4744 = vmatprep.mubr.bf16.mxu1 %v3969_v44  ;;  %5072 = vmatprep.mubr.bf16.mxu0 %v3985_v37  ;;  %v4322_v43 = vld [vmem:[#allocation5 + $0x9d8] sm:$0xff]  ;;  %v4065_v44 = vld [vmem:[#allocation5 + $0x1d0] sm:$0xff] }
 0x617   :  { %v4321_v37 = vld [vmem:[#allocation5 + $0x9d0] sm:$0xff] }
 0x618   :  { %4715 = vmatpush1.bf16.msra.mxu1 %v4041_v60  ;;  %5043 = vmatpush1.bf16.msra.mxu0 %v4297_v39  ;;  %v4068_v60 = vld [vmem:[#allocation5 + $0x1e8] sm:$0xff] }
 0x619   :  { %4716 = vmatprep.subr.bf16.mxu1 %v4044_v3  ;;  %5044 = vmatprep.subr.bf16.mxu0 %v4300_v46  ;;  %v4324_v39 = vld [vmem:[#allocation5 + $0x9e8] sm:$0xff]  ;;  %v9655_v3 = vsub.s32 2, %v8296_v59  ;;  %v4067_v46 = vld [vmem:[#allocation5 + $0x1e0] sm:$0xff] }
 0x61c   :  { %4717 = vmatpush1.bf16.msra.mxu1 %v4043_v47  ;;  %5045 = vmatpush1.bf16.msra.mxu0 %v4299_v6  ;;  %v4323_v47 = vld [vmem:[#allocation5 + $0x9e0] sm:$0xff]  ;;  %v4070_v6 = vld [vmem:[#allocation5 + $0x1f8] sm:$0xff] }
 0x61d   :  { %4718 = vmatprep.subr.bf16.mxu1 %v4046_v62  ;;  %5046 = vmatprep.subr.bf16.mxu0 %v4302_v48  ;;  %v4326_v62 = vld [vmem:[#allocation5 + $0x9f8] sm:$0xff]  ;;  %v9658_v48 = vsub.s32 5, %v8296_v59 }
 0x620   :  { %4719 = vmatpush1.bf16.msra.mxu1 %v4045_v49  ;;  %5047 = vmatpush1.bf16.msra.mxu0 %v4301_v50  ;;  %v3772_v49 = vrot.slane %v8835_v52, %v9655_v3  ;;  %v3836_v50 = vrot.slane %v9159_v18, %v9655_v3 }
 0x621   :  { %4720 = vmatprep.subr.bf16.mxu1 %v4048_v53  ;;  %5048 = vmatprep.subr.bf16.mxu0 %v4304_v61  ;;  %v4069_v53 = vld [vmem:[#allocation5 + $0x1f0] sm:$0xff] }
 0x622   :  { %v4325_v61 = vld [vmem:[#allocation5 + $0x9f0] sm:$0xff] }
 0x624   :  { %4721 = vmatpush1.bf16.msra.mxu1 %v4047_v63  ;;  %5049 = vmatpush1.bf16.msra.mxu0 %v4303_v25  ;;  %v4072_v63 = vld [vmem:[#allocation5 + $0x208] sm:$0xff] }
 0x625   :  { %4722 = vmatprep.subr.bf16.mxu1 %v4050_v21  ;;  %5050 = vmatprep.subr.bf16.mxu0 %v4306_v10  ;;  %v4328_v25 = vld [vmem:[#allocation5 + $0xa08] sm:$0xff]  ;;  %v3784_v21 = vrot.slane %v8835_v52, %v9658_v48  ;;  %v3848_v10 = vrot.slane %v9159_v18, %v9658_v48 }
 0x628   :  { %4723 = vmatpush1.bf16.msra.mxu1 %v4049_v9  ;;  %5051 = vmatpush1.bf16.msra.mxu0 %v4305_v4  ;;  %v3968_v9 = vpack.c.bf16 %v3772_v49, %v3772_v49  ;;  %v3984_v4 = vpack.c.bf16 %v3836_v50, %v3836_v50  ;;  %v4089_v49 = vld [vmem:[#allocation5 + $0x290] sm:$0xff] }
 0x629   :  { %4724 = vmatprep.subr.bf16.mxu1 %v4052_v51  ;;  %5052 = vmatprep.subr.bf16.mxu0 %v4308_v38  ;;  %v4071_v51 = vld [vmem:[#allocation5 + $0x200] sm:$0xff]  ;;  %v4345_v50 = vld [vmem:[#allocation5 + $0xa90] sm:$0xff] }
 0x62a   :  { %v4327_v38 = vld [vmem:[#allocation5 + $0xa00] sm:$0xff] }
 0x62c   :  { %4725 = vmatpush1.bf16.msra.mxu1 %v4051_v11  ;;  %5053 = vmatpush1.bf16.msra.mxu0 %v4307_v12  ;;  %v4074_v11 = vld [vmem:[#allocation5 + $0x218] sm:$0xff] }
 0x62d   :  { %4726 = vmatprep.subr.bf16.mxu1 %v4054_v8  ;;  %5054 = vmatprep.subr.bf16.mxu0 %v4310_v13  ;;  %v4330_v12 = vld [vmem:[#allocation5 + $0xa18] sm:$0xff]  ;;  %v3971_v8 = vpack.c.bf16 %v3784_v21, %v3784_v21  ;;  %v3987_v13 = vpack.c.bf16 %v3848_v10, %v3848_v10 }
 0x62e   :  { %v4094_v21 = vld [vmem:[#allocation5 + $0x2b8] sm:$0xff] }
 0x62f   :  { %v4350_v10 = vld [vmem:[#allocation5 + $0xab8] sm:$0xff] }
 0x630   :  { %4727 = vmatpush1.bf16.msra.mxu1 %v4053_v16  ;;  %5055 = vmatpush1.bf16.msra.mxu0 %v4309_v45  ;;  %v4073_v16 = vld [vmem:[#allocation5 + $0x210] sm:$0xff] }
 0x631   :  { %4728 = vmatprep.subr.bf16.mxu1 %v4056_v17  ;;  %5056 = vmatprep.subr.bf16.mxu0 %v4312_v19  ;;  %v4329_v45 = vld [vmem:[#allocation5 + $0xa10] sm:$0xff]  ;;  %v4076_v17 = vld [vmem:[#allocation5 + $0x228] sm:$0xff] }
 0x632   :  { %v4332_v19 = vld [vmem:[#allocation5 + $0xa28] sm:$0xff] }
 0x634   :  { %4729 = vmatpush1.bf16.msra.mxu1 %v4055_v20  ;;  %5057 = vmatpush1.bf16.msra.mxu0 %v4311_v15  ;;  %v4075_v20 = vld [vmem:[#allocation5 + $0x220] sm:$0xff] }
 0x635   :  { %4730 = vmatprep.subr.bf16.mxu1 %v4058_v27  ;;  %5058 = vmatprep.subr.bf16.mxu0 %v4314_v28  ;;  %v4331_v15 = vld [vmem:[#allocation5 + $0xa20] sm:$0xff]  ;;  %v4078_v27 = vld [vmem:[#allocation5 + $0x238] sm:$0xff] }
 0x636   :  { %v4334_v28 = vld [vmem:[#allocation5 + $0xa38] sm:$0xff] }
 0x638   :  { %4731 = vmatpush1.bf16.msra.mxu1 %v4057_v24  ;;  %5059 = vmatpush1.bf16.msra.mxu0 %v4313_v22  ;;  %v4077_v24 = vld [vmem:[#allocation5 + $0x230] sm:$0xff] }
 0x639   :  { %4732 = vmatprep.subr.bf16.mxu1 %v4060_v30  ;;  %5060 = vmatprep.subr.bf16.mxu0 %v4316_v31  ;;  %v4333_v22 = vld [vmem:[#allocation5 + $0xa30] sm:$0xff]  ;;  %v4080_v30 = vld [vmem:[#allocation5 + $0x248] sm:$0xff] }
 0x63a   :  { %v4336_v31 = vld [vmem:[#allocation5 + $0xa48] sm:$0xff] }
 0x63c   :  { %4733 = vmatpush1.bf16.msra.mxu1 %v4059_v32  ;;  %5061 = vmatpush1.bf16.msra.mxu0 %v4315_v33  ;;  %v4079_v32 = vld [vmem:[#allocation5 + $0x240] sm:$0xff] }
 0x63d   :  { %4734 = vmatprep.subr.bf16.mxu1 %v4062_v34  ;;  %5062 = vmatprep.subr.bf16.mxu0 %v4318_v36  ;;  %v4335_v33 = vld [vmem:[#allocation5 + $0xa40] sm:$0xff]  ;;  %v4082_v34 = vld [vmem:[#allocation5 + $0x258] sm:$0xff] }
 0x63e   :  { %v4338_v36 = vld [vmem:[#allocation5 + $0xa58] sm:$0xff] }
 0x640   :  { %4735 = vmatpush1.bf16.msra.mxu1 %v4061_v58  ;;  %5063 = vmatpush1.bf16.msra.mxu0 %v4317_v26  ;;  %v4081_v58 = vld [vmem:[#allocation5 + $0x250] sm:$0xff] }
 0x641   :  { %4736 = vmatprep.subr.bf16.mxu1 %v4064_v35  ;;  %5064 = vmatprep.subr.bf16.mxu0 %v4320_v57  ;;  %v4337_v26 = vld [vmem:[#allocation5 + $0xa50] sm:$0xff]  ;;  %v4084_v35 = vld [vmem:[#allocation5 + $0x268] sm:$0xff] }
 0x642   :  { %v4340_v57 = vld [vmem:[#allocation5 + $0xa68] sm:$0xff] }
 0x644   :  { %4737 = vmatpush1.bf16.msra.mxu1 %v4063_v40  ;;  %5065 = vmatpush1.bf16.msra.mxu0 %v4319_v41  ;;  %v4083_v40 = vld [vmem:[#allocation5 + $0x260] sm:$0xff] }
 0x645   :  { %4738 = vmatprep.subr.bf16.mxu1 %v4066_v42  ;;  %5066 = vmatprep.subr.bf16.mxu0 %v4322_v43  ;;  %v4339_v41 = vld [vmem:[#allocation5 + $0xa60] sm:$0xff]  ;;  %v4086_v42 = vld [vmem:[#allocation5 + $0x278] sm:$0xff] }
 0x646   :  { %v4342_v43 = vld [vmem:[#allocation5 + $0xa78] sm:$0xff] }
 0x648   :  { %4739 = vmatpush1.bf16.msra.mxu1 %v4065_v44  ;;  %5067 = vmatpush1.bf16.msra.mxu0 %v4321_v37  ;;  %v4085_v44 = vld [vmem:[#allocation5 + $0x270] sm:$0xff] }
 0x649   :  { %4740 = vmatprep.subr.bf16.mxu1 %v4068_v60  ;;  %5068 = vmatprep.subr.bf16.mxu0 %v4324_v39  ;;  %v4341_v37 = vld [vmem:[#allocation5 + $0xa70] sm:$0xff]  ;;  %v4088_v60 = vld [vmem:[#allocation5 + $0x288] sm:$0xff] }
 0x64a   :  { %v4344_v39 = vld [vmem:[#allocation5 + $0xa88] sm:$0xff] }
 0x64c   :  { %4741 = vmatpush1.bf16.msra.mxu1 %v4067_v46  ;;  %5069 = vmatpush1.bf16.msra.mxu0 %v4323_v47  ;;  %v4087_v46 = vld [vmem:[#allocation5 + $0x280] sm:$0xff] }
 0x64d   :  { %4742 = vmatprep.subr.bf16.mxu1 %v4070_v6  ;;  %5070 = vmatprep.subr.bf16.mxu0 %v4326_v62  ;;  %v4343_v47 = vld [vmem:[#allocation5 + $0xa80] sm:$0xff]  ;;  %v4090_v6 = vld [vmem:[#allocation5 + $0x298] sm:$0xff] }
 0x64e   :  { %v4346_v62 = vld [vmem:[#allocation5 + $0xa98] sm:$0xff] }
 0x650   :  { %4743 = vmatpush1.bf16.msra.mxu1 %v4069_v53  ;;  %5071 = vmatpush1.bf16.msra.mxu0 %v4325_v61  ;;  %v4092_v53 = vld [vmem:[#allocation5 + $0x2a8] sm:$0xff] }
 0x651   :  { %4753 = vmatprep.subr.bf16.mxu1 %v4072_v63  ;;  %5081 = vmatprep.subr.bf16.mxu0 %v4328_v25  ;;  %v4348_v61 = vld [vmem:[#allocation5 + $0xaa8] sm:$0xff]  ;;  %v4091_v63 = vld [vmem:[#allocation5 + $0x2a0] sm:$0xff] }
 0x652   :  { %v4347_v25 = vld [vmem:[#allocation5 + $0xaa0] sm:$0xff] }
 0x653   :  { %4745 = vmatmul.mubr.bf16.vlgmr.msra.gmra.mrb[12].mxu1 %v3968_v9  ;;  %5073 = vmatmul.mubr.bf16.vlgmr.msra.gmra.mrb[4].mxu0 %v3984_v4  ;;  %v4093_v9 = vld [vmem:[#allocation5 + $0x2b0] sm:$0xff] }
 0x654   :  { %4754 = vmatpush1.bf16.msra.mxu1 %v4071_v51  ;;  %5082 = vmatpush1.bf16.msra.mxu0 %v4327_v38  ;;  %v4349_v4 = vld [vmem:[#allocation5 + $0xab0] sm:$0xff]  ;;  %v4096_v51 = vld [vmem:[#allocation5 + $0x2c8] sm:$0xff] }
 0x655   :  { %4755 = vmatprep.subr.bf16.mxu1 %v4074_v11  ;;  %5083 = vmatprep.subr.bf16.mxu0 %v4330_v12  ;;  %v4352_v38 = vld [vmem:[#allocation5 + $0xac8] sm:$0xff]  ;;  %v4095_v11 = vld [vmem:[#allocation5 + $0x2c0] sm:$0xff] }
 0x656   :  { %4785 = vmatprep.mubr.bf16.mxu1 %v3971_v8  ;;  %5113 = vmatprep.mubr.bf16.mxu0 %v3987_v13  ;;  %v4351_v12 = vld [vmem:[#allocation5 + $0xac0] sm:$0xff]  ;;  %v4098_v8 = vld [vmem:[#allocation5 + $0x2d8] sm:$0xff] }
 0x657   :  { %v4354_v13 = vld [vmem:[#allocation5 + $0xad8] sm:$0xff] }
 0x658   :  { %4756 = vmatpush1.bf16.msra.mxu1 %v4073_v16  ;;  %5084 = vmatpush1.bf16.msra.mxu0 %v4329_v45  ;;  %v4097_v16 = vld [vmem:[#allocation5 + $0x2d0] sm:$0xff] }
 0x659   :  { %4757 = vmatprep.subr.bf16.mxu1 %v4076_v17  ;;  %5085 = vmatprep.subr.bf16.mxu0 %v4332_v19  ;;  %v4353_v45 = vld [vmem:[#allocation5 + $0xad0] sm:$0xff]  ;;  %v4100_v17 = vld [vmem:[#allocation5 + $0x2e8] sm:$0xff] }
 0x65a   :  { %v4356_v19 = vld [vmem:[#allocation5 + $0xae8] sm:$0xff] }
 0x65c   :  { %4758 = vmatpush1.bf16.msra.mxu1 %v4075_v20  ;;  %5086 = vmatpush1.bf16.msra.mxu0 %v4331_v15  ;;  %v9669_v20 = vsub.s32 4, %v8296_v59  ;;  %v4099_v15 = vld [vmem:[#allocation5 + $0x2e0] sm:$0xff] }
 0x65d   :  { %4759 = vmatprep.subr.bf16.mxu1 %v4078_v27  ;;  %5087 = vmatprep.subr.bf16.mxu0 %v4334_v28  ;;  %v4355_v27 = vld [vmem:[#allocation5 + $0xae0] sm:$0xff]  ;;  %v4102_v28 = vld [vmem:[#allocation5 + $0x2f8] sm:$0xff] }
 0x660   :  { %4760 = vmatpush1.bf16.msra.mxu1 %v4077_v24  ;;  %5088 = vmatpush1.bf16.msra.mxu0 %v4333_v22  ;;  %v4358_v24 = vld [vmem:[#allocation5 + $0xaf8] sm:$0xff]  ;;  %v9672_v22 = vsub.s32 7, %v8296_v59 }
 0x661   :  { %4761 = vmatprep.subr.bf16.mxu1 %v4080_v30  ;;  %5089 = vmatprep.subr.bf16.mxu0 %v4336_v31  ;;  %v3780_v30 = vrot.slane %v8835_v52, %v9669_v20  ;;  %v3844_v31 = vrot.slane %v9159_v18, %v9669_v20 }
 0x664   :  { %4762 = vmatpush1.bf16.msra.mxu1 %v4079_v32  ;;  %5090 = vmatpush1.bf16.msra.mxu0 %v4335_v33  ;;  %v4101_v32 = vld [vmem:[#allocation5 + $0x2f0] sm:$0xff] }
 0x665   :  { %4763 = vmatprep.subr.bf16.mxu1 %v4082_v34  ;;  %5091 = vmatprep.subr.bf16.mxu0 %v4338_v36  ;;  %v4357_v33 = vld [vmem:[#allocation5 + $0xaf0] sm:$0xff]  ;;  %v4104_v34 = vld [vmem:[#allocation5 + $0x308] sm:$0xff] }
 0x666   :  { %v4360_v36 = vld [vmem:[#allocation5 + $0xb08] sm:$0xff] }
 0x668   :  { %4764 = vmatpush1.bf16.msra.mxu1 %v4081_v58  ;;  %5092 = vmatpush1.bf16.msra.mxu0 %v4337_v26  ;;  %v3792_v58 = vrot.slane %v8835_v52, %v9672_v22  ;;  %v3856_v26 = vrot.slane %v9159_v18, %v9672_v22 }
 0x669   :  { %4765 = vmatprep.subr.bf16.mxu1 %v4084_v35  ;;  %5093 = vmatprep.subr.bf16.mxu0 %v4340_v57  ;;  %v3970_v35 = vpack.c.bf16 %v3780_v30, %v3780_v30  ;;  %v3986_v57 = vpack.c.bf16 %v3844_v31, %v3844_v31  ;;  %v4122_v30 = vld [vmem:[#allocation5 + $0x398] sm:$0xff] }
 0x66a   :  { %v4378_v31 = vld [vmem:[#allocation5 + $0xb98] sm:$0xff] }
 0x66c   :  { %4766 = vmatpush1.bf16.msra.mxu1 %v4083_v40  ;;  %5094 = vmatpush1.bf16.msra.mxu0 %v4339_v41  ;;  %v4103_v40 = vld [vmem:[#allocation5 + $0x300] sm:$0xff] }
 0x66d   :  { %4767 = vmatprep.subr.bf16.mxu1 %v4086_v42  ;;  %5095 = vmatprep.subr.bf16.mxu0 %v4342_v43  ;;  %v4359_v41 = vld [vmem:[#allocation5 + $0xb00] sm:$0xff]  ;;  %v4106_v42 = vld [vmem:[#allocation5 + $0x318] sm:$0xff] }
 0x66e   :  { %v4362_v43 = vld [vmem:[#allocation5 + $0xb18] sm:$0xff] }
 0x670   :  { %4768 = vmatpush1.bf16.msra.mxu1 %v4085_v44  ;;  %5096 = vmatpush1.bf16.msra.mxu0 %v4341_v37  ;;  %v3973_v44 = vpack.c.bf16 %v3792_v58, %v3792_v58  ;;  %v3989_v37 = vpack.c.bf16 %v3856_v26, %v3856_v26  ;;  %v4123_v58 = vld [vmem:[#allocation5 + $0x3a0] sm:$0xff] }
 0x671   :  { %4769 = vmatprep.subr.bf16.mxu1 %v4088_v60  ;;  %5097 = vmatprep.subr.bf16.mxu0 %v4344_v39  ;;  %v4105_v60 = vld [vmem:[#allocation5 + $0x310] sm:$0xff]  ;;  %v4379_v26 = vld [vmem:[#allocation5 + $0xba0] sm:$0xff] }
 0x672   :  { %v4361_v39 = vld [vmem:[#allocation5 + $0xb10] sm:$0xff] }
 0x674   :  { %4770 = vmatpush1.bf16.msra.mxu1 %v4087_v46  ;;  %5098 = vmatpush1.bf16.msra.mxu0 %v4343_v47  ;;  %v4108_v46 = vld [vmem:[#allocation5 + $0x328] sm:$0xff] }
 0x675   :  { %4771 = vmatprep.subr.bf16.mxu1 %v4090_v6  ;;  %5099 = vmatprep.subr.bf16.mxu0 %v4346_v62  ;;  %v4364_v47 = vld [vmem:[#allocation5 + $0xb28] sm:$0xff]  ;;  %v4107_v6 = vld [vmem:[#allocation5 + $0x320] sm:$0xff] }
 0x676   :  { %v4363_v62 = vld [vmem:[#allocation5 + $0xb20] sm:$0xff] }
 0x678   :  { %4772 = vmatpush1.bf16.msra.mxu1 %v4089_v49  ;;  %5100 = vmatpush1.bf16.msra.mxu0 %v4345_v50  ;;  %v4110_v49 = vld [vmem:[#allocation5 + $0x338] sm:$0xff] }
 0x679   :  { %4773 = vmatprep.subr.bf16.mxu1 %v4092_v53  ;;  %5101 = vmatprep.subr.bf16.mxu0 %v4348_v61  ;;  %v4366_v50 = vld [vmem:[#allocation5 + $0xb38] sm:$0xff]  ;;  %v4109_v53 = vld [vmem:[#allocation5 + $0x330] sm:$0xff] }
 0x67a   :  { %v4365_v61 = vld [vmem:[#allocation5 + $0xb30] sm:$0xff] }
 0x67c   :  { %4774 = vmatpush1.bf16.msra.mxu1 %v4091_v63  ;;  %5102 = vmatpush1.bf16.msra.mxu0 %v4347_v25  ;;  %v4112_v63 = vld [vmem:[#allocation5 + $0x348] sm:$0xff] }
 0x67d   :  { %4775 = vmatprep.subr.bf16.mxu1 %v4094_v21  ;;  %5103 = vmatprep.subr.bf16.mxu0 %v4350_v10  ;;  %v4368_v25 = vld [vmem:[#allocation5 + $0xb48] sm:$0xff]  ;;  %v4111_v21 = vld [vmem:[#allocation5 + $0x340] sm:$0xff] }
 0x67e   :  { %v4367_v10 = vld [vmem:[#allocation5 + $0xb40] sm:$0xff] }
 0x680   :  { %4776 = vmatpush1.bf16.msra.mxu1 %v4093_v9  ;;  %5104 = vmatpush1.bf16.msra.mxu0 %v4349_v4  ;;  %v4114_v9 = vld [vmem:[#allocation5 + $0x358] sm:$0xff] }
 0x681   :  { %4777 = vmatprep.subr.bf16.mxu1 %v4096_v51  ;;  %5105 = vmatprep.subr.bf16.mxu0 %v4352_v38  ;;  %v4370_v4 = vld [vmem:[#allocation5 + $0xb58] sm:$0xff]  ;;  %v4113_v51 = vld [vmem:[#allocation5 + $0x350] sm:$0xff] }
 0x682   :  { %v4369_v38 = vld [vmem:[#allocation5 + $0xb50] sm:$0xff] }
 0x684   :  { %4778 = vmatpush1.bf16.msra.mxu1 %v4095_v11  ;;  %5106 = vmatpush1.bf16.msra.mxu0 %v4351_v12  ;;  %v4116_v11 = vld [vmem:[#allocation5 + $0x368] sm:$0xff] }
 0x685   :  { %4779 = vmatprep.subr.bf16.mxu1 %v4098_v8  ;;  %5107 = vmatprep.subr.bf16.mxu0 %v4354_v13  ;;  %v4372_v12 = vld [vmem:[#allocation5 + $0xb68] sm:$0xff]  ;;  %v4115_v8 = vld [vmem:[#allocation5 + $0x360] sm:$0xff] }
 0x686   :  { %v4371_v13 = vld [vmem:[#allocation5 + $0xb60] sm:$0xff] }
 0x688   :  { %4780 = vmatpush1.bf16.msra.mxu1 %v4097_v16  ;;  %5108 = vmatpush1.bf16.msra.mxu0 %v4353_v45  ;;  %v4118_v16 = vld [vmem:[#allocation5 + $0x378] sm:$0xff] }
 0x689   :  { %4781 = vmatprep.subr.bf16.mxu1 %v4100_v17  ;;  %5109 = vmatprep.subr.bf16.mxu0 %v4356_v19  ;;  %v4374_v45 = vld [vmem:[#allocation5 + $0xb78] sm:$0xff]  ;;  %v4117_v17 = vld [vmem:[#allocation5 + $0x370] sm:$0xff] }
 0x68a   :  { %v4373_v19 = vld [vmem:[#allocation5 + $0xb70] sm:$0xff] }
 0x68c   :  { %4782 = vmatpush1.bf16.msra.mxu1 %v4099_v15  ;;  %5110 = vmatpush1.bf16.msra.mxu0 %v4355_v27  ;;  %v4120_v15 = vld [vmem:[#allocation5 + $0x388] sm:$0xff] }
 0x68d   :  { %4783 = vmatprep.subr.bf16.mxu1 %v4102_v28  ;;  %5111 = vmatprep.subr.bf16.mxu0 %v4358_v24  ;;  %v4376_v27 = vld [vmem:[#allocation5 + $0xb88] sm:$0xff]  ;;  %v4119_v28 = vld [vmem:[#allocation5 + $0x380] sm:$0xff] }
 0x68e   :  { %v4375_v24 = vld [vmem:[#allocation5 + $0xb80] sm:$0xff] }
 0x690   :  { %4784 = vmatpush1.bf16.msra.mxu1 %v4101_v32  ;;  %5112 = vmatpush1.bf16.msra.mxu0 %v4357_v33  ;;  %v4121_v32 = vld [vmem:[#allocation5 + $0x390] sm:$0xff] }
 0x691   :  { %4794 = vmatprep.subr.bf16.mxu1 %v4104_v34  ;;  %5122 = vmatprep.subr.bf16.mxu0 %v4360_v36  ;;  %v4377_v33 = vld [vmem:[#allocation5 + $0xb90] sm:$0xff]  ;;  %v4124_v34 = vld [vmem:[#allocation5 + $0x3a8] sm:$0xff] }
 0x692   :  { %v4380_v36 = vld [vmem:[#allocation5 + $0xba8] sm:$0xff] }
 0x693   :  { %4786 = vmatmul.mubr.bf16.vlgmr.msra.gmra.mrb[12].mxu1 %v3970_v35  ;;  %5114 = vmatmul.mubr.bf16.vlgmr.msra.gmra.mrb[4].mxu0 %v3986_v57  ;;  %v4126_v35 = vld [vmem:[#allocation5 + $0x3b8] sm:$0xff] }
 0x694   :  { %4795 = vmatpush1.bf16.msra.mxu1 %v4103_v40  ;;  %5123 = vmatpush1.bf16.msra.mxu0 %v4359_v41  ;;  %v4382_v57 = vld [vmem:[#allocation5 + $0xbb8] sm:$0xff]  ;;  %v4125_v40 = vld [vmem:[#allocation5 + $0x3b0] sm:$0xff] }
 0x695   :  { %4796 = vmatprep.subr.bf16.mxu1 %v4106_v42  ;;  %5124 = vmatprep.subr.bf16.mxu0 %v4362_v43  ;;  %v4381_v41 = vld [vmem:[#allocation5 + $0xbb0] sm:$0xff]  ;;  %v4128_v42 = vld [vmem:[#allocation5 + $0x3c8] sm:$0xff] }
 0x696   :  { %4826 = vmatprep.mubr.bf16.mxu1 %v3973_v44  ;;  %5154 = vmatprep.mubr.bf16.mxu0 %v3989_v37  ;;  %v4384_v43 = vld [vmem:[#allocation5 + $0xbc8] sm:$0xff]  ;;  %v4127_v44 = vld [vmem:[#allocation5 + $0x3c0] sm:$0xff] }
 0x697   :  { %v4383_v37 = vld [vmem:[#allocation5 + $0xbc0] sm:$0xff] }
 0x698   :  { %4797 = vmatpush1.bf16.msra.mxu1 %v4105_v60  ;;  %5125 = vmatpush1.bf16.msra.mxu0 %v4361_v39  ;;  %v4130_v60 = vld [vmem:[#allocation5 + $0x3d8] sm:$0xff] }
 0x699   :  { %4798 = vmatprep.subr.bf16.mxu1 %v4108_v46  ;;  %5126 = vmatprep.subr.bf16.mxu0 %v4364_v47  ;;  %v4386_v39 = vld [vmem:[#allocation5 + $0xbd8] sm:$0xff]  ;;  %v4129_v46 = vld [vmem:[#allocation5 + $0x3d0] sm:$0xff] }
 0x69a   :  { %v4385_v47 = vld [vmem:[#allocation5 + $0xbd0] sm:$0xff] }
 0x69c   :  { %4799 = vmatpush1.bf16.msra.mxu1 %v4107_v6  ;;  %5127 = vmatpush1.bf16.msra.mxu0 %v4363_v62  ;;  %v4132_v6 = vld [vmem:[#allocation5 + $0x3e8] sm:$0xff] }
 0x69d   :  { %4800 = vmatprep.subr.bf16.mxu1 %v4110_v49  ;;  %5128 = vmatprep.subr.bf16.mxu0 %v4366_v50  ;;  %v4388_v62 = vld [vmem:[#allocation5 + $0xbe8] sm:$0xff]  ;;  %v9683_v49 = vsub.s32 6, %v8296_v59  ;;  %v4131_v50 = vld [vmem:[#allocation5 + $0x3e0] sm:$0xff]  ;;  %v4133_v59 = vld [vmem:[#allocation5 + $0x3f0] sm:$0xff] }
 0x6a0   :  { %4801 = vmatpush1.bf16.msra.mxu1 %v4109_v53  ;;  %5129 = vmatpush1.bf16.msra.mxu0 %v4365_v61  ;;  %v4387_v53 = vld [vmem:[#allocation5 + $0xbe0] sm:$0xff]  ;;  %v4134_v61 = vld [vmem:[#allocation5 + $0x3f8] sm:$0xff] }
 0x6a1   :  { %4802 = vmatprep.subr.bf16.mxu1 %v4112_v63  ;;  %5130 = vmatprep.subr.bf16.mxu0 %v4368_v25  ;;  %v4390_v63 = vld [vmem:[#allocation5 + $0xbf8] sm:$0xff]  ;;  %v3788_v25 = vrot.slane %v8835_v52, %v9683_v49  ;;  %v4135_v52 = vld [vmem:[#allocation5 + $0x400] sm:$0xff] }
 0x6a4   :  { %4803 = vmatpush1.bf16.msra.mxu1 %v4111_v21  ;;  %5131 = vmatpush1.bf16.msra.mxu0 %v4367_v10  ;;  %v3852_v21 = vrot.slane %v9159_v18, %v9683_v49  ;;  %v4389_v10 = vld [vmem:[#allocation5 + $0xbf0] sm:$0xff]  ;;  %v4391_v18 = vld [vmem:[#allocation5 + $0xc00] sm:$0xff] }
 0x6a5   :  { %4804 = vmatprep.subr.bf16.mxu1 %v4114_v9  ;;  %5132 = vmatprep.subr.bf16.mxu0 %v4370_v4  ;;  %v4136_v9 = vld [vmem:[#allocation5 + $0x408] sm:$0xff] }
 0x6a6   :  { %v4392_v4 = vld [vmem:[#allocation5 + $0xc08] sm:$0xff] }
 0x6a8   :  { %4805 = vmatpush1.bf16.msra.mxu1 %v4113_v51  ;;  %5133 = vmatpush1.bf16.msra.mxu0 %v4369_v38  ;;  %v3800_v51 = vrot.slane %v9084_v55, %v9634_v7  ;;  %v3864_v38 = vrot.slane %v9589_v56, %v9634_v7 }
 0x6a9   :  { %4806 = vmatprep.subr.bf16.mxu1 %v4116_v11  ;;  %5134 = vmatprep.subr.bf16.mxu0 %v4372_v12  ;;  %v3972_v11 = vpack.c.bf16 %v3788_v25, %v3788_v25  ;;  %v3988_v12 = vpack.c.bf16 %v3852_v21, %v3852_v21  ;;  %v4153_v25 = vld [vmem:[#allocation5 + $0x490] sm:$0xff] }
 0x6aa   :  { %v4409_v21 = vld [vmem:[#allocation5 + $0xc90] sm:$0xff] }
 0x6ac   :  { %4807 = vmatpush1.bf16.msra.mxu1 %v4115_v8  ;;  %5135 = vmatpush1.bf16.msra.mxu0 %v4371_v13  ;;  %v4138_v8 = vld [vmem:[#allocation5 + $0x418] sm:$0xff] }
 0x6ad   :  { %4808 = vmatprep.subr.bf16.mxu1 %v4118_v16  ;;  %5136 = vmatprep.subr.bf16.mxu0 %v4374_v45  ;;  %v4394_v13 = vld [vmem:[#allocation5 + $0xc18] sm:$0xff]  ;;  %v3975_v16 = vpack.c.bf16 %v3800_v51, %v3800_v51  ;;  %v3991_v45 = vpack.c.bf16 %v3864_v38, %v3864_v38 }
 0x6ae   :  { %v4158_v51 = vld [vmem:[#allocation5 + $0x4b8] sm:$0xff] }
 0x6af   :  { %v4414_v38 = vld [vmem:[#allocation5 + $0xcb8] sm:$0xff] }
 0x6b0   :  { %4809 = vmatpush1.bf16.msra.mxu1 %v4117_v17  ;;  %5137 = vmatpush1.bf16.msra.mxu0 %v4373_v19  ;;  %v4137_v17 = vld [vmem:[#allocation5 + $0x410] sm:$0xff] }
 0x6b1   :  { %4810 = vmatprep.subr.bf16.mxu1 %v4120_v15  ;;  %5138 = vmatprep.subr.bf16.mxu0 %v4376_v27  ;;  %v4393_v19 = vld [vmem:[#allocation5 + $0xc10] sm:$0xff]  ;;  %v4140_v15 = vld [vmem:[#allocation5 + $0x428] sm:$0xff] }
 0x6b2   :  { %v4396_v27 = vld [vmem:[#allocation5 + $0xc28] sm:$0xff] }
 0x6b4   :  { %4811 = vmatpush1.bf16.msra.mxu1 %v4119_v28  ;;  %5139 = vmatpush1.bf16.msra.mxu0 %v4375_v24  ;;  %v4139_v28 = vld [vmem:[#allocation5 + $0x420] sm:$0xff] }
 0x6b5   :  { %4812 = vmatprep.subr.bf16.mxu1 %v4122_v30  ;;  %5140 = vmatprep.subr.bf16.mxu0 %v4378_v31  ;;  %v4395_v24 = vld [vmem:[#allocation5 + $0xc20] sm:$0xff]  ;;  %v4142_v30 = vld [vmem:[#allocation5 + $0x438] sm:$0xff] }
 0x6b6   :  { %v4398_v31 = vld [vmem:[#allocation5 + $0xc38] sm:$0xff] }
 0x6b8   :  { %4813 = vmatpush1.bf16.msra.mxu1 %v4121_v32  ;;  %5141 = vmatpush1.bf16.msra.mxu0 %v4377_v33  ;;  %v4141_v32 = vld [vmem:[#allocation5 + $0x430] sm:$0xff] }
 0x6b9   :  { %4814 = vmatprep.subr.bf16.mxu1 %v4124_v34  ;;  %5142 = vmatprep.subr.bf16.mxu0 %v4380_v36  ;;  %v4397_v33 = vld [vmem:[#allocation5 + $0xc30] sm:$0xff]  ;;  %v4144_v34 = vld [vmem:[#allocation5 + $0x448] sm:$0xff] }
 0x6ba   :  { %v4400_v36 = vld [vmem:[#allocation5 + $0xc48] sm:$0xff] }
 0x6bc   :  { %4815 = vmatpush1.bf16.msra.mxu1 %v4123_v58  ;;  %5143 = vmatpush1.bf16.msra.mxu0 %v4379_v26  ;;  %v4143_v58 = vld [vmem:[#allocation5 + $0x440] sm:$0xff] }
 0x6bd   :  { %4816 = vmatprep.subr.bf16.mxu1 %v4126_v35  ;;  %5144 = vmatprep.subr.bf16.mxu0 %v4382_v57  ;;  %v4399_v26 = vld [vmem:[#allocation5 + $0xc40] sm:$0xff]  ;;  %v4146_v35 = vld [vmem:[#allocation5 + $0x458] sm:$0xff] }
 0x6be   :  { %v4402_v57 = vld [vmem:[#allocation5 + $0xc58] sm:$0xff] }
 0x6c0   :  { %4817 = vmatpush1.bf16.msra.mxu1 %v4125_v40  ;;  %5145 = vmatpush1.bf16.msra.mxu0 %v4381_v41  ;;  %v4145_v40 = vld [vmem:[#allocation5 + $0x450] sm:$0xff] }
 0x6c1   :  { %4818 = vmatprep.subr.bf16.mxu1 %v4128_v42  ;;  %5146 = vmatprep.subr.bf16.mxu0 %v4384_v43  ;;  %v4401_v41 = vld [vmem:[#allocation5 + $0xc50] sm:$0xff]  ;;  %v4148_v42 = vld [vmem:[#allocation5 + $0x468] sm:$0xff] }
 0x6c2   :  { %v4404_v43 = vld [vmem:[#allocation5 + $0xc68] sm:$0xff] }
 0x6c4   :  { %4819 = vmatpush1.bf16.msra.mxu1 %v4127_v44  ;;  %5147 = vmatpush1.bf16.msra.mxu0 %v4383_v37  ;;  %v4147_v44 = vld [vmem:[#allocation5 + $0x460] sm:$0xff] }
 0x6c5   :  { %4820 = vmatprep.subr.bf16.mxu1 %v4130_v60  ;;  %5148 = vmatprep.subr.bf16.mxu0 %v4386_v39  ;;  %v4403_v37 = vld [vmem:[#allocation5 + $0xc60] sm:$0xff]  ;;  %v4150_v60 = vld [vmem:[#allocation5 + $0x478] sm:$0xff] }
 0x6c6   :  { %v4406_v39 = vld [vmem:[#allocation5 + $0xc78] sm:$0xff] }
 0x6c8   :  { %4821 = vmatpush1.bf16.msra.mxu1 %v4129_v46  ;;  %5149 = vmatpush1.bf16.msra.mxu0 %v4385_v47  ;;  %v4149_v46 = vld [vmem:[#allocation5 + $0x470] sm:$0xff] }
 0x6c9   :  { %4822 = vmatprep.subr.bf16.mxu1 %v4132_v6  ;;  %5150 = vmatprep.subr.bf16.mxu0 %v4388_v62  ;;  %v4405_v47 = vld [vmem:[#allocation5 + $0xc70] sm:$0xff]  ;;  %v4152_v6 = vld [vmem:[#allocation5 + $0x488] sm:$0xff] }
 0x6ca   :  { %v4408_v62 = vld [vmem:[#allocation5 + $0xc88] sm:$0xff] }
 0x6cc   :  { %4823 = vmatpush1.bf16.msra.mxu1 %v4131_v50  ;;  %5151 = vmatpush1.bf16.msra.mxu0 %v4387_v53  ;;  %v4151_v50 = vld [vmem:[#allocation5 + $0x480] sm:$0xff] }
 0x6cd   :  { %4824 = vmatprep.subr.bf16.mxu1 %v4134_v61  ;;  %5152 = vmatprep.subr.bf16.mxu0 %v4390_v63  ;;  %v4407_v53 = vld [vmem:[#allocation5 + $0xc80] sm:$0xff]  ;;  %v4154_v61 = vld [vmem:[#allocation5 + $0x498] sm:$0xff] }
 0x6ce   :  { %v4410_v63 = vld [vmem:[#allocation5 + $0xc98] sm:$0xff] }
 0x6d0   :  { %4825 = vmatpush1.bf16.msra.mxu1 %v4133_v59  ;;  %5153 = vmatpush1.bf16.msra.mxu0 %v4389_v10  ;;  %v4156_v59 = vld [vmem:[#allocation5 + $0x4a8] sm:$0xff] }
 0x6d1   :  { %4835 = vmatprep.subr.bf16.mxu1 %v4136_v9  ;;  %5163 = vmatprep.subr.bf16.mxu0 %v4392_v4  ;;  %v4412_v10 = vld [vmem:[#allocation5 + $0xca8] sm:$0xff]  ;;  %v4155_v9 = vld [vmem:[#allocation5 + $0x4a0] sm:$0xff] }
 0x6d2   :  { %v4411_v4 = vld [vmem:[#allocation5 + $0xca0] sm:$0xff] }
 0x6d3   :  { %4827 = vmatmul.mubr.bf16.vlgmr.msra.gmra.mrb[12].mxu1 %v3972_v11  ;;  %5155 = vmatmul.mubr.bf16.vlgmr.msra.gmra.mrb[4].mxu0 %v3988_v12  ;;  %v4157_v11 = vld [vmem:[#allocation5 + $0x4b0] sm:$0xff] }
 0x6d4   :  { %4836 = vmatpush1.bf16.msra.mxu1 %v4135_v52  ;;  %5164 = vmatpush1.bf16.msra.mxu0 %v4391_v18  ;;  %v4413_v12 = vld [vmem:[#allocation5 + $0xcb0] sm:$0xff]  ;;  %v4160_v52 = vld [vmem:[#allocation5 + $0x4c8] sm:$0xff] }
 0x6d5   :  { %4837 = vmatprep.subr.bf16.mxu1 %v4138_v8  ;;  %5165 = vmatprep.subr.bf16.mxu0 %v4394_v13  ;;  %v4416_v18 = vld [vmem:[#allocation5 + $0xcc8] sm:$0xff]  ;;  %v4159_v8 = vld [vmem:[#allocation5 + $0x4c0] sm:$0xff] }
 0x6d6   :  { %4867 = vmatprep.mubr.bf16.mxu1 %v3975_v16  ;;  %5195 = vmatprep.mubr.bf16.mxu0 %v3991_v45  ;;  %v4415_v13 = vld [vmem:[#allocation5 + $0xcc0] sm:$0xff]  ;;  %v4162_v16 = vld [vmem:[#allocation5 + $0x4d8] sm:$0xff] }
 0x6d7   :  { %v4418_v45 = vld [vmem:[#allocation5 + $0xcd8] sm:$0xff] }
 0x6d8   :  { %4838 = vmatpush1.bf16.msra.mxu1 %v4137_v17  ;;  %5166 = vmatpush1.bf16.msra.mxu0 %v4393_v19  ;;  %v4161_v17 = vld [vmem:[#allocation5 + $0x4d0] sm:$0xff] }
 0x6d9   :  { %4839 = vmatprep.subr.bf16.mxu1 %v4140_v15  ;;  %5167 = vmatprep.subr.bf16.mxu0 %v4396_v27  ;;  %v4417_v19 = vld [vmem:[#allocation5 + $0xcd0] sm:$0xff]  ;;  %v4164_v15 = vld [vmem:[#allocation5 + $0x4e8] sm:$0xff] }
 0x6da   :  { %v4420_v27 = vld [vmem:[#allocation5 + $0xce8] sm:$0xff] }
 0x6dc   :  { %4840 = vmatpush1.bf16.msra.mxu1 %v4139_v28  ;;  %5168 = vmatpush1.bf16.msra.mxu0 %v4395_v24  ;;  %v4163_v28 = vld [vmem:[#allocation5 + $0x4e0] sm:$0xff] }
 0x6dd   :  { %4841 = vmatprep.subr.bf16.mxu1 %v4142_v30  ;;  %5169 = vmatprep.subr.bf16.mxu0 %v4398_v31  ;;  %v4419_v24 = vld [vmem:[#allocation5 + $0xce0] sm:$0xff]  ;;  %v4166_v30 = vld [vmem:[#allocation5 + $0x4f8] sm:$0xff] }
 0x6de   :  { %v4422_v31 = vld [vmem:[#allocation5 + $0xcf8] sm:$0xff] }
 0x6e0   :  { %4842 = vmatpush1.bf16.msra.mxu1 %v4141_v32  ;;  %5170 = vmatpush1.bf16.msra.mxu0 %v4397_v33  ;;  %v3796_v32 = vrot.slane %v9084_v55, %v9641_v14  ;;  %v3860_v33 = vrot.slane %v9589_v56, %v9641_v14 }
 0x6e1   :  { %4843 = vmatprep.subr.bf16.mxu1 %v4144_v34  ;;  %5171 = vmatprep.subr.bf16.mxu0 %v4400_v36  ;;  %v4165_v34 = vld [vmem:[#allocation5 + $0x4f0] sm:$0xff] }
 0x6e2   :  { %v4421_v36 = vld [vmem:[#allocation5 + $0xcf0] sm:$0xff] }
 0x6e4   :  { %4844 = vmatpush1.bf16.msra.mxu1 %v4143_v58  ;;  %5172 = vmatpush1.bf16.msra.mxu0 %v4399_v26  ;;  %v4168_v58 = vld [vmem:[#allocation5 + $0x508] sm:$0xff] }
 0x6e5   :  { %4845 = vmatprep.subr.bf16.mxu1 %v4146_v35  ;;  %5173 = vmatprep.subr.bf16.mxu0 %v4402_v57  ;;  %v4424_v26 = vld [vmem:[#allocation5 + $0xd08] sm:$0xff]  ;;  %v3808_v35 = vrot.slane %v9084_v55, %v9644_v29  ;;  %v3872_v57 = vrot.slane %v9589_v56, %v9644_v29 }
 0x6e8   :  { %4846 = vmatpush1.bf16.msra.mxu1 %v4145_v40  ;;  %5174 = vmatpush1.bf16.msra.mxu0 %v4401_v41  ;;  %v3974_v40 = vpack.c.bf16 %v3796_v32, %v3796_v32  ;;  %v3990_v41 = vpack.c.bf16 %v3860_v33, %v3860_v33  ;;  %v4185_v32 = vld [vmem:[#allocation5 + $0x590] sm:$0xff] }
 0x6e9   :  { %4847 = vmatprep.subr.bf16.mxu1 %v4148_v42  ;;  %5175 = vmatprep.subr.bf16.mxu0 %v4404_v43  ;;  %v4167_v42 = vld [vmem:[#allocation5 + $0x500] sm:$0xff]  ;;  %v4441_v33 = vld [vmem:[#allocation5 + $0xd90] sm:$0xff] }
 0x6ea   :  { %v4423_v43 = vld [vmem:[#allocation5 + $0xd00] sm:$0xff] }
 0x6ec   :  { %4848 = vmatpush1.bf16.msra.mxu1 %v4147_v44  ;;  %5176 = vmatpush1.bf16.msra.mxu0 %v4403_v37  ;;  %v4170_v44 = vld [vmem:[#allocation5 + $0x518] sm:$0xff] }
 0x6ed   :  { %4849 = vmatprep.subr.bf16.mxu1 %v4150_v60  ;;  %5177 = vmatprep.subr.bf16.mxu0 %v4406_v39  ;;  %v4426_v37 = vld [vmem:[#allocation5 + $0xd18] sm:$0xff]  ;;  %v3977_v60 = vpack.c.bf16 %v3808_v35, %v3808_v35  ;;  %v3993_v39 = vpack.c.bf16 %v3872_v57, %v3872_v57 }
 0x6ee   :  { %v4190_v35 = vld [vmem:[#allocation5 + $0x5b8] sm:$0xff] }
 0x6ef   :  { %v4446_v57 = vld [vmem:[#allocation5 + $0xdb8] sm:$0xff] }
 0x6f0   :  { %4850 = vmatpush1.bf16.msra.mxu1 %v4149_v46  ;;  %5178 = vmatpush1.bf16.msra.mxu0 %v4405_v47  ;;  %v4169_v46 = vld [vmem:[#allocation5 + $0x510] sm:$0xff] }
 0x6f1   :  { %4851 = vmatprep.subr.bf16.mxu1 %v4152_v6  ;;  %5179 = vmatprep.subr.bf16.mxu0 %v4408_v62  ;;  %v4425_v47 = vld [vmem:[#allocation5 + $0xd10] sm:$0xff]  ;;  %v4172_v6 = vld [vmem:[#allocation5 + $0x528] sm:$0xff] }
 0x6f2   :  { %v4428_v62 = vld [vmem:[#allocation5 + $0xd28] sm:$0xff] }
 0x6f4   :  { %4852 = vmatpush1.bf16.msra.mxu1 %v4151_v50  ;;  %5180 = vmatpush1.bf16.msra.mxu0 %v4407_v53  ;;  %v4171_v50 = vld [vmem:[#allocation5 + $0x520] sm:$0xff] }
 0x6f5   :  { %4853 = vmatprep.subr.bf16.mxu1 %v4154_v61  ;;  %5181 = vmatprep.subr.bf16.mxu0 %v4410_v63  ;;  %v4427_v53 = vld [vmem:[#allocation5 + $0xd20] sm:$0xff]  ;;  %v4174_v61 = vld [vmem:[#allocation5 + $0x538] sm:$0xff] }
 0x6f6   :  { %v4430_v63 = vld [vmem:[#allocation5 + $0xd38] sm:$0xff] }
 0x6f8   :  { %4854 = vmatpush1.bf16.msra.mxu1 %v4153_v25  ;;  %5182 = vmatpush1.bf16.msra.mxu0 %v4409_v21  ;;  %v4173_v25 = vld [vmem:[#allocation5 + $0x530] sm:$0xff] }
 0x6f9   :  { %4855 = vmatprep.subr.bf16.mxu1 %v4156_v59  ;;  %5183 = vmatprep.subr.bf16.mxu0 %v4412_v10  ;;  %v4429_v21 = vld [vmem:[#allocation5 + $0xd30] sm:$0xff]  ;;  %v4176_v59 = vld [vmem:[#allocation5 + $0x548] sm:$0xff] }
 0x6fa   :  { %v4432_v10 = vld [vmem:[#allocation5 + $0xd48] sm:$0xff] }
 0x6fc   :  { %4856 = vmatpush1.bf16.msra.mxu1 %v4155_v9  ;;  %5184 = vmatpush1.bf16.msra.mxu0 %v4411_v4  ;;  %v4175_v9 = vld [vmem:[#allocation5 + $0x540] sm:$0xff] }
 0x6fd   :  { %4857 = vmatprep.subr.bf16.mxu1 %v4158_v51  ;;  %5185 = vmatprep.subr.bf16.mxu0 %v4414_v38  ;;  %v4431_v4 = vld [vmem:[#allocation5 + $0xd40] sm:$0xff]  ;;  %v4178_v51 = vld [vmem:[#allocation5 + $0x558] sm:$0xff] }
 0x6fe   :  { %v4434_v38 = vld [vmem:[#allocation5 + $0xd58] sm:$0xff] }
 0x700   :  { %4858 = vmatpush1.bf16.msra.mxu1 %v4157_v11  ;;  %5186 = vmatpush1.bf16.msra.mxu0 %v4413_v12  ;;  %v4177_v11 = vld [vmem:[#allocation5 + $0x550] sm:$0xff] }
 0x701   :  { %4859 = vmatprep.subr.bf16.mxu1 %v4160_v52  ;;  %5187 = vmatprep.subr.bf16.mxu0 %v4416_v18  ;;  %v4433_v12 = vld [vmem:[#allocation5 + $0xd50] sm:$0xff]  ;;  %v4180_v52 = vld [vmem:[#allocation5 + $0x568] sm:$0xff] }
 0x702   :  { %v4436_v18 = vld [vmem:[#allocation5 + $0xd68] sm:$0xff] }
 0x704   :  { %4860 = vmatpush1.bf16.msra.mxu1 %v4159_v8  ;;  %5188 = vmatpush1.bf16.msra.mxu0 %v4415_v13  ;;  %v4179_v8 = vld [vmem:[#allocation5 + $0x560] sm:$0xff] }
 0x705   :  { %4861 = vmatprep.subr.bf16.mxu1 %v4162_v16  ;;  %5189 = vmatprep.subr.bf16.mxu0 %v4418_v45  ;;  %v4435_v13 = vld [vmem:[#allocation5 + $0xd60] sm:$0xff]  ;;  %v4182_v16 = vld [vmem:[#allocation5 + $0x578] sm:$0xff] }
 0x706   :  { %v4438_v45 = vld [vmem:[#allocation5 + $0xd78] sm:$0xff] }
 0x708   :  { %4862 = vmatpush1.bf16.msra.mxu1 %v4161_v17  ;;  %5190 = vmatpush1.bf16.msra.mxu0 %v4417_v19  ;;  %v4181_v17 = vld [vmem:[#allocation5 + $0x570] sm:$0xff] }
 0x709   :  { %4863 = vmatprep.subr.bf16.mxu1 %v4164_v15  ;;  %5191 = vmatprep.subr.bf16.mxu0 %v4420_v27  ;;  %v4437_v19 = vld [vmem:[#allocation5 + $0xd70] sm:$0xff]  ;;  %v4184_v15 = vld [vmem:[#allocation5 + $0x588] sm:$0xff] }
 0x70a   :  { %v4440_v27 = vld [vmem:[#allocation5 + $0xd88] sm:$0xff] }
 0x70c   :  { %4864 = vmatpush1.bf16.msra.mxu1 %v4163_v28  ;;  %5192 = vmatpush1.bf16.msra.mxu0 %v4419_v24  ;;  %v4183_v28 = vld [vmem:[#allocation5 + $0x580] sm:$0xff] }
 0x70d   :  { %4865 = vmatprep.subr.bf16.mxu1 %v4166_v30  ;;  %5193 = vmatprep.subr.bf16.mxu0 %v4422_v31  ;;  %v4439_v24 = vld [vmem:[#allocation5 + $0xd80] sm:$0xff]  ;;  %v4186_v30 = vld [vmem:[#allocation5 + $0x598] sm:$0xff] }
 0x70e   :  { %v4442_v31 = vld [vmem:[#allocation5 + $0xd98] sm:$0xff] }
 0x710   :  { %4866 = vmatpush1.bf16.msra.mxu1 %v4165_v34  ;;  %5194 = vmatpush1.bf16.msra.mxu0 %v4421_v36  ;;  %v4188_v34 = vld [vmem:[#allocation5 + $0x5a8] sm:$0xff] }
 0x711   :  { %4876 = vmatprep.subr.bf16.mxu1 %v4168_v58  ;;  %5204 = vmatprep.subr.bf16.mxu0 %v4424_v26  ;;  %v4444_v36 = vld [vmem:[#allocation5 + $0xda8] sm:$0xff]  ;;  %v4187_v58 = vld [vmem:[#allocation5 + $0x5a0] sm:$0xff] }
 0x712   :  { %v4443_v26 = vld [vmem:[#allocation5 + $0xda0] sm:$0xff] }
 0x713   :  { %4868 = vmatmul.mubr.bf16.vlgmr.msra.gmra.mrb[12].mxu1 %v3974_v40  ;;  %5196 = vmatmul.mubr.bf16.vlgmr.msra.gmra.mrb[4].mxu0 %v3990_v41  ;;  %v4189_v40 = vld [vmem:[#allocation5 + $0x5b0] sm:$0xff] }
 0x714   :  { %4877 = vmatpush1.bf16.msra.mxu1 %v4167_v42  ;;  %5205 = vmatpush1.bf16.msra.mxu0 %v4423_v43  ;;  %v4445_v41 = vld [vmem:[#allocation5 + $0xdb0] sm:$0xff]  ;;  %v4192_v42 = vld [vmem:[#allocation5 + $0x5c8] sm:$0xff] }
 0x715   :  { %4878 = vmatprep.subr.bf16.mxu1 %v4170_v44  ;;  %5206 = vmatprep.subr.bf16.mxu0 %v4426_v37  ;;  %v4448_v43 = vld [vmem:[#allocation5 + $0xdc8] sm:$0xff]  ;;  %v4191_v44 = vld [vmem:[#allocation5 + $0x5c0] sm:$0xff] }
 0x716   :  { %4908 = vmatprep.mubr.bf16.mxu1 %v3977_v60  ;;  %5236 = vmatprep.mubr.bf16.mxu0 %v3993_v39  ;;  %v4447_v37 = vld [vmem:[#allocation5 + $0xdc0] sm:$0xff]  ;;  %v4194_v60 = vld [vmem:[#allocation5 + $0x5d8] sm:$0xff] }
 0x717   :  { %v4450_v39 = vld [vmem:[#allocation5 + $0xdd8] sm:$0xff] }
 0x718   :  { %4879 = vmatpush1.bf16.msra.mxu1 %v4169_v46  ;;  %5207 = vmatpush1.bf16.msra.mxu0 %v4425_v47  ;;  %v4193_v46 = vld [vmem:[#allocation5 + $0x5d0] sm:$0xff] }
 0x719   :  { %4880 = vmatprep.subr.bf16.mxu1 %v4172_v6  ;;  %5208 = vmatprep.subr.bf16.mxu0 %v4428_v62  ;;  %v4449_v47 = vld [vmem:[#allocation5 + $0xdd0] sm:$0xff]  ;;  %v4196_v6 = vld [vmem:[#allocation5 + $0x5e8] sm:$0xff] }
 0x71a   :  { %v4452_v62 = vld [vmem:[#allocation5 + $0xde8] sm:$0xff] }
 0x71c   :  { %4881 = vmatpush1.bf16.msra.mxu1 %v4171_v50  ;;  %5209 = vmatpush1.bf16.msra.mxu0 %v4427_v53  ;;  %v4195_v50 = vld [vmem:[#allocation5 + $0x5e0] sm:$0xff] }
 0x71d   :  { %4882 = vmatprep.subr.bf16.mxu1 %v4174_v61  ;;  %5210 = vmatprep.subr.bf16.mxu0 %v4430_v63  ;;  %v4451_v53 = vld [vmem:[#allocation5 + $0xde0] sm:$0xff]  ;;  %v4198_v61 = vld [vmem:[#allocation5 + $0x5f8] sm:$0xff] }
 0x71e   :  { %v4454_v63 = vld [vmem:[#allocation5 + $0xdf8] sm:$0xff] }
 0x720   :  { %4883 = vmatpush1.bf16.msra.mxu1 %v4173_v25  ;;  %5211 = vmatpush1.bf16.msra.mxu0 %v4429_v21  ;;  %v3804_v25 = vrot.slane %v9084_v55, %v9655_v3  ;;  %v3868_v21 = vrot.slane %v9589_v56, %v9655_v3 }
 0x721   :  { %4884 = vmatprep.subr.bf16.mxu1 %v4176_v59  ;;  %5212 = vmatprep.subr.bf16.mxu0 %v4432_v10  ;;  %v4197_v59 = vld [vmem:[#allocation5 + $0x5f0] sm:$0xff] }
 0x722   :  { %v4453_v10 = vld [vmem:[#allocation5 + $0xdf0] sm:$0xff] }
 0x724   :  { %4885 = vmatpush1.bf16.msra.mxu1 %v4175_v9  ;;  %5213 = vmatpush1.bf16.msra.mxu0 %v4431_v4  ;;  %v4200_v9 = vld [vmem:[#allocation5 + $0x608] sm:$0xff] }
 0x725   :  { %4886 = vmatprep.subr.bf16.mxu1 %v4178_v51  ;;  %5214 = vmatprep.subr.bf16.mxu0 %v4434_v38  ;;  %v4456_v4 = vld [vmem:[#allocation5 + $0xe08] sm:$0xff]  ;;  %v3816_v51 = vrot.slane %v9084_v55, %v9658_v48  ;;  %v3880_v38 = vrot.slane %v9589_v56, %v9658_v48 }
 0x728   :  { %4887 = vmatpush1.bf16.msra.mxu1 %v4177_v11  ;;  %5215 = vmatpush1.bf16.msra.mxu0 %v4433_v12  ;;  %v3976_v11 = vpack.c.bf16 %v3804_v25, %v3804_v25  ;;  %v3992_v12 = vpack.c.bf16 %v3868_v21, %v3868_v21  ;;  %v4217_v25 = vld [vmem:[#allocation5 + $0x690] sm:$0xff] }
 0x729   :  { %4888 = vmatprep.subr.bf16.mxu1 %v4180_v52  ;;  %5216 = vmatprep.subr.bf16.mxu0 %v4436_v18  ;;  %v4199_v52 = vld [vmem:[#allocation5 + $0x600] sm:$0xff]  ;;  %v4473_v21 = vld [vmem:[#allocation5 + $0xe90] sm:$0xff] }
 0x72a   :  { %v4455_v18 = vld [vmem:[#allocation5 + $0xe00] sm:$0xff] }
 0x72c   :  { %4889 = vmatpush1.bf16.msra.mxu1 %v4179_v8  ;;  %5217 = vmatpush1.bf16.msra.mxu0 %v4435_v13  ;;  %v4202_v8 = vld [vmem:[#allocation5 + $0x618] sm:$0xff] }
 0x72d   :  { %4890 = vmatprep.subr.bf16.mxu1 %v4182_v16  ;;  %5218 = vmatprep.subr.bf16.mxu0 %v4438_v45  ;;  %v4458_v13 = vld [vmem:[#allocation5 + $0xe18] sm:$0xff]  ;;  %v3979_v16 = vpack.c.bf16 %v3816_v51, %v3816_v51  ;;  %v3995_v45 = vpack.c.bf16 %v3880_v38, %v3880_v38 }
 0x72e   :  { %v4222_v51 = vld [vmem:[#allocation5 + $0x6b8] sm:$0xff] }
 0x72f   :  { %v4478_v38 = vld [vmem:[#allocation5 + $0xeb8] sm:$0xff] }
 0x730   :  { %4891 = vmatpush1.bf16.msra.mxu1 %v4181_v17  ;;  %5219 = vmatpush1.bf16.msra.mxu0 %v4437_v19  ;;  %v4201_v17 = vld [vmem:[#allocation5 + $0x610] sm:$0xff] }
 0x731   :  { %4892 = vmatprep.subr.bf16.mxu1 %v4184_v15  ;;  %5220 = vmatprep.subr.bf16.mxu0 %v4440_v27  ;;  %v4457_v19 = vld [vmem:[#allocation5 + $0xe10] sm:$0xff]  ;;  %v4204_v15 = vld [vmem:[#allocation5 + $0x628] sm:$0xff] }
 0x732   :  { %v4460_v27 = vld [vmem:[#allocation5 + $0xe28] sm:$0xff] }
 0x734   :  { %4893 = vmatpush1.bf16.msra.mxu1 %v4183_v28  ;;  %5221 = vmatpush1.bf16.msra.mxu0 %v4439_v24  ;;  %v4203_v28 = vld [vmem:[#allocation5 + $0x620] sm:$0xff] }
 0x735   :  { %4894 = vmatprep.subr.bf16.mxu1 %v4186_v30  ;;  %5222 = vmatprep.subr.bf16.mxu0 %v4442_v31  ;;  %v4459_v24 = vld [vmem:[#allocation5 + $0xe20] sm:$0xff]  ;;  %v4206_v30 = vld [vmem:[#allocation5 + $0x638] sm:$0xff] }
 0x736   :  { %v4462_v31 = vld [vmem:[#allocation5 + $0xe38] sm:$0xff] }
 0x738   :  { %4895 = vmatpush1.bf16.msra.mxu1 %v4185_v32  ;;  %5223 = vmatpush1.bf16.msra.mxu0 %v4441_v33  ;;  %v4205_v32 = vld [vmem:[#allocation5 + $0x630] sm:$0xff] }
 0x739   :  { %4896 = vmatprep.subr.bf16.mxu1 %v4188_v34  ;;  %5224 = vmatprep.subr.bf16.mxu0 %v4444_v36  ;;  %v4461_v33 = vld [vmem:[#allocation5 + $0xe30] sm:$0xff]  ;;  %v4208_v34 = vld [vmem:[#allocation5 + $0x648] sm:$0xff] }
 0x73a   :  { %v4464_v36 = vld [vmem:[#allocation5 + $0xe48] sm:$0xff] }
 0x73c   :  { %4897 = vmatpush1.bf16.msra.mxu1 %v4187_v58  ;;  %5225 = vmatpush1.bf16.msra.mxu0 %v4443_v26  ;;  %v4207_v58 = vld [vmem:[#allocation5 + $0x640] sm:$0xff] }
 0x73d   :  { %4898 = vmatprep.subr.bf16.mxu1 %v4190_v35  ;;  %5226 = vmatprep.subr.bf16.mxu0 %v4446_v57  ;;  %v4463_v26 = vld [vmem:[#allocation5 + $0xe40] sm:$0xff]  ;;  %v4210_v35 = vld [vmem:[#allocation5 + $0x658] sm:$0xff] }
 0x73e   :  { %v4466_v57 = vld [vmem:[#allocation5 + $0xe58] sm:$0xff] }
 0x740   :  { %4899 = vmatpush1.bf16.msra.mxu1 %v4189_v40  ;;  %5227 = vmatpush1.bf16.msra.mxu0 %v4445_v41  ;;  %v4209_v40 = vld [vmem:[#allocation5 + $0x650] sm:$0xff] }
 0x741   :  { %4900 = vmatprep.subr.bf16.mxu1 %v4192_v42  ;;  %5228 = vmatprep.subr.bf16.mxu0 %v4448_v43  ;;  %v4465_v41 = vld [vmem:[#allocation5 + $0xe50] sm:$0xff]  ;;  %v4212_v42 = vld [vmem:[#allocation5 + $0x668] sm:$0xff] }
 0x742   :  { %v4468_v43 = vld [vmem:[#allocation5 + $0xe68] sm:$0xff] }
 0x744   :  { %4901 = vmatpush1.bf16.msra.mxu1 %v4191_v44  ;;  %5229 = vmatpush1.bf16.msra.mxu0 %v4447_v37  ;;  %v4211_v44 = vld [vmem:[#allocation5 + $0x660] sm:$0xff] }
 0x745   :  { %4902 = vmatprep.subr.bf16.mxu1 %v4194_v60  ;;  %5230 = vmatprep.subr.bf16.mxu0 %v4450_v39  ;;  %v4467_v37 = vld [vmem:[#allocation5 + $0xe60] sm:$0xff]  ;;  %v4214_v60 = vld [vmem:[#allocation5 + $0x678] sm:$0xff] }
 0x746   :  { %v4470_v39 = vld [vmem:[#allocation5 + $0xe78] sm:$0xff] }
 0x748   :  { %4903 = vmatpush1.bf16.msra.mxu1 %v4193_v46  ;;  %5231 = vmatpush1.bf16.msra.mxu0 %v4449_v47  ;;  %v4213_v46 = vld [vmem:[#allocation5 + $0x670] sm:$0xff] }
 0x749   :  { %4904 = vmatprep.subr.bf16.mxu1 %v4196_v6  ;;  %5232 = vmatprep.subr.bf16.mxu0 %v4452_v62  ;;  %v4469_v47 = vld [vmem:[#allocation5 + $0xe70] sm:$0xff]  ;;  %v4216_v6 = vld [vmem:[#allocation5 + $0x688] sm:$0xff] }
 0x74a   :  { %v4472_v62 = vld [vmem:[#allocation5 + $0xe88] sm:$0xff] }
 0x74c   :  { %4905 = vmatpush1.bf16.msra.mxu1 %v4195_v50  ;;  %5233 = vmatpush1.bf16.msra.mxu0 %v4451_v53  ;;  %v4215_v50 = vld [vmem:[#allocation5 + $0x680] sm:$0xff] }
 0x74d   :  { %4906 = vmatprep.subr.bf16.mxu1 %v4198_v61  ;;  %5234 = vmatprep.subr.bf16.mxu0 %v4454_v63  ;;  %v4471_v53 = vld [vmem:[#allocation5 + $0xe80] sm:$0xff]  ;;  %v4218_v61 = vld [vmem:[#allocation5 + $0x698] sm:$0xff] }
 0x74e   :  { %v4474_v63 = vld [vmem:[#allocation5 + $0xe98] sm:$0xff] }
 0x750   :  { %4907 = vmatpush1.bf16.msra.mxu1 %v4197_v59  ;;  %5235 = vmatpush1.bf16.msra.mxu0 %v4453_v10  ;;  %v4220_v59 = vld [vmem:[#allocation5 + $0x6a8] sm:$0xff] }
 0x751   :  { %4917 = vmatprep.subr.bf16.mxu1 %v4200_v9  ;;  %5245 = vmatprep.subr.bf16.mxu0 %v4456_v4  ;;  %v4476_v10 = vld [vmem:[#allocation5 + $0xea8] sm:$0xff]  ;;  %v4219_v9 = vld [vmem:[#allocation5 + $0x6a0] sm:$0xff] }
 0x752   :  { %v4475_v4 = vld [vmem:[#allocation5 + $0xea0] sm:$0xff] }
 0x753   :  { %4909 = vmatmul.mubr.bf16.vlgmr.msra.gmra.mrb[12].mxu1 %v3976_v11  ;;  %5237 = vmatmul.mubr.bf16.vlgmr.msra.gmra.mrb[4].mxu0 %v3992_v12  ;;  %v4221_v11 = vld [vmem:[#allocation5 + $0x6b0] sm:$0xff] }
 0x754   :  { %4918 = vmatpush1.bf16.msra.mxu1 %v4199_v52  ;;  %5246 = vmatpush1.bf16.msra.mxu0 %v4455_v18  ;;  %v4477_v12 = vld [vmem:[#allocation5 + $0xeb0] sm:$0xff]  ;;  %v4224_v52 = vld [vmem:[#allocation5 + $0x6c8] sm:$0xff] }
 0x755   :  { %4919 = vmatprep.subr.bf16.mxu1 %v4202_v8  ;;  %5247 = vmatprep.subr.bf16.mxu0 %v4458_v13  ;;  %v4480_v18 = vld [vmem:[#allocation5 + $0xec8] sm:$0xff]  ;;  %v4223_v8 = vld [vmem:[#allocation5 + $0x6c0] sm:$0xff] }
 0x756   :  { %4949 = vmatprep.mubr.bf16.mxu1 %v3979_v16  ;;  %5277 = vmatprep.mubr.bf16.mxu0 %v3995_v45  ;;  %v4479_v13 = vld [vmem:[#allocation5 + $0xec0] sm:$0xff]  ;;  %v4226_v16 = vld [vmem:[#allocation5 + $0x6d8] sm:$0xff] }
 0x757   :  { %v4482_v45 = vld [vmem:[#allocation5 + $0xed8] sm:$0xff] }
 0x758   :  { %4920 = vmatpush1.bf16.msra.mxu1 %v4201_v17  ;;  %5248 = vmatpush1.bf16.msra.mxu0 %v4457_v19  ;;  %v4225_v17 = vld [vmem:[#allocation5 + $0x6d0] sm:$0xff] }
 0x759   :  { %4921 = vmatprep.subr.bf16.mxu1 %v4204_v15  ;;  %5249 = vmatprep.subr.bf16.mxu0 %v4460_v27  ;;  %v4481_v19 = vld [vmem:[#allocation5 + $0xed0] sm:$0xff]  ;;  %v4228_v15 = vld [vmem:[#allocation5 + $0x6e8] sm:$0xff] }
 0x75a   :  { %v4484_v27 = vld [vmem:[#allocation5 + $0xee8] sm:$0xff] }
 0x75c   :  { %4922 = vmatpush1.bf16.msra.mxu1 %v4203_v28  ;;  %5250 = vmatpush1.bf16.msra.mxu0 %v4459_v24  ;;  %v4227_v28 = vld [vmem:[#allocation5 + $0x6e0] sm:$0xff] }
 0x75d   :  { %4923 = vmatprep.subr.bf16.mxu1 %v4206_v30  ;;  %5251 = vmatprep.subr.bf16.mxu0 %v4462_v31  ;;  %v4483_v24 = vld [vmem:[#allocation5 + $0xee0] sm:$0xff]  ;;  %v4230_v30 = vld [vmem:[#allocation5 + $0x6f8] sm:$0xff] }
 0x75e   :  { %v4486_v31 = vld [vmem:[#allocation5 + $0xef8] sm:$0xff] }
 0x760   :  { %4924 = vmatpush1.bf16.msra.mxu1 %v4205_v32  ;;  %5252 = vmatpush1.bf16.msra.mxu0 %v4461_v33  ;;  %v3812_v32 = vrot.slane %v9084_v55, %v9669_v20  ;;  %v3876_v33 = vrot.slane %v9589_v56, %v9669_v20 }
 0x761   :  { %4925 = vmatprep.subr.bf16.mxu1 %v4208_v34  ;;  %5253 = vmatprep.subr.bf16.mxu0 %v4464_v36  ;;  %v4229_v34 = vld [vmem:[#allocation5 + $0x6f0] sm:$0xff] }
 0x762   :  { %v4485_v36 = vld [vmem:[#allocation5 + $0xef0] sm:$0xff] }
 0x764   :  { %4926 = vmatpush1.bf16.msra.mxu1 %v4207_v58  ;;  %5254 = vmatpush1.bf16.msra.mxu0 %v4463_v26  ;;  %v4232_v58 = vld [vmem:[#allocation5 + $0x708] sm:$0xff] }
 0x765   :  { %4927 = vmatprep.subr.bf16.mxu1 %v4210_v35  ;;  %5255 = vmatprep.subr.bf16.mxu0 %v4466_v57  ;;  %v4488_v26 = vld [vmem:[#allocation5 + $0xf08] sm:$0xff]  ;;  %v3824_v35 = vrot.slane %v9084_v55, %v9672_v22  ;;  %v3888_v57 = vrot.slane %v9589_v56, %v9672_v22 }
 0x768   :  { %4928 = vmatpush1.bf16.msra.mxu1 %v4209_v40  ;;  %5256 = vmatpush1.bf16.msra.mxu0 %v4465_v41  ;;  %v3978_v40 = vpack.c.bf16 %v3812_v32, %v3812_v32  ;;  %v3994_v41 = vpack.c.bf16 %v3876_v33, %v3876_v33  ;;  %v4249_v32 = vld [vmem:[#allocation5 + $0x790] sm:$0xff] }
 0x769   :  { %4929 = vmatprep.subr.bf16.mxu1 %v4212_v42  ;;  %5257 = vmatprep.subr.bf16.mxu0 %v4468_v43  ;;  %v4231_v42 = vld [vmem:[#allocation5 + $0x700] sm:$0xff]  ;;  %v4505_v33 = vld [vmem:[#allocation5 + $0xf90] sm:$0xff] }
 0x76a   :  { %v4487_v43 = vld [vmem:[#allocation5 + $0xf00] sm:$0xff] }
 0x76c   :  { %4930 = vmatpush1.bf16.msra.mxu1 %v4211_v44  ;;  %5258 = vmatpush1.bf16.msra.mxu0 %v4467_v37  ;;  %v4234_v44 = vld [vmem:[#allocation5 + $0x718] sm:$0xff] }
 0x76d   :  { %4931 = vmatprep.subr.bf16.mxu1 %v4214_v60  ;;  %5259 = vmatprep.subr.bf16.mxu0 %v4470_v39  ;;  %v4490_v37 = vld [vmem:[#allocation5 + $0xf18] sm:$0xff]  ;;  %v3981_v60 = vpack.c.bf16 %v3824_v35, %v3824_v35  ;;  %v3997_v39 = vpack.c.bf16 %v3888_v57, %v3888_v57 }
 0x76e   :  { %v4254_v35 = vld [vmem:[#allocation5 + $0x7b8] sm:$0xff] }
 0x76f   :  { %v4510_v57 = vld [vmem:[#allocation5 + $0xfb8] sm:$0xff] }
 0x770   :  { %4932 = vmatpush1.bf16.msra.mxu1 %v4213_v46  ;;  %5260 = vmatpush1.bf16.msra.mxu0 %v4469_v47  ;;  %v4233_v46 = vld [vmem:[#allocation5 + $0x710] sm:$0xff] }
 0x771   :  { %4933 = vmatprep.subr.bf16.mxu1 %v4216_v6  ;;  %5261 = vmatprep.subr.bf16.mxu0 %v4472_v62  ;;  %v4489_v47 = vld [vmem:[#allocation5 + $0xf10] sm:$0xff]  ;;  %v4236_v6 = vld [vmem:[#allocation5 + $0x728] sm:$0xff] }
 0x772   :  { %v4492_v62 = vld [vmem:[#allocation5 + $0xf28] sm:$0xff] }
 0x774   :  { %4934 = vmatpush1.bf16.msra.mxu1 %v4215_v50  ;;  %5262 = vmatpush1.bf16.msra.mxu0 %v4471_v53  ;;  %v4235_v50 = vld [vmem:[#allocation5 + $0x720] sm:$0xff] }
 0x775   :  { %4935 = vmatprep.subr.bf16.mxu1 %v4218_v61  ;;  %5263 = vmatprep.subr.bf16.mxu0 %v4474_v63  ;;  %v4491_v53 = vld [vmem:[#allocation5 + $0xf20] sm:$0xff]  ;;  %v4238_v61 = vld [vmem:[#allocation5 + $0x738] sm:$0xff] }
 0x776   :  { %v4494_v63 = vld [vmem:[#allocation5 + $0xf38] sm:$0xff] }
 0x778   :  { %4936 = vmatpush1.bf16.msra.mxu1 %v4217_v25  ;;  %5264 = vmatpush1.bf16.msra.mxu0 %v4473_v21  ;;  %v4237_v25 = vld [vmem:[#allocation5 + $0x730] sm:$0xff] }
 0x779   :  { %4937 = vmatprep.subr.bf16.mxu1 %v4220_v59  ;;  %5265 = vmatprep.subr.bf16.mxu0 %v4476_v10  ;;  %v4493_v21 = vld [vmem:[#allocation5 + $0xf30] sm:$0xff]  ;;  %v4240_v59 = vld [vmem:[#allocation5 + $0x748] sm:$0xff] }
 0x77a   :  { %v4496_v10 = vld [vmem:[#allocation5 + $0xf48] sm:$0xff] }
 0x77c   :  { %4938 = vmatpush1.bf16.msra.mxu1 %v4219_v9  ;;  %5266 = vmatpush1.bf16.msra.mxu0 %v4475_v4  ;;  %v4239_v9 = vld [vmem:[#allocation5 + $0x740] sm:$0xff] }
 0x77d   :  { %4939 = vmatprep.subr.bf16.mxu1 %v4222_v51  ;;  %5267 = vmatprep.subr.bf16.mxu0 %v4478_v38  ;;  %v4495_v4 = vld [vmem:[#allocation5 + $0xf40] sm:$0xff]  ;;  %v4242_v51 = vld [vmem:[#allocation5 + $0x758] sm:$0xff] }
 0x77e   :  { %v4498_v38 = vld [vmem:[#allocation5 + $0xf58] sm:$0xff] }
 0x780   :  { %4940 = vmatpush1.bf16.msra.mxu1 %v4221_v11  ;;  %5268 = vmatpush1.bf16.msra.mxu0 %v4477_v12  ;;  %v4241_v11 = vld [vmem:[#allocation5 + $0x750] sm:$0xff] }
 0x781   :  { %4941 = vmatprep.subr.bf16.mxu1 %v4224_v52  ;;  %5269 = vmatprep.subr.bf16.mxu0 %v4480_v18  ;;  %v4497_v12 = vld [vmem:[#allocation5 + $0xf50] sm:$0xff]  ;;  %v4244_v52 = vld [vmem:[#allocation5 + $0x768] sm:$0xff] }
 0x782   :  { %v4500_v18 = vld [vmem:[#allocation5 + $0xf68] sm:$0xff] }
 0x784   :  { %4942 = vmatpush1.bf16.msra.mxu1 %v4223_v8  ;;  %5270 = vmatpush1.bf16.msra.mxu0 %v4479_v13  ;;  %v4243_v8 = vld [vmem:[#allocation5 + $0x760] sm:$0xff] }
 0x785   :  { %4943 = vmatprep.subr.bf16.mxu1 %v4226_v16  ;;  %5271 = vmatprep.subr.bf16.mxu0 %v4482_v45  ;;  %v4499_v13 = vld [vmem:[#allocation5 + $0xf60] sm:$0xff]  ;;  %v4246_v16 = vld [vmem:[#allocation5 + $0x778] sm:$0xff] }
 0x786   :  { %v4502_v45 = vld [vmem:[#allocation5 + $0xf78] sm:$0xff] }
 0x788   :  { %4944 = vmatpush1.bf16.msra.mxu1 %v4225_v17  ;;  %5272 = vmatpush1.bf16.msra.mxu0 %v4481_v19  ;;  %v4245_v17 = vld [vmem:[#allocation5 + $0x770] sm:$0xff] }
 0x789   :  { %4945 = vmatprep.subr.bf16.mxu1 %v4228_v15  ;;  %5273 = vmatprep.subr.bf16.mxu0 %v4484_v27  ;;  %v4501_v19 = vld [vmem:[#allocation5 + $0xf70] sm:$0xff]  ;;  %v4248_v15 = vld [vmem:[#allocation5 + $0x788] sm:$0xff] }
 0x78a   :  { %v4504_v27 = vld [vmem:[#allocation5 + $0xf88] sm:$0xff] }
 0x78c   :  { %4946 = vmatpush1.bf16.msra.mxu1 %v4227_v28  ;;  %5274 = vmatpush1.bf16.msra.mxu0 %v4483_v24  ;;  %v4247_v28 = vld [vmem:[#allocation5 + $0x780] sm:$0xff] }
 0x78d   :  { %4947 = vmatprep.subr.bf16.mxu1 %v4230_v30  ;;  %5275 = vmatprep.subr.bf16.mxu0 %v4486_v31  ;;  %v4503_v24 = vld [vmem:[#allocation5 + $0xf80] sm:$0xff]  ;;  %v4250_v30 = vld [vmem:[#allocation5 + $0x798] sm:$0xff] }
 0x78e   :  { %v4506_v31 = vld [vmem:[#allocation5 + $0xf98] sm:$0xff] }
 0x790   :  { %4948 = vmatpush1.bf16.msra.mxu1 %v4229_v34  ;;  %5276 = vmatpush1.bf16.msra.mxu0 %v4485_v36  ;;  %v4252_v34 = vld [vmem:[#allocation5 + $0x7a8] sm:$0xff] }
 0x791   :  { %4958 = vmatprep.subr.bf16.mxu1 %v4232_v58  ;;  %5286 = vmatprep.subr.bf16.mxu0 %v4488_v26  ;;  %v4508_v36 = vld [vmem:[#allocation5 + $0xfa8] sm:$0xff]  ;;  %v4251_v58 = vld [vmem:[#allocation5 + $0x7a0] sm:$0xff] }
 0x792   :  { %v4507_v26 = vld [vmem:[#allocation5 + $0xfa0] sm:$0xff] }
 0x793   :  { %4950 = vmatmul.mubr.bf16.vlgmr.msra.gmra.mrb[12].mxu1 %v3978_v40  ;;  %5278 = vmatmul.mubr.bf16.vlgmr.msra.gmra.mrb[4].mxu0 %v3994_v41  ;;  %v4253_v40 = vld [vmem:[#allocation5 + $0x7b0] sm:$0xff] }
 0x794   :  { %4959 = vmatpush1.bf16.msra.mxu1 %v4231_v42  ;;  %5287 = vmatpush1.bf16.msra.mxu0 %v4487_v43  ;;  %v4509_v41 = vld [vmem:[#allocation5 + $0xfb0] sm:$0xff]  ;;  %v4256_v42 = vld [vmem:[#allocation5 + $0x7c8] sm:$0xff] }
 0x795   :  { %4960 = vmatprep.subr.bf16.mxu1 %v4234_v44  ;;  %5288 = vmatprep.subr.bf16.mxu0 %v4490_v37  ;;  %v4512_v43 = vld [vmem:[#allocation5 + $0xfc8] sm:$0xff]  ;;  %v4255_v44 = vld [vmem:[#allocation5 + $0x7c0] sm:$0xff] }
 0x796   :  { %4990 = vmatprep.mubr.bf16.mxu1 %v3981_v60  ;;  %5318 = vmatprep.mubr.bf16.mxu0 %v3997_v39  ;;  %v4511_v37 = vld [vmem:[#allocation5 + $0xfc0] sm:$0xff]  ;;  %v4258_v60 = vld [vmem:[#allocation5 + $0x7d8] sm:$0xff] }
 0x797   :  { %v4514_v39 = vld [vmem:[#allocation5 + $0xfd8] sm:$0xff] }
 0x798   :  { %4961 = vmatpush1.bf16.msra.mxu1 %v4233_v46  ;;  %5289 = vmatpush1.bf16.msra.mxu0 %v4489_v47  ;;  %v4257_v46 = vld [vmem:[#allocation5 + $0x7d0] sm:$0xff] }
 0x799   :  { %4962 = vmatprep.subr.bf16.mxu1 %v4236_v6  ;;  %5290 = vmatprep.subr.bf16.mxu0 %v4492_v62  ;;  %v4513_v47 = vld [vmem:[#allocation5 + $0xfd0] sm:$0xff]  ;;  %v4260_v6 = vld [vmem:[#allocation5 + $0x7e8] sm:$0xff] }
 0x79a   :  { %v4516_v62 = vld [vmem:[#allocation5 + $0xfe8] sm:$0xff] }
 0x79c   :  { %4963 = vmatpush1.bf16.msra.mxu1 %v4235_v50  ;;  %5291 = vmatpush1.bf16.msra.mxu0 %v4491_v53  ;;  %v4259_v50 = vld [vmem:[#allocation5 + $0x7e0] sm:$0xff] }
 0x79d   :  { %4964 = vmatprep.subr.bf16.mxu1 %v4238_v61  ;;  %5292 = vmatprep.subr.bf16.mxu0 %v4494_v63  ;;  %v4515_v53 = vld [vmem:[#allocation5 + $0xfe0] sm:$0xff]  ;;  %v4262_v61 = vld [vmem:[#allocation5 + $0x7f8] sm:$0xff] }
 0x79e   :  { %v4518_v63 = vld [vmem:[#allocation5 + $0xff8] sm:$0xff] }
 0x7a0   :  { %4965 = vmatpush1.bf16.msra.mxu1 %v4237_v25  ;;  %5293 = vmatpush1.bf16.msra.mxu0 %v4493_v21  ;;  %v3820_v25 = vrot.slane %v9084_v55, %v9683_v49  ;;  %v3884_v21 = vrot.slane %v9589_v56, %v9683_v49  ;;  %v4519_v55 = vld [vmem:[#allocation5 + $0x1000] sm:$0xff]  ;;  %v4521_v56 = vld [vmem:[#allocation5 + $0x1010] sm:$0xff] }
 0x7a1   :  { %4966 = vmatprep.subr.bf16.mxu1 %v4240_v59  ;;  %5294 = vmatprep.subr.bf16.mxu0 %v4496_v10  ;;  %v3896_v59 = vrot.slane %v9629_v0, %v9634_v7  ;;  %v4261_v10 = vld [vmem:[#allocation5 + $0x7f0] sm:$0xff] }
 0x7a4   :  { %4967 = vmatpush1.bf16.msra.mxu1 %v4239_v9  ;;  %5295 = vmatpush1.bf16.msra.mxu0 %v4495_v4  ;;  %v4517_v9 = vld [vmem:[#allocation5 + $0xff0] sm:$0xff]  ;;  %v4520_v4 = vld [vmem:[#allocation5 + $0x1008] sm:$0xff] }
 0x7a5   :  { %4968 = vmatprep.subr.bf16.mxu1 %v4242_v51  ;;  %5296 = vmatprep.subr.bf16.mxu0 %v4498_v38  ;;  %v3980_v51 = vpack.c.bf16 %v3820_v25, %v3820_v25  ;;  %v3996_v38 = vpack.c.bf16 %v3884_v21, %v3884_v21  ;;  %v4558_v25 = vld [vmem:[#allocation5 + $0x1138] sm:$0xff]  ;;  %v4560_v21 = vld [vmem:[#allocation5 + $0x1148] sm:$0xff] }
 0x7a8   :  { %4969 = vmatpush1.bf16.msra.mxu1 %v4241_v11  ;;  %5297 = vmatpush1.bf16.msra.mxu0 %v4497_v12  ;;  %v3999_v11 = vpack.c.bf16 %v3896_v59, %v3896_v59  ;;  %v4522_v12 = vld [vmem:[#allocation5 + $0x1018] sm:$0xff]  ;;  %v4559_v59 = vld [vmem:[#allocation5 + $0x1140] sm:$0xff] }
 0x7a9   :  { %4970 = vmatprep.subr.bf16.mxu1 %v4244_v52  ;;  %5298 = vmatprep.subr.bf16.mxu0 %v4500_v18  ;;  %v4524_v52 = vld [vmem:[#allocation5 + $0x1028] sm:$0xff]  ;;  %v4523_v18 = vld [vmem:[#allocation5 + $0x1020] sm:$0xff] }
 0x7ac   :  { %4971 = vmatpush1.bf16.msra.mxu1 %v4243_v8  ;;  %5299 = vmatpush1.bf16.msra.mxu0 %v4499_v13  ;;  %v4526_v8 = vld [vmem:[#allocation5 + $0x1038] sm:$0xff]  ;;  %v4525_v13 = vld [vmem:[#allocation5 + $0x1030] sm:$0xff] }
 0x7ad   :  { %4972 = vmatprep.subr.bf16.mxu1 %v4246_v16  ;;  %5300 = vmatprep.subr.bf16.mxu0 %v4502_v45  ;;  %v4528_v16 = vld [vmem:[#allocation5 + $0x1048] sm:$0xff]  ;;  %v4527_v45 = vld [vmem:[#allocation5 + $0x1040] sm:$0xff] }
 0x7b0   :  { %4973 = vmatpush1.bf16.msra.mxu1 %v4245_v17  ;;  %5301 = vmatpush1.bf16.msra.mxu0 %v4501_v19  ;;  %v4530_v17 = vld [vmem:[#allocation5 + $0x1058] sm:$0xff]  ;;  %v4529_v19 = vld [vmem:[#allocation5 + $0x1050] sm:$0xff] }
 0x7b1   :  { %4974 = vmatprep.subr.bf16.mxu1 %v4248_v15  ;;  %5302 = vmatprep.subr.bf16.mxu0 %v4504_v27  ;;  %v4532_v15 = vld [vmem:[#allocation5 + $0x1068] sm:$0xff]  ;;  %v4531_v27 = vld [vmem:[#allocation5 + $0x1060] sm:$0xff] }
 0x7b4   :  { %4975 = vmatpush1.bf16.msra.mxu1 %v4247_v28  ;;  %5303 = vmatpush1.bf16.msra.mxu0 %v4503_v24  ;;  %v4534_v28 = vld [vmem:[#allocation5 + $0x1078] sm:$0xff]  ;;  %v4533_v24 = vld [vmem:[#allocation5 + $0x1070] sm:$0xff] }
 0x7b5   :  { %4976 = vmatprep.subr.bf16.mxu1 %v4250_v30  ;;  %5304 = vmatprep.subr.bf16.mxu0 %v4506_v31  ;;  %v4536_v30 = vld [vmem:[#allocation5 + $0x1088] sm:$0xff]  ;;  %v4535_v31 = vld [vmem:[#allocation5 + $0x1080] sm:$0xff] }
 0x7b8   :  { %4977 = vmatpush1.bf16.msra.mxu1 %v4249_v32  ;;  %5305 = vmatpush1.bf16.msra.mxu0 %v4505_v33  ;;  %v4538_v32 = vld [vmem:[#allocation5 + $0x1098] sm:$0xff]  ;;  %v4537_v33 = vld [vmem:[#allocation5 + $0x1090] sm:$0xff] }
 0x7b9   :  { %4978 = vmatprep.subr.bf16.mxu1 %v4252_v34  ;;  %5306 = vmatprep.subr.bf16.mxu0 %v4508_v36  ;;  %v4540_v34 = vld [vmem:[#allocation5 + $0x10a8] sm:$0xff]  ;;  %v4539_v36 = vld [vmem:[#allocation5 + $0x10a0] sm:$0xff] }
 0x7bc   :  { %4979 = vmatpush1.bf16.msra.mxu1 %v4251_v58  ;;  %5307 = vmatpush1.bf16.msra.mxu0 %v4507_v26  ;;  %v4542_v58 = vld [vmem:[#allocation5 + $0x10b8] sm:$0xff]  ;;  %v4541_v26 = vld [vmem:[#allocation5 + $0x10b0] sm:$0xff] }
 0x7bd   :  { %4980 = vmatprep.subr.bf16.mxu1 %v4254_v35  ;;  %5308 = vmatprep.subr.bf16.mxu0 %v4510_v57  ;;  %v4544_v35 = vld [vmem:[#allocation5 + $0x10c8] sm:$0xff]  ;;  %v4543_v57 = vld [vmem:[#allocation5 + $0x10c0] sm:$0xff] }
 0x7c0   :  { %4981 = vmatpush1.bf16.msra.mxu1 %v4253_v40  ;;  %5309 = vmatpush1.bf16.msra.mxu0 %v4509_v41  ;;  %v4546_v40 = vld [vmem:[#allocation5 + $0x10d8] sm:$0xff]  ;;  %v4545_v41 = vld [vmem:[#allocation5 + $0x10d0] sm:$0xff] }
 0x7c1   :  { %4982 = vmatprep.subr.bf16.mxu1 %v4256_v42  ;;  %5310 = vmatprep.subr.bf16.mxu0 %v4512_v43  ;;  %v4548_v42 = vld [vmem:[#allocation5 + $0x10e8] sm:$0xff]  ;;  %v4547_v43 = vld [vmem:[#allocation5 + $0x10e0] sm:$0xff] }
 0x7c4   :  { %4983 = vmatpush1.bf16.msra.mxu1 %v4255_v44  ;;  %5311 = vmatpush1.bf16.msra.mxu0 %v4511_v37  ;;  %v4550_v44 = vld [vmem:[#allocation5 + $0x10f8] sm:$0xff]  ;;  %v3892_v37 = vrot.slane %v9629_v0, %v9641_v14 }
 0x7c5   :  { %4984 = vmatprep.subr.bf16.mxu1 %v4258_v60  ;;  %5312 = vmatprep.subr.bf16.mxu0 %v4514_v39  ;;  %v3904_v60 = vrot.slane %v9629_v0, %v9644_v29  ;;  %v4549_v39 = vld [vmem:[#allocation5 + $0x10f0] sm:$0xff] }
 0x7c6   :  { %v4557_v29 = vld [vmem:[#allocation5 + $0x1130] sm:$0xff] }
 0x7c8   :  { %4985 = vmatpush1.bf16.msra.mxu1 %v4257_v46  ;;  %5313 = vmatpush1.bf16.msra.mxu0 %v4513_v47  ;;  %v4552_v46 = vld [vmem:[#allocation5 + $0x1108] sm:$0xff]  ;;  %v3998_v47 = vpack.c.bf16 %v3892_v37, %v3892_v37  ;;  %v5535_v37 = vld [vmem:[%s10350_s8 + $0x8] sm:$0xff] }
 0x7c9   :  { %4986 = vmatprep.subr.bf16.mxu1 %v4260_v6  ;;  %5314 = vmatprep.subr.bf16.mxu0 %v4516_v62  ;;  %v4001_v6 = vpack.c.bf16 %v3904_v60, %v3904_v60  ;;  %v4551_v62 = vld [vmem:[#allocation5 + $0x1100] sm:$0xff]  ;;  %v5537_v60 = vld [vmem:[%s10350_s8 + $0x18] sm:$0xff] }
 0x7cc   :  { %4987 = vmatpush1.bf16.msra.mxu1 %v4259_v50  ;;  %5315 = vmatpush1.bf16.msra.mxu0 %v4515_v53  ;;  %v4554_v50 = vld [vmem:[#allocation5 + $0x1118] sm:$0xff]  ;;  %v4553_v53 = vld [vmem:[#allocation5 + $0x1110] sm:$0xff] }
 0x7cd   :  { %4988 = vmatprep.subr.bf16.mxu1 %v4262_v61  ;;  %5316 = vmatprep.subr.bf16.mxu0 %v4518_v63  ;;  %v4556_v61 = vld [vmem:[#allocation5 + $0x1128] sm:$0xff]  ;;  %v4555_v63 = vld [vmem:[#allocation5 + $0x1120] sm:$0xff] }
 0x7d0   :  { %4989 = vmatpush1.bf16.msra.mxu1 %v4261_v10  ;;  %5317 = vmatpush1.bf16.msra.mxu0 %v4517_v9  ;;  %v4562_v10 = vld [vmem:[#allocation5 + $0x1158] sm:$0xff]  ;;  %v4561_v9 = vld [vmem:[#allocation5 + $0x1150] sm:$0xff] }
 0x7d1   :  { %5327 = vmatprep.subr.bf16.mxu0 %v4520_v4  ;;  %v4564_v4 = vld [vmem:[#allocation5 + $0x1168] sm:$0xff] }
 0x7d3   :  { %4991 = vmatmul.mubr.bf16.vlgmr.msra.gmra.mrb[12].mxu1 %v3980_v51  ;;  %5319 = vmatmul.mubr.bf16.vlgmr.msra.gmra.mrb[4].mxu0 %v3996_v38  ;;  %v4563_v51 = vld [vmem:[#allocation5 + $0x1160] sm:$0xff]  ;;  %v4566_v38 = vld [vmem:[#allocation5 + $0x1178] sm:$0xff] }
 0x7d4   :  { %5328 = vmatpush1.bf16.msra.mxu0 %v4519_v55  ;;  %5359 = vmatprep.mubr.bf16.mxu0 %v3999_v11  ;;  %v4565_v11 = vld [vmem:[#allocation5 + $0x1170] sm:$0xff]  ;;  %v4568_v55 = vld [vmem:[#allocation5 + $0x1188] sm:$0xff] }
 0x7d5   :  { %5329 = vmatprep.subr.bf16.mxu0 %v4522_v12  ;;  %v4567_v12 = vld [vmem:[#allocation5 + $0x1180] sm:$0xff] }
 0x7d8   :  { %5330 = vmatpush1.bf16.msra.mxu0 %v4521_v56  ;;  %v4570_v56 = vld [vmem:[#allocation5 + $0x1198] sm:$0xff] }
 0x7d9   :  { %5331 = vmatprep.subr.bf16.mxu0 %v4524_v52  ;;  %v4569_v52 = vld [vmem:[#allocation5 + $0x1190] sm:$0xff] }
 0x7dc   :  { %5332 = vmatpush1.bf16.msra.mxu0 %v4523_v18  ;;  %v4572_v18 = vld [vmem:[#allocation5 + $0x11a8] sm:$0xff] }
 0x7dd   :  { %5333 = vmatprep.subr.bf16.mxu0 %v4526_v8  ;;  %v4571_v8 = vld [vmem:[#allocation5 + $0x11a0] sm:$0xff] }
 0x7e0   :  { %5334 = vmatpush1.bf16.msra.mxu0 %v4525_v13  ;;  %v4574_v13 = vld [vmem:[#allocation5 + $0x11b8] sm:$0xff] }
 0x7e1   :  { %5335 = vmatprep.subr.bf16.mxu0 %v4528_v16  ;;  %v4573_v16 = vld [vmem:[#allocation5 + $0x11b0] sm:$0xff] }
 0x7e4   :  { %5336 = vmatpush1.bf16.msra.mxu0 %v4527_v45  ;;  %v4576_v45 = vld [vmem:[#allocation5 + $0x11c8] sm:$0xff] }
 0x7e5   :  { %5337 = vmatprep.subr.bf16.mxu0 %v4530_v17  ;;  %v4575_v17 = vld [vmem:[#allocation5 + $0x11c0] sm:$0xff] }
 0x7e8   :  { %5338 = vmatpush1.bf16.msra.mxu0 %v4529_v19  ;;  %v4578_v19 = vld [vmem:[#allocation5 + $0x11d8] sm:$0xff] }
 0x7e9   :  { %5339 = vmatprep.subr.bf16.mxu0 %v4532_v15  ;;  %v4577_v15 = vld [vmem:[#allocation5 + $0x11d0] sm:$0xff] }
 0x7ec   :  { %5340 = vmatpush1.bf16.msra.mxu0 %v4531_v27  ;;  %v4580_v27 = vld [vmem:[#allocation5 + $0x11e8] sm:$0xff] }
 0x7ed   :  { %5341 = vmatprep.subr.bf16.mxu0 %v4534_v28  ;;  %v4579_v28 = vld [vmem:[#allocation5 + $0x11e0] sm:$0xff] }
 0x7f0   :  { %5342 = vmatpush1.bf16.msra.mxu0 %v4533_v24  ;;  %v4582_v24 = vld [vmem:[#allocation5 + $0x11f8] sm:$0xff] }
 0x7f1   :  { %5343 = vmatprep.subr.bf16.mxu0 %v4536_v30  ;;  %v3900_v30 = vrot.slane %v9629_v0, %v9655_v3  ;;  %v4587_v3 = vld [vmem:[#allocation5 + $0x1220] sm:$0xff] }
 0x7f4   :  { %5344 = vmatpush1.bf16.msra.mxu0 %v4535_v31  ;;  %v3912_v31 = vrot.slane %v9629_v0, %v9658_v48  ;;  %v4589_v48 = vld [vmem:[#allocation5 + $0x1230] sm:$0xff] }
 0x7f5   :  { %5345 = vmatprep.subr.bf16.mxu0 %v4538_v32  ;;  %v4581_v32 = vld [vmem:[#allocation5 + $0x11f0] sm:$0xff] }
 0x7f8   :  { %5346 = vmatpush1.bf16.msra.mxu0 %v4537_v33  ;;  %v4584_v33 = vld [vmem:[#allocation5 + $0x1208] sm:$0xff] }
 0x7f9   :  { %5347 = vmatprep.subr.bf16.mxu0 %v4540_v34  ;;  %v4000_v34 = vpack.c.bf16 %v3900_v30, %v3900_v30  ;;  %v5557_v30 = vld [vmem:[%s10350_s8 + $0xb8] sm:$0xff] }
 0x7fc   :  { %5348 = vmatpush1.bf16.msra.mxu0 %v4539_v36  ;;  %v4003_v36 = vpack.c.bf16 %v3912_v31, %v3912_v31  ;;  %v4602_v31 = vld [vmem:[#allocation5 + $0x1298] sm:$0xff] }
 0x7fd   :  { %5349 = vmatprep.subr.bf16.mxu0 %v4542_v58  ;;  %v4583_v58 = vld [vmem:[#allocation5 + $0x1200] sm:$0xff] }
 0x800   :  { %5350 = vmatpush1.bf16.msra.mxu0 %v4541_v26  ;;  %v4586_v26 = vld [vmem:[#allocation5 + $0x1218] sm:$0xff] }
 0x801   :  { %5351 = vmatprep.subr.bf16.mxu0 %v4544_v35  ;;  %v4585_v35 = vld [vmem:[#allocation5 + $0x1210] sm:$0xff] }
 0x804   :  { %5352 = vmatpush1.bf16.msra.mxu0 %v4543_v57  ;;  %v4588_v57 = vld [vmem:[#allocation5 + $0x1228] sm:$0xff] }
 0x805   :  { %5353 = vmatprep.subr.bf16.mxu0 %v4546_v40  ;;  %v4590_v40 = vld [vmem:[#allocation5 + $0x1238] sm:$0xff] }
 0x808   :  { %5354 = vmatpush1.bf16.msra.mxu0 %v4545_v41  ;;  %v4592_v41 = vld [vmem:[#allocation5 + $0x1248] sm:$0xff] }
 0x809   :  { %5355 = vmatprep.subr.bf16.mxu0 %v4548_v42  ;;  %v4591_v42 = vld [vmem:[#allocation5 + $0x1240] sm:$0xff] }
 0x80c   :  { %5356 = vmatpush1.bf16.msra.mxu0 %v4547_v43  ;;  %v4594_v43 = vld [vmem:[#allocation5 + $0x1258] sm:$0xff] }
 0x80d   :  { %5357 = vmatprep.subr.bf16.mxu0 %v4550_v44  ;;  %v4593_v44 = vld [vmem:[#allocation5 + $0x1250] sm:$0xff] }
 0x810   :  { %5358 = vmatpush1.bf16.msra.mxu0 %v4549_v39  ;;  %v5534_v39 = vld [vmem:[%s10350_s8] sm:$0xff] }
 0x811   :  { %5368 = vmatprep.subr.bf16.mxu0 %v4552_v46  ;;  %v6755_v46 = vpack.c.bf16 %v5537_v60, %v5535_v37  ;;  %v4606_v37 = vld [vmem:[#allocation5 + $0x12b8] sm:$0xff] }
 0x813   :  { %5360 = vmatmul.mubr.bf16.vlgmr.msra.gmra.mrb[4].mxu0 %v3998_v47  ;;  %v5536_v47 = vld [vmem:[%s10350_s8 + $0x10] sm:$0xff]  ;;  %6756 = vmatprep.subr.bf16.mxu1 %v6755_v46  ;;  %v5562_v46 = vld [vmem:[%s10350_s8 + $0xe0] sm:$0xff] }
 0x814   :  { %5369 = vmatpush1.bf16.msra.mxu0 %v4551_v62  ;;  %5400 = vmatprep.mubr.bf16.mxu0 %v4001_v6  ;;  %v5539_v6 = vld [vmem:[%s10350_s8 + $0x28] sm:$0xff]  ;;  %v5541_v62 = vld [vmem:[%s10350_s8 + $0x38] sm:$0xff] }
 0x815   :  { %5370 = vmatprep.subr.bf16.mxu0 %v4554_v50  ;;  %v6757_v50 = vpack.c.bf16 %v5536_v47, %v5534_v39  ;;  %v5564_v47 = vld [vmem:[%s10350_s8 + $0xf0] sm:$0xff] }
 0x817   :  { %6758 = vmatpush1.bf16.msra.mxu1 %v6757_v50  ;;  %v5569_v50 = vld [vmem:[%s10350_s8 + $0x118] sm:$0xff] }
 0x818   :  { %5371 = vmatpush1.bf16.msra.mxu0 %v4553_v53  ;;  %v6759_v53 = vpack.c.bf16 %v5541_v62, %v5539_v6  ;;  %v4605_v6 = vld [vmem:[#allocation5 + $0x12b0] sm:$0xff]  ;;  %v5567_v62 = vld [vmem:[%s10350_s8 + $0x108] sm:$0xff] }
 0x819   :  { %5372 = vmatprep.subr.bf16.mxu0 %v4556_v61  ;;  %v5538_v61 = vld [vmem:[%s10350_s8 + $0x20] sm:$0xff] }
 0x81a   :  { %6760 = vmatprep.subr.bf16.mxu1 %v6759_v53  ;;  %v4608_v53 = vld [vmem:[#allocation5 + $0x12c8] sm:$0xff] }
 0x81c   :  { %5373 = vmatpush1.bf16.msra.mxu0 %v4555_v63  ;;  %v5540_v63 = vld [vmem:[%s10350_s8 + $0x30] sm:$0xff] }
 0x81d   :  { %5374 = vmatprep.subr.bf16.mxu0 %v4558_v25  ;;  %v5543_v25 = vld [vmem:[%s10350_s8 + $0x48] sm:$0xff] }
 0x820   :  { %5375 = vmatpush1.bf16.msra.mxu0 %v4557_v29  ;;  %v4596_v29 = vld [vmem:[#allocation5 + $0x1268] sm:$0xff] }
 0x821   :  { %5376 = vmatprep.subr.bf16.mxu0 %v4560_v21  ;;  %v5545_v21 = vld [vmem:[%s10350_s8 + $0x58] sm:$0xff] }
 0x824   :  { %5377 = vmatpush1.bf16.msra.mxu0 %v4559_v59  ;;  %v6761_v59 = vpack.c.bf16 %v5540_v63, %v5538_v61  ;;  %v6785_v61 = vpack.c.bf16 %v5564_v47, %v5562_v46  ;;  %v6787_v63 = vpack.c.bf16 %v5569_v50, %v5567_v62  ;;  %v5591_v46 = vld [vmem:[%s10350_s8 + $0x1c8] sm:$0xff]  ;;  %v5593_v47 = vld [vmem:[%s10350_s8 + $0x1d8] sm:$0xff] }
 0x825   :  { %5378 = vmatprep.subr.bf16.mxu0 %v4562_v10  ;;  %v6763_v10 = vpack.c.bf16 %v5545_v21, %v5543_v25  ;;  %v5566_v25 = vld [vmem:[%s10350_s8 + $0x100] sm:$0xff]  ;;  %v4607_v21 = vld [vmem:[#allocation5 + $0x12c0] sm:$0xff]  ;;  %v6811_v50 = vpack.c.bf16 %v5593_v47, %v5591_v46 }
 0x826   :  { %6762 = vmatpush1.bf16.msra.mxu1 %v6761_v59  ;;  %v5571_v59 = vld [vmem:[%s10350_s8 + $0x128] sm:$0xff]  ;;  %v4655_v46 = vld [vmem:[#allocation11] sm:$0x3] }
 0x827   :  { %6764 = vmatprep.subr.bf16.mxu1 %v6763_v10  ;;  %v5573_v10 = vld [vmem:[%s10350_s8 + $0x138] sm:$0xff]  ;;  %v4660_v47 = vrot.slane %v4655_v46, %v9641_v14 }
 0x828   :  { %5379 = vmatpush1.bf16.msra.mxu0 %v4561_v9  ;;  %v5542_v9 = vld [vmem:[%s10350_s8 + $0x40] sm:$0xff] }
 0x829   :  { %5380 = vmatprep.subr.bf16.mxu0 %v4564_v4  ;;  %v5544_v4 = vld [vmem:[%s10350_s8 + $0x50] sm:$0xff] }
 0x82c   :  { %5381 = vmatpush1.bf16.msra.mxu0 %v4563_v51  ;;  %v4595_v51 = vld [vmem:[#allocation5 + $0x1260] sm:$0xff] }
 0x82d   :  { %5382 = vmatprep.subr.bf16.mxu0 %v4566_v38  ;;  %v5547_v38 = vld [vmem:[%s10350_s8 + $0x68] sm:$0xff] }
 0x830   :  { %5383 = vmatpush1.bf16.msra.mxu0 %v4565_v11  ;;  %v5549_v11 = vld [vmem:[%s10350_s8 + $0x78] sm:$0xff] }
 0x831   :  { %5384 = vmatprep.subr.bf16.mxu0 %v4568_v55  ;;  %v4598_v55 = vld [vmem:[#allocation5 + $0x1278] sm:$0xff] }
 0x834   :  { %5385 = vmatpush1.bf16.msra.mxu0 %v4567_v12  ;;  %v6765_v12 = vpack.c.bf16 %v5544_v4, %v5542_v9  ;;  %v4610_v9 = vld [vmem:[#allocation5 + $0x12d8] sm:$0xff] }
 0x835   :  { %5386 = vmatprep.subr.bf16.mxu0 %v4570_v56  ;;  %v6767_v56 = vpack.c.bf16 %v5549_v11, %v5547_v38  ;;  %v5570_v38 = vld [vmem:[%s10350_s8 + $0x120] sm:$0xff]  ;;  %v5572_v11 = vld [vmem:[%s10350_s8 + $0x130] sm:$0xff] }
 0x836   :  { %6766 = vmatpush1.bf16.msra.mxu1 %v6765_v12  ;;  %v5575_v12 = vld [vmem:[%s10350_s8 + $0x148] sm:$0xff] }
 0x837   :  { %6768 = vmatprep.subr.bf16.mxu1 %v6767_v56  ;;  %v5577_v56 = vld [vmem:[%s10350_s8 + $0x158] sm:$0xff] }
 0x838   :  { %5387 = vmatpush1.bf16.msra.mxu0 %v4569_v52  ;;  %v5546_v52 = vld [vmem:[%s10350_s8 + $0x60] sm:$0xff] }
 0x839   :  { %5388 = vmatprep.subr.bf16.mxu0 %v4572_v18  ;;  %v5548_v18 = vld [vmem:[%s10350_s8 + $0x70] sm:$0xff] }
 0x83c   :  { %5389 = vmatpush1.bf16.msra.mxu0 %v4571_v8  ;;  %v4597_v8 = vld [vmem:[#allocation5 + $0x1270] sm:$0xff] }
 0x83d   :  { %5390 = vmatprep.subr.bf16.mxu0 %v4574_v13  ;;  %v5551_v13 = vld [vmem:[%s10350_s8 + $0x88] sm:$0xff] }
 0x840   :  { %5391 = vmatpush1.bf16.msra.mxu0 %v4573_v16  ;;  %v5553_v16 = vld [vmem:[%s10350_s8 + $0x98] sm:$0xff] }
 0x841   :  { %5392 = vmatprep.subr.bf16.mxu0 %v4576_v45  ;;  %v4600_v45 = vld [vmem:[#allocation5 + $0x1288] sm:$0xff] }
 0x844   :  { %5393 = vmatpush1.bf16.msra.mxu0 %v4575_v17  ;;  %v6769_v17 = vpack.c.bf16 %v5548_v18, %v5546_v52  ;;  %v4612_v52 = vld [vmem:[#allocation5 + $0x12e8] sm:$0xff]  ;;  %v6793_v18 = vpack.c.bf16 %v5572_v11, %v5570_v38  ;;  %v4627_v11 = vld [vmem:[#allocation5 + $0x1360] sm:$0xff] }
 0x845   :  { %5394 = vmatprep.subr.bf16.mxu0 %v4578_v19  ;;  %v6771_v19 = vpack.c.bf16 %v5553_v16, %v5551_v13  ;;  %v5574_v13 = vld [vmem:[%s10350_s8 + $0x140] sm:$0xff]  ;;  %v5576_v16 = vld [vmem:[%s10350_s8 + $0x150] sm:$0xff] }
 0x846   :  { %6770 = vmatpush1.bf16.msra.mxu1 %v6769_v17  ;;  %v5579_v17 = vld [vmem:[%s10350_s8 + $0x168] sm:$0xff] }
 0x847   :  { %6772 = vmatprep.subr.bf16.mxu1 %v6771_v19  ;;  %v5581_v19 = vld [vmem:[%s10350_s8 + $0x178] sm:$0xff] }
 0x848   :  { %5395 = vmatpush1.bf16.msra.mxu0 %v4577_v15  ;;  %v5550_v15 = vld [vmem:[%s10350_s8 + $0x80] sm:$0xff] }
 0x849   :  { %5396 = vmatprep.subr.bf16.mxu0 %v4580_v27  ;;  %v5552_v27 = vld [vmem:[%s10350_s8 + $0x90] sm:$0xff] }
 0x84c   :  { %5397 = vmatpush1.bf16.msra.mxu0 %v4579_v28  ;;  %v4599_v28 = vld [vmem:[#allocation5 + $0x1280] sm:$0xff] }
 0x84d   :  { %5398 = vmatprep.subr.bf16.mxu0 %v4582_v24  ;;  %v5555_v24 = vld [vmem:[%s10350_s8 + $0xa8] sm:$0xff] }
 0x850   :  { %5399 = vmatpush1.bf16.msra.mxu0 %v4581_v32  ;;  %v6773_v32 = vpack.c.bf16 %v5552_v27, %v5550_v15  ;;  %v4614_v15 = vld [vmem:[#allocation5 + $0x12f8] sm:$0xff]  ;;  %v3908_v27 = vrot.slane %v9629_v0, %v9669_v20 }
 0x851   :  { %5409 = vmatprep.subr.bf16.mxu0 %v4584_v33  ;;  %v6775_v33 = vpack.c.bf16 %v5557_v30, %v5555_v24  ;;  %v3920_v24 = vrot.slane %v9629_v0, %v9672_v22  ;;  %v6799_v30 = vpack.c.bf16 %v5581_v19, %v5579_v17  ;;  %v5583_v20 = vld [vmem:[%s10350_s8 + $0x188] sm:$0xff]  ;;  %v5585_v22 = vld [vmem:[%s10350_s8 + $0x198] sm:$0xff] }
 0x852   :  { %6774 = vmatpush1.bf16.msra.mxu1 %v6773_v32  ;;  %v5580_v32 = vld [vmem:[%s10350_s8 + $0x170] sm:$0xff]  ;;  %v4637_v17 = vld [vmem:[#allocation5 + $0x13b0] sm:$0xff] }
 0x853   :  { %5401 = vmatmul.mubr.bf16.vlgmr.msra.gmra.mrb[4].mxu0 %v4000_v34  ;;  %v5554_v34 = vld [vmem:[%s10350_s8 + $0xa0] sm:$0xff]  ;;  %6776 = vmatprep.subr.bf16.mxu1 %v6775_v33  ;;  %v4640_v19 = vld [vmem:[#allocation5 + $0x13c8] sm:$0xff] }
 0x854   :  { %5410 = vmatpush1.bf16.msra.mxu0 %v4583_v58  ;;  %5441 = vmatprep.mubr.bf16.mxu0 %v4003_v36  ;;  %v5556_v36 = vld [vmem:[%s10350_s8 + $0xb0] sm:$0xff]  ;;  %v4601_v58 = vld [vmem:[#allocation5 + $0x1290] sm:$0xff] }
 0x855   :  { %5411 = vmatprep.subr.bf16.mxu0 %v4586_v26  ;;  %v5559_v26 = vld [vmem:[%s10350_s8 + $0xc8] sm:$0xff]  ;;  %v4613_v33 = vld [vmem:[#allocation5 + $0x12f0] sm:$0xff] }
 0x858   :  { %5412 = vmatpush1.bf16.msra.mxu0 %v4585_v35  ;;  %v5561_v35 = vld [vmem:[%s10350_s8 + $0xd8] sm:$0xff] }
 0x859   :  { %5413 = vmatprep.subr.bf16.mxu0 %v4588_v57  ;;  %v4604_v57 = vld [vmem:[#allocation5 + $0x12a8] sm:$0xff] }
 0x85c   :  { %5414 = vmatpush1.bf16.msra.mxu0 %v4587_v3  ;;  %v6777_v3 = vpack.c.bf16 %v5556_v36, %v5554_v34  ;;  %v4616_v34 = vld [vmem:[#allocation5 + $0x1308] sm:$0xff]  ;;  %v4002_v36 = vpack.c.bf16 %v3908_v27, %v3908_v27  ;;  %v4642_v27 = vld [vmem:[#allocation5 + $0x13d8] sm:$0xff] }
 0x85d   :  { %5415 = vmatprep.subr.bf16.mxu0 %v4590_v40  ;;  %v6779_v40 = vpack.c.bf16 %v5561_v35, %v5559_v26  ;;  %v4005_v26 = vpack.c.bf16 %v3920_v24, %v3920_v24  ;;  %v5582_v35 = vld [vmem:[%s10350_s8 + $0x180] sm:$0xff]  ;;  %v4644_v24 = vld [vmem:[#allocation5 + $0x13e8] sm:$0xff] }
 0x85e   :  { %6778 = vmatpush1.bf16.msra.mxu1 %v6777_v3  ;;  %v4615_v3 = vld [vmem:[#allocation5 + $0x1300] sm:$0xff] }
 0x85f   :  { %6780 = vmatprep.subr.bf16.mxu1 %v6779_v40  ;;  %v6803_v40 = vpack.c.bf16 %v5585_v22, %v5583_v20  ;;  %v4647_v22 = vld [vmem:[#allocation5 + $0x1400] sm:$0xff] }
 0x860   :  { %5416 = vmatpush1.bf16.msra.mxu0 %v4589_v48  ;;  %v5558_v48 = vld [vmem:[%s10350_s8 + $0xc0] sm:$0xff] }
 0x861   :  { %5417 = vmatprep.subr.bf16.mxu0 %v4592_v41  ;;  %v5560_v41 = vld [vmem:[%s10350_s8 + $0xd0] sm:$0xff] }
 0x862   :  { %v6781_v60 = vpack.c.bf16 %v5560_v41, %v5558_v48  ;;  %v5587_v48 = vld [vmem:[%s10350_s8 + $0x1a8] sm:$0xff]  ;;  %v5589_v41 = vld [vmem:[%s10350_s8 + $0x1b8] sm:$0xff] }
 0x864   :  { %5418 = vmatpush1.bf16.msra.mxu0 %v4591_v42  ;;  %v4603_v42 = vld [vmem:[#allocation5 + $0x12a0] sm:$0xff]  ;;  %6782 = vmatpush1.bf16.msra.mxu1 %v6781_v60 }
 0x865   :  { %5419 = vmatprep.subr.bf16.mxu0 %v4594_v43  ;;  %v5563_v43 = vld [vmem:[%s10350_s8 + $0xe8] sm:$0xff]  ;;  %v5588_v60 = vld [vmem:[%s10350_s8 + $0x1b0] sm:$0xff] }
 0x868   :  { %5420 = vmatpush1.bf16.msra.mxu0 %v4593_v44  ;;  %v5565_v44 = vld [vmem:[%s10350_s8 + $0xf8] sm:$0xff] }
 0x869   :  { %5421 = vmatprep.subr.bf16.mxu0 %v4596_v29  ;;  %v6783_v39 = vpack.c.bf16 %v5565_v44, %v5563_v43  ;;  %v5568_v29 = vld [vmem:[%s10350_s8 + $0x110] sm:$0xff]  ;;  %v6807_v44 = vpack.c.bf16 %v5589_v41, %v5587_v48  ;;  %v5595_v48 = vld [vmem:[%s10350_s8 + $0x1e8] sm:$0xff] }
 0x86a   :  { %v6789_v4 = vpack.c.bf16 %v5568_v29, %v5566_v25  ;;  %v4624_v25 = vld [vmem:[#allocation5 + $0x1348] sm:$0xff]  ;;  %v4623_v29 = vld [vmem:[#allocation5 + $0x1340] sm:$0xff] }
 0x86b   :  { %6784 = vmatprep.subr.bf16.mxu1 %v6783_v39  ;;  %v4617_v39 = vld [vmem:[#allocation5 + $0x1310] sm:$0xff] }
 0x86c   :  { %5422 = vmatpush1.bf16.msra.mxu0 %v4595_v51  ;;  %6786 = vmatpush1.bf16.msra.mxu1 %v6785_v61  ;;  %v6791_v51 = vpack.c.bf16 %v5573_v10, %v5571_v59  ;;  %v4622_v61 = vld [vmem:[#allocation5 + $0x1338] sm:$0xff]  ;;  %v4625_v59 = vld [vmem:[#allocation5 + $0x1350] sm:$0xff] }
 0x86d   :  { %5423 = vmatprep.subr.bf16.mxu0 %v4598_v55  ;;  %6788 = vmatprep.subr.bf16.mxu1 %v6787_v63  ;;  %v4609_v55 = vld [vmem:[#allocation5 + $0x12d0] sm:$0xff] }
 0x86e   :  { %v4621_v63 = vld [vmem:[#allocation5 + $0x1330] sm:$0xff] }
 0x870   :  { %5424 = vmatpush1.bf16.msra.mxu0 %v4597_v8  ;;  %6790 = vmatpush1.bf16.msra.mxu1 %v6789_v4  ;;  %v6795_v8 = vpack.c.bf16 %v5577_v56, %v5575_v12  ;;  %v4629_v12 = vld [vmem:[#allocation5 + $0x1370] sm:$0xff]  ;;  %v4632_v56 = vld [vmem:[#allocation5 + $0x1388] sm:$0xff] }
 0x871   :  { %5425 = vmatprep.subr.bf16.mxu0 %v4600_v45  ;;  %6792 = vmatprep.subr.bf16.mxu1 %v6791_v51  ;;  %v4611_v45 = vld [vmem:[#allocation5 + $0x12e0] sm:$0xff] }
 0x874   :  { %5426 = vmatpush1.bf16.msra.mxu0 %v4599_v28  ;;  %6794 = vmatpush1.bf16.msra.mxu1 %v6793_v18  ;;  %v6797_v28 = vpack.c.bf16 %v5576_v16, %v5574_v13  ;;  %v4634_v18 = vld [vmem:[#allocation5 + $0x1398] sm:$0xff]  ;;  %v4636_v13 = vld [vmem:[#allocation5 + $0x13a8] sm:$0xff]  ;;  %v4635_v16 = vld [vmem:[#allocation5 + $0x13a0] sm:$0xff] }
 0x875   :  { %5427 = vmatprep.subr.bf16.mxu0 %v4602_v31  ;;  %6796 = vmatprep.subr.bf16.mxu1 %v6795_v8  ;;  %v5578_v31 = vld [vmem:[%s10350_s8 + $0x160] sm:$0xff] }
 0x876   :  { %v4633_v8 = vld [vmem:[#allocation5 + $0x1390] sm:$0xff] }
 0x878   :  { %5428 = vmatpush1.bf16.msra.mxu0 %v4601_v58  ;;  %6798 = vmatpush1.bf16.msra.mxu1 %v6797_v28  ;;  %v6801_v58 = vpack.c.bf16 %v5580_v32, %v5578_v31  ;;  %v4641_v28 = vld [vmem:[#allocation5 + $0x13d0] sm:$0xff]  ;;  %v4646_v31 = vld [vmem:[#allocation5 + $0x13f8] sm:$0xff]  ;;  %v3916_v32 = vrot.slane %v9629_v0, %v9683_v49 }
 0x879   :  { %5429 = vmatprep.subr.bf16.mxu0 %v4604_v57  ;;  %6800 = vmatprep.subr.bf16.mxu1 %v6799_v30  ;;  %v5584_v57 = vld [vmem:[%s10350_s8 + $0x190] sm:$0xff]  ;;  %v4654_v0 = vld [vmem:[#allocation5 + $0x1438] sm:$0xff]  ;;  %v4653_v49 = vld [vmem:[#allocation5 + $0x1430] sm:$0xff] }
 0x87a   :  { %v6805_v43 = vpack.c.bf16 %v5584_v57, %v5582_v35  ;;  %v4643_v30 = vld [vmem:[#allocation5 + $0x13e0] sm:$0xff]  ;;  %v4004_v20 = vpack.c.bf16 %v3916_v32, %v3916_v32  ;;  %v4006_v57 = vpack.c.bf16 %v9631_v5, %v9631_v5  ;;  %v5597_v5 = vld [vmem:[%s10350_s8 + $0x1f8] sm:$0x3] }
 0x87b   :  { %v4651_v35 = vld [vmem:[#allocation5 + $0x1420] sm:$0xff]  ;;  %v6815_v41 = vpack.c.bf16 %v5597_v5, %v5595_v48 }
 0x87c   :  { %5430 = vmatpush1.bf16.msra.mxu0 %v4603_v42  ;;  %v4618_v42 = vld [vmem:[#allocation5 + $0x1318] sm:$0xff]  ;;  %6802 = vmatpush1.bf16.msra.mxu1 %v6801_v58  ;;  %v4649_v58 = vld [vmem:[#allocation5 + $0x1410] sm:$0xff]  ;;  %v5720_v48 = vld [vmem:[%s10352_s10 + $0xd0] sm:$0xff] }
 0x87d   :  { %5431 = vmatprep.subr.bf16.mxu0 %v4606_v37  ;;  %v5586_v37 = vld [vmem:[%s10350_s8 + $0x1a0] sm:$0xff]  ;;  %6804 = vmatprep.subr.bf16.mxu1 %v6803_v40  ;;  %v5723_v5 = vld [vmem:[%s10352_s10 + $0xe8] sm:$0xff] }
 0x87e   :  { %v6809_v62 = vpack.c.bf16 %v5588_v60, %v5586_v37  ;;  %v5695_v37 = vld [vmem:[%s10352_s10 + $0x8] sm:$0xff]  ;;  %v5697_v60 = vld [vmem:[%s10352_s10 + $0x18] sm:$0xff] }
 0x880   :  { %5432 = vmatpush1.bf16.msra.mxu0 %v4605_v6  ;;  %v4620_v6 = vld [vmem:[#allocation5 + $0x1328] sm:$0xff]  ;;  %6806 = vmatpush1.bf16.msra.mxu1 %v6805_v43  ;;  %v5596_v43 = vld [vmem:[%s10350_s8 + $0x1f0] sm:$0x3] }
 0x881   :  { %5433 = vmatprep.subr.bf16.mxu0 %v4608_v53  ;;  %6808 = vmatprep.subr.bf16.mxu1 %v6807_v44  ;;  %v4619_v53 = vld [vmem:[#allocation5 + $0x1320] sm:$0xff] }
 0x884   :  { %5434 = vmatpush1.bf16.msra.mxu0 %v4607_v21  ;;  %6810 = vmatpush1.bf16.msra.mxu1 %v6809_v62  ;;  %v4626_v21 = vld [vmem:[#allocation5 + $0x1358] sm:$0xff] }
 0x885   :  { %5435 = vmatprep.subr.bf16.mxu0 %v4610_v9  ;;  %6812 = vmatprep.subr.bf16.mxu1 %v6811_v50  ;;  %v4628_v9 = vld [vmem:[#allocation5 + $0x1368] sm:$0xff] }
 0x888   :  { %5436 = vmatpush1.bf16.msra.mxu0 %v4609_v55  ;;  %v4630_v55 = vld [vmem:[#allocation5 + $0x1378] sm:$0xff] }
 0x889   :  { %5437 = vmatprep.subr.bf16.mxu0 %v4612_v52  ;;  %v4631_v52 = vld [vmem:[#allocation5 + $0x1380] sm:$0xff] }
 0x88c   :  { %5438 = vmatpush1.bf16.msra.mxu0 %v4611_v45  ;;  %v4638_v45 = vld [vmem:[#allocation5 + $0x13b8] sm:$0xff] }
 0x88d   :  { %5439 = vmatprep.subr.bf16.mxu0 %v4614_v15  ;;  %v4639_v15 = vld [vmem:[#allocation5 + $0x13c0] sm:$0xff] }
 0x890   :  { %5440 = vmatpush1.bf16.msra.mxu0 %v4613_v33  ;;  %v4645_v33 = vld [vmem:[#allocation5 + $0x13f0] sm:$0xff] }
 0x891   :  { %5450 = vmatprep.subr.bf16.mxu0 %v4616_v34  ;;  %v4648_v34 = vld [vmem:[#allocation5 + $0x1408] sm:$0xff] }
 0x893   :  { %5442 = vmatmul.mubr.bf16.vlgmr.msra.gmra.mrb[4].mxu0 %v4002_v36  ;;  %v4650_v36 = vld [vmem:[#allocation5 + $0x1418] sm:$0xff] }
 0x894   :  { %5451 = vmatpush1.bf16.msra.mxu0 %v4615_v3  ;;  %5482 = vmatprep.mubr.bf16.mxu0 %v4005_v26  ;;  %v4652_v26 = vld [vmem:[#allocation5 + $0x1428] sm:$0xff] }
 0x895   :  { %5452 = vmatprep.subr.bf16.mxu0 %v4618_v42  ;;  %v5592_v3 = vld [vmem:[%s10350_s8 + $0x1d0] sm:$0xff]  ;;  %v5594_v42 = vld [vmem:[%s10350_s8 + $0x1e0] sm:$0xff] }
 0x896   :  { %v6818_v44 = vpack.c.bf16 %v5596_v43, %v5594_v42 }
 0x898   :  { %5453 = vmatpush1.bf16.msra.mxu0 %v4617_v39  ;;  %v6821_v39 = vpack.c.bf16 %v5697_v60, %v5695_v37  ;;  %v5724_v37 = vld [vmem:[%s10352_s10 + $0xf0] sm:$0xff]  ;;  %v5727_v60 = vld [vmem:[%s10352_s10 + $0x108] sm:$0xff] }
 0x899   :  { %5454 = vmatprep.subr.bf16.mxu0 %v4620_v6  ;;  %v4664_v6 = vrot.slane %v4655_v46, %v9634_v7 }
 0x89c   :  { %5455 = vmatpush1.bf16.msra.mxu0 %v4619_v53 }
 0x89d   :  { %5456 = vmatprep.subr.bf16.mxu0 %v4622_v61 }
 0x8a0   :  { %5457 = vmatpush1.bf16.msra.mxu0 %v4621_v63 }
 0x8a1   :  { %5458 = vmatprep.subr.bf16.mxu0 %v4624_v25  ;;  %v5694_v25 = vld [vmem:[%s10352_s10] sm:$0xff] }
 0x8a4   :  { %5459 = vmatpush1.bf16.msra.mxu0 %v4623_v29  ;;  %v5696_v29 = vld [vmem:[%s10352_s10 + $0x10] sm:$0xff] }
 0x8a5   :  { %5460 = vmatprep.subr.bf16.mxu0 %v4626_v21 }
 0x8a6   :  { %v9909_v10 = vpop.f32.mrb[12].mxu1 }
 0x8a7   :  { %v9911_v4 = vpop.f32.mrb[13].mxu1  ;;  %v6948_v62 = vadd.f32 %v9909_v10, %v4660_v47  ;;  %v5701_v10 = vld [vmem:[%s10352_s10 + $0x38] sm:$0xff] }
 0x8a8   :  { %v4996_v51 = vpop.f32.mrb[14].mxu1  ;;  %5461 = vmatpush1.bf16.msra.mxu0 %v4625_v59  ;;  %v6950_v50 = vadd.f32 %v9911_v4, %v4664_v6  ;;  %v5726_v6 = vld [vmem:[%s10352_s10 + $0x100] sm:$0xff] }
 0x8a9   :  { %v4997_v38 = vpop.f32.mrb[15].mxu1  ;;  %5462 = vmatprep.subr.bf16.mxu0 %v4628_v9  ;;  %v5699_v9 = vld [vmem:[%s10352_s10 + $0x28] sm:$0xff] }
 0x8aa   :  { %v6823_v38 = vpack.c.bf16 %v5696_v29, %v5694_v25  ;;  %v5730_v25 = vld [vmem:[%s10352_s10 + $0x120] sm:$0xff]  ;;  %v5732_v29 = vld [vmem:[%s10352_s10 + $0x130] sm:$0xff] }
 0x8ac   :  { %5463 = vmatpush1.bf16.msra.mxu0 %v4627_v11 }
 0x8ad   :  { %5464 = vmatprep.subr.bf16.mxu0 %v4630_v55  ;;  %v6825_v55 = vpack.c.bf16 %v5701_v10, %v5699_v9  ;;  %v6859_v9 = vpack.c.bf16 %v5732_v29, %v5730_v25  ;;  %v5894_v25 = vld [vmem:[%s10354_s12 + $0xa0] sm:$0xff]  ;;  %v5896_v29 = vld [vmem:[%s10354_s12 + $0xb0] sm:$0xff] }
 0x8b0   :  { %5465 = vmatpush1.bf16.msra.mxu0 %v4629_v12  ;;  %v5698_v12 = vld [vmem:[%s10352_s10 + $0x20] sm:$0xff] }
 0x8b1   :  { %5466 = vmatprep.subr.bf16.mxu0 %v4632_v56  ;;  %v5700_v56 = vld [vmem:[%s10352_s10 + $0x30] sm:$0xff] }
 0x8b4   :  { %5467 = vmatpush1.bf16.msra.mxu0 %v4631_v52  ;;  %v5703_v52 = vld [vmem:[%s10352_s10 + $0x48] sm:$0xff] }
 0x8b5   :  { %5468 = vmatprep.subr.bf16.mxu0 %v4634_v18  ;;  %v5705_v18 = vld [vmem:[%s10352_s10 + $0x58] sm:$0xff] }
 0x8b8   :  { %5469 = vmatpush1.bf16.msra.mxu0 %v4633_v8  ;;  %v6827_v8 = vpack.c.bf16 %v5700_v56, %v5698_v12  ;;  %v5738_v56 = vld [vmem:[%s10352_s10 + $0x160] sm:$0xff] }
 0x8b9   :  { %5470 = vmatprep.subr.bf16.mxu0 %v4636_v13  ;;  %v6829_v13 = vpack.c.bf16 %v5705_v18, %v5703_v52  ;;  %v5740_v52 = vld [vmem:[%s10352_s10 + $0x170] sm:$0xff] }
 0x8ba   :  { %v6867_v18 = vpack.c.bf16 %v5740_v52, %v5738_v56  ;;  %v5902_v56 = vld [vmem:[%s10354_s12 + $0xe0] sm:$0xff]  ;;  %v5904_v52 = vld [vmem:[%s10354_s12 + $0xf0] sm:$0xff] }
 0x8bc   :  { %5471 = vmatpush1.bf16.msra.mxu0 %v4635_v16  ;;  %v5702_v16 = vld [vmem:[%s10352_s10 + $0x40] sm:$0xff] }
 0x8bd   :  { %5472 = vmatprep.subr.bf16.mxu0 %v4638_v45  ;;  %v5704_v45 = vld [vmem:[%s10352_s10 + $0x50] sm:$0xff] }
 0x8c0   :  { %5473 = vmatpush1.bf16.msra.mxu0 %v4637_v17  ;;  %v5707_v17 = vld [vmem:[%s10352_s10 + $0x68] sm:$0xff] }
 0x8c1   :  { %5474 = vmatprep.subr.bf16.mxu0 %v4640_v19  ;;  %v5709_v19 = vld [vmem:[%s10352_s10 + $0x78] sm:$0xff] }
 0x8c4   :  { %5475 = vmatpush1.bf16.msra.mxu0 %v4639_v15  ;;  %v6831_v15 = vpack.c.bf16 %v5704_v45, %v5702_v16  ;;  %v5877_v16 = vld [vmem:[%s10354_s12 + $0x18] sm:$0xff]  ;;  %v5742_v45 = vld [vmem:[%s10352_s10 + $0x180] sm:$0xff] }
 0x8c5   :  { %5476 = vmatprep.subr.bf16.mxu0 %v4642_v27  ;;  %v6833_v27 = vpack.c.bf16 %v5709_v19, %v5707_v17  ;;  %v5598_v19 = vld [vmem:[#allocation13] sm:$0x3] }
 0x8c8   :  { %5477 = vmatpush1.bf16.msra.mxu0 %v4641_v28  ;;  %v5706_v28 = vld [vmem:[%s10352_s10 + $0x60] sm:$0xff] }
 0x8c9   :  { %5478 = vmatprep.subr.bf16.mxu0 %v4644_v24  ;;  %v5708_v24 = vld [vmem:[%s10352_s10 + $0x70] sm:$0xff] }
 0x8ca   :  { %v6835_v32 = vpack.c.bf16 %v5708_v24, %v5706_v28 }
 0x8cc   :  { %5479 = vmatpush1.bf16.msra.mxu0 %v4643_v30  ;;  %v5711_v30 = vld [vmem:[%s10352_s10 + $0x88] sm:$0xff] }
 0x8cd   :  { %5480 = vmatprep.subr.bf16.mxu0 %v4646_v31  ;;  %v5713_v31 = vld [vmem:[%s10352_s10 + $0x98] sm:$0xff] }
 0x8d0   :  { %5481 = vmatpush1.bf16.msra.mxu0 %v4645_v33  ;;  %v6837_v33 = vpack.c.bf16 %v5713_v31, %v5711_v30  ;;  %v5874_v31 = vld [vmem:[%s10354_s12] sm:$0xff] }
 0x8d1   :  { %5491 = vmatprep.subr.bf16.mxu0 %v4648_v34  ;;  %v5710_v34 = vld [vmem:[%s10352_s10 + $0x80] sm:$0xff] }
 0x8d3   :  { %5483 = vmatmul.mubr.bf16.vlgmr.msra.gmra.mrb[4].mxu0 %v4004_v20  ;;  %v5712_v20 = vld [vmem:[%s10352_s10 + $0x90] sm:$0xff] }
 0x8d4   :  { %5492 = vmatpush1.bf16.msra.mxu0 %v4647_v22  ;;  %5523 = vmatprep.mubr.bf16.mxu0 %v7506_v23  ;;  %v5590_v23 = vld [vmem:[%s10350_s8 + $0x1c0] sm:$0xff]  ;;  %v5715_v22 = vld [vmem:[%s10352_s10 + $0xa8] sm:$0xff] }
 0x8d5   :  { %5493 = vmatprep.subr.bf16.mxu0 %v4650_v36  ;;  %v6813_v40 = vpack.c.bf16 %v5592_v3, %v5590_v23  ;;  %v5717_v36 = vld [vmem:[%s10352_s10 + $0xb8] sm:$0xff] }
 0x8d7   :  { %6814 = vmatpush1.bf16.msra.mxu1 %v6813_v40  ;;  %v5718_v40 = vld [vmem:[%s10352_s10 + $0xc0] sm:$0xff] }
 0x8d8   :  { %5494 = vmatpush1.bf16.msra.mxu0 %v4649_v58  ;;  %6817 = vmatprep.subr.msk.bf16.mxu1 %vm6816_vm5, %v6815_v41  ;;  %v6839_v58 = vpack.c.bf16 %v5712_v20, %v5710_v34  ;;  %v5725_v41 = vld [vmem:[%s10352_s10 + $0xf8] sm:$0xff]  ;;  %v6847_v42 = vpack.c.bf16 %v5720_v48, %v5718_v40  ;;  %v5879_v34 = vld [vmem:[%s10354_s12 + $0x28] sm:$0xff]  ;;  %v5882_v40 = vld [vmem:[%s10354_s12 + $0x40] sm:$0xff] }
 0x8d9   :  { %5495 = vmatprep.subr.bf16.mxu0 %v4652_v26  ;;  %v6841_v26 = vpack.c.bf16 %v5717_v36, %v5715_v22  ;;  %v6849_v43 = vpack.c.bf16 %v5725_v41, %v5723_v5  ;;  %v5881_v20 = vld [vmem:[%s10354_s12 + $0x38] sm:$0xff]  ;;  %v5884_v48 = vld [vmem:[%s10354_s12 + $0x50] sm:$0xff]  ;;  %v5887_v5 = vld [vmem:[%s10354_s12 + $0x68] sm:$0xff] }
 0x8da   :  { %v5889_v41 = vld [vmem:[%s10354_s12 + $0x78] sm:$0xff] }
 0x8db   :  { %6820 = vmatpush1.bf16.msk.msra.mxu1 %vm6816_vm5, %v6818_v44  ;;  %v5722_v44 = vld [vmem:[%s10352_s10 + $0xe0] sm:$0xff] }
 0x8dc   :  { %5496 = vmatpush1.bf16.msra.mxu0 %v4651_v35  ;;  %6822 = vmatprep.subr.bf16.mxu1 %v6821_v39  ;;  %v5714_v35 = vld [vmem:[%s10352_s10 + $0xa0] sm:$0xff]  ;;  %v5729_v39 = vld [vmem:[%s10352_s10 + $0x118] sm:$0xff]  ;;  %v6851_v46 = vpack.c.bf16 %v5724_v37, %v5722_v44  ;;  %v5888_v37 = vld [vmem:[%s10354_s12 + $0x70] sm:$0xff] }
 0x8dd   :  { %5497 = vmatprep.subr.bf16.mxu0 %v4654_v0  ;;  %v5716_v0 = vld [vmem:[%s10352_s10 + $0xb0] sm:$0xff]  ;;  %v6853_v47 = vpack.c.bf16 %v5729_v39, %v5727_v60  ;;  %v5886_v44 = vld [vmem:[%s10354_s12 + $0x60] sm:$0xff]  ;;  %v5891_v60 = vld [vmem:[%s10354_s12 + $0x88] sm:$0xff] }
 0x8de   :  { %v6843_v23 = vpack.c.bf16 %v5716_v0, %v5714_v35  ;;  %v5878_v35 = vld [vmem:[%s10354_s12 + $0x20] sm:$0xff]  ;;  %v5880_v0 = vld [vmem:[%s10354_s12 + $0x30] sm:$0xff]  ;;  %v5893_v39 = vld [vmem:[%s10354_s12 + $0x98] sm:$0xff] }
 0x8e0   :  { %5498 = vmatpush1.bf16.msra.mxu0 %v4653_v49  ;;  %v5719_v49 = vld [vmem:[%s10352_s10 + $0xc8] sm:$0xff] }
 0x8e3   :  { %6269 = vmatmul.mubr.msk.bf16.vlgmr.msra.gmra.mrb[4].mxu0 %vm4667_vm11, %v4006_v57  ;;  %v5721_v57 = vld [vmem:[%s10352_s10 + $0xd8] sm:$0xff] }
 0x8e4   :  { %v6845_v3 = vpack.c.bf16 %v5721_v57, %v5719_v49  ;;  %v5883_v49 = vld [vmem:[%s10354_s12 + $0x48] sm:$0xff]  ;;  %v5885_v57 = vld [vmem:[%s10354_s12 + $0x58] sm:$0xff] }
 0x9b6   :  { %v5525_v53 = vpop.f32.mrb[4].mxu0 }
 0x9b7   :  { %v6949_v61 = vadd.f32 %v6948_v62, %v5525_v53  ;;  %v5527_v63 = vpop.f32.mrb[5].mxu0  ;;  %v5728_v62 = vld [vmem:[%s10352_s10 + $0x110] sm:$0xff]  ;;  %v5733_v53 = vld [vmem:[%s10352_s10 + $0x138] sm:$0xff] }
 0x9b8   :  { %v6951_v21 = vadd.f32 %v6950_v50, %v5527_v63  ;;  %v5529_v59 = vpop.f32.mrb[6].mxu0  ;;  %v5731_v50 = vld [vmem:[%s10352_s10 + $0x128] sm:$0xff] }
 0x9b9   :  { %v5530_v4 = vpop.f32.mrb[7].mxu0  ;;  %v5532_v11 = vmax.f32 %v6949_v61, 0.0  ;;  %v6855_v61 = vpack.c.bf16 %v5728_v62, %v5726_v6  ;;  %v6857_v63 = vpack.c.bf16 %v5733_v53, %v5731_v50  ;;  %v5737_v59 = vld [vmem:[%s10352_s10 + $0x158] sm:$0xff]  ;;  %v5890_v6 = vld [vmem:[%s10354_s12 + $0x80] sm:$0xff]  ;;  %v5892_v62 = vld [vmem:[%s10354_s12 + $0x90] sm:$0xff] }
 0x9ba   :  { %v5533_v51 = vmax.f32 %v6951_v21, 0.0  ;;  %v5735_v21 = vld [vmem:[%s10352_s10 + $0x148] sm:$0xff]  ;;  %v5734_v4 = vld [vmem:[%s10352_s10 + $0x140] sm:$0xff]  ;;  %v5897_v53 = vld [vmem:[%s10354_s12 + $0xb8] sm:$0xff] }
 0x9bb   :  { %v6861_v10 = vpack.c.bf16 %v5737_v59, %v5735_v21  ;;  %v5895_v50 = vld [vmem:[%s10354_s12 + $0xa8] sm:$0xff]  ;;  %v5901_v59 = vld [vmem:[%s10354_s12 + $0xd8] sm:$0xff] }
 0x9bc   :  { %6272 = vmatprep.mubr.msk.f32.mxu1 %vm5610_vm12, %v5533_v51  ;;  %v5736_v51 = vld [vmem:[%s10352_s10 + $0x150] sm:$0xff]  ;;  %v5899_v21 = vld [vmem:[%s10354_s12 + $0xc8] sm:$0xff] }
 0x9bd   :  { %5686 = vmatmul.mubr.f32.vlgmr.msra.gmra.mrb[16].mxu1 %v5532_v11  ;;  %v5739_v11 = vld [vmem:[%s10352_s10 + $0x168] sm:$0xff] }
 0x9be   :  { %6824 = vmatpush1.bf16.msra.mxu1 %v6823_v38  ;;  %v6863_v38 = vpack.c.bf16 %v5736_v51, %v5734_v4  ;;  %v5898_v4 = vld [vmem:[%s10354_s12 + $0xc0] sm:$0xff]  ;;  %v5900_v51 = vld [vmem:[%s10354_s12 + $0xd0] sm:$0xff] }
 0x9bf   :  { %6826 = vmatprep.subr.bf16.mxu1 %v6825_v55  ;;  %v5741_v55 = vld [vmem:[%s10352_s10 + $0x178] sm:$0xff] }
 0x9c0   :  { %v6865_v12 = vpack.c.bf16 %v5741_v55, %v5739_v11  ;;  %v5905_v11 = vld [vmem:[%s10354_s12 + $0xf8] sm:$0xff]  ;;  %v6895_v55 = vpack.c.bf16 %v5900_v51, %v5898_v4  ;;  %v6025_v51 = vld [vmem:[%s10356_s14 + $0x80] sm:$0xff] }
 0x9c2   :  { %6828 = vmatpush1.bf16.msra.mxu1 %v6827_v8  ;;  %v5743_v8 = vld [vmem:[%s10352_s10 + $0x188] sm:$0xff] }
 0x9c3   :  { %6830 = vmatprep.subr.bf16.mxu1 %v6829_v13  ;;  %v5875_v13 = vld [vmem:[%s10354_s12 + $0x8] sm:$0xff] }
 0x9c4   :  { %v6869_v17 = vpack.c.bf16 %v5877_v16, %v5875_v13  ;;  %v6899_v13 = vpack.c.bf16 %v5904_v52, %v5902_v56 }
 0x9c6   :  { %6832 = vmatpush1.bf16.msra.mxu1 %v6831_v15  ;;  %v5603_v15 = vrot.slane %v5598_v19, %v9641_v14 }
 0x9c7   :  { %6834 = vmatprep.subr.bf16.mxu1 %v6833_v27  ;;  %v5607_v27 = vrot.slane %v5598_v19, %v9634_v7  ;;  %v5911_v19 = vld [vmem:[%s10354_s12 + $0x128] sm:$0xff] }
 0x9ca   :  { %6836 = vmatpush1.bf16.msra.mxu1 %v6835_v32  ;;  %v5876_v32 = vld [vmem:[%s10354_s12 + $0x10] sm:$0xff] }
 0x9cb   :  { %6838 = vmatprep.subr.bf16.mxu1 %v6837_v33  ;;  %v6871_v36 = vpack.c.bf16 %v5876_v32, %v5874_v31  ;;  %v5912_v31 = vld [vmem:[%s10354_s12 + $0x130] sm:$0xff]  ;;  %v5915_v32 = vld [vmem:[%s10354_s12 + $0x148] sm:$0xff] }
 0x9ce   :  { %6840 = vmatpush1.bf16.msra.mxu1 %v6839_v58 }
 0x9cf   :  { %6842 = vmatprep.subr.bf16.mxu1 %v6841_v26  ;;  %v6873_v26 = vpack.c.bf16 %v5881_v20, %v5879_v34 }
 0x9d2   :  { %6844 = vmatpush1.bf16.msra.mxu1 %v6843_v23  ;;  %v6875_v23 = vpack.c.bf16 %v5880_v0, %v5878_v35  ;;  %v5921_v35 = vld [vmem:[%s10354_s12 + $0x178] sm:$0xff] }
 0x9d3   :  { %6846 = vmatprep.subr.bf16.mxu1 %v6845_v3  ;;  %v6877_v3 = vpack.c.bf16 %v5885_v57, %v5883_v49  ;;  %v5918_v57 = vld [vmem:[%s10354_s12 + $0x160] sm:$0xff] }
 0x9d6   :  { %6848 = vmatpush1.bf16.msra.mxu1 %v6847_v42  ;;  %v6879_v42 = vpack.c.bf16 %v5884_v48, %v5882_v40  ;;  %v5923_v40 = vld [vmem:[%s10354_s12 + $0x188] sm:$0xff]  ;;  %v5922_v48 = vld [vmem:[%s10354_s12 + $0x180] sm:$0xff] }
 0x9d7   :  { %6850 = vmatprep.subr.bf16.mxu1 %v6849_v43  ;;  %v6881_v43 = vpack.c.bf16 %v5889_v41, %v5887_v5  ;;  %v6009_v5 = vld [vmem:[%s10356_s14] sm:$0xff]  ;;  %v6010_v41 = vld [vmem:[%s10356_s14 + $0x8] sm:$0xff] }
 0x9da   :  { %6852 = vmatpush1.bf16.msra.mxu1 %v6851_v46  ;;  %v6883_v46 = vpack.c.bf16 %v5888_v37, %v5886_v44  ;;  %v6918_v44 = vpack.c.bf16 %v6010_v41, %v6009_v5  ;;  %v6013_v37 = vld [vmem:[%s10356_s14 + $0x20] sm:$0xff] }
 0x9db   :  { %6854 = vmatprep.subr.bf16.mxu1 %v6853_v47  ;;  %v6885_v47 = vpack.c.bf16 %v5893_v39, %v5891_v60  ;;  %v6014_v60 = vld [vmem:[%s10356_s14 + $0x28] sm:$0xff] }
 0x9dc   :  { %v6924_v39 = vpack.c.bf16 %v6014_v60, %v6013_v37 }
 0x9de   :  { %6856 = vmatpush1.bf16.msra.mxu1 %v6855_v61  ;;  %v6887_v61 = vpack.c.bf16 %v5892_v62, %v5890_v6  ;;  %v6017_v62 = vld [vmem:[%s10356_s14 + $0x40] sm:$0xff] }
 0x9df   :  { %6858 = vmatprep.subr.bf16.mxu1 %v6857_v63  ;;  %v6889_v63 = vpack.c.bf16 %v5897_v53, %v5895_v50  ;;  %v6018_v50 = vld [vmem:[%s10356_s14 + $0x48] sm:$0xff] }
 0x9e0   :  { %v6930_v53 = vpack.c.bf16 %v6018_v50, %v6017_v62 }
 0x9e2   :  { %6860 = vmatpush1.bf16.msra.mxu1 %v6859_v9  ;;  %v6891_v9 = vpack.c.bf16 %v5896_v29, %v5894_v25  ;;  %v6021_v29 = vld [vmem:[%s10356_s14 + $0x60] sm:$0xff] }
 0x9e3   :  { %6862 = vmatprep.subr.bf16.mxu1 %v6861_v10  ;;  %v6893_v10 = vpack.c.bf16 %v5901_v59, %v5899_v21  ;;  %v6022_v21 = vld [vmem:[%s10356_s14 + $0x68] sm:$0xff] }
 0x9e4   :  { %v6936_v59 = vpack.c.bf16 %v6022_v21, %v6021_v29 }
 0x9e6   :  { %6864 = vmatpush1.bf16.msra.mxu1 %v6863_v38  ;;  %v5903_v38 = vld [vmem:[%s10354_s12 + $0xe8] sm:$0xff] }
 0x9e7   :  { %6866 = vmatprep.subr.bf16.mxu1 %v6865_v12  ;;  %v6897_v12 = vpack.c.bf16 %v5905_v11, %v5903_v38  ;;  %v6026_v38 = vld [vmem:[%s10356_s14 + $0x88] sm:$0xff] }
 0x9e8   :  { %v6942_v11 = vpack.c.bf16 %v6026_v38, %v6025_v51 }
 0x9ea   :  { %6868 = vmatpush1.bf16.msra.mxu1 %v6867_v18  ;;  %v5907_v18 = vld [vmem:[%s10354_s12 + $0x108] sm:$0xff] }
 0x9eb   :  { %5808 = vmatprep.subr.mxu1 %v5743_v8  ;;  %v5909_v8 = vld [vmem:[%s10354_s12 + $0x118] sm:$0xff] }
 0x9ec   :  { %v6901_v16 = vpack.c.bf16 %v5909_v8, %v5907_v18 }
 0x9ee   :  { %5809 = vmatpush1.msra.mxu1 %v5742_v45  ;;  %v5906_v45 = vld [vmem:[%s10354_s12 + $0x100] sm:$0xff] }
 0x9ef   :  { %6870 = vmatprep.subr.bf16.mxu1 %v6869_v17  ;;  %v5908_v17 = vld [vmem:[%s10354_s12 + $0x110] sm:$0xff] }
 0xa90   :  { %v5687_v28 = vpop.f32.mrb[16].mxu1 }
 0xa91   :  { %v10098_v24 = vadd.f32 %v5687_v28, %v5603_v15  ;;  %v5689_v30 = vpop.f32.mrb[17].mxu1  ;;  %v5913_v15 = vld [vmem:[%s10354_s12 + $0x138] sm:$0xff] }
 0xa92   :  { %v5690_v33 = vadd.f32 %v5689_v30, %v5607_v27  ;;  %v6903_v27 = vpack.c.bf16 %v5908_v17, %v5906_v45  ;;  %v6905_v28 = vpack.c.bf16 %v5913_v15, %v5911_v19  ;;  %v5910_v30 = vld [vmem:[%s10354_s12 + $0x120] sm:$0xff]  ;;  %v5924_v19 = vld [vmem:[#allocation16] sm:$0x3] }
 0xa93   :  { %v5692_v58 = vmax.f32 %v10098_v24, 0.0  ;;  %v6907_v34 = vpack.c.bf16 %v5912_v31, %v5910_v30  ;;  %v6012_v24 = vld [vmem:[%s10356_s14 + $0x18] sm:$0xff]  ;;  %v5929_v15 = vrot.slane %v5924_v19, %v9641_v14 }
 0xa94   :  { %v5693_v22 = vmax.f32 %v5690_v33, 0.0  ;;  %v5917_v33 = vld [vmem:[%s10354_s12 + $0x158] sm:$0xff] }
 0xa95   :  { %v6909_v20 = vpack.c.bf16 %v5917_v33, %v5915_v32 }
 0xa96   :  { %6273 = vmatprep.mubr.msk.f32.mxu1 %vm5756_vm7, %v5693_v22 }
 0xa97   :  { %5825 = vmatmul.mubr.f32.vlgmr.msra.gmra.mrb[18].mxu1 %v5692_v58 }
 0xa98   :  { %6872 = vmatpush1.bf16.msra.mxu1 %v6871_v36  ;;  %6274 = vmatprep.mubr.msk.f32.mxu1 %vm5756_vm7, %v5693_v22  ;;  %v5914_v22 = vld [vmem:[%s10354_s12 + $0x140] sm:$0xff]  ;;  %v5916_v36 = vld [vmem:[%s10354_s12 + $0x150] sm:$0xff] }
 0xa99   :  { %6874 = vmatprep.subr.bf16.mxu1 %v6873_v26  ;;  %v5919_v26 = vld [vmem:[%s10354_s12 + $0x168] sm:$0xff]  ;;  %v6911_v0 = vpack.c.bf16 %v5916_v36, %v5914_v22 }
 0xa9a   :  { %v6913_v49 = vpack.c.bf16 %v5921_v35, %v5919_v26 }
 0xa9c   :  { %6876 = vmatpush1.bf16.msra.mxu1 %v6875_v23  ;;  %v5920_v23 = vld [vmem:[%s10354_s12 + $0x170] sm:$0xff] }
 0xa9d   :  { %6878 = vmatprep.subr.bf16.mxu1 %v6877_v3  ;;  %v6915_v3 = vpack.c.bf16 %v5920_v23, %v5918_v57  ;;  %v6028_v23 = vld [vmem:[#allocation7] sm:$0x1] }
 0xaa0   :  { %6880 = vmatpush1.bf16.msra.mxu1 %v6879_v42  ;;  %v6011_v42 = vld [vmem:[%s10356_s14 + $0x10] sm:$0xff] }
 0xaa1   :  { %6882 = vmatprep.subr.bf16.mxu1 %v6881_v43  ;;  %v7563_v43 = vmov 0.0|0.0  }
 0xaa4   :  { %6884 = vmatpush1.bf16.msra.mxu1 %v6883_v46  ;;  %v6015_v46 = vld [vmem:[%s10356_s14 + $0x30] sm:$0xff] }
 0xaa5   :  { %6886 = vmatprep.subr.bf16.mxu1 %v6885_v47  ;;  %v6016_v47 = vld [vmem:[%s10356_s14 + $0x38] sm:$0xff] }
 0xaa6   :  { %v6927_v6 = vpack.c.bf16 %v6016_v47, %v6015_v46 }
 0xaa8   :  { %6888 = vmatpush1.bf16.msra.mxu1 %v6887_v61  ;;  %v6019_v61 = vld [vmem:[%s10356_s14 + $0x50] sm:$0xff] }
 0xaa9   :  { %6890 = vmatprep.subr.bf16.mxu1 %v6889_v63  ;;  %v6020_v63 = vld [vmem:[%s10356_s14 + $0x58] sm:$0xff] }
 0xaaa   :  { %v6933_v25 = vpack.c.bf16 %v6020_v63, %v6019_v61 }
 0xaac   :  { %6892 = vmatpush1.bf16.msra.mxu1 %v6891_v9  ;;  %v6023_v9 = vld [vmem:[%s10356_s14 + $0x70] sm:$0xff] }
 0xaad   :  { %6894 = vmatprep.subr.bf16.mxu1 %v6893_v10  ;;  %v6024_v10 = vld [vmem:[%s10356_s14 + $0x78] sm:$0xff] }
 0xaae   :  { %v6939_v4 = vpack.c.bf16 %v6024_v10, %v6023_v9 }
 0xab0   :  { %6896 = vmatpush1.bf16.msra.mxu1 %v6895_v55  ;;  %v6027_v55 = vld [vmem:[%s10356_s14 + $0x90] sm:$0x3f]  ;;  %s7564_s14 = smov [#allocation18]  }
 0xab1   :  { %6898 = vmatprep.subr.bf16.mxu1 %v6897_v12  ;;  %v5744_v12 = vld [vmem:[#allocation14] sm:$0x3]  ;;  %s6126_s0 = sshll.u32 %s7564_s14, 4  ;;  %s6127_s0 = int_to_ptr.vmem [resolvable:$true] %s6126_s0 }
 0xab2   :  { %v5749_v56 = vrot.slane %v5744_v12, %v9641_v14  ;;  %v5753_v52 = vrot.slane %v5744_v12, %v9634_v7  ;;  %s7420_s29 = scalar_lea.vmem %s6127_s0, 16  ;;  %s7424_s24 = scalar_lea.vmem %s6127_s0, 32 }
 0xab3   :  { %p7421_p12 = scmp.ne.s32.totalorder %s6127_s0, %s7420_s29  ;;  %p7425_p13 = scmp.lt.s32.totalorder %s6127_s0, %s6127_s0 }
 0xab4   :  { %6900 = vmatpush1.bf16.msra.mxu1 %v6899_v13  ;;  %p7426_p0 = scmp.lt.s32.totalorder %s7424_s24, %s7420_s29 }
 0xab5   :  { %6902 = vmatprep.subr.bf16.mxu1 %v6901_v16 }
 0xab6   :  { %p7427_p1 = por %p7426_p0, %p7425_p13 }
 0xab8   :  { %6904 = vmatpush1.bf16.msra.mxu1 %v6903_v27  ;;  %v5933_v27 = vrot.slane %v5924_v19, %v9634_v7  ;;  %p7428_p2 = pnand %p7427_p1, %p7421_p12 }
 0xab9   :  { %6906 = vmatprep.subr.bf16.mxu1 %v6905_v28 }
 0xabc   :  { %6908 = vmatpush1.bf16.msra.mxu1 %v6907_v34 }
 0xabd   :  { %6910 = vmatprep.subr.bf16.mxu1 %v6909_v20 }
 0xac0   :  { %6912 = vmatpush1.bf16.msra.mxu1 %v6911_v0 }
 0xac1   :  { %6914 = vmatprep.subr.bf16.mxu1 %v6913_v49 }
 0xac4   :  { %6916 = vmatpush1.bf16.msra.mxu1 %v6915_v3 }
 0xac5   :  { %5984 = vmatprep.subr.mxu1 %v5923_v40 }
 0xac8   :  { %5985 = vmatpush1.msra.mxu1 %v5922_v48 }
 0xac9   :  { %6001 = vmatmul.mubr.f32.vlgmr.msra.gmra.mrb[20].mxu1 %v5692_v58  ;;  %6917 = vmatprep.subr.bf16.mxu1 %v7563_v43  ;;  %v6921_v58 = vpack.c.bf16 %v6012_v24, %v6011_v42 }
 0xaca   :  { %6919 = vmatpush1.bf16.msra.mxu1 %v6918_v44 }
 0xacb   :  { %6920 = vmatprep.subr.bf16.mxu1 %v7563_v43 }
 0xace   :  { %6922 = vmatpush1.bf16.msra.mxu1 %v6921_v58 }
 0xacf   :  { %6923 = vmatprep.subr.bf16.mxu1 %v7563_v43 }
 0xad2   :  { %6925 = vmatpush1.bf16.msra.mxu1 %v6924_v39 }
 0xad3   :  { %6926 = vmatprep.subr.bf16.mxu1 %v7563_v43 }
 0xad6   :  { %6928 = vmatpush1.bf16.msra.mxu1 %v6927_v6 }
 0xad7   :  { %6929 = vmatprep.subr.bf16.mxu1 %v7563_v43 }
 0xada   :  { %6931 = vmatpush1.bf16.msra.mxu1 %v6930_v53 }
 0xadb   :  { %6932 = vmatprep.subr.bf16.mxu1 %v7563_v43 }
 0xade   :  { %6934 = vmatpush1.bf16.msra.mxu1 %v6933_v25 }
 0xadf   :  { %6935 = vmatprep.subr.bf16.mxu1 %v7563_v43 }
 0xae2   :  { %6937 = vmatpush1.bf16.msra.mxu1 %v6936_v59 }
 0xae3   :  { %6938 = vmatprep.subr.bf16.mxu1 %v7563_v43 }
 0xae6   :  { %6940 = vmatpush1.bf16.msra.mxu1 %v6939_v4 }
 0xae7   :  { %6941 = vmatprep.subr.bf16.mxu1 %v7563_v43 }
 0xaea   :  { %6943 = vmatpush1.bf16.msra.mxu1 %v6942_v11 }
 0xaeb   :  { %6073 = vmatprep.subr.mxu1 %v7489_v1 }
 0xaee   :  { %6275 = vmatpush1.msk.msra.mxu1 %vm6033_vm8, %v6027_v55 }
 0xb6a   :  { %v5826_v18 = vpop.f32.mrb[18].mxu1 }
 0xb6b   :  { %v5827_v8 = vadd.f32 %v5826_v18, %v5749_v56  ;;  %v5828_v13 = vpop.f32.mrb[19].mxu1 }
 0xb6c   :  { %v5829_v16 = vadd.f32 %v5828_v13, %v5753_v52 }
 0xb6d   :  { %v5832_v45 = vsel %vm5831_vm6, %v5827_v8, -inf }
 0xb6e   :  { %v5834_v1 = vsel %vm5833_vm4, %v5829_v16, -inf }
 0xb6f   :  { %v5835_v17 = vmax.f32 %v5832_v45, %v5834_v1 }
 0xb71   :  { %5836 = vmax.xlane.f32.xlu0 %v5835_v17 }
 0xb9c   :  { %v6002_v28 = vpop.f32.mrb[20].mxu1 }
 0xb9d   :  { %v6003_v30 = vadd.f32 %v6002_v28, %v5929_v15  ;;  %v6004_v31 = vpop.f32.mrb[21].mxu1 }
 0xb9e   :  { %v6005_v32 = vadd.f32 %v6004_v31, %v5933_v27 }
 0xb9f   :  { %v6007_v34 = vmax.f32 %v6003_v30, 0.0 }
 0xba0   :  { %v6008_v33 = vmax.f32 %v6005_v32, 0.0 }
 0xba2   :  { %6276 = vmatprep.mubr.msk.f32.mxu1 %vm6029_vm15, %v6008_v33 }
 0xba3   :  { %6102 = vmatmul.mubr.f32.vlgmr.msra.gmra.mrb[22].mxu1 %v6007_v34 }
 0xbfe   :  { %v5837_v20 = vpop.xlane.xlu0 %5836 }
 0xbff   :  { %v5838_v22 = vsub.f32 %v5827_v8, %v5837_v20  ;;  %v5839_v36 = vsub.f32 %v5829_v16, %v5837_v20 }
 0xc01   :  { %v5840_v26 = vmul.f32 1.442695, %v5838_v22  ;;  %v5842_v35 = vmul.f32 1.442695, %v5839_v36 }
 0xc03   :  { %7302 = vpow2.f32 %v5840_v26 }
 0xc04   :  { %7304 = vpow2.f32 %v5842_v35 }
 0xc0d   :  { %v7303_v0 = vpop.eup %7302 }
 0xc0e   :  { %v7305_v14 = vpop.eup %7304  ;;  %v5844_v7 = vsel %vm5831_vm6, %v7303_v0, 0.0 }
 0xc0f   :  { %v5845_v49 = vsel %vm5833_vm4, %v7305_v14, 0.0 }
 0xc10   :  { %v5846_v57 = vadd.f32 %v5845_v49, %v5844_v7 }
 0xc12   :  { %5847 = vadd.xlane.f32.xlu0 %v5846_v57 }
 0xc76   :  { %v6103_v3 = vpop.f32.mrb[22].mxu1 }
 0xc77   :  { %v6104_v40 = vadd.f32 %v6103_v3, %v6028_v23  ;;  %v6105_v48 = vpop.f32.mrb[23].mxu1 }
 0xc79   :  { %7306 = vtanh.f32 %v6104_v40 }
 0xc83   :  { %v7307_v5 = vpop.eup %7306 }
 0xc84   :  { %6109 = vst.msk [vmem:[#allocation18] sm:$0x1] %vm6108_vm1, %v7307_v5 }
 0xc85   :  { %7431 = shalt.err (!%p7428_p2)
}
 0xc86   :  { %s7432_s30 = scalar_lea.hbm %s10359_s17, 16 }
 0xc87   :  { %p7433_p3 = scmp.ne.s32.totalorder %s10359_s17, %s7432_s30  ;;  %p7436_p4 = scmp.lt.u32.totalorder %s7432_s30, %s10359_s17 }
 0xc89   :  { %p7438_p5 = pnand %p7436_p4, %p7433_p3 }
 0xc8b   :  { %7441 = shalt.err (!%p7438_p5)
}
 0xc8c   :  { %6129 = dma.vmem_to_hbm [thread:$0]  %s6127_s0, 16, %s10359_s17, [#allocation19]   ;;  %vm5871_vm10 = vcmp.lt.s32.totalorder %v2779_v54, 140 }
 0xc8d   :  { %s7565_s18 = smov [#allocation17]  }
 0xc8e   :  { %s6116_s19 = sshll.u32 %s7565_s18, 4  ;;  %s6117_s19 = int_to_ptr.vmem [resolvable:$true] %s6116_s19 }
 0xc8f   :  { %s7442_s7 = scalar_lea.vmem %s6117_s19, 32  ;;  %p7447_p7 = scmp.lt.s32.totalorder %s6117_s19, %s6117_s19 }
 0xc90   :  { %p7443_p6 = scmp.ne.s32.totalorder %s6117_s19, %s7442_s7  ;;  %p7448_p8 = scmp.lt.s32.totalorder %s7442_s7, %s7442_s7 }
 0xc92   :  { %p7449_p9 = por %p7448_p8, %p7447_p7 }
 0xc94   :  { %p7450_p10 = pnand %p7449_p9, %p7443_p6 }
 0xc9f   :  { %v5848_v41 = vpop.xlane.xlu0 %5847 }
 0xca0   :  { %7308 = vlog2.f32 %v5848_v41 }
 0xcaa   :  { %v7309_v42 = vpop.eup %7308 }
 0xcab   :  { %v5850_v43 = vmul.f32 0.6931472, %v7309_v42 }
 0xcad   :  { %v5851_v44 = vsub.f32 %v5838_v22, %v5850_v43  ;;  %v5852_v24 = vsub.f32 %v5839_v36, %v5850_v43 }
 0xcaf   :  { %v5855_v58 = vcombine.low %v5851_v44, %v5852_v24 }
 0xcb1   :  { %v5862_v37 = vrot.slane %v5855_v58, %v8299_v2 }
 0xcb3   :  { %v5869_v60 = vrot.slane %v5862_v37, %v8299_v2 }
 0xcb5   :  { %5873 = vst.msk [vmem:[#allocation17] sm:$0x3] %vm5871_vm10, %v5869_v60 }
 0xcb6   :  { %7453 = shalt.err (!%p7450_p10)
}
 0xcb7   :  { %s7454_s21 = scalar_lea.hbm %s10358_s16, 32 }
 0xcb8   :  { %p7455_p11 = scmp.ne.s32.totalorder %s10358_s16, %s7454_s21  ;;  %p7458_p12 = scmp.lt.u32.totalorder %s7454_s21, %s10358_s16 }
 0xcba   :  { %p7460_p13 = pnand %p7458_p12, %p7455_p11 }
 0xcbc   :  { %7463 = shalt.err (!%p7460_p13)
}
 0xcbd   :  { %6119 = dma.vmem_to_hbm [thread:$0]  %s6117_s19, 32, %s10358_s16, [#allocation10]  }
 0xcbe   :  { %7472 = dma.done.wait [#allocation10], 32  }
 0xcbf   :  { %7473 = vsyncadd [#allocation10], 4294967264 }
 0xcc0   :  { %7474 = dma.done.wait [#allocation19], 16  }
 0xcc1   :  { %7475 = vsyncadd [#allocation19], 4294967280 }
 0xcc2   :  { %6136 = vsyncpa [#allocation9], 1 }
 0xcc3   :  { %6137 = vsyncpa [#allocation12], 1 }
 0xcc4   :  { %6138 = vsyncpa [#allocation15], 1 }
 0xcc5   :  { %6139 = vsyncpa [#allocation10], 1 }
 0xcc6   :  { %6140 = vsyncpa [#allocation19], 1 }
 0xcc7   :  { %6141 = vsyncmov [#allocation6] }
 0xcca   :  { %s6142_s23 = vpop.sfrf %6141 }
 0xccb   :  { %p6277_p0 = scmp.ne.s32.totalorder %s6142_s23, 0 }
 0xccd   :  { %6146 = shalt.err (%p6277_p0)  }

</bundles_post_ra>
